<compile_context>
chip_gen: v5e
topology: v5e:2x2
jax: 0.10.0
libtpu: 0.0.40
codegen_flags: <defaults>
</compile_context>

<pallas_src>
import functools

import jax
import jax.numpy as jnp
from jax.experimental import pallas as pl
from jax.experimental.pallas import tpu as pltpu


# ----------------------------------------------------------------------------
# Tiled fused matmul kernel:  O = act_out( (act_a(A) @ B) + shift )
# ----------------------------------------------------------------------------
def _mm_fused_kernel(a_ref, b_ref, shift_ref, o_ref, acc_ref, *, act_a, act_out):
    @pl.when(pl.program_id(2) == 0)
    def _():
        acc_ref[...] = jnp.zeros_like(acc_ref)

    a = a_ref[...]
    if act_a == "relu":
        a = jnp.maximum(a, 0.0)
    elif act_a == "leaky_relu":
        a = jnp.where(a >= 0, a, 0.2 * a)

    acc_ref[...] += jnp.dot(a, b_ref[...], preferred_element_type=jnp.float32)

    @pl.when(pl.program_id(2) == pl.num_programs(2) - 1)
    def _():
        y = acc_ref[...] + shift_ref[...]
        if act_out == "leaky_relu":
            y = jnp.where(y >= 0, y, 0.2 * y)
        elif act_out == "relu":
            y = jnp.maximum(y, 0.0)
        elif act_out == "tanh":
            y = jnp.tanh(y)
        o_ref[...] = y


def _round_up(v, m):
    return ((v + m - 1) // m) * m


def matmul_fused(a, b, shift=None, act_a="none", act_out="none"):
    """act_out((act_a(A) @ B) + shift), f32, tiled/pipelined on the MXU."""
    M, K = a.shape
    K2, N = b.shape
    assert K == K2
    a = a.astype(jnp.float32)
    b = b.astype(jnp.float32)
    if shift is None:
        shift = jnp.zeros((N,), jnp.float32)
    shift = shift.reshape(1, N).astype(jnp.float32)

    # (8,128)-aligned, lane-dense tiles; zero padding is exact for matmul.
    mp0 = _round_up(M, 8)
    tm = min(256, mp0)
    mp = _round_up(mp0, tm)
    kp0 = _round_up(K, 128)
    tk = min(256, kp0)
    kp = _round_up(kp0, tk)
    np0 = _round_up(N, 128)
    tn = min(256, np0)
    npad = _round_up(np0, tn)

    a_p = jnp.pad(a, ((0, mp - M), (0, kp - K)))
    b_p = jnp.pad(b, ((0, kp - K), (0, npad - N)))
    s_p = jnp.pad(shift, ((0, 0), (0, npad - N)))

    grid = (mp // tm, npad // tn, kp // tk)
    kernel = functools.partial(_mm_fused_kernel, act_a=act_a, act_out=act_out)

    out = pl.pallas_call(
        kernel,
        out_shape=jax.ShapeDtypeStruct((mp, npad), jnp.float32),
        grid_spec=pltpu.PrefetchScalarGridSpec(
            num_scalar_prefetch=0,
            grid=grid,
            in_specs=[
                pl.BlockSpec((tm, tk), lambda i, j, k: (i, k)),
                pl.BlockSpec((tk, tn), lambda i, j, k: (k, j)),
                pl.BlockSpec((1, tn), lambda i, j, k: (0, j)),
            ],
            out_specs=pl.BlockSpec((tm, tn), lambda i, j, k: (i, j)),
            scratch_shapes=[pltpu.VMEM((tm, tn), jnp.float32)],
        ),
        compiler_params=pltpu.CompilerParams(
            dimension_semantics=("parallel", "parallel", "arbitrary"),
            vmem_limit_bytes=32 * 1024 * 1024,
        ),
    )(a_p, b_p, s_p)
    return out[:M, :N]


# ----------------------------------------------------------------------------
# Conv (NHWC, im2col -> fused matmul) and 2x bilinear upsample (one matmul)
# ----------------------------------------------------------------------------
def conv2d_nhwc(x, w, stride, padding, scale=None, shift=None, act_out="none"):
    """x: (N,H,W,Cin) f32, w: (Cout,Cin,kh,kw) torch layout, no bias.
    BN scale folded into the weights; +shift and activation fused in-kernel."""
    n, h, wdim, cin = x.shape
    cout, cin2, kh, kw = w.shape
    assert cin == cin2
    hout = (h + 2 * padding - kh) // stride + 1
    wout = (wdim + 2 * padding - kw) // stride + 1

    xp = jnp.pad(x, ((0, 0), (padding, padding), (padding, padding), (0, 0)))
    cols = [
        xp[:, i:i + stride * hout:stride, j:j + stride * wout:stride, :]
        for i in range(kh) for j in range(kw)
    ]
    a = jnp.concatenate(cols, axis=-1).reshape(n * hout * wout, kh * kw * cin)

    # weight flattened to match (kh, kw, cin) column ordering
    b = jnp.transpose(w, (2, 3, 1, 0)).reshape(kh * kw * cin, cout)
    if scale is not None:
        b = b * scale[None, :]

    out = matmul_fused(a, b, shift=shift, act_out=act_out)
    return out.reshape(n, hout, wout, cout)


def _interp_matrix(out_size, in_size):
    """Bilinear interpolation matrix, align_corners=True (PyTorch semantics)."""
    if in_size == 1:
        return jnp.ones((out_size, 1), jnp.float32)
    idx = jnp.arange(out_size, dtype=jnp.float32)
    src = idx * (in_size - 1) / (out_size - 1)
    lo = jnp.clip(jnp.floor(src).astype(jnp.int32), 0, in_size - 1)
    hi = jnp.clip(lo + 1, 0, in_size - 1)
    frac = src - lo.astype(jnp.float32)
    m = jnp.zeros((out_size, in_size), jnp.float32)
    m = m.at[jnp.arange(out_size), lo].add(1.0 - frac)
    m = m.at[jnp.arange(out_size), hi].add(frac)
    return m


def upsample2x_bilinear_nhwc(x, act_in="none"):
    """nn.Upsample(scale_factor=2, mode='bilinear', align_corners=True), NHWC.
    Single fused matmul: rows = (N*C), K = H*W, cols = (2H*2W)."""
    n, h, w, c = x.shape
    ho, wo = 2 * h, 2 * w
    u = jnp.kron(_interp_matrix(ho, h), _interp_matrix(wo, w))   # (Ho*Wo, H*W)
    a = jnp.transpose(x, (0, 3, 1, 2)).reshape(n * c, h * w)
    out = matmul_fused(a, u.T, act_a=act_in)                     # (N*C, Ho*Wo)
    return jnp.transpose(out.reshape(n, c, ho, wo), (0, 2, 3, 1))


# ----------------------------------------------------------------------------
# UnetGeneratorBetterUpsampler parameters & forward (no skip concatenation,
# matching the reference module: up consumes only the submodule output).
# ----------------------------------------------------------------------------
def init_params(key, input_nc, output_nc, num_downs, ngf, inner_nc):
    """Deterministic synthetic parameters, blocks ordered outermost->innermost.
    Convs are bias-free (BatchNorm norm layer); BN is eval-mode with
    running_mean=0, running_var=1 and random affine (gamma, beta)."""
    cfgs = [dict(dn_in=input_nc, dn_out=ngf, dn_relu=False, dn_bn=False,
                 up_in=ngf, up_out=output_nc, up_bn=False, tanh=True)]
    for c_in, c_out in [(ngf, ngf * 2), (ngf * 2, ngf * 4), (ngf * 4, ngf * 8)]:
        cfgs.append(dict(dn_in=c_in, dn_out=c_out, dn_relu=True, dn_bn=True,
                         up_in=c_out, up_out=c_in, up_bn=True, tanh=False))
    for _ in range(num_downs - 5):
        cfgs.append(dict(dn_in=ngf * 8, dn_out=ngf * 8, dn_relu=True, dn_bn=True,
                         up_in=ngf * 8, up_out=ngf * 8, up_bn=True, tanh=False))
    cfgs.append(dict(dn_in=ngf * 8, dn_out=inner_nc, dn_relu=True, dn_bn=False,
                     up_in=inner_nc, up_out=ngf * 8, up_bn=True, tanh=False))

    params = []
    for cfg in cfgs:
        key, k1, k2, k3, k4, k5, k6 = jax.random.split(key, 7)
        p = dict(cfg)
        p["dn_w"] = 0.02 * jax.random.normal(
            k1, (cfg["dn_out"], cfg["dn_in"], 4, 4), jnp.float32)
        p["up_w"] = 0.02 * jax.random.normal(
            k2, (cfg["up_out"], cfg["up_in"], 3, 3), jnp.float32)
        if cfg["dn_bn"]:
            p["dn_gamma"] = 1.0 + 0.1 * jax.random.normal(k3, (cfg["dn_out"],), jnp.float32)
            p["dn_beta"] = 0.1 * jax.random.normal(k4, (cfg["dn_out"],), jnp.float32)
        if cfg["up_bn"]:
            p["up_gamma"] = 1.0 + 0.1 * jax.random.normal(k5, (cfg["up_out"],), jnp.float32)
            p["up_beta"] = 0.1 * jax.random.normal(k6, (cfg["up_out"],), jnp.float32)
        params.append(p)
    return params


def _bn_affine(gamma, beta, eps=1e-5):
    # eval-mode BatchNorm with running_mean=0, running_var=1
    return gamma / jnp.sqrt(1.0 + eps), beta


def unet_forward(x_nchw, params):
    """Returns (output, innermost latent x_fv), both NCHW, matching PyTorch."""
    h = jnp.transpose(x_nchw, (0, 2, 3, 1)).astype(jnp.float32)   # NHWC internally
    n_blocks = len(params)

    # ----- down path (outermost -> innermost) -----
    # The LeakyReLU that precedes block i+1's downconv is fused into block i's
    # conv(+BN) epilogue; the innermost conv stays raw so x_fv matches PyTorch.
    for i, p in enumerate(params):
        scale = shift = None
        if p["dn_bn"]:
            scale, shift = _bn_affine(p["dn_gamma"], p["dn_beta"])
        next_relu = (i + 1 < n_blocks) and params[i + 1]["dn_relu"]
        h = conv2d_nhwc(h, p["dn_w"], stride=2, padding=1,
                        scale=scale, shift=shift,
                        act_out="leaky_relu" if next_relu else "none")
    x_fv = h

    # ----- up path (innermost -> outermost) -----
    # Each block: [ReLU, Upsample, Conv3x3, BN-or-Tanh].  The consumer's ReLU is
    # fused into the producer conv's epilogue; the very first ReLU (on x_fv) is
    # fused as a pre-activation on the upsample's A operand.
    first = True
    for p in reversed(params):
        h = upsample2x_bilinear_nhwc(h, act_in="relu" if first else "none")
        first = False
        scale = shift = None
        if p["up_bn"]:
            scale, shift = _bn_affine(p["up_gamma"], p["up_beta"])
        h = conv2d_nhwc(h, p["up_w"], stride=1, padding=1,
                        scale=scale, shift=shift,
                        act_out="tanh" if p["tanh"] else "relu")

    out = jnp.transpose(h, (0, 3, 1, 2))
    x_fv_nchw = jnp.transpose(x_fv, (0, 3, 1, 2))
    return out, x_fv_nchw


# ----------------------------------------------------------------------------
if __name__ == "__main__":
    key = jax.random.PRNGKey(0)
    kp, kx = jax.random.split(key)

    # small but structurally faithful configuration
    input_nc, output_nc = 3, 3
    num_downs, ngf, inner_nc = 5, 8, 16
    N, H, W = 2, 32, 32  # 5 stride-2 downs: 32 -> 16 -> 8 -> 4 -> 2 -> 1

    params = init_params(kp, input_nc, output_nc, num_downs, ngf, inner_nc)
    x = jax.random.normal(kx, (N, input_nc, H, W), jnp.float32)

    fwd = jax.jit(lambda inp: unet_forward(inp, params))
    out, x_fv = fwd(x)
    jax.block_until_ready(out)
    jax.block_until_ready(x_fv)

    assert out.shape == (N, output_nc, H, W), out.shape
    assert x_fv.shape == (N, inner_nc, 1, 1), x_fv.shape
    assert bool(jnp.all(jnp.isfinite(out))) and bool(jnp.all(jnp.isfinite(x_fv)))
    print("KERNEL_OK")
</pallas_src>

<mosaic_0001>
module attributes {stable_mosaic.version = 11 : i64} {
  func.func @_mm_fused_kernel(%arg0: i32, %arg1: i32, %arg2: i32, %arg3: memref<256x128xf32, #tpu.memory_space<vmem>>, %arg4: memref<128x128xf32, #tpu.memory_space<vmem>>, %arg5: memref<1x128xf32, #tpu.memory_space<vmem>>, %arg6: memref<256x128xf32, #tpu.memory_space<vmem>>, %arg7: memref<256x128xf32, #tpu.memory_space<vmem>>) attributes {dimension_semantics = [#tpu.dimension_semantics<parallel>, #tpu.dimension_semantics<parallel>, #tpu.dimension_semantics<arbitrary>], iteration_bounds = array<i64: 2, 1, 1>, scalar_prefetch = 0 : i64, scratch_operands = 1 : i64, tpu.core_type = #tpu.core_type<tc>, window_params = [{transform_indices = @transform_0, window_bounds = array<i64: 256, 128>}, {transform_indices = @transform_1, window_bounds = array<i64: 128, 128>}, {transform_indices = @transform_2, window_bounds = array<i64: 1, 128>}, {transform_indices = @transform_3, window_bounds = array<i64: 256, 128>}]} {
    %c0_i32 = arith.constant 0 : i32
    %0 = arith.cmpi eq, %arg2, %c0_i32 : i32
    %1 = arith.extui %0 : i1 to i32
    %c0_i32_0 = arith.constant 0 : i32
    %2 = arith.cmpi ne, %1, %c0_i32_0 : i32
    scf.if %2 {
      %cst_10 = arith.constant 0.000000e+00 : f32
      %12 = vector.broadcast %cst_10 : f32 to vector<256x128xf32>
      %c0_11 = arith.constant 0 : index
      %c0_12 = arith.constant 0 : index
      %13 = vector.load %arg7[%c0_11, %c0_12] : memref<256x128xf32, #tpu.memory_space<vmem>>, vector<256x128xf32>
      tpu.vector_store %arg7[%c0_11, %c0_12], %12 {strides = array<i32>} : memref<256x128xf32, #tpu.memory_space<vmem>>, vector<256x128xf32>,
    } else {
    }
    %c0 = arith.constant 0 : index
    %c0_1 = arith.constant 0 : index
    %3 = vector.load %arg3[%c0, %c0_1] : memref<256x128xf32, #tpu.memory_space<vmem>>, vector<256x128xf32>
    %c0_2 = arith.constant 0 : index
    %c0_3 = arith.constant 0 : index
    %4 = vector.load %arg7[%c0_2, %c0_3] : memref<256x128xf32, #tpu.memory_space<vmem>>, vector<256x128xf32>
    %c0_4 = arith.constant 0 : index
    %c0_5 = arith.constant 0 : index
    %5 = vector.load %arg4[%c0_4, %c0_5] : memref<128x128xf32, #tpu.memory_space<vmem>>, vector<128x128xf32>
    %cst = arith.constant dense<0.000000e+00> : vector<256x128xf32>
    %6 = tpu.matmul %3, %5, %cst {dimension_numbers = #tpu.dot_dimension_numbers<[1], [0], [0], [1], [0, 0, 1, 1], [], []>} : vector<256x128xf32>, vector<128x128xf32>, vector<256x128xf32> -> vector<256x128xf32>
    %7 = arith.addf %4, %6 : vector<256x128xf32>
    %c0_6 = arith.constant 0 : index
    %c0_7 = arith.constant 0 : index
    %8 = vector.load %arg7[%c0_6, %c0_7] : memref<256x128xf32, #tpu.memory_space<vmem>>, vector<256x128xf32>
    tpu.vector_store %arg7[%c0_6, %c0_7], %7 {strides = array<i32>} : memref<256x128xf32, #tpu.memory_space<vmem>>, vector<256x128xf32>,
    %c0_i32_8 = arith.constant 0 : i32
    %9 = arith.cmpi eq, %arg2, %c0_i32_8 : i32
    %10 = arith.extui %9 : i1 to i32
    %c0_i32_9 = arith.constant 0 : i32
    %11 = arith.cmpi ne, %10, %c0_i32_9 : i32
    scf.if %11 {
      %c0_10 = arith.constant 0 : index
      %c0_11 = arith.constant 0 : index
      %12 = vector.load %arg7[%c0_10, %c0_11] : memref<256x128xf32, #tpu.memory_space<vmem>>, vector<256x128xf32>
      %c0_12 = arith.constant 0 : index
      %c0_13 = arith.constant 0 : index
      %13 = vector.load %arg5[%c0_12, %c0_13] : memref<1x128xf32, #tpu.memory_space<vmem>>, vector<1x128xf32>
      %14 = vector.broadcast %13 : vector<1x128xf32> to vector<256x128xf32>
      %15 = arith.addf %12, %14 : vector<256x128xf32>
      %cst_14 = arith.constant 0.000000e+00 : f32
      %16 = vector.broadcast %cst_14 : f32 to vector<256x128xf32>
      %17 = arith.cmpf oge, %15, %16 : vector<256x128xf32>
      %cst_15 = arith.constant 2.000000e-01 : f32
      %18 = vector.broadcast %cst_15 : f32 to vector<256x128xf32>
      %19 = arith.mulf %18, %15 : vector<256x128xf32>
      %20 = arith.select %17, %15, %19 : vector<256x128xi1>, vector<256x128xf32>
      %c0_16 = arith.constant 0 : index
      %c0_17 = arith.constant 0 : index
      %21 = vector.load %arg6[%c0_16, %c0_17] : memref<256x128xf32, #tpu.memory_space<vmem>>, vector<256x128xf32>
      tpu.vector_store %arg6[%c0_16, %c0_17], %20 {strides = array<i32>} : memref<256x128xf32, #tpu.memory_space<vmem>>, vector<256x128xf32>,
    } else {
    }
    return
  }
  func.func @transform_0(%arg0: i32, %arg1: i32, %arg2: i32) -> (i32, i32) {
    %c0_i32 = arith.constant 0 : i32
    return %arg0, %arg2 : i32, i32
  }
  func.func @transform_1(%arg0: i32, %arg1: i32, %arg2: i32) -> (i32, i32) {
    %c0_i32 = arith.constant 0 : i32
    return %arg2, %arg1 : i32, i32
  }
  func.func @transform_2(%arg0: i32, %arg1: i32, %arg2: i32) -> (i32, i32) {
    %c0_i32 = arith.constant 0 : i32
    %c0_i32_0 = arith.constant 0 : i32
    return %c0_i32, %arg1 : i32, i32
  }
  func.func @transform_3(%arg0: i32, %arg1: i32, %arg2: i32) -> (i32, i32) {
    %c0_i32 = arith.constant 0 : i32
    return %arg0, %arg1 : i32, i32
  }
}

module attributes {stable_mosaic.version = 11 : i64} {
  func.func @_mm_fused_kernel(%arg0: i32, %arg1: i32, %arg2: i32, %arg3: memref<128x128xf32, #tpu.memory_space<vmem>>, %arg4: memref<128x128xf32, #tpu.memory_space<vmem>>, %arg5: memref<1x128xf32, #tpu.memory_space<vmem>>, %arg6: memref<128x128xf32, #tpu.memory_space<vmem>>, %arg7: memref<128x128xf32, #tpu.memory_space<vmem>>) attributes {dimension_semantics = [#tpu.dimension_semantics<parallel>, #tpu.dimension_semantics<parallel>, #tpu.dimension_semantics<arbitrary>], iteration_bounds = array<i64: 1, 1, 1>, scalar_prefetch = 0 : i64, scratch_operands = 1 : i64, tpu.core_type = #tpu.core_type<tc>, window_params = [{transform_indices = @transform_0, window_bounds = array<i64: 128, 128>}, {transform_indices = @transform_1, window_bounds = array<i64: 128, 128>}, {transform_indices = @transform_2, window_bounds = array<i64: 1, 128>}, {transform_indices = @transform_3, window_bounds = array<i64: 128, 128>}]} {
    %c0_i32 = arith.constant 0 : i32
    %0 = arith.cmpi eq, %arg2, %c0_i32 : i32
    %1 = arith.extui %0 : i1 to i32
    %c0_i32_0 = arith.constant 0 : i32
    %2 = arith.cmpi ne, %1, %c0_i32_0 : i32
    scf.if %2 {
      %cst_10 = arith.constant 0.000000e+00 : f32
      %12 = vector.broadcast %cst_10 : f32 to vector<128x128xf32>
      %c0_11 = arith.constant 0 : index
      %c0_12 = arith.constant 0 : index
      %13 = vector.load %arg7[%c0_11, %c0_12] : memref<128x128xf32, #tpu.memory_space<vmem>>, vector<128x128xf32>
      tpu.vector_store %arg7[%c0_11, %c0_12], %12 {strides = array<i32>} : memref<128x128xf32, #tpu.memory_space<vmem>>, vector<128x128xf32>,
    } else {
    }
    %c0 = arith.constant 0 : index
    %c0_1 = arith.constant 0 : index
    %3 = vector.load %arg3[%c0, %c0_1] : memref<128x128xf32, #tpu.memory_space<vmem>>, vector<128x128xf32>
    %c0_2 = arith.constant 0 : index
    %c0_3 = arith.constant 0 : index
    %4 = vector.load %arg7[%c0_2, %c0_3] : memref<128x128xf32, #tpu.memory_space<vmem>>, vector<128x128xf32>
    %c0_4 = arith.constant 0 : index
    %c0_5 = arith.constant 0 : index
    %5 = vector.load %arg4[%c0_4, %c0_5] : memref<128x128xf32, #tpu.memory_space<vmem>>, vector<128x128xf32>
    %cst = arith.constant dense<0.000000e+00> : vector<128x128xf32>
    %6 = tpu.matmul %3, %5, %cst {dimension_numbers = #tpu.dot_dimension_numbers<[1], [0], [0], [1], [0, 0, 1, 1], [], []>} : vector<128x128xf32>, vector<128x128xf32>, vector<128x128xf32> -> vector<128x128xf32>
    %7 = arith.addf %4, %6 : vector<128x128xf32>
    %c0_6 = arith.constant 0 : index
    %c0_7 = arith.constant 0 : index
    %8 = vector.load %arg7[%c0_6, %c0_7] : memref<128x128xf32, #tpu.memory_space<vmem>>, vector<128x128xf32>
    tpu.vector_store %arg7[%c0_6, %c0_7], %7 {strides = array<i32>} : memref<128x128xf32, #tpu.memory_space<vmem>>, vector<128x128xf32>,
    %c0_i32_8 = arith.constant 0 : i32
    %9 = arith.cmpi eq, %arg2, %c0_i32_8 : i32
    %10 = arith.extui %9 : i1 to i32
    %c0_i32_9 = arith.constant 0 : i32
    %11 = arith.cmpi ne, %10, %c0_i32_9 : i32
    scf.if %11 {
      %c0_10 = arith.constant 0 : index
      %c0_11 = arith.constant 0 : index
      %12 = vector.load %arg7[%c0_10, %c0_11] : memref<128x128xf32, #tpu.memory_space<vmem>>, vector<128x128xf32>
      %c0_12 = arith.constant 0 : index
      %c0_13 = arith.constant 0 : index
      %13 = vector.load %arg5[%c0_12, %c0_13] : memref<1x128xf32, #tpu.memory_space<vmem>>, vector<1x128xf32>
      %14 = vector.broadcast %13 : vector<1x128xf32> to vector<128x128xf32>
      %15 = arith.addf %12, %14 : vector<128x128xf32>
      %cst_14 = arith.constant 0.000000e+00 : f32
      %16 = vector.broadcast %cst_14 : f32 to vector<128x128xf32>
      %17 = arith.cmpf oge, %15, %16 : vector<128x128xf32>
      %cst_15 = arith.constant 2.000000e-01 : f32
      %18 = vector.broadcast %cst_15 : f32 to vector<128x128xf32>
      %19 = arith.mulf %18, %15 : vector<128x128xf32>
      %20 = arith.select %17, %15, %19 : vector<128x128xi1>, vector<128x128xf32>
      %c0_16 = arith.constant 0 : index
      %c0_17 = arith.constant 0 : index
      %21 = vector.load %arg6[%c0_16, %c0_17] : memref<128x128xf32, #tpu.memory_space<vmem>>, vector<128x128xf32>
      tpu.vector_store %arg6[%c0_16, %c0_17], %20 {strides = array<i32>} : memref<128x128xf32, #tpu.memory_space<vmem>>, vector<128x128xf32>,
    } else {
    }
    return
  }
  func.func @transform_0(%arg0: i32, %arg1: i32, %arg2: i32) -> (i32, i32) {
    %c0_i32 = arith.constant 0 : i32
    return %arg0, %arg2 : i32, i32
  }
  func.func @transform_1(%arg0: i32, %arg1: i32, %arg2: i32) -> (i32, i32) {
    %c0_i32 = arith.constant 0 : i32
    return %arg2, %arg1 : i32, i32
  }
  func.func @transform_2(%arg0: i32, %arg1: i32, %arg2: i32) -> (i32, i32) {
    %c0_i32 = arith.constant 0 : i32
    %c0_i32_0 = arith.constant 0 : i32
    return %c0_i32, %arg1 : i32, i32
  }
  func.func @transform_3(%arg0: i32, %arg1: i32, %arg2: i32) -> (i32, i32) {
    %c0_i32 = arith.constant 0 : i32
    return %arg0, %arg1 : i32, i32
  }
}

module attributes {stable_mosaic.version = 11 : i64} {
  func.func @_mm_fused_kernel(%arg0: i32, %arg1: i32, %arg2: i32, %arg3: memref<32x256xf32, #tpu.memory_space<vmem>>, %arg4: memref<256x128xf32, #tpu.memory_space<vmem>>, %arg5: memref<1x128xf32, #tpu.memory_space<vmem>>, %arg6: memref<32x128xf32, #tpu.memory_space<vmem>>, %arg7: memref<32x128xf32, #tpu.memory_space<vmem>>) attributes {dimension_semantics = [#tpu.dimension_semantics<parallel>, #tpu.dimension_semantics<parallel>, #tpu.dimension_semantics<arbitrary>], iteration_bounds = array<i64: 1, 1, 1>, scalar_prefetch = 0 : i64, scratch_operands = 1 : i64, tpu.core_type = #tpu.core_type<tc>, window_params = [{transform_indices = @transform_0, window_bounds = array<i64: 32, 256>}, {transform_indices = @transform_1, window_bounds = array<i64: 256, 128>}, {transform_indices = @transform_2, window_bounds = array<i64: 1, 128>}, {transform_indices = @transform_3, window_bounds = array<i64: 32, 128>}]} {
    %c0_i32 = arith.constant 0 : i32
    %0 = arith.cmpi eq, %arg2, %c0_i32 : i32
    %1 = arith.extui %0 : i1 to i32
    %c0_i32_0 = arith.constant 0 : i32
    %2 = arith.cmpi ne, %1, %c0_i32_0 : i32
    scf.if %2 {
      %cst_10 = arith.constant 0.000000e+00 : f32
      %12 = vector.broadcast %cst_10 : f32 to vector<32x128xf32>
      %c0_11 = arith.constant 0 : index
      %c0_12 = arith.constant 0 : index
      %13 = vector.load %arg7[%c0_11, %c0_12] : memref<32x128xf32, #tpu.memory_space<vmem>>, vector<32x128xf32>
      tpu.vector_store %arg7[%c0_11, %c0_12], %12 {strides = array<i32>} : memref<32x128xf32, #tpu.memory_space<vmem>>, vector<32x128xf32>,
    } else {
    }
    %c0 = arith.constant 0 : index
    %c0_1 = arith.constant 0 : index
    %3 = vector.load %arg3[%c0, %c0_1] : memref<32x256xf32, #tpu.memory_space<vmem>>, vector<32x256xf32>
    %c0_2 = arith.constant 0 : index
    %c0_3 = arith.constant 0 : index
    %4 = vector.load %arg7[%c0_2, %c0_3] : memref<32x128xf32, #tpu.memory_space<vmem>>, vector<32x128xf32>
    %c0_4 = arith.constant 0 : index
    %c0_5 = arith.constant 0 : index
    %5 = vector.load %arg4[%c0_4, %c0_5] : memref<256x128xf32, #tpu.memory_space<vmem>>, vector<256x128xf32>
    %cst = arith.constant dense<0.000000e+00> : vector<32x128xf32>
    %6 = tpu.matmul %3, %5, %cst {dimension_numbers = #tpu.dot_dimension_numbers<[1], [0], [0], [1], [0, 0, 1, 1], [], []>} : vector<32x256xf32>, vector<256x128xf32>, vector<32x128xf32> -> vector<32x128xf32>
    %7 = arith.addf %4, %6 : vector<32x128xf32>
    %c0_6 = arith.constant 0 : index
    %c0_7 = arith.constant 0 : index
    %8 = vector.load %arg7[%c0_6, %c0_7] : memref<32x128xf32, #tpu.memory_space<vmem>>, vector<32x128xf32>
    tpu.vector_store %arg7[%c0_6, %c0_7], %7 {strides = array<i32>} : memref<32x128xf32, #tpu.memory_space<vmem>>, vector<32x128xf32>,
    %c0_i32_8 = arith.constant 0 : i32
    %9 = arith.cmpi eq, %arg2, %c0_i32_8 : i32
    %10 = arith.extui %9 : i1 to i32
    %c0_i32_9 = arith.constant 0 : i32
    %11 = arith.cmpi ne, %10, %c0_i32_9 : i32
    scf.if %11 {
      %c0_10 = arith.constant 0 : index
      %c0_11 = arith.constant 0 : index
      %12 = vector.load %arg7[%c0_10, %c0_11] : memref<32x128xf32, #tpu.memory_space<vmem>>, vector<32x128xf32>
      %c0_12 = arith.constant 0 : index
      %c0_13 = arith.constant 0 : index
      %13 = vector.load %arg5[%c0_12, %c0_13] : memref<1x128xf32, #tpu.memory_space<vmem>>, vector<1x128xf32>
      %14 = vector.broadcast %13 : vector<1x128xf32> to vector<32x128xf32>
      %15 = arith.addf %12, %14 : vector<32x128xf32>
      %cst_14 = arith.constant 0.000000e+00 : f32
      %16 = vector.broadcast %cst_14 : f32 to vector<32x128xf32>
      %17 = arith.cmpf oge, %15, %16 : vector<32x128xf32>
      %cst_15 = arith.constant 2.000000e-01 : f32
      %18 = vector.broadcast %cst_15 : f32 to vector<32x128xf32>
      %19 = arith.mulf %18, %15 : vector<32x128xf32>
      %20 = arith.select %17, %15, %19 : vector<32x128xi1>, vector<32x128xf32>
      %c0_16 = arith.constant 0 : index
      %c0_17 = arith.constant 0 : index
      %21 = vector.load %arg6[%c0_16, %c0_17] : memref<32x128xf32, #tpu.memory_space<vmem>>, vector<32x128xf32>
      tpu.vector_store %arg6[%c0_16, %c0_17], %20 {strides = array<i32>} : memref<32x128xf32, #tpu.memory_space<vmem>>, vector<32x128xf32>,
    } else {
    }
    return
  }
  func.func @transform_0(%arg0: i32, %arg1: i32, %arg2: i32) -> (i32, i32) {
    %c0_i32 = arith.constant 0 : i32
    return %arg0, %arg2 : i32, i32
  }
  func.func @transform_1(%arg0: i32, %arg1: i32, %arg2: i32) -> (i32, i32) {
    %c0_i32 = arith.constant 0 : i32
    return %arg2, %arg1 : i32, i32
  }
  func.func @transform_2(%arg0: i32, %arg1: i32, %arg2: i32) -> (i32, i32) {
    %c0_i32 = arith.constant 0 : i32
    %c0_i32_0 = arith.constant 0 : i32
    return %c0_i32, %arg1 : i32, i32
  }
  func.func @transform_3(%arg0: i32, %arg1: i32, %arg2: i32) -> (i32, i32) {
    %c0_i32 = arith.constant 0 : i32
    return %arg0, %arg1 : i32, i32
  }
}

module attributes {stable_mosaic.version = 11 : i64} {
  func.func @_mm_fused_kernel(%arg0: i32, %arg1: i32, %arg2: i32, %arg3: memref<8x256xf32, #tpu.memory_space<vmem>>, %arg4: memref<256x128xf32, #tpu.memory_space<vmem>>, %arg5: memref<1x128xf32, #tpu.memory_space<vmem>>, %arg6: memref<8x128xf32, #tpu.memory_space<vmem>>, %arg7: memref<8x128xf32, #tpu.memory_space<vmem>>) attributes {dimension_semantics = [#tpu.dimension_semantics<parallel>, #tpu.dimension_semantics<parallel>, #tpu.dimension_semantics<arbitrary>], iteration_bounds = array<i64: 1, 1, 2>, scalar_prefetch = 0 : i64, scratch_operands = 1 : i64, tpu.core_type = #tpu.core_type<tc>, window_params = [{transform_indices = @transform_0, window_bounds = array<i64: 8, 256>}, {transform_indices = @transform_1, window_bounds = array<i64: 256, 128>}, {transform_indices = @transform_2, window_bounds = array<i64: 1, 128>}, {transform_indices = @transform_3, window_bounds = array<i64: 8, 128>}]} {
    %c0_i32 = arith.constant 0 : i32
    %0 = arith.cmpi eq, %arg2, %c0_i32 : i32
    %1 = arith.extui %0 : i1 to i32
    %c0_i32_0 = arith.constant 0 : i32
    %2 = arith.cmpi ne, %1, %c0_i32_0 : i32
    scf.if %2 {
      %cst_9 = arith.constant 0.000000e+00 : f32
      %12 = vector.broadcast %cst_9 : f32 to vector<8x128xf32>
      %c0_10 = arith.constant 0 : index
      %c0_11 = arith.constant 0 : index
      %13 = vector.load %arg7[%c0_10, %c0_11] : memref<8x128xf32, #tpu.memory_space<vmem>>, vector<8x128xf32>
      tpu.vector_store %arg7[%c0_10, %c0_11], %12 {strides = array<i32>} : memref<8x128xf32, #tpu.memory_space<vmem>>, vector<8x128xf32>,
    } else {
    }
    %c0 = arith.constant 0 : index
    %c0_1 = arith.constant 0 : index
    %3 = vector.load %arg3[%c0, %c0_1] : memref<8x256xf32, #tpu.memory_space<vmem>>, vector<8x256xf32>
    %c0_2 = arith.constant 0 : index
    %c0_3 = arith.constant 0 : index
    %4 = vector.load %arg7[%c0_2, %c0_3] : memref<8x128xf32, #tpu.memory_space<vmem>>, vector<8x128xf32>
    %c0_4 = arith.constant 0 : index
    %c0_5 = arith.constant 0 : index
    %5 = vector.load %arg4[%c0_4, %c0_5] : memref<256x128xf32, #tpu.memory_space<vmem>>, vector<256x128xf32>
    %cst = arith.constant dense<0.000000e+00> : vector<8x128xf32>
    %6 = tpu.matmul %3, %5, %cst {dimension_numbers = #tpu.dot_dimension_numbers<[1], [0], [0], [1], [0, 0, 1, 1], [], []>} : vector<8x256xf32>, vector<256x128xf32>, vector<8x128xf32> -> vector<8x128xf32>
    %7 = arith.addf %4, %6 : vector<8x128xf32>
    %c0_6 = arith.constant 0 : index
    %c0_7 = arith.constant 0 : index
    %8 = vector.load %arg7[%c0_6, %c0_7] : memref<8x128xf32, #tpu.memory_space<vmem>>, vector<8x128xf32>
    tpu.vector_store %arg7[%c0_6, %c0_7], %7 {strides = array<i32>} : memref<8x128xf32, #tpu.memory_space<vmem>>, vector<8x128xf32>,
    %c1_i32 = arith.constant 1 : i32
    %9 = arith.cmpi eq, %arg2, %c1_i32 : i32
    %10 = arith.extui %9 : i1 to i32
    %c0_i32_8 = arith.constant 0 : i32
    %11 = arith.cmpi ne, %10, %c0_i32_8 : i32
    scf.if %11 {
      %c0_9 = arith.constant 0 : index
      %c0_10 = arith.constant 0 : index
      %12 = vector.load %arg7[%c0_9, %c0_10] : memref<8x128xf32, #tpu.memory_space<vmem>>, vector<8x128xf32>
      %c0_11 = arith.constant 0 : index
      %c0_12 = arith.constant 0 : index
      %13 = vector.load %arg5[%c0_11, %c0_12] : memref<1x128xf32, #tpu.memory_space<vmem>>, vector<1x128xf32>
      %14 = vector.broadcast %13 : vector<1x128xf32> to vector<8x128xf32>
      %15 = arith.addf %12, %14 : vector<8x128xf32>
      %cst_13 = arith.constant 0.000000e+00 : f32
      %16 = vector.broadcast %cst_13 : f32 to vector<8x128xf32>
      %17 = arith.cmpf oge, %15, %16 : vector<8x128xf32>
      %cst_14 = arith.constant 2.000000e-01 : f32
      %18 = vector.broadcast %cst_14 : f32 to vector<8x128xf32>
      %19 = arith.mulf %18, %15 : vector<8x128xf32>
      %20 = arith.select %17, %15, %19 : vector<8x128xi1>, vector<8x128xf32>
      %c0_15 = arith.constant 0 : index
      %c0_16 = arith.constant 0 : index
      %21 = vector.load %arg6[%c0_15, %c0_16] : memref<8x128xf32, #tpu.memory_space<vmem>>, vector<8x128xf32>
      tpu.vector_store %arg6[%c0_15, %c0_16], %20 {strides = array<i32>} : memref<8x128xf32, #tpu.memory_space<vmem>>, vector<8x128xf32>,
    } else {
    }
    return
  }
  func.func @transform_0(%arg0: i32, %arg1: i32, %arg2: i32) -> (i32, i32) {
    %c0_i32 = arith.constant 0 : i32
    return %arg0, %arg2 : i32, i32
  }
  func.func @transform_1(%arg0: i32, %arg1: i32, %arg2: i32) -> (i32, i32) {
    %c0_i32 = arith.constant 0 : i32
    return %arg2, %arg1 : i32, i32
  }
  func.func @transform_2(%arg0: i32, %arg1: i32, %arg2: i32) -> (i32, i32) {
    %c0_i32 = arith.constant 0 : i32
    %c0_i32_0 = arith.constant 0 : i32
    return %c0_i32, %arg1 : i32, i32
  }
  func.func @transform_3(%arg0: i32, %arg1: i32, %arg2: i32) -> (i32, i32) {
    %c0_i32 = arith.constant 0 : i32
    return %arg0, %arg1 : i32, i32
  }
}

module attributes {stable_mosaic.version = 11 : i64} {
  func.func @_mm_fused_kernel(%arg0: i32, %arg1: i32, %arg2: i32, %arg3: memref<8x256xf32, #tpu.memory_space<vmem>>, %arg4: memref<256x128xf32, #tpu.memory_space<vmem>>, %arg5: memref<1x128xf32, #tpu.memory_space<vmem>>, %arg6: memref<8x128xf32, #tpu.memory_space<vmem>>, %arg7: memref<8x128xf32, #tpu.memory_space<vmem>>) attributes {dimension_semantics = [#tpu.dimension_semantics<parallel>, #tpu.dimension_semantics<parallel>, #tpu.dimension_semantics<arbitrary>], iteration_bounds = array<i64: 1, 1, 4>, scalar_prefetch = 0 : i64, scratch_operands = 1 : i64, tpu.core_type = #tpu.core_type<tc>, window_params = [{transform_indices = @transform_0, window_bounds = array<i64: 8, 256>}, {transform_indices = @transform_1, window_bounds = array<i64: 256, 128>}, {transform_indices = @transform_2, window_bounds = array<i64: 1, 128>}, {transform_indices = @transform_3, window_bounds = array<i64: 8, 128>}]} {
    %c0_i32 = arith.constant 0 : i32
    %0 = arith.cmpi eq, %arg2, %c0_i32 : i32
    %1 = arith.extui %0 : i1 to i32
    %c0_i32_0 = arith.constant 0 : i32
    %2 = arith.cmpi ne, %1, %c0_i32_0 : i32
    scf.if %2 {
      %cst_9 = arith.constant 0.000000e+00 : f32
      %12 = vector.broadcast %cst_9 : f32 to vector<8x128xf32>
      %c0_10 = arith.constant 0 : index
      %c0_11 = arith.constant 0 : index
      %13 = vector.load %arg7[%c0_10, %c0_11] : memref<8x128xf32, #tpu.memory_space<vmem>>, vector<8x128xf32>
      tpu.vector_store %arg7[%c0_10, %c0_11], %12 {strides = array<i32>} : memref<8x128xf32, #tpu.memory_space<vmem>>, vector<8x128xf32>,
    } else {
    }
    %c0 = arith.constant 0 : index
    %c0_1 = arith.constant 0 : index
    %3 = vector.load %arg3[%c0, %c0_1] : memref<8x256xf32, #tpu.memory_space<vmem>>, vector<8x256xf32>
    %c0_2 = arith.constant 0 : index
    %c0_3 = arith.constant 0 : index
    %4 = vector.load %arg7[%c0_2, %c0_3] : memref<8x128xf32, #tpu.memory_space<vmem>>, vector<8x128xf32>
    %c0_4 = arith.constant 0 : index
    %c0_5 = arith.constant 0 : index
    %5 = vector.load %arg4[%c0_4, %c0_5] : memref<256x128xf32, #tpu.memory_space<vmem>>, vector<256x128xf32>
    %cst = arith.constant dense<0.000000e+00> : vector<8x128xf32>
    %6 = tpu.matmul %3, %5, %cst {dimension_numbers = #tpu.dot_dimension_numbers<[1], [0], [0], [1], [0, 0, 1, 1], [], []>} : vector<8x256xf32>, vector<256x128xf32>, vector<8x128xf32> -> vector<8x128xf32>
    %7 = arith.addf %4, %6 : vector<8x128xf32>
    %c0_6 = arith.constant 0 : index
    %c0_7 = arith.constant 0 : index
    %8 = vector.load %arg7[%c0_6, %c0_7] : memref<8x128xf32, #tpu.memory_space<vmem>>, vector<8x128xf32>
    tpu.vector_store %arg7[%c0_6, %c0_7], %7 {strides = array<i32>} : memref<8x128xf32, #tpu.memory_space<vmem>>, vector<8x128xf32>,
    %c3_i32 = arith.constant 3 : i32
    %9 = arith.cmpi eq, %arg2, %c3_i32 : i32
    %10 = arith.extui %9 : i1 to i32
    %c0_i32_8 = arith.constant 0 : i32
    %11 = arith.cmpi ne, %10, %c0_i32_8 : i32
    scf.if %11 {
      %c0_9 = arith.constant 0 : index
      %c0_10 = arith.constant 0 : index
      %12 = vector.load %arg7[%c0_9, %c0_10] : memref<8x128xf32, #tpu.memory_space<vmem>>, vector<8x128xf32>
      %c0_11 = arith.constant 0 : index
      %c0_12 = arith.constant 0 : index
      %13 = vector.load %arg5[%c0_11, %c0_12] : memref<1x128xf32, #tpu.memory_space<vmem>>, vector<1x128xf32>
      %14 = vector.broadcast %13 : vector<1x128xf32> to vector<8x128xf32>
      %15 = arith.addf %12, %14 : vector<8x128xf32>
      %c0_13 = arith.constant 0 : index
      %c0_14 = arith.constant 0 : index
      %16 = vector.load %arg6[%c0_13, %c0_14] : memref<8x128xf32, #tpu.memory_space<vmem>>, vector<8x128xf32>
      tpu.vector_store %arg6[%c0_13, %c0_14], %15 {strides = array<i32>} : memref<8x128xf32, #tpu.memory_space<vmem>>, vector<8x128xf32>,
    } else {
    }
    return
  }
  func.func @transform_0(%arg0: i32, %arg1: i32, %arg2: i32) -> (i32, i32) {
    %c0_i32 = arith.constant 0 : i32
    return %arg0, %arg2 : i32, i32
  }
  func.func @transform_1(%arg0: i32, %arg1: i32, %arg2: i32) -> (i32, i32) {
    %c0_i32 = arith.constant 0 : i32
    return %arg2, %arg1 : i32, i32
  }
  func.func @transform_2(%arg0: i32, %arg1: i32, %arg2: i32) -> (i32, i32) {
    %c0_i32 = arith.constant 0 : i32
    %c0_i32_0 = arith.constant 0 : i32
    return %c0_i32, %arg1 : i32, i32
  }
  func.func @transform_3(%arg0: i32, %arg1: i32, %arg2: i32) -> (i32, i32) {
    %c0_i32 = arith.constant 0 : i32
    return %arg0, %arg1 : i32, i32
  }
}

module attributes {stable_mosaic.version = 11 : i64} {
  func.func @_mm_fused_kernel(%arg0: i32, %arg1: i32, %arg2: i32, %arg3: memref<32x128xf32, #tpu.memory_space<vmem>>, %arg4: memref<128x128xf32, #tpu.memory_space<vmem>>, %arg5: memref<1x128xf32, #tpu.memory_space<vmem>>, %arg6: memref<32x128xf32, #tpu.memory_space<vmem>>, %arg7: memref<32x128xf32, #tpu.memory_space<vmem>>) attributes {dimension_semantics = [#tpu.dimension_semantics<parallel>, #tpu.dimension_semantics<parallel>, #tpu.dimension_semantics<arbitrary>], iteration_bounds = array<i64: 1, 1, 1>, scalar_prefetch = 0 : i64, scratch_operands = 1 : i64, tpu.core_type = #tpu.core_type<tc>, window_params = [{transform_indices = @transform_0, window_bounds = array<i64: 32, 128>}, {transform_indices = @transform_1, window_bounds = array<i64: 128, 128>}, {transform_indices = @transform_2, window_bounds = array<i64: 1, 128>}, {transform_indices = @transform_3, window_bounds = array<i64: 32, 128>}]} {
    %c0_i32 = arith.constant 0 : i32
    %0 = arith.cmpi eq, %arg2, %c0_i32 : i32
    %1 = arith.extui %0 : i1 to i32
    %c0_i32_0 = arith.constant 0 : i32
    %2 = arith.cmpi ne, %1, %c0_i32_0 : i32
    scf.if %2 {
      %cst_11 = arith.constant 0.000000e+00 : f32
      %14 = vector.broadcast %cst_11 : f32 to vector<32x128xf32>
      %c0_12 = arith.constant 0 : index
      %c0_13 = arith.constant 0 : index
      %15 = vector.load %arg7[%c0_12, %c0_13] : memref<32x128xf32, #tpu.memory_space<vmem>>, vector<32x128xf32>
      tpu.vector_store %arg7[%c0_12, %c0_13], %14 {strides = array<i32>} : memref<32x128xf32, #tpu.memory_space<vmem>>, vector<32x128xf32>,
    } else {
    }
    %c0 = arith.constant 0 : index
    %c0_1 = arith.constant 0 : index
    %3 = vector.load %arg3[%c0, %c0_1] : memref<32x128xf32, #tpu.memory_space<vmem>>, vector<32x128xf32>
    %cst = arith.constant 0.000000e+00 : f32
    %4 = vector.broadcast %cst : f32 to vector<32x128xf32>
    %5 = arith.maximumf %3, %4 : vector<32x128xf32>
    %c0_2 = arith.constant 0 : index
    %c0_3 = arith.constant 0 : index
    %6 = vector.load %arg7[%c0_2, %c0_3] : memref<32x128xf32, #tpu.memory_space<vmem>>, vector<32x128xf32>
    %c0_4 = arith.constant 0 : index
    %c0_5 = arith.constant 0 : index
    %7 = vector.load %arg4[%c0_4, %c0_5] : memref<128x128xf32, #tpu.memory_space<vmem>>, vector<128x128xf32>
    %cst_6 = arith.constant dense<0.000000e+00> : vector<32x128xf32>
    %8 = tpu.matmul %5, %7, %cst_6 {dimension_numbers = #tpu.dot_dimension_numbers<[1], [0], [0], [1], [0, 0, 1, 1], [], []>} : vector<32x128xf32>, vector<128x128xf32>, vector<32x128xf32> -> vector<32x128xf32>
    %9 = arith.addf %6, %8 : vector<32x128xf32>
    %c0_7 = arith.constant 0 : index
    %c0_8 = arith.constant 0 : index
    %10 = vector.load %arg7[%c0_7, %c0_8] : memref<32x128xf32, #tpu.memory_space<vmem>>, vector<32x128xf32>
    tpu.vector_store %arg7[%c0_7, %c0_8], %9 {strides = array<i32>} : memref<32x128xf32, #tpu.memory_space<vmem>>, vector<32x128xf32>,
    %c0_i32_9 = arith.constant 0 : i32
    %11 = arith.cmpi eq, %arg2, %c0_i32_9 : i32
    %12 = arith.extui %11 : i1 to i32
    %c0_i32_10 = arith.constant 0 : i32
    %13 = arith.cmpi ne, %12, %c0_i32_10 : i32
    scf.if %13 {
      %c0_11 = arith.constant 0 : index
      %c0_12 = arith.constant 0 : index
      %14 = vector.load %arg7[%c0_11, %c0_12] : memref<32x128xf32, #tpu.memory_space<vmem>>, vector<32x128xf32>
      %c0_13 = arith.constant 0 : index
      %c0_14 = arith.constant 0 : index
      %15 = vector.load %arg5[%c0_13, %c0_14] : memref<1x128xf32, #tpu.memory_space<vmem>>, vector<1x128xf32>
      %16 = vector.broadcast %15 : vector<1x128xf32> to vector<32x128xf32>
      %17 = arith.addf %14, %16 : vector<32x128xf32>
      %c0_15 = arith.constant 0 : index
      %c0_16 = arith.constant 0 : index
      %18 = vector.load %arg6[%c0_15, %c0_16] : memref<32x128xf32, #tpu.memory_space<vmem>>, vector<32x128xf32>
      tpu.vector_store %arg6[%c0_15, %c0_16], %17 {strides = array<i32>} : memref<32x128xf32, #tpu.memory_space<vmem>>, vector<32x128xf32>,
    } else {
    }
    return
  }
  func.func @transform_0(%arg0: i32, %arg1: i32, %arg2: i32) -> (i32, i32) {
    %c0_i32 = arith.constant 0 : i32
    return %arg0, %arg2 : i32, i32
  }
  func.func @transform_1(%arg0: i32, %arg1: i32, %arg2: i32) -> (i32, i32) {
    %c0_i32 = arith.constant 0 : i32
    return %arg2, %arg1 : i32, i32
  }
  func.func @transform_2(%arg0: i32, %arg1: i32, %arg2: i32) -> (i32, i32) {
    %c0_i32 = arith.constant 0 : i32
    %c0_i32_0 = arith.constant 0 : i32
    return %c0_i32, %arg1 : i32, i32
  }
  func.func @transform_3(%arg0: i32, %arg1: i32, %arg2: i32) -> (i32, i32) {
    %c0_i32 = arith.constant 0 : i32
    return %arg0, %arg1 : i32, i32
  }
}

module attributes {stable_mosaic.version = 11 : i64} {
  func.func @_mm_fused_kernel(%arg0: i32, %arg1: i32, %arg2: i32, %arg3: memref<8x256xf32, #tpu.memory_space<vmem>>, %arg4: memref<256x128xf32, #tpu.memory_space<vmem>>, %arg5: memref<1x128xf32, #tpu.memory_space<vmem>>, %arg6: memref<8x128xf32, #tpu.memory_space<vmem>>, %arg7: memref<8x128xf32, #tpu.memory_space<vmem>>) attributes {dimension_semantics = [#tpu.dimension_semantics<parallel>, #tpu.dimension_semantics<parallel>, #tpu.dimension_semantics<arbitrary>], iteration_bounds = array<i64: 1, 1, 1>, scalar_prefetch = 0 : i64, scratch_operands = 1 : i64, tpu.core_type = #tpu.core_type<tc>, window_params = [{transform_indices = @transform_0, window_bounds = array<i64: 8, 256>}, {transform_indices = @transform_1, window_bounds = array<i64: 256, 128>}, {transform_indices = @transform_2, window_bounds = array<i64: 1, 128>}, {transform_indices = @transform_3, window_bounds = array<i64: 8, 128>}]} {
    %c0_i32 = arith.constant 0 : i32
    %0 = arith.cmpi eq, %arg2, %c0_i32 : i32
    %1 = arith.extui %0 : i1 to i32
    %c0_i32_0 = arith.constant 0 : i32
    %2 = arith.cmpi ne, %1, %c0_i32_0 : i32
    scf.if %2 {
      %cst_10 = arith.constant 0.000000e+00 : f32
      %12 = vector.broadcast %cst_10 : f32 to vector<8x128xf32>
      %c0_11 = arith.constant 0 : index
      %c0_12 = arith.constant 0 : index
      %13 = vector.load %arg7[%c0_11, %c0_12] : memref<8x128xf32, #tpu.memory_space<vmem>>, vector<8x128xf32>
      tpu.vector_store %arg7[%c0_11, %c0_12], %12 {strides = array<i32>} : memref<8x128xf32, #tpu.memory_space<vmem>>, vector<8x128xf32>,
    } else {
    }
    %c0 = arith.constant 0 : index
    %c0_1 = arith.constant 0 : index
    %3 = vector.load %arg3[%c0, %c0_1] : memref<8x256xf32, #tpu.memory_space<vmem>>, vector<8x256xf32>
    %c0_2 = arith.constant 0 : index
    %c0_3 = arith.constant 0 : index
    %4 = vector.load %arg7[%c0_2, %c0_3] : memref<8x128xf32, #tpu.memory_space<vmem>>, vector<8x128xf32>
    %c0_4 = arith.constant 0 : index
    %c0_5 = arith.constant 0 : index
    %5 = vector.load %arg4[%c0_4, %c0_5] : memref<256x128xf32, #tpu.memory_space<vmem>>, vector<256x128xf32>
    %cst = arith.constant dense<0.000000e+00> : vector<8x128xf32>
    %6 = tpu.matmul %3, %5, %cst {dimension_numbers = #tpu.dot_dimension_numbers<[1], [0], [0], [1], [0, 0, 1, 1], [], []>} : vector<8x256xf32>, vector<256x128xf32>, vector<8x128xf32> -> vector<8x128xf32>
    %7 = arith.addf %4, %6 : vector<8x128xf32>
    %c0_6 = arith.constant 0 : index
    %c0_7 = arith.constant 0 : index
    %8 = vector.load %arg7[%c0_6, %c0_7] : memref<8x128xf32, #tpu.memory_space<vmem>>, vector<8x128xf32>
    tpu.vector_store %arg7[%c0_6, %c0_7], %7 {strides = array<i32>} : memref<8x128xf32, #tpu.memory_space<vmem>>, vector<8x128xf32>,
    %c0_i32_8 = arith.constant 0 : i32
    %9 = arith.cmpi eq, %arg2, %c0_i32_8 : i32
    %10 = arith.extui %9 : i1 to i32
    %c0_i32_9 = arith.constant 0 : i32
    %11 = arith.cmpi ne, %10, %c0_i32_9 : i32
    scf.if %11 {
      %c0_10 = arith.constant 0 : index
      %c0_11 = arith.constant 0 : index
      %12 = vector.load %arg7[%c0_10, %c0_11] : memref<8x128xf32, #tpu.memory_space<vmem>>, vector<8x128xf32>
      %c0_12 = arith.constant 0 : index
      %c0_13 = arith.constant 0 : index
      %13 = vector.load %arg5[%c0_12, %c0_13] : memref<1x128xf32, #tpu.memory_space<vmem>>, vector<1x128xf32>
      %14 = vector.broadcast %13 : vector<1x128xf32> to vector<8x128xf32>
      %15 = arith.addf %12, %14 : vector<8x128xf32>
      %cst_14 = arith.constant 0.000000e+00 : f32
      %16 = vector.broadcast %cst_14 : f32 to vector<8x128xf32>
      %17 = arith.maximumf %15, %16 : vector<8x128xf32>
      %c0_15 = arith.constant 0 : index
      %c0_16 = arith.constant 0 : index
      %18 = vector.load %arg6[%c0_15, %c0_16] : memref<8x128xf32, #tpu.memory_space<vmem>>, vector<8x128xf32>
      tpu.vector_store %arg6[%c0_15, %c0_16], %17 {strides = array<i32>} : memref<8x128xf32, #tpu.memory_space<vmem>>, vector<8x128xf32>,
    } else {
    }
    return
  }
  func.func @transform_0(%arg0: i32, %arg1: i32, %arg2: i32) -> (i32, i32) {
    %c0_i32 = arith.constant 0 : i32
    return %arg0, %arg2 : i32, i32
  }
  func.func @transform_1(%arg0: i32, %arg1: i32, %arg2: i32) -> (i32, i32) {
    %c0_i32 = arith.constant 0 : i32
    return %arg2, %arg1 : i32, i32
  }
  func.func @transform_2(%arg0: i32, %arg1: i32, %arg2: i32) -> (i32, i32) {
    %c0_i32 = arith.constant 0 : i32
    %c0_i32_0 = arith.constant 0 : i32
    return %c0_i32, %arg1 : i32, i32
  }
  func.func @transform_3(%arg0: i32, %arg1: i32, %arg2: i32) -> (i32, i32) {
    %c0_i32 = arith.constant 0 : i32
    return %arg0, %arg1 : i32, i32
  }
}

module attributes {stable_mosaic.version = 11 : i64} {
  func.func @_mm_fused_kernel(%arg0: i32, %arg1: i32, %arg2: i32, %arg3: memref<128x128xf32, #tpu.memory_space<vmem>>, %arg4: memref<128x128xf32, #tpu.memory_space<vmem>>, %arg5: memref<1x128xf32, #tpu.memory_space<vmem>>, %arg6: memref<128x128xf32, #tpu.memory_space<vmem>>, %arg7: memref<128x128xf32, #tpu.memory_space<vmem>>) attributes {dimension_semantics = [#tpu.dimension_semantics<parallel>, #tpu.dimension_semantics<parallel>, #tpu.dimension_semantics<arbitrary>], iteration_bounds = array<i64: 1, 1, 1>, scalar_prefetch = 0 : i64, scratch_operands = 1 : i64, tpu.core_type = #tpu.core_type<tc>, window_params = [{transform_indices = @transform_0, window_bounds = array<i64: 128, 128>}, {transform_indices = @transform_1, window_bounds = array<i64: 128, 128>}, {transform_indices = @transform_2, window_bounds = array<i64: 1, 128>}, {transform_indices = @transform_3, window_bounds = array<i64: 128, 128>}]} {
    %c0_i32 = arith.constant 0 : i32
    %0 = arith.cmpi eq, %arg2, %c0_i32 : i32
    %1 = arith.extui %0 : i1 to i32
    %c0_i32_0 = arith.constant 0 : i32
    %2 = arith.cmpi ne, %1, %c0_i32_0 : i32
    scf.if %2 {
      %cst_10 = arith.constant 0.000000e+00 : f32
      %12 = vector.broadcast %cst_10 : f32 to vector<128x128xf32>
      %c0_11 = arith.constant 0 : index
      %c0_12 = arith.constant 0 : index
      %13 = vector.load %arg7[%c0_11, %c0_12] : memref<128x128xf32, #tpu.memory_space<vmem>>, vector<128x128xf32>
      tpu.vector_store %arg7[%c0_11, %c0_12], %12 {strides = array<i32>} : memref<128x128xf32, #tpu.memory_space<vmem>>, vector<128x128xf32>,
    } else {
    }
    %c0 = arith.constant 0 : index
    %c0_1 = arith.constant 0 : index
    %3 = vector.load %arg3[%c0, %c0_1] : memref<128x128xf32, #tpu.memory_space<vmem>>, vector<128x128xf32>
    %c0_2 = arith.constant 0 : index
    %c0_3 = arith.constant 0 : index
    %4 = vector.load %arg7[%c0_2, %c0_3] : memref<128x128xf32, #tpu.memory_space<vmem>>, vector<128x128xf32>
    %c0_4 = arith.constant 0 : index
    %c0_5 = arith.constant 0 : index
    %5 = vector.load %arg4[%c0_4, %c0_5] : memref<128x128xf32, #tpu.memory_space<vmem>>, vector<128x128xf32>
    %cst = arith.constant dense<0.000000e+00> : vector<128x128xf32>
    %6 = tpu.matmul %3, %5, %cst {dimension_numbers = #tpu.dot_dimension_numbers<[1], [0], [0], [1], [0, 0, 1, 1], [], []>} : vector<128x128xf32>, vector<128x128xf32>, vector<128x128xf32> -> vector<128x128xf32>
    %7 = arith.addf %4, %6 : vector<128x128xf32>
    %c0_6 = arith.constant 0 : index
    %c0_7 = arith.constant 0 : index
    %8 = vector.load %arg7[%c0_6, %c0_7] : memref<128x128xf32, #tpu.memory_space<vmem>>, vector<128x128xf32>
    tpu.vector_store %arg7[%c0_6, %c0_7], %7 {strides = array<i32>} : memref<128x128xf32, #tpu.memory_space<vmem>>, vector<128x128xf32>,
    %c0_i32_8 = arith.constant 0 : i32
    %9 = arith.cmpi eq, %arg2, %c0_i32_8 : i32
    %10 = arith.extui %9 : i1 to i32
    %c0_i32_9 = arith.constant 0 : i32
    %11 = arith.cmpi ne, %10, %c0_i32_9 : i32
    scf.if %11 {
      %c0_10 = arith.constant 0 : index
      %c0_11 = arith.constant 0 : index
      %12 = vector.load %arg7[%c0_10, %c0_11] : memref<128x128xf32, #tpu.memory_space<vmem>>, vector<128x128xf32>
      %c0_12 = arith.constant 0 : index
      %c0_13 = arith.constant 0 : index
      %13 = vector.load %arg5[%c0_12, %c0_13] : memref<1x128xf32, #tpu.memory_space<vmem>>, vector<1x128xf32>
      %14 = vector.broadcast %13 : vector<1x128xf32> to vector<128x128xf32>
      %15 = arith.addf %12, %14 : vector<128x128xf32>
      %c0_14 = arith.constant 0 : index
      %c0_15 = arith.constant 0 : index
      %16 = vector.load %arg6[%c0_14, %c0_15] : memref<128x128xf32, #tpu.memory_space<vmem>>, vector<128x128xf32>
      tpu.vector_store %arg6[%c0_14, %c0_15], %15 {strides = array<i32>} : memref<128x128xf32, #tpu.memory_space<vmem>>, vector<128x128xf32>,
    } else {
    }
    return
  }
  func.func @transform_0(%arg0: i32, %arg1: i32, %arg2: i32) -> (i32, i32) {
    %c0_i32 = arith.constant 0 : i32
    return %arg0, %arg2 : i32, i32
  }
  func.func @transform_1(%arg0: i32, %arg1: i32, %arg2: i32) -> (i32, i32) {
    %c0_i32 = arith.constant 0 : i32
    return %arg2, %arg1 : i32, i32
  }
  func.func @transform_2(%arg0: i32, %arg1: i32, %arg2: i32) -> (i32, i32) {
    %c0_i32 = arith.constant 0 : i32
    %c0_i32_0 = arith.constant 0 : i32
    return %c0_i32, %arg1 : i32, i32
  }
  func.func @transform_3(%arg0: i32, %arg1: i32, %arg2: i32) -> (i32, i32) {
    %c0_i32 = arith.constant 0 : i32
    return %arg0, %arg1 : i32, i32
  }
}

module attributes {stable_mosaic.version = 11 : i64} {
  func.func @_mm_fused_kernel(%arg0: i32, %arg1: i32, %arg2: i32, %arg3: memref<32x256xf32, #tpu.memory_space<vmem>>, %arg4: memref<256x128xf32, #tpu.memory_space<vmem>>, %arg5: memref<1x128xf32, #tpu.memory_space<vmem>>, %arg6: memref<32x128xf32, #tpu.memory_space<vmem>>, %arg7: memref<32x128xf32, #tpu.memory_space<vmem>>) attributes {dimension_semantics = [#tpu.dimension_semantics<parallel>, #tpu.dimension_semantics<parallel>, #tpu.dimension_semantics<arbitrary>], iteration_bounds = array<i64: 1, 1, 3>, scalar_prefetch = 0 : i64, scratch_operands = 1 : i64, tpu.core_type = #tpu.core_type<tc>, window_params = [{transform_indices = @transform_0, window_bounds = array<i64: 32, 256>}, {transform_indices = @transform_1, window_bounds = array<i64: 256, 128>}, {transform_indices = @transform_2, window_bounds = array<i64: 1, 128>}, {transform_indices = @transform_3, window_bounds = array<i64: 32, 128>}]} {
    %c0_i32 = arith.constant 0 : i32
    %0 = arith.cmpi eq, %arg2, %c0_i32 : i32
    %1 = arith.extui %0 : i1 to i32
    %c0_i32_0 = arith.constant 0 : i32
    %2 = arith.cmpi ne, %1, %c0_i32_0 : i32
    scf.if %2 {
      %cst_9 = arith.constant 0.000000e+00 : f32
      %12 = vector.broadcast %cst_9 : f32 to vector<32x128xf32>
      %c0_10 = arith.constant 0 : index
      %c0_11 = arith.constant 0 : index
      %13 = vector.load %arg7[%c0_10, %c0_11] : memref<32x128xf32, #tpu.memory_space<vmem>>, vector<32x128xf32>
      tpu.vector_store %arg7[%c0_10, %c0_11], %12 {strides = array<i32>} : memref<32x128xf32, #tpu.memory_space<vmem>>, vector<32x128xf32>,
    } else {
    }
    %c0 = arith.constant 0 : index
    %c0_1 = arith.constant 0 : index
    %3 = vector.load %arg3[%c0, %c0_1] : memref<32x256xf32, #tpu.memory_space<vmem>>, vector<32x256xf32>
    %c0_2 = arith.constant 0 : index
    %c0_3 = arith.constant 0 : index
    %4 = vector.load %arg7[%c0_2, %c0_3] : memref<32x128xf32, #tpu.memory_space<vmem>>, vector<32x128xf32>
    %c0_4 = arith.constant 0 : index
    %c0_5 = arith.constant 0 : index
    %5 = vector.load %arg4[%c0_4, %c0_5] : memref<256x128xf32, #tpu.memory_space<vmem>>, vector<256x128xf32>
    %cst = arith.constant dense<0.000000e+00> : vector<32x128xf32>
    %6 = tpu.matmul %3, %5, %cst {dimension_numbers = #tpu.dot_dimension_numbers<[1], [0], [0], [1], [0, 0, 1, 1], [], []>} : vector<32x256xf32>, vector<256x128xf32>, vector<32x128xf32> -> vector<32x128xf32>
    %7 = arith.addf %4, %6 : vector<32x128xf32>
    %c0_6 = arith.constant 0 : index
    %c0_7 = arith.constant 0 : index
    %8 = vector.load %arg7[%c0_6, %c0_7] : memref<32x128xf32, #tpu.memory_space<vmem>>, vector<32x128xf32>
    tpu.vector_store %arg7[%c0_6, %c0_7], %7 {strides = array<i32>} : memref<32x128xf32, #tpu.memory_space<vmem>>, vector<32x128xf32>,
    %c2_i32 = arith.constant 2 : i32
    %9 = arith.cmpi eq, %arg2, %c2_i32 : i32
    %10 = arith.extui %9 : i1 to i32
    %c0_i32_8 = arith.constant 0 : i32
    %11 = arith.cmpi ne, %10, %c0_i32_8 : i32
    scf.if %11 {
      %c0_9 = arith.constant 0 : index
      %c0_10 = arith.constant 0 : index
      %12 = vector.load %arg7[%c0_9, %c0_10] : memref<32x128xf32, #tpu.memory_space<vmem>>, vector<32x128xf32>
      %c0_11 = arith.constant 0 : index
      %c0_12 = arith.constant 0 : index
      %13 = vector.load %arg5[%c0_11, %c0_12] : memref<1x128xf32, #tpu.memory_space<vmem>>, vector<1x128xf32>
      %14 = vector.broadcast %13 : vector<1x128xf32> to vector<32x128xf32>
      %15 = arith.addf %12, %14 : vector<32x128xf32>
      %cst_13 = arith.constant 0.000000e+00 : f32
      %16 = vector.broadcast %cst_13 : f32 to vector<32x128xf32>
      %17 = arith.maximumf %15, %16 : vector<32x128xf32>
      %c0_14 = arith.constant 0 : index
      %c0_15 = arith.constant 0 : index
      %18 = vector.load %arg6[%c0_14, %c0_15] : memref<32x128xf32, #tpu.memory_space<vmem>>, vector<32x128xf32>
      tpu.vector_store %arg6[%c0_14, %c0_15], %17 {strides = array<i32>} : memref<32x128xf32, #tpu.memory_space<vmem>>, vector<32x128xf32>,
    } else {
    }
    return
  }
  func.func @transform_0(%arg0: i32, %arg1: i32, %arg2: i32) -> (i32, i32) {
    %c0_i32 = arith.constant 0 : i32
    return %arg0, %arg2 : i32, i32
  }
  func.func @transform_1(%arg0: i32, %arg1: i32, %arg2: i32) -> (i32, i32) {
    %c0_i32 = arith.constant 0 : i32
    return %arg2, %arg1 : i32, i32
  }
  func.func @transform_2(%arg0: i32, %arg1: i32, %arg2: i32) -> (i32, i32) {
    %c0_i32 = arith.constant 0 : i32
    %c0_i32_0 = arith.constant 0 : i32
    return %c0_i32, %arg1 : i32, i32
  }
  func.func @transform_3(%arg0: i32, %arg1: i32, %arg2: i32) -> (i32, i32) {
    %c0_i32 = arith.constant 0 : i32
    return %arg0, %arg1 : i32, i32
  }
}

module attributes {stable_mosaic.version = 11 : i64} {
  func.func @_mm_fused_kernel(%arg0: i32, %arg1: i32, %arg2: i32, %arg3: memref<64x128xf32, #tpu.memory_space<vmem>>, %arg4: memref<128x128xf32, #tpu.memory_space<vmem>>, %arg5: memref<1x128xf32, #tpu.memory_space<vmem>>, %arg6: memref<64x128xf32, #tpu.memory_space<vmem>>, %arg7: memref<64x128xf32, #tpu.memory_space<vmem>>) attributes {dimension_semantics = [#tpu.dimension_semantics<parallel>, #tpu.dimension_semantics<parallel>, #tpu.dimension_semantics<arbitrary>], iteration_bounds = array<i64: 1, 1, 1>, scalar_prefetch = 0 : i64, scratch_operands = 1 : i64, tpu.core_type = #tpu.core_type<tc>, window_params = [{transform_indices = @transform_0, window_bounds = array<i64: 64, 128>}, {transform_indices = @transform_1, window_bounds = array<i64: 128, 128>}, {transform_indices = @transform_2, window_bounds = array<i64: 1, 128>}, {transform_indices = @transform_3, window_bounds = array<i64: 64, 128>}]} {
    %c0_i32 = arith.constant 0 : i32
    %0 = arith.cmpi eq, %arg2, %c0_i32 : i32
    %1 = arith.extui %0 : i1 to i32
    %c0_i32_0 = arith.constant 0 : i32
    %2 = arith.cmpi ne, %1, %c0_i32_0 : i32
    scf.if %2 {
      %cst_10 = arith.constant 0.000000e+00 : f32
      %12 = vector.broadcast %cst_10 : f32 to vector<64x128xf32>
      %c0_11 = arith.constant 0 : index
      %c0_12 = arith.constant 0 : index
      %13 = vector.load %arg7[%c0_11, %c0_12] : memref<64x128xf32, #tpu.memory_space<vmem>>, vector<64x128xf32>
      tpu.vector_store %arg7[%c0_11, %c0_12], %12 {strides = array<i32>} : memref<64x128xf32, #tpu.memory_space<vmem>>, vector<64x128xf32>,
    } else {
    }
    %c0 = arith.constant 0 : index
    %c0_1 = arith.constant 0 : index
    %3 = vector.load %arg3[%c0, %c0_1] : memref<64x128xf32, #tpu.memory_space<vmem>>, vector<64x128xf32>
    %c0_2 = arith.constant 0 : index
    %c0_3 = arith.constant 0 : index
    %4 = vector.load %arg7[%c0_2, %c0_3] : memref<64x128xf32, #tpu.memory_space<vmem>>, vector<64x128xf32>
    %c0_4 = arith.constant 0 : index
    %c0_5 = arith.constant 0 : index
    %5 = vector.load %arg4[%c0_4, %c0_5] : memref<128x128xf32, #tpu.memory_space<vmem>>, vector<128x128xf32>
    %cst = arith.constant dense<0.000000e+00> : vector<64x128xf32>
    %6 = tpu.matmul %3, %5, %cst {dimension_numbers = #tpu.dot_dimension_numbers<[1], [0], [0], [1], [0, 0, 1, 1], [], []>} : vector<64x128xf32>, vector<128x128xf32>, vector<64x128xf32> -> vector<64x128xf32>
    %7 = arith.addf %4, %6 : vector<64x128xf32>
    %c0_6 = arith.constant 0 : index
    %c0_7 = arith.constant 0 : index
    %8 = vector.load %arg7[%c0_6, %c0_7] : memref<64x128xf32, #tpu.memory_space<vmem>>, vector<64x128xf32>
    tpu.vector_store %arg7[%c0_6, %c0_7], %7 {strides = array<i32>} : memref<64x128xf32, #tpu.memory_space<vmem>>, vector<64x128xf32>,
    %c0_i32_8 = arith.constant 0 : i32
    %9 = arith.cmpi eq, %arg2, %c0_i32_8 : i32
    %10 = arith.extui %9 : i1 to i32
    %c0_i32_9 = arith.constant 0 : i32
    %11 = arith.cmpi ne, %10, %c0_i32_9 : i32
    scf.if %11 {
      %c0_10 = arith.constant 0 : index
      %c0_11 = arith.constant 0 : index
      %12 = vector.load %arg7[%c0_10, %c0_11] : memref<64x128xf32, #tpu.memory_space<vmem>>, vector<64x128xf32>
      %c0_12 = arith.constant 0 : index
      %c0_13 = arith.constant 0 : index
      %13 = vector.load %arg5[%c0_12, %c0_13] : memref<1x128xf32, #tpu.memory_space<vmem>>, vector<1x128xf32>
      %14 = vector.broadcast %13 : vector<1x128xf32> to vector<64x128xf32>
      %15 = arith.addf %12, %14 : vector<64x128xf32>
      %c0_14 = arith.constant 0 : index
      %c0_15 = arith.constant 0 : index
      %16 = vector.load %arg6[%c0_14, %c0_15] : memref<64x128xf32, #tpu.memory_space<vmem>>, vector<64x128xf32>
      tpu.vector_store %arg6[%c0_14, %c0_15], %15 {strides = array<i32>} : memref<64x128xf32, #tpu.memory_space<vmem>>, vector<64x128xf32>,
    } else {
    }
    return
  }
  func.func @transform_0(%arg0: i32, %arg1: i32, %arg2: i32) -> (i32, i32) {
    %c0_i32 = arith.constant 0 : i32
    return %arg0, %arg2 : i32, i32
  }
  func.func @transform_1(%arg0: i32, %arg1: i32, %arg2: i32) -> (i32, i32) {
    %c0_i32 = arith.constant 0 : i32
    return %arg2, %arg1 : i32, i32
  }
  func.func @transform_2(%arg0: i32, %arg1: i32, %arg2: i32) -> (i32, i32) {
    %c0_i32 = arith.constant 0 : i32
    %c0_i32_0 = arith.constant 0 : i32
    return %c0_i32, %arg1 : i32, i32
  }
  func.func @transform_3(%arg0: i32, %arg1: i32, %arg2: i32) -> (i32, i32) {
    %c0_i32 = arith.constant 0 : i32
    return %arg0, %arg1 : i32, i32
  }
}

module attributes {stable_mosaic.version = 11 : i64} {
  func.func @_mm_fused_kernel(%arg0: i32, %arg1: i32, %arg2: i32, %arg3: memref<128x256xf32, #tpu.memory_space<vmem>>, %arg4: memref<256x128xf32, #tpu.memory_space<vmem>>, %arg5: memref<1x128xf32, #tpu.memory_space<vmem>>, %arg6: memref<128x128xf32, #tpu.memory_space<vmem>>, %arg7: memref<128x128xf32, #tpu.memory_space<vmem>>) attributes {dimension_semantics = [#tpu.dimension_semantics<parallel>, #tpu.dimension_semantics<parallel>, #tpu.dimension_semantics<arbitrary>], iteration_bounds = array<i64: 1, 1, 2>, scalar_prefetch = 0 : i64, scratch_operands = 1 : i64, tpu.core_type = #tpu.core_type<tc>, window_params = [{transform_indices = @transform_0, window_bounds = array<i64: 128, 256>}, {transform_indices = @transform_1, window_bounds = array<i64: 256, 128>}, {transform_indices = @transform_2, window_bounds = array<i64: 1, 128>}, {transform_indices = @transform_3, window_bounds = array<i64: 128, 128>}]} {
    %c0_i32 = arith.constant 0 : i32
    %0 = arith.cmpi eq, %arg2, %c0_i32 : i32
    %1 = arith.extui %0 : i1 to i32
    %c0_i32_0 = arith.constant 0 : i32
    %2 = arith.cmpi ne, %1, %c0_i32_0 : i32
    scf.if %2 {
      %cst_9 = arith.constant 0.000000e+00 : f32
      %12 = vector.broadcast %cst_9 : f32 to vector<128x128xf32>
      %c0_10 = arith.constant 0 : index
      %c0_11 = arith.constant 0 : index
      %13 = vector.load %arg7[%c0_10, %c0_11] : memref<128x128xf32, #tpu.memory_space<vmem>>, vector<128x128xf32>
      tpu.vector_store %arg7[%c0_10, %c0_11], %12 {strides = array<i32>} : memref<128x128xf32, #tpu.memory_space<vmem>>, vector<128x128xf32>,
    } else {
    }
    %c0 = arith.constant 0 : index
    %c0_1 = arith.constant 0 : index
    %3 = vector.load %arg3[%c0, %c0_1] : memref<128x256xf32, #tpu.memory_space<vmem>>, vector<128x256xf32>
    %c0_2 = arith.constant 0 : index
    %c0_3 = arith.constant 0 : index
    %4 = vector.load %arg7[%c0_2, %c0_3] : memref<128x128xf32, #tpu.memory_space<vmem>>, vector<128x128xf32>
    %c0_4 = arith.constant 0 : index
    %c0_5 = arith.constant 0 : index
    %5 = vector.load %arg4[%c0_4, %c0_5] : memref<256x128xf32, #tpu.memory_space<vmem>>, vector<256x128xf32>
    %cst = arith.constant dense<0.000000e+00> : vector<128x128xf32>
    %6 = tpu.matmul %3, %5, %cst {dimension_numbers = #tpu.dot_dimension_numbers<[1], [0], [0], [1], [0, 0, 1, 1], [], []>} : vector<128x256xf32>, vector<256x128xf32>, vector<128x128xf32> -> vector<128x128xf32>
    %7 = arith.addf %4, %6 : vector<128x128xf32>
    %c0_6 = arith.constant 0 : index
    %c0_7 = arith.constant 0 : index
    %8 = vector.load %arg7[%c0_6, %c0_7] : memref<128x128xf32, #tpu.memory_space<vmem>>, vector<128x128xf32>
    tpu.vector_store %arg7[%c0_6, %c0_7], %7 {strides = array<i32>} : memref<128x128xf32, #tpu.memory_space<vmem>>, vector<128x128xf32>,
    %c1_i32 = arith.constant 1 : i32
    %9 = arith.cmpi eq, %arg2, %c1_i32 : i32
    %10 = arith.extui %9 : i1 to i32
    %c0_i32_8 = arith.constant 0 : i32
    %11 = arith.cmpi ne, %10, %c0_i32_8 : i32
    scf.if %11 {
      %c0_9 = arith.constant 0 : index
      %c0_10 = arith.constant 0 : index
      %12 = vector.load %arg7[%c0_9, %c0_10] : memref<128x128xf32, #tpu.memory_space<vmem>>, vector<128x128xf32>
      %c0_11 = arith.constant 0 : index
      %c0_12 = arith.constant 0 : index
      %13 = vector.load %arg5[%c0_11, %c0_12] : memref<1x128xf32, #tpu.memory_space<vmem>>, vector<1x128xf32>
      %14 = vector.broadcast %13 : vector<1x128xf32> to vector<128x128xf32>
      %15 = arith.addf %12, %14 : vector<128x128xf32>
      %cst_13 = arith.constant 0.000000e+00 : f32
      %16 = vector.broadcast %cst_13 : f32 to vector<128x128xf32>
      %17 = arith.maximumf %15, %16 : vector<128x128xf32>
      %c0_14 = arith.constant 0 : index
      %c0_15 = arith.constant 0 : index
      %18 = vector.load %arg6[%c0_14, %c0_15] : memref<128x128xf32, #tpu.memory_space<vmem>>, vector<128x128xf32>
      tpu.vector_store %arg6[%c0_14, %c0_15], %17 {strides = array<i32>} : memref<128x128xf32, #tpu.memory_space<vmem>>, vector<128x128xf32>,
    } else {
    }
    return
  }
  func.func @transform_0(%arg0: i32, %arg1: i32, %arg2: i32) -> (i32, i32) {
    %c0_i32 = arith.constant 0 : i32
    return %arg0, %arg2 : i32, i32
  }
  func.func @transform_1(%arg0: i32, %arg1: i32, %arg2: i32) -> (i32, i32) {
    %c0_i32 = arith.constant 0 : i32
    return %arg2, %arg1 : i32, i32
  }
  func.func @transform_2(%arg0: i32, %arg1: i32, %arg2: i32) -> (i32, i32) {
    %c0_i32 = arith.constant 0 : i32
    %c0_i32_0 = arith.constant 0 : i32
    return %c0_i32, %arg1 : i32, i32
  }
  func.func @transform_3(%arg0: i32, %arg1: i32, %arg2: i32) -> (i32, i32) {
    %c0_i32 = arith.constant 0 : i32
    return %arg0, %arg1 : i32, i32
  }
}

module attributes {stable_mosaic.version = 11 : i64} {
  func.func @_mm_fused_kernel(%arg0: i32, %arg1: i32, %arg2: i32, %arg3: memref<32x128xf32, #tpu.memory_space<vmem>>, %arg4: memref<128x256xf32, #tpu.memory_space<vmem>>, %arg5: memref<1x256xf32, #tpu.memory_space<vmem>>, %arg6: memref<32x256xf32, #tpu.memory_space<vmem>>, %arg7: memref<32x256xf32, #tpu.memory_space<vmem>>) attributes {dimension_semantics = [#tpu.dimension_semantics<parallel>, #tpu.dimension_semantics<parallel>, #tpu.dimension_semantics<arbitrary>], iteration_bounds = array<i64: 1, 1, 1>, scalar_prefetch = 0 : i64, scratch_operands = 1 : i64, tpu.core_type = #tpu.core_type<tc>, window_params = [{transform_indices = @transform_0, window_bounds = array<i64: 32, 128>}, {transform_indices = @transform_1, window_bounds = array<i64: 128, 256>}, {transform_indices = @transform_2, window_bounds = array<i64: 1, 256>}, {transform_indices = @transform_3, window_bounds = array<i64: 32, 256>}]} {
    %c0_i32 = arith.constant 0 : i32
    %0 = arith.cmpi eq, %arg2, %c0_i32 : i32
    %1 = arith.extui %0 : i1 to i32
    %c0_i32_0 = arith.constant 0 : i32
    %2 = arith.cmpi ne, %1, %c0_i32_0 : i32
    scf.if %2 {
      %cst_10 = arith.constant 0.000000e+00 : f32
      %12 = vector.broadcast %cst_10 : f32 to vector<32x256xf32>
      %c0_11 = arith.constant 0 : index
      %c0_12 = arith.constant 0 : index
      %13 = vector.load %arg7[%c0_11, %c0_12] : memref<32x256xf32, #tpu.memory_space<vmem>>, vector<32x256xf32>
      tpu.vector_store %arg7[%c0_11, %c0_12], %12 {strides = array<i32>} : memref<32x256xf32, #tpu.memory_space<vmem>>, vector<32x256xf32>,
    } else {
    }
    %c0 = arith.constant 0 : index
    %c0_1 = arith.constant 0 : index
    %3 = vector.load %arg3[%c0, %c0_1] : memref<32x128xf32, #tpu.memory_space<vmem>>, vector<32x128xf32>
    %c0_2 = arith.constant 0 : index
    %c0_3 = arith.constant 0 : index
    %4 = vector.load %arg7[%c0_2, %c0_3] : memref<32x256xf32, #tpu.memory_space<vmem>>, vector<32x256xf32>
    %c0_4 = arith.constant 0 : index
    %c0_5 = arith.constant 0 : index
    %5 = vector.load %arg4[%c0_4, %c0_5] : memref<128x256xf32, #tpu.memory_space<vmem>>, vector<128x256xf32>
    %cst = arith.constant dense<0.000000e+00> : vector<32x256xf32>
    %6 = tpu.matmul %3, %5, %cst {dimension_numbers = #tpu.dot_dimension_numbers<[1], [0], [0], [1], [0, 0, 1, 1], [], []>} : vector<32x128xf32>, vector<128x256xf32>, vector<32x256xf32> -> vector<32x256xf32>
    %7 = arith.addf %4, %6 : vector<32x256xf32>
    %c0_6 = arith.constant 0 : index
    %c0_7 = arith.constant 0 : index
    %8 = vector.load %arg7[%c0_6, %c0_7] : memref<32x256xf32, #tpu.memory_space<vmem>>, vector<32x256xf32>
    tpu.vector_store %arg7[%c0_6, %c0_7], %7 {strides = array<i32>} : memref<32x256xf32, #tpu.memory_space<vmem>>, vector<32x256xf32>,
    %c0_i32_8 = arith.constant 0 : i32
    %9 = arith.cmpi eq, %arg2, %c0_i32_8 : i32
    %10 = arith.extui %9 : i1 to i32
    %c0_i32_9 = arith.constant 0 : i32
    %11 = arith.cmpi ne, %10, %c0_i32_9 : i32
    scf.if %11 {
      %c0_10 = arith.constant 0 : index
      %c0_11 = arith.constant 0 : index
      %12 = vector.load %arg7[%c0_10, %c0_11] : memref<32x256xf32, #tpu.memory_space<vmem>>, vector<32x256xf32>
      %c0_12 = arith.constant 0 : index
      %c0_13 = arith.constant 0 : index
      %13 = vector.load %arg5[%c0_12, %c0_13] : memref<1x256xf32, #tpu.memory_space<vmem>>, vector<1x256xf32>
      %14 = vector.broadcast %13 : vector<1x256xf32> to vector<32x256xf32>
      %15 = arith.addf %12, %14 : vector<32x256xf32>
      %c0_14 = arith.constant 0 : index
      %c0_15 = arith.constant 0 : index
      %16 = vector.load %arg6[%c0_14, %c0_15] : memref<32x256xf32, #tpu.memory_space<vmem>>, vector<32x256xf32>
      tpu.vector_store %arg6[%c0_14, %c0_15], %15 {strides = array<i32>} : memref<32x256xf32, #tpu.memory_space<vmem>>, vector<32x256xf32>,
    } else {
    }
    return
  }
  func.func @transform_0(%arg0: i32, %arg1: i32, %arg2: i32) -> (i32, i32) {
    %c0_i32 = arith.constant 0 : i32
    return %arg0, %arg2 : i32, i32
  }
  func.func @transform_1(%arg0: i32, %arg1: i32, %arg2: i32) -> (i32, i32) {
    %c0_i32 = arith.constant 0 : i32
    return %arg2, %arg1 : i32, i32
  }
  func.func @transform_2(%arg0: i32, %arg1: i32, %arg2: i32) -> (i32, i32) {
    %c0_i32 = arith.constant 0 : i32
    %c0_i32_0 = arith.constant 0 : i32
    return %c0_i32, %arg1 : i32, i32
  }
  func.func @transform_3(%arg0: i32, %arg1: i32, %arg2: i32) -> (i32, i32) {
    %c0_i32 = arith.constant 0 : i32
    return %arg0, %arg1 : i32, i32
  }
}

module attributes {stable_mosaic.version = 11 : i64} {
  func.func @_mm_fused_kernel(%arg0: i32, %arg1: i32, %arg2: i32, %arg3: memref<256x256xf32, #tpu.memory_space<vmem>>, %arg4: memref<256x128xf32, #tpu.memory_space<vmem>>, %arg5: memref<1x128xf32, #tpu.memory_space<vmem>>, %arg6: memref<256x128xf32, #tpu.memory_space<vmem>>, %arg7: memref<256x128xf32, #tpu.memory_space<vmem>>) attributes {dimension_semantics = [#tpu.dimension_semantics<parallel>, #tpu.dimension_semantics<parallel>, #tpu.dimension_semantics<arbitrary>], iteration_bounds = array<i64: 2, 1, 1>, scalar_prefetch = 0 : i64, scratch_operands = 1 : i64, tpu.core_type = #tpu.core_type<tc>, window_params = [{transform_indices = @transform_0, window_bounds = array<i64: 256, 256>}, {transform_indices = @transform_1, window_bounds = array<i64: 256, 128>}, {transform_indices = @transform_2, window_bounds = array<i64: 1, 128>}, {transform_indices = @transform_3, window_bounds = array<i64: 256, 128>}]} {
    %c0_i32 = arith.constant 0 : i32
    %0 = arith.cmpi eq, %arg2, %c0_i32 : i32
    %1 = arith.extui %0 : i1 to i32
    %c0_i32_0 = arith.constant 0 : i32
    %2 = arith.cmpi ne, %1, %c0_i32_0 : i32
    scf.if %2 {
      %cst_10 = arith.constant 0.000000e+00 : f32
      %12 = vector.broadcast %cst_10 : f32 to vector<256x128xf32>
      %c0_11 = arith.constant 0 : index
      %c0_12 = arith.constant 0 : index
      %13 = vector.load %arg7[%c0_11, %c0_12] : memref<256x128xf32, #tpu.memory_space<vmem>>, vector<256x128xf32>
      tpu.vector_store %arg7[%c0_11, %c0_12], %12 {strides = array<i32>} : memref<256x128xf32, #tpu.memory_space<vmem>>, vector<256x128xf32>,
    } else {
    }
    %c0 = arith.constant 0 : index
    %c0_1 = arith.constant 0 : index
    %3 = vector.load %arg3[%c0, %c0_1] : memref<256x256xf32, #tpu.memory_space<vmem>>, vector<256x256xf32>
    %c0_2 = arith.constant 0 : index
    %c0_3 = arith.constant 0 : index
    %4 = vector.load %arg7[%c0_2, %c0_3] : memref<256x128xf32, #tpu.memory_space<vmem>>, vector<256x128xf32>
    %c0_4 = arith.constant 0 : index
    %c0_5 = arith.constant 0 : index
    %5 = vector.load %arg4[%c0_4, %c0_5] : memref<256x128xf32, #tpu.memory_space<vmem>>, vector<256x128xf32>
    %cst = arith.constant dense<0.000000e+00> : vector<256x128xf32>
    %6 = tpu.matmul %3, %5, %cst {dimension_numbers = #tpu.dot_dimension_numbers<[1], [0], [0], [1], [0, 0, 1, 1], [], []>} : vector<256x256xf32>, vector<256x128xf32>, vector<256x128xf32> -> vector<256x128xf32>
    %7 = arith.addf %4, %6 : vector<256x128xf32>
    %c0_6 = arith.constant 0 : index
    %c0_7 = arith.constant 0 : index
    %8 = vector.load %arg7[%c0_6, %c0_7] : memref<256x128xf32, #tpu.memory_space<vmem>>, vector<256x128xf32>
    tpu.vector_store %arg7[%c0_6, %c0_7], %7 {strides = array<i32>} : memref<256x128xf32, #tpu.memory_space<vmem>>, vector<256x128xf32>,
    %c0_i32_8 = arith.constant 0 : i32
    %9 = arith.cmpi eq, %arg2, %c0_i32_8 : i32
    %10 = arith.extui %9 : i1 to i32
    %c0_i32_9 = arith.constant 0 : i32
    %11 = arith.cmpi ne, %10, %c0_i32_9 : i32
    scf.if %11 {
      %c0_10 = arith.constant 0 : index
      %c0_11 = arith.constant 0 : index
      %12 = vector.load %arg7[%c0_10, %c0_11] : memref<256x128xf32, #tpu.memory_space<vmem>>, vector<256x128xf32>
      %c0_12 = arith.constant 0 : index
      %c0_13 = arith.constant 0 : index
      %13 = vector.load %arg5[%c0_12, %c0_13] : memref<1x128xf32, #tpu.memory_space<vmem>>, vector<1x128xf32>
      %14 = vector.broadcast %13 : vector<1x128xf32> to vector<256x128xf32>
      %15 = arith.addf %12, %14 : vector<256x128xf32>
      %cst_14 = arith.constant 0.000000e+00 : f32
      %16 = vector.broadcast %cst_14 : f32 to vector<256x128xf32>
      %17 = arith.maximumf %15, %16 : vector<256x128xf32>
      %c0_15 = arith.constant 0 : index
      %c0_16 = arith.constant 0 : index
      %18 = vector.load %arg6[%c0_15, %c0_16] : memref<256x128xf32, #tpu.memory_space<vmem>>, vector<256x128xf32>
      tpu.vector_store %arg6[%c0_15, %c0_16], %17 {strides = array<i32>} : memref<256x128xf32, #tpu.memory_space<vmem>>, vector<256x128xf32>,
    } else {
    }
    return
  }
  func.func @transform_0(%arg0: i32, %arg1: i32, %arg2: i32) -> (i32, i32) {
    %c0_i32 = arith.constant 0 : i32
    return %arg0, %arg2 : i32, i32
  }
  func.func @transform_1(%arg0: i32, %arg1: i32, %arg2: i32) -> (i32, i32) {
    %c0_i32 = arith.constant 0 : i32
    return %arg2, %arg1 : i32, i32
  }
  func.func @transform_2(%arg0: i32, %arg1: i32, %arg2: i32) -> (i32, i32) {
    %c0_i32 = arith.constant 0 : i32
    %c0_i32_0 = arith.constant 0 : i32
    return %c0_i32, %arg1 : i32, i32
  }
  func.func @transform_3(%arg0: i32, %arg1: i32, %arg2: i32) -> (i32, i32) {
    %c0_i32 = arith.constant 0 : i32
    return %arg0, %arg1 : i32, i32
  }
}

module attributes {stable_mosaic.version = 11 : i64} {
  func.func @_mm_fused_kernel(%arg0: i32, %arg1: i32, %arg2: i32, %arg3: memref<16x256xf32, #tpu.memory_space<vmem>>, %arg4: memref<256x256xf32, #tpu.memory_space<vmem>>, %arg5: memref<1x256xf32, #tpu.memory_space<vmem>>, %arg6: memref<16x256xf32, #tpu.memory_space<vmem>>, %arg7: memref<16x256xf32, #tpu.memory_space<vmem>>) attributes {dimension_semantics = [#tpu.dimension_semantics<parallel>, #tpu.dimension_semantics<parallel>, #tpu.dimension_semantics<arbitrary>], iteration_bounds = array<i64: 1, 4, 1>, scalar_prefetch = 0 : i64, scratch_operands = 1 : i64, tpu.core_type = #tpu.core_type<tc>, window_params = [{transform_indices = @transform_0, window_bounds = array<i64: 16, 256>}, {transform_indices = @transform_1, window_bounds = array<i64: 256, 256>}, {transform_indices = @transform_2, window_bounds = array<i64: 1, 256>}, {transform_indices = @transform_3, window_bounds = array<i64: 16, 256>}]} {
    %c0_i32 = arith.constant 0 : i32
    %0 = arith.cmpi eq, %arg2, %c0_i32 : i32
    %1 = arith.extui %0 : i1 to i32
    %c0_i32_0 = arith.constant 0 : i32
    %2 = arith.cmpi ne, %1, %c0_i32_0 : i32
    scf.if %2 {
      %cst_10 = arith.constant 0.000000e+00 : f32
      %12 = vector.broadcast %cst_10 : f32 to vector<16x256xf32>
      %c0_11 = arith.constant 0 : index
      %c0_12 = arith.constant 0 : index
      %13 = vector.load %arg7[%c0_11, %c0_12] : memref<16x256xf32, #tpu.memory_space<vmem>>, vector<16x256xf32>
      tpu.vector_store %arg7[%c0_11, %c0_12], %12 {strides = array<i32>} : memref<16x256xf32, #tpu.memory_space<vmem>>, vector<16x256xf32>,
    } else {
    }
    %c0 = arith.constant 0 : index
    %c0_1 = arith.constant 0 : index
    %3 = vector.load %arg3[%c0, %c0_1] : memref<16x256xf32, #tpu.memory_space<vmem>>, vector<16x256xf32>
    %c0_2 = arith.constant 0 : index
    %c0_3 = arith.constant 0 : index
    %4 = vector.load %arg7[%c0_2, %c0_3] : memref<16x256xf32, #tpu.memory_space<vmem>>, vector<16x256xf32>
    %c0_4 = arith.constant 0 : index
    %c0_5 = arith.constant 0 : index
    %5 = vector.load %arg4[%c0_4, %c0_5] : memref<256x256xf32, #tpu.memory_space<vmem>>, vector<256x256xf32>
    %cst = arith.constant dense<0.000000e+00> : vector<16x256xf32>
    %6 = tpu.matmul %3, %5, %cst {dimension_numbers = #tpu.dot_dimension_numbers<[1], [0], [0], [1], [0, 0, 1, 1], [], []>} : vector<16x256xf32>, vector<256x256xf32>, vector<16x256xf32> -> vector<16x256xf32>
    %7 = arith.addf %4, %6 : vector<16x256xf32>
    %c0_6 = arith.constant 0 : index
    %c0_7 = arith.constant 0 : index
    %8 = vector.load %arg7[%c0_6, %c0_7] : memref<16x256xf32, #tpu.memory_space<vmem>>, vector<16x256xf32>
    tpu.vector_store %arg7[%c0_6, %c0_7], %7 {strides = array<i32>} : memref<16x256xf32, #tpu.memory_space<vmem>>, vector<16x256xf32>,
    %c0_i32_8 = arith.constant 0 : i32
    %9 = arith.cmpi eq, %arg2, %c0_i32_8 : i32
    %10 = arith.extui %9 : i1 to i32
    %c0_i32_9 = arith.constant 0 : i32
    %11 = arith.cmpi ne, %10, %c0_i32_9 : i32
    scf.if %11 {
      %c0_10 = arith.constant 0 : index
      %c0_11 = arith.constant 0 : index
      %12 = vector.load %arg7[%c0_10, %c0_11] : memref<16x256xf32, #tpu.memory_space<vmem>>, vector<16x256xf32>
      %c0_12 = arith.constant 0 : index
      %c0_13 = arith.constant 0 : index
      %13 = vector.load %arg5[%c0_12, %c0_13] : memref<1x256xf32, #tpu.memory_space<vmem>>, vector<1x256xf32>
      %14 = vector.broadcast %13 : vector<1x256xf32> to vector<16x256xf32>
      %15 = arith.addf %12, %14 : vector<16x256xf32>
      %c0_14 = arith.constant 0 : index
      %c0_15 = arith.constant 0 : index
      %16 = vector.load %arg6[%c0_14, %c0_15] : memref<16x256xf32, #tpu.memory_space<vmem>>, vector<16x256xf32>
      tpu.vector_store %arg6[%c0_14, %c0_15], %15 {strides = array<i32>} : memref<16x256xf32, #tpu.memory_space<vmem>>, vector<16x256xf32>,
    } else {
    }
    return
  }
  func.func @transform_0(%arg0: i32, %arg1: i32, %arg2: i32) -> (i32, i32) {
    %c0_i32 = arith.constant 0 : i32
    return %arg0, %arg2 : i32, i32
  }
  func.func @transform_1(%arg0: i32, %arg1: i32, %arg2: i32) -> (i32, i32) {
    %c0_i32 = arith.constant 0 : i32
    return %arg2, %arg1 : i32, i32
  }
  func.func @transform_2(%arg0: i32, %arg1: i32, %arg2: i32) -> (i32, i32) {
    %c0_i32 = arith.constant 0 : i32
    %c0_i32_0 = arith.constant 0 : i32
    return %c0_i32, %arg1 : i32, i32
  }
  func.func @transform_3(%arg0: i32, %arg1: i32, %arg2: i32) -> (i32, i32) {
    %c0_i32 = arith.constant 0 : i32
    return %arg0, %arg1 : i32, i32
  }
}

module attributes {stable_mosaic.version = 11 : i64} {
  func.func @_mm_fused_kernel(%arg0: i32, %arg1: i32, %arg2: i32, %arg3: memref<256x128xf32, #tpu.memory_space<vmem>>, %arg4: memref<128x128xf32, #tpu.memory_space<vmem>>, %arg5: memref<1x128xf32, #tpu.memory_space<vmem>>, %arg6: memref<256x128xf32, #tpu.memory_space<vmem>>, %arg7: memref<256x128xf32, #tpu.memory_space<vmem>>) attributes {dimension_semantics = [#tpu.dimension_semantics<parallel>, #tpu.dimension_semantics<parallel>, #tpu.dimension_semantics<arbitrary>], iteration_bounds = array<i64: 8, 1, 1>, scalar_prefetch = 0 : i64, scratch_operands = 1 : i64, tpu.core_type = #tpu.core_type<tc>, window_params = [{transform_indices = @transform_0, window_bounds = array<i64: 256, 128>}, {transform_indices = @transform_1, window_bounds = array<i64: 128, 128>}, {transform_indices = @transform_2, window_bounds = array<i64: 1, 128>}, {transform_indices = @transform_3, window_bounds = array<i64: 256, 128>}]} {
    %c0_i32 = arith.constant 0 : i32
    %0 = arith.cmpi eq, %arg2, %c0_i32 : i32
    %1 = arith.extui %0 : i1 to i32
    %c0_i32_0 = arith.constant 0 : i32
    %2 = arith.cmpi ne, %1, %c0_i32_0 : i32
    scf.if %2 {
      %cst_10 = arith.constant 0.000000e+00 : f32
      %12 = vector.broadcast %cst_10 : f32 to vector<256x128xf32>
      %c0_11 = arith.constant 0 : index
      %c0_12 = arith.constant 0 : index
      %13 = vector.load %arg7[%c0_11, %c0_12] : memref<256x128xf32, #tpu.memory_space<vmem>>, vector<256x128xf32>
      tpu.vector_store %arg7[%c0_11, %c0_12], %12 {strides = array<i32>} : memref<256x128xf32, #tpu.memory_space<vmem>>, vector<256x128xf32>,
    } else {
    }
    %c0 = arith.constant 0 : index
    %c0_1 = arith.constant 0 : index
    %3 = vector.load %arg3[%c0, %c0_1] : memref<256x128xf32, #tpu.memory_space<vmem>>, vector<256x128xf32>
    %c0_2 = arith.constant 0 : index
    %c0_3 = arith.constant 0 : index
    %4 = vector.load %arg7[%c0_2, %c0_3] : memref<256x128xf32, #tpu.memory_space<vmem>>, vector<256x128xf32>
    %c0_4 = arith.constant 0 : index
    %c0_5 = arith.constant 0 : index
    %5 = vector.load %arg4[%c0_4, %c0_5] : memref<128x128xf32, #tpu.memory_space<vmem>>, vector<128x128xf32>
    %cst = arith.constant dense<0.000000e+00> : vector<256x128xf32>
    %6 = tpu.matmul %3, %5, %cst {dimension_numbers = #tpu.dot_dimension_numbers<[1], [0], [0], [1], [0, 0, 1, 1], [], []>} : vector<256x128xf32>, vector<128x128xf32>, vector<256x128xf32> -> vector<256x128xf32>
    %7 = arith.addf %4, %6 : vector<256x128xf32>
    %c0_6 = arith.constant 0 : index
    %c0_7 = arith.constant 0 : index
    %8 = vector.load %arg7[%c0_6, %c0_7] : memref<256x128xf32, #tpu.memory_space<vmem>>, vector<256x128xf32>
    tpu.vector_store %arg7[%c0_6, %c0_7], %7 {strides = array<i32>} : memref<256x128xf32, #tpu.memory_space<vmem>>, vector<256x128xf32>,
    %c0_i32_8 = arith.constant 0 : i32
    %9 = arith.cmpi eq, %arg2, %c0_i32_8 : i32
    %10 = arith.extui %9 : i1 to i32
    %c0_i32_9 = arith.constant 0 : i32
    %11 = arith.cmpi ne, %10, %c0_i32_9 : i32
    scf.if %11 {
      %c0_10 = arith.constant 0 : index
      %c0_11 = arith.constant 0 : index
      %12 = vector.load %arg7[%c0_10, %c0_11] : memref<256x128xf32, #tpu.memory_space<vmem>>, vector<256x128xf32>
      %c0_12 = arith.constant 0 : index
      %c0_13 = arith.constant 0 : index
      %13 = vector.load %arg5[%c0_12, %c0_13] : memref<1x128xf32, #tpu.memory_space<vmem>>, vector<1x128xf32>
      %14 = vector.broadcast %13 : vector<1x128xf32> to vector<256x128xf32>
      %15 = arith.addf %12, %14 : vector<256x128xf32>
      %16 = math.tanh %15 : vector<256x128xf32>
      %c0_14 = arith.constant 0 : index
      %c0_15 = arith.constant 0 : index
      %17 = vector.load %arg6[%c0_14, %c0_15] : memref<256x128xf32, #tpu.memory_space<vmem>>, vector<256x128xf32>
      tpu.vector_store %arg6[%c0_14, %c0_15], %16 {strides = array<i32>} : memref<256x128xf32, #tpu.memory_space<vmem>>, vector<256x128xf32>,
    } else {
    }
    return
  }
  func.func @transform_0(%arg0: i32, %arg1: i32, %arg2: i32) -> (i32, i32) {
    %c0_i32 = arith.constant 0 : i32
    return %arg0, %arg2 : i32, i32
  }
  func.func @transform_1(%arg0: i32, %arg1: i32, %arg2: i32) -> (i32, i32) {
    %c0_i32 = arith.constant 0 : i32
    return %arg2, %arg1 : i32, i32
  }
  func.func @transform_2(%arg0: i32, %arg1: i32, %arg2: i32) -> (i32, i32) {
    %c0_i32 = arith.constant 0 : i32
    %c0_i32_0 = arith.constant 0 : i32
    return %c0_i32, %arg1 : i32, i32
  }
  func.func @transform_3(%arg0: i32, %arg1: i32, %arg2: i32) -> (i32, i32) {
    %c0_i32 = arith.constant 0 : i32
    return %arg0, %arg1 : i32, i32
  }
}

</mosaic_0001>

<bundles_post_ra>
// kernel: _lambda_.15
= control target key start
LH: loop header
LB: loop body
LE: loop exit
PB: predicated region body
PF: predicated region fallthrough
CT: control target
= control target key end

     0   :  { %s992_s12 = smov 0   ;;  %s994_s13 = smov 0   ;;  %s1188_s0 = inlined_call_operand.vmem [shape: f32[512,128], index: 0, kind: input, shape index: {}]   ;;  %s1189_s1 = inlined_call_operand.vmem [shape: f32[128,128], index: 1, kind: input, shape index: {}]   ;;  %s1190_s2 = inlined_call_operand.vmem [shape: f32[1,128], index: 2, kind: input, shape index: {}]   ;;  %s1191_s3 = inlined_call_operand.vmem [shape: f32[512,128], index: 3, kind: output, shape index: {}]  }
   0x1   :  { %s996_s14 = smov 0  }
   0x2 LB: > { %s32_s15 = sadd.s32 1, %s966_s13  ;;  %p868_p0 = scmp.ge.s32.totalorder %s970_s14, 1  ;;  %s970_s14 = sphi %s996_s14, %s13_s14   ;;  %s966_s13 = sphi %s994_s13, %s1193_s13   ;;  %s962_s12 = sphi %s992_s12, %s1192_s12  }
   0x3   : > { %p34_p1 = scmp.ge.s32.totalorder %s32_s15, 2  ;;  %p188_p2 = scmp.lt.s32.totalorder %s970_s14, 3 }
   0x5   : > { %s1195_s15 = smov (%p34_p1, %s32_s15), 0  ;;  %p189_p3 = pnand %p868_p0, %p188_p2 }
   0x6   : > { %s869_s5 = sshll.u32 (!%p189_p3), %s962_s12, 5 }
   0x7   : > { %192 = sbr.rel (%p189_p3) target bundleno = 239 (0xef), region = 32  ;;  %p230_p4 = scmp.lt.s32.totalorder (!%p189_p3), %s869_s5, 63 }
   0xc   : > { %v374_v0 = vld [vmem:[%s1189_s1 + $0x78] sm:$0xff]  ;;  %v373_v1 = vld [vmem:[%s1189_s1 + $0x70] sm:$0xff]  ;;  %v372_v2 = vld [vmem:[%s1189_s1 + $0x68] sm:$0xff]  ;;  %s1197_s5 = smov (!%p230_p4, %s869_s5), 63 }
   0xd   : > { %876 = vmatpush.msra.mxu2 %v374_v0  ;;  %877 = vmatpush.msra.mxu3 %v374_v0  ;;  %v371_v3 = vld [vmem:[%s1189_s1 + $0x60] sm:$0xff]  ;;  %v370_v4 = vld [vmem:[%s1189_s1 + $0x58] sm:$0xff]  ;;  %v369_v5 = vld [vmem:[%s1189_s1 + $0x50] sm:$0xff]  ;;  %s870_s19 = sshll.u32 %s1197_s5, 3 }
   0xe   : > { %375 = vmatpush.msra.mxu0 %v374_v0  ;;  %875 = vmatpush.msra.mxu1 %v374_v0  ;;  %v368_v6 = vld [vmem:[%s1189_s1 + $0x48] sm:$0xff]  ;;  %v367_v7 = vld [vmem:[%s1189_s1 + $0x40] sm:$0xff]  ;;  %v366_v8 = vld [vmem:[%s1189_s1 + $0x38] sm:$0xff]  ;;  %s1066_s26 = scalar_lea.vmem %s1188_s0, %s870_s19  ;;  %s1115_s7 = scalar_lea.vmem %s1191_s3, %s870_s19 }
   0xf   : > { %879 = vmatpush.msra.mxu2 %v373_v1  ;;  %880 = vmatpush.msra.mxu3 %v373_v1  ;;  %v365_v9 = vld [vmem:[%s1189_s1 + $0x30] sm:$0xff]  ;;  %v364_v10 = vld [vmem:[%s1189_s1 + $0x28] sm:$0xff]  ;;  %v363_v11 = vld [vmem:[%s1189_s1 + $0x20] sm:$0xff] }
  0x10   : > { %376 = vmatpush.msra.mxu0 %v373_v1  ;;  %878 = vmatpush.msra.mxu1 %v373_v1  ;;  %v362_v12 = vld [vmem:[%s1189_s1 + $0x18] sm:$0xff]  ;;  %v361_v13 = vld [vmem:[%s1189_s1 + $0x10] sm:$0xff]  ;;  %v360_v14 = vld [vmem:[%s1189_s1 + $0x8] sm:$0xff] }
  0x11   : > { %882 = vmatpush.msra.mxu2 %v372_v2  ;;  %883 = vmatpush.msra.mxu3 %v372_v2  ;;  %v359_v15 = vld [vmem:[%s1189_s1] sm:$0xff]  ;;  %v312_v20 = vld [vmem:[%s1066_s26 + $0x88] sm:$0xff]  ;;  %v313_v24 = vld [vmem:[%s1066_s26 + $0x90] sm:$0xff] }
  0x12   : > { %377 = vmatpush.msra.mxu0 %v372_v2  ;;  %881 = vmatpush.msra.mxu1 %v372_v2  ;;  %v311_v16 = vld [vmem:[%s1066_s26 + $0x80] sm:$0xff]  ;;  %v320_v21 = vld [vmem:[%s1066_s26 + $0xc8] sm:$0xff]  ;;  %v321_v25 = vld [vmem:[%s1066_s26 + $0xd0] sm:$0xff] }
  0x13   : > { %885 = vmatpush.msra.mxu2 %v371_v3  ;;  %886 = vmatpush.msra.mxu3 %v371_v3  ;;  %v319_v17 = vld [vmem:[%s1066_s26 + $0xc0] sm:$0xff]  ;;  %v296_v22 = vld [vmem:[%s1066_s26 + $0x8] sm:$0xff]  ;;  %v297_v26 = vld [vmem:[%s1066_s26 + $0x10] sm:$0xff] }
  0x14   : > { %378 = vmatpush.msra.mxu0 %v371_v3  ;;  %884 = vmatpush.msra.mxu1 %v371_v3  ;;  %v295_v18 = vld [vmem:[%s1066_s26] sm:$0xff]  ;;  %v304_v23 = vld [vmem:[%s1066_s26 + $0x48] sm:$0xff]  ;;  %v305_v27 = vld [vmem:[%s1066_s26 + $0x50] sm:$0xff] }
  0x15   : > { %888 = vmatpush.msra.mxu2 %v370_v4  ;;  %889 = vmatpush.msra.mxu3 %v370_v4  ;;  %v303_v19 = vld [vmem:[%s1066_s26 + $0x40] sm:$0xff]  ;;  %v314_v28 = vld [vmem:[%s1066_s26 + $0x98] sm:$0xff]  ;;  %v316_v36 = vld [vmem:[%s1066_s26 + $0xa8] sm:$0xff] }
  0x16   : > { %379 = vmatpush.msra.mxu0 %v370_v4  ;;  %887 = vmatpush.msra.mxu1 %v370_v4  ;;  %v322_v29 = vld [vmem:[%s1066_s26 + $0xd8] sm:$0xff]  ;;  %v315_v32 = vld [vmem:[%s1066_s26 + $0xa0] sm:$0xff]  ;;  %v324_v37 = vld [vmem:[%s1066_s26 + $0xe8] sm:$0xff] }
  0x17   : > { %891 = vmatpush.msra.mxu2 %v369_v5  ;;  %892 = vmatpush.msra.mxu3 %v369_v5  ;;  %v298_v30 = vld [vmem:[%s1066_s26 + $0x18] sm:$0xff]  ;;  %v323_v33 = vld [vmem:[%s1066_s26 + $0xe0] sm:$0xff]  ;;  %v300_v38 = vld [vmem:[%s1066_s26 + $0x28] sm:$0xff] }
  0x18   : > { %380 = vmatpush.msra.mxu0 %v369_v5  ;;  %890 = vmatpush.msra.mxu1 %v369_v5  ;;  %v306_v31 = vld [vmem:[%s1066_s26 + $0x58] sm:$0xff]  ;;  %v299_v34 = vld [vmem:[%s1066_s26 + $0x20] sm:$0xff]  ;;  %v308_v39 = vld [vmem:[%s1066_s26 + $0x68] sm:$0xff] }
  0x19   : > { %894 = vmatpush.msra.mxu2 %v368_v6  ;;  %895 = vmatpush.msra.mxu3 %v368_v6  ;;  %v307_v35 = vld [vmem:[%s1066_s26 + $0x60] sm:$0xff]  ;;  %v317_v40 = vld [vmem:[%s1066_s26 + $0xb0] sm:$0xff]  ;;  %v318_v44 = vld [vmem:[%s1066_s26 + $0xb8] sm:$0xff] }
  0x1a   : > { %381 = vmatpush.msra.mxu0 %v368_v6  ;;  %893 = vmatpush.msra.mxu1 %v368_v6  ;;  %v325_v41 = vld [vmem:[%s1066_s26 + $0xf0] sm:$0xff]  ;;  %v326_v45 = vld [vmem:[%s1066_s26 + $0xf8] sm:$0xff]  ;;  %v1106_v48 = vld [vmem:[%s1190_s2] ss:$0 sm:$0xff] }
  0x1b   : > { %897 = vmatpush.msra.mxu2 %v367_v7  ;;  %898 = vmatpush.msra.mxu3 %v367_v7  ;;  %v301_v42 = vld [vmem:[%s1066_s26 + $0x30] sm:$0xff]  ;;  %v302_v46 = vld [vmem:[%s1066_s26 + $0x38] sm:$0xff] }
  0x1c   : > { %382 = vmatpush.msra.mxu0 %v367_v7  ;;  %896 = vmatpush.msra.mxu1 %v367_v7  ;;  %v309_v43 = vld [vmem:[%s1066_s26 + $0x70] sm:$0xff]  ;;  %v310_v47 = vld [vmem:[%s1066_s26 + $0x78] sm:$0xff] }
  0x1d   : > { %900 = vmatpush.msra.mxu2 %v366_v8  ;;  %901 = vmatpush.msra.mxu3 %v366_v8 }
  0x1e   : > { %383 = vmatpush.msra.mxu0 %v366_v8  ;;  %899 = vmatpush.msra.mxu1 %v366_v8 }
  0x1f   : > { %903 = vmatpush.msra.mxu2 %v365_v9  ;;  %904 = vmatpush.msra.mxu3 %v365_v9 }
  0x20   : > { %384 = vmatpush.msra.mxu0 %v365_v9  ;;  %902 = vmatpush.msra.mxu1 %v365_v9 }
  0x21   : > { %906 = vmatpush.msra.mxu2 %v364_v10  ;;  %907 = vmatpush.msra.mxu3 %v364_v10 }
  0x22   : > { %385 = vmatpush.msra.mxu0 %v364_v10  ;;  %905 = vmatpush.msra.mxu1 %v364_v10 }
  0x23   : > { %909 = vmatpush.msra.mxu2 %v363_v11  ;;  %910 = vmatpush.msra.mxu3 %v363_v11 }
  0x24   : > { %386 = vmatpush.msra.mxu0 %v363_v11  ;;  %908 = vmatpush.msra.mxu1 %v363_v11 }
  0x25   : > { %912 = vmatpush.msra.mxu2 %v362_v12  ;;  %913 = vmatpush.msra.mxu3 %v362_v12 }
  0x26   : > { %387 = vmatpush.msra.mxu0 %v362_v12  ;;  %911 = vmatpush.msra.mxu1 %v362_v12 }
  0x27   : > { %915 = vmatpush.msra.mxu2 %v361_v13  ;;  %916 = vmatpush.msra.mxu3 %v361_v13 }
  0x28   : > { %388 = vmatpush.msra.mxu0 %v361_v13  ;;  %914 = vmatpush.msra.mxu1 %v361_v13 }
  0x29   : > { %918 = vmatpush.msra.mxu2 %v360_v14  ;;  %919 = vmatpush.msra.mxu3 %v360_v14 }
  0x2a   : > { %389 = vmatpush.msra.mxu0 %v360_v14  ;;  %917 = vmatpush.msra.mxu1 %v360_v14 }
  0x2b   : > { %921 = vmatpush.msra.mxu2 %v359_v15  ;;  %922 = vmatpush.msra.mxu3 %v359_v15 }
  0x2c   : > { %439 = vmatmul.f32.vlgmr.msra.gmra.mxu2 %v311_v16  ;;  %463 = vmatmul.f32.vlgmr.msra.gmra.mxu3 %v319_v17 }
  0x2d   : > { %390 = vmatpush.msra.mxu0 %v359_v15  ;;  %920 = vmatpush.msra.mxu1 %v359_v15 }
  0x2e   : > { %391 = vmatmul.f32.vlgmr.msra.gmra.mxu0 %v295_v18  ;;  %415 = vmatmul.f32.vlgmr.msra.gmra.mxu1 %v303_v19 }
  0x34   : > { %442 = vmatmul.f32.gmra.mxu2 %v312_v20  ;;  %466 = vmatmul.f32.gmra.mxu3 %v320_v21 }
  0x36   : > { %394 = vmatmul.f32.gmra.mxu0 %v296_v22  ;;  %418 = vmatmul.f32.gmra.mxu1 %v304_v23 }
  0x3c   : > { %445 = vmatmul.f32.gmra.mxu2 %v313_v24  ;;  %469 = vmatmul.f32.gmra.mxu3 %v321_v25 }
  0x3e   : > { %397 = vmatmul.f32.gmra.mxu0 %v297_v26  ;;  %421 = vmatmul.f32.gmra.mxu1 %v305_v27 }
  0x44   : > { %448 = vmatmul.f32.gmra.mxu2 %v314_v28  ;;  %472 = vmatmul.f32.gmra.mxu3 %v322_v29 }
  0x46   : > { %400 = vmatmul.f32.gmra.mxu0 %v298_v30  ;;  %424 = vmatmul.f32.gmra.mxu1 %v306_v31 }
  0x4c   : > { %451 = vmatmul.f32.gmra.mxu2 %v315_v32  ;;  %475 = vmatmul.f32.gmra.mxu3 %v323_v33 }
  0x4e   : > { %403 = vmatmul.f32.gmra.mxu0 %v299_v34  ;;  %427 = vmatmul.f32.gmra.mxu1 %v307_v35 }
  0x54   : > { %454 = vmatmul.f32.gmra.mxu2 %v316_v36  ;;  %478 = vmatmul.f32.gmra.mxu3 %v324_v37 }
  0x56   : > { %406 = vmatmul.f32.gmra.mxu0 %v300_v38  ;;  %430 = vmatmul.f32.gmra.mxu1 %v308_v39 }
  0x5c   : > { %457 = vmatmul.f32.gmra.mxu2 %v317_v40  ;;  %481 = vmatmul.f32.gmra.mxu3 %v325_v41 }
  0x5e   : > { %409 = vmatmul.f32.gmra.mxu0 %v301_v42  ;;  %433 = vmatmul.f32.gmra.mxu1 %v309_v43 }
  0x64   : > { %460 = vmatmul.f32.gmra.mxu2 %v318_v44  ;;  %484 = vmatmul.f32.gmra.mxu3 %v326_v45 }
  0x66   : > { %412 = vmatmul.f32.gmra.mxu0 %v302_v46  ;;  %436 = vmatmul.f32.gmra.mxu1 %v310_v47 }
  0xab   : > { %v392_v49 = vpop.f32.mrf.mxu0  ;;  %v416_v50 = vpop.f32.mrf.mxu1 }
  0xac   : > { %v591_v51 = vadd.f32 %v1106_v48, %v392_v49  ;;  %v599_v52 = vadd.f32 %v1106_v48, %v416_v50 }
  0xae   : > { %vm623_vm0 = vcmp.ge.f32.partialorder %v591_v51, 0.0  ;;  %v655_v53 = vmul.f32 0.2, %v591_v51  ;;  %vm631_vm1 = vcmp.ge.f32.partialorder %v599_v52, 0.0  ;;  %v663_v54 = vmul.f32 0.2, %v599_v52 }
  0xaf   : > { %v440_v55 = vpop.f32.mrf.mxu2  ;;  %v464_v56 = vpop.f32.mrf.mxu3 }
  0xb0   : > { %v687_v57 = vsel %vm623_vm0, %v591_v51, %v655_v53  ;;  %v695_v58 = vsel %vm631_vm1, %v599_v52, %v663_v54  ;;  %v607_v59 = vadd.f32 %v1106_v48, %v440_v55  ;;  %v615_v60 = vadd.f32 %v1106_v48, %v464_v56 }
  0xb1   : > { %719 = vst [vmem:[%s1115_s7] sm:$0xff] %v687_v57 }
  0xb2   : > { %727 = vst [vmem:[%s1115_s7 + $0x40] sm:$0xff] %v695_v58  ;;  %vm639_vm2 = vcmp.ge.f32.partialorder %v607_v59, 0.0  ;;  %v671_v61 = vmul.f32 0.2, %v607_v59  ;;  %vm647_vm3 = vcmp.ge.f32.partialorder %v615_v60, 0.0 }
  0xb3   : > { %v679_v62 = vmul.f32 0.2, %v615_v60  ;;  %v395_v63 = vpop.f32.mrf.mxu0  ;;  %v419_v0 = vpop.f32.mrf.mxu1 }
  0xb4   : > { %v703_v1 = vsel %vm639_vm2, %v607_v59, %v671_v61  ;;  %v592_v2 = vadd.f32 %v1106_v48, %v395_v63  ;;  %v600_v3 = vadd.f32 %v1106_v48, %v419_v0 }
  0xb5   : > { %735 = vst [vmem:[%s1115_s7 + $0x80] sm:$0xff] %v703_v1  ;;  %v711_v4 = vsel %vm647_vm3, %v615_v60, %v679_v62 }
  0xb6   : > { %743 = vst [vmem:[%s1115_s7 + $0xc0] sm:$0xff] %v711_v4  ;;  %vm624_vm4 = vcmp.ge.f32.partialorder %v592_v2, 0.0  ;;  %v656_v5 = vmul.f32 0.2, %v592_v2  ;;  %vm632_vm5 = vcmp.ge.f32.partialorder %v600_v3, 0.0 }
  0xb7   : > { %v664_v6 = vmul.f32 0.2, %v600_v3  ;;  %v443_v7 = vpop.f32.mrf.mxu2  ;;  %v467_v8 = vpop.f32.mrf.mxu3 }
  0xb8   : > { %v688_v9 = vsel %vm624_vm4, %v592_v2, %v656_v5  ;;  %v608_v10 = vadd.f32 %v1106_v48, %v443_v7  ;;  %v616_v11 = vadd.f32 %v1106_v48, %v467_v8 }
  0xb9   : > { %720 = vst [vmem:[%s1115_s7 + $0x8] sm:$0xff] %v688_v9  ;;  %v696_v12 = vsel %vm632_vm5, %v600_v3, %v664_v6 }
  0xba   : > { %728 = vst [vmem:[%s1115_s7 + $0x48] sm:$0xff] %v696_v12  ;;  %vm640_vm6 = vcmp.ge.f32.partialorder %v608_v10, 0.0  ;;  %v672_v13 = vmul.f32 0.2, %v608_v10  ;;  %vm648_vm7 = vcmp.ge.f32.partialorder %v616_v11, 0.0 }
  0xbb   : > { %v680_v14 = vmul.f32 0.2, %v616_v11  ;;  %v398_v15 = vpop.f32.mrf.mxu0  ;;  %v422_v16 = vpop.f32.mrf.mxu1 }
  0xbc   : > { %v704_v17 = vsel %vm640_vm6, %v608_v10, %v672_v13  ;;  %v593_v18 = vadd.f32 %v1106_v48, %v398_v15  ;;  %v601_v19 = vadd.f32 %v1106_v48, %v422_v16 }
  0xbd   : > { %736 = vst [vmem:[%s1115_s7 + $0x88] sm:$0xff] %v704_v17  ;;  %v712_v20 = vsel %vm648_vm7, %v616_v11, %v680_v14 }
  0xbe   : > { %744 = vst [vmem:[%s1115_s7 + $0xc8] sm:$0xff] %v712_v20  ;;  %vm625_vm8 = vcmp.ge.f32.partialorder %v593_v18, 0.0  ;;  %v657_v21 = vmul.f32 0.2, %v593_v18  ;;  %vm633_vm9 = vcmp.ge.f32.partialorder %v601_v19, 0.0 }
  0xbf   : > { %v665_v22 = vmul.f32 0.2, %v601_v19  ;;  %v446_v23 = vpop.f32.mrf.mxu2  ;;  %v470_v24 = vpop.f32.mrf.mxu3 }
  0xc0   : > { %v689_v25 = vsel %vm625_vm8, %v593_v18, %v657_v21  ;;  %v609_v26 = vadd.f32 %v1106_v48, %v446_v23  ;;  %v617_v27 = vadd.f32 %v1106_v48, %v470_v24 }
  0xc1   : > { %721 = vst [vmem:[%s1115_s7 + $0x10] sm:$0xff] %v689_v25  ;;  %v697_v28 = vsel %vm633_vm9, %v601_v19, %v665_v22 }
  0xc2   : > { %729 = vst [vmem:[%s1115_s7 + $0x50] sm:$0xff] %v697_v28  ;;  %vm641_vm10 = vcmp.ge.f32.partialorder %v609_v26, 0.0  ;;  %v673_v29 = vmul.f32 0.2, %v609_v26  ;;  %vm649_vm11 = vcmp.ge.f32.partialorder %v617_v27, 0.0 }
  0xc3   : > { %v681_v30 = vmul.f32 0.2, %v617_v27  ;;  %v401_v31 = vpop.f32.mrf.mxu0  ;;  %v425_v32 = vpop.f32.mrf.mxu1 }
  0xc4   : > { %v705_v33 = vsel %vm641_vm10, %v609_v26, %v673_v29  ;;  %v594_v34 = vadd.f32 %v1106_v48, %v401_v31  ;;  %v602_v35 = vadd.f32 %v1106_v48, %v425_v32 }
  0xc5   : > { %737 = vst [vmem:[%s1115_s7 + $0x90] sm:$0xff] %v705_v33  ;;  %v713_v36 = vsel %vm649_vm11, %v617_v27, %v681_v30 }
  0xc6   : > { %745 = vst [vmem:[%s1115_s7 + $0xd0] sm:$0xff] %v713_v36  ;;  %vm626_vm12 = vcmp.ge.f32.partialorder %v594_v34, 0.0  ;;  %v658_v37 = vmul.f32 0.2, %v594_v34  ;;  %vm634_vm13 = vcmp.ge.f32.partialorder %v602_v35, 0.0 }
  0xc7   : > { %v666_v38 = vmul.f32 0.2, %v602_v35  ;;  %v449_v39 = vpop.f32.mrf.mxu2  ;;  %v473_v40 = vpop.f32.mrf.mxu3 }
  0xc8   : > { %v690_v41 = vsel %vm626_vm12, %v594_v34, %v658_v37  ;;  %v610_v42 = vadd.f32 %v1106_v48, %v449_v39  ;;  %v618_v43 = vadd.f32 %v1106_v48, %v473_v40 }
  0xc9   : > { %722 = vst [vmem:[%s1115_s7 + $0x18] sm:$0xff] %v690_v41  ;;  %v698_v44 = vsel %vm634_vm13, %v602_v35, %v666_v38 }
  0xca   : > { %730 = vst [vmem:[%s1115_s7 + $0x58] sm:$0xff] %v698_v44  ;;  %vm642_vm14 = vcmp.ge.f32.partialorder %v610_v42, 0.0  ;;  %v674_v45 = vmul.f32 0.2, %v610_v42  ;;  %vm650_vm15 = vcmp.ge.f32.partialorder %v618_v43, 0.0 }
  0xcb   : > { %v682_v46 = vmul.f32 0.2, %v618_v43  ;;  %v404_v47 = vpop.f32.mrf.mxu0  ;;  %v428_v49 = vpop.f32.mrf.mxu1 }
  0xcc   : > { %v706_v50 = vsel %vm642_vm14, %v610_v42, %v674_v45  ;;  %v595_v51 = vadd.f32 %v1106_v48, %v404_v47  ;;  %v603_v52 = vadd.f32 %v1106_v48, %v428_v49 }
  0xcd   : > { %738 = vst [vmem:[%s1115_s7 + $0x98] sm:$0xff] %v706_v50  ;;  %v714_v53 = vsel %vm650_vm15, %v618_v43, %v682_v46 }
  0xce   : > { %746 = vst [vmem:[%s1115_s7 + $0xd8] sm:$0xff] %v714_v53  ;;  %vm627_vm0 = vcmp.ge.f32.partialorder %v595_v51, 0.0  ;;  %v659_v54 = vmul.f32 0.2, %v595_v51  ;;  %vm635_vm1 = vcmp.ge.f32.partialorder %v603_v52, 0.0 }
  0xcf   : > { %v667_v55 = vmul.f32 0.2, %v603_v52  ;;  %v452_v56 = vpop.f32.mrf.mxu2  ;;  %v476_v57 = vpop.f32.mrf.mxu3 }
  0xd0   : > { %v691_v58 = vsel %vm627_vm0, %v595_v51, %v659_v54  ;;  %v611_v59 = vadd.f32 %v1106_v48, %v452_v56  ;;  %v619_v60 = vadd.f32 %v1106_v48, %v476_v57 }
  0xd1   : > { %723 = vst [vmem:[%s1115_s7 + $0x20] sm:$0xff] %v691_v58  ;;  %v699_v61 = vsel %vm635_vm1, %v603_v52, %v667_v55 }
  0xd2   : > { %731 = vst [vmem:[%s1115_s7 + $0x60] sm:$0xff] %v699_v61  ;;  %vm643_vm2 = vcmp.ge.f32.partialorder %v611_v59, 0.0  ;;  %v675_v62 = vmul.f32 0.2, %v611_v59  ;;  %vm651_vm3 = vcmp.ge.f32.partialorder %v619_v60, 0.0 }
  0xd3   : > { %v683_v63 = vmul.f32 0.2, %v619_v60  ;;  %v407_v0 = vpop.f32.mrf.mxu0  ;;  %v431_v1 = vpop.f32.mrf.mxu1 }
  0xd4   : > { %v707_v2 = vsel %vm643_vm2, %v611_v59, %v675_v62  ;;  %v596_v3 = vadd.f32 %v1106_v48, %v407_v0  ;;  %v604_v4 = vadd.f32 %v1106_v48, %v431_v1 }
  0xd5   : > { %739 = vst [vmem:[%s1115_s7 + $0xa0] sm:$0xff] %v707_v2  ;;  %v715_v5 = vsel %vm651_vm3, %v619_v60, %v683_v63 }
  0xd6   : > { %747 = vst [vmem:[%s1115_s7 + $0xe0] sm:$0xff] %v715_v5  ;;  %vm628_vm4 = vcmp.ge.f32.partialorder %v596_v3, 0.0  ;;  %v660_v6 = vmul.f32 0.2, %v596_v3  ;;  %vm636_vm5 = vcmp.ge.f32.partialorder %v604_v4, 0.0 }
  0xd7   : > { %v668_v7 = vmul.f32 0.2, %v604_v4  ;;  %v455_v8 = vpop.f32.mrf.mxu2  ;;  %v479_v9 = vpop.f32.mrf.mxu3 }
  0xd8   : > { %v692_v10 = vsel %vm628_vm4, %v596_v3, %v660_v6  ;;  %v612_v11 = vadd.f32 %v1106_v48, %v455_v8  ;;  %v620_v12 = vadd.f32 %v1106_v48, %v479_v9 }
  0xd9   : > { %724 = vst [vmem:[%s1115_s7 + $0x28] sm:$0xff] %v692_v10  ;;  %v700_v13 = vsel %vm636_vm5, %v604_v4, %v668_v7 }
  0xda   : > { %732 = vst [vmem:[%s1115_s7 + $0x68] sm:$0xff] %v700_v13  ;;  %vm644_vm6 = vcmp.ge.f32.partialorder %v612_v11, 0.0  ;;  %v676_v14 = vmul.f32 0.2, %v612_v11  ;;  %vm652_vm7 = vcmp.ge.f32.partialorder %v620_v12, 0.0 }
  0xdb   : > { %v684_v15 = vmul.f32 0.2, %v620_v12  ;;  %v410_v16 = vpop.f32.mrf.mxu0  ;;  %v434_v17 = vpop.f32.mrf.mxu1 }
  0xdc   : > { %v708_v18 = vsel %vm644_vm6, %v612_v11, %v676_v14  ;;  %v597_v19 = vadd.f32 %v1106_v48, %v410_v16  ;;  %v605_v20 = vadd.f32 %v1106_v48, %v434_v17 }
  0xdd   : > { %740 = vst [vmem:[%s1115_s7 + $0xa8] sm:$0xff] %v708_v18  ;;  %v716_v21 = vsel %vm652_vm7, %v620_v12, %v684_v15 }
  0xde   : > { %748 = vst [vmem:[%s1115_s7 + $0xe8] sm:$0xff] %v716_v21  ;;  %vm629_vm8 = vcmp.ge.f32.partialorder %v597_v19, 0.0  ;;  %v661_v22 = vmul.f32 0.2, %v597_v19  ;;  %vm637_vm9 = vcmp.ge.f32.partialorder %v605_v20, 0.0 }
  0xdf   : > { %v669_v23 = vmul.f32 0.2, %v605_v20  ;;  %v458_v24 = vpop.f32.mrf.mxu2  ;;  %v482_v25 = vpop.f32.mrf.mxu3 }
  0xe0   : > { %v693_v26 = vsel %vm629_vm8, %v597_v19, %v661_v22  ;;  %v613_v27 = vadd.f32 %v1106_v48, %v458_v24  ;;  %v621_v28 = vadd.f32 %v1106_v48, %v482_v25 }
  0xe1   : > { %725 = vst [vmem:[%s1115_s7 + $0x30] sm:$0xff] %v693_v26  ;;  %v701_v29 = vsel %vm637_vm9, %v605_v20, %v669_v23 }
  0xe2   : > { %733 = vst [vmem:[%s1115_s7 + $0x70] sm:$0xff] %v701_v29  ;;  %vm645_vm10 = vcmp.ge.f32.partialorder %v613_v27, 0.0  ;;  %v677_v30 = vmul.f32 0.2, %v613_v27  ;;  %vm653_vm11 = vcmp.ge.f32.partialorder %v621_v28, 0.0 }
  0xe3   : > { %v685_v31 = vmul.f32 0.2, %v621_v28  ;;  %v413_v32 = vpop.f32.mrf.mxu0  ;;  %v437_v33 = vpop.f32.mrf.mxu1 }
  0xe4   : > { %v709_v34 = vsel %vm645_vm10, %v613_v27, %v677_v30  ;;  %v598_v35 = vadd.f32 %v1106_v48, %v413_v32  ;;  %v606_v36 = vadd.f32 %v1106_v48, %v437_v33 }
  0xe5   : > { %741 = vst [vmem:[%s1115_s7 + $0xb0] sm:$0xff] %v709_v34  ;;  %v717_v37 = vsel %vm653_vm11, %v621_v28, %v685_v31 }
  0xe6   : > { %749 = vst [vmem:[%s1115_s7 + $0xf0] sm:$0xff] %v717_v37  ;;  %vm630_vm12 = vcmp.ge.f32.partialorder %v598_v35, 0.0  ;;  %v662_v38 = vmul.f32 0.2, %v598_v35  ;;  %vm638_vm13 = vcmp.ge.f32.partialorder %v606_v36, 0.0 }
  0xe7   : > { %v670_v39 = vmul.f32 0.2, %v606_v36  ;;  %v461_v40 = vpop.f32.mrf.mxu2  ;;  %v485_v41 = vpop.f32.mrf.mxu3 }
  0xe8   : > { %v694_v42 = vsel %vm630_vm12, %v598_v35, %v662_v38  ;;  %v614_v43 = vadd.f32 %v1106_v48, %v461_v40  ;;  %v622_v44 = vadd.f32 %v1106_v48, %v485_v41 }
  0xe9   : > { %726 = vst [vmem:[%s1115_s7 + $0x38] sm:$0xff] %v694_v42  ;;  %v702_v45 = vsel %vm638_vm13, %v606_v36, %v670_v39 }
  0xea   : > { %734 = vst [vmem:[%s1115_s7 + $0x78] sm:$0xff] %v702_v45  ;;  %vm646_vm14 = vcmp.ge.f32.partialorder %v614_v43, 0.0  ;;  %v678_v46 = vmul.f32 0.2, %v614_v43  ;;  %vm654_vm15 = vcmp.ge.f32.partialorder %v622_v44, 0.0 }
  0xeb   : > { %v686_v47 = vmul.f32 0.2, %v622_v44 }
  0xec   : > { %v710_v49 = vsel %vm646_vm14, %v614_v43, %v678_v46 }
  0xed   : > { %742 = vst [vmem:[%s1115_s7 + $0xb8] sm:$0xff] %v710_v49  ;;  %v718_v50 = vsel %vm654_vm15, %v622_v44, %v686_v47 }
  0xee   : > { %750 = vst [vmem:[%s1115_s7 + $0xf8] sm:$0xff] %v718_v50 }
  0xef PF: > { %s13_s14 = sadd.s32 1, %s970_s14   ;;  %s1192_s12 = smov %s966_s13 }
  0xf0   : > { %p10_p5 = scmp.ge.s32.totalorder %s13_s14, 4   ;;  %s1193_s13 = smov %s1195_s15 }
  0xf2   :  { %12 = sbr.rel (!%p10_p5) target bundleno = 2 (0x2), region = 76 }

// kernel: _lambda_.16
= control target key start
LH: loop header
LB: loop body
LE: loop exit
PB: predicated region body
PF: predicated region fallthrough
CT: control target
= control target key end

     0   :  { %s520_s1 = inlined_call_operand.vmem [shape: f32[128,128], index: 1, kind: input, shape index: {}]   ;;  %s521_s2 = inlined_call_operand.vmem [shape: f32[1,128], index: 2, kind: input, shape index: {}]   ;;  %s522_s0 = inlined_call_operand.vmem [shape: f32[128,128], index: 0, kind: input, shape index: {}]   ;;  %s523_s3 = inlined_call_operand.vmem [shape: f32[128,128], index: 3, kind: output, shape index: {}]  }
   0x1   :  { %v81_v0 = vld [vmem:[%s520_s1 + $0x78] sm:$0xff]  ;;  %v80_v1 = vld [vmem:[%s520_s1 + $0x70] sm:$0xff]  ;;  %v79_v2 = vld [vmem:[%s520_s1 + $0x68] sm:$0xff] }
   0x2   :  { %287 = vmatpush.msra.mxu2 %v81_v0  ;;  %288 = vmatpush.msra.mxu3 %v81_v0  ;;  %v78_v3 = vld [vmem:[%s520_s1 + $0x60] sm:$0xff]  ;;  %v77_v4 = vld [vmem:[%s520_s1 + $0x58] sm:$0xff]  ;;  %v76_v5 = vld [vmem:[%s520_s1 + $0x50] sm:$0xff] }
   0x3   :  { %82 = vmatpush.msra.mxu0 %v81_v0  ;;  %286 = vmatpush.msra.mxu1 %v81_v0  ;;  %v75_v6 = vld [vmem:[%s520_s1 + $0x48] sm:$0xff]  ;;  %v74_v7 = vld [vmem:[%s520_s1 + $0x40] sm:$0xff]  ;;  %v73_v8 = vld [vmem:[%s520_s1 + $0x38] sm:$0xff] }
   0x4   :  { %290 = vmatpush.msra.mxu2 %v80_v1  ;;  %291 = vmatpush.msra.mxu3 %v80_v1  ;;  %v72_v9 = vld [vmem:[%s520_s1 + $0x30] sm:$0xff]  ;;  %v71_v10 = vld [vmem:[%s520_s1 + $0x28] sm:$0xff]  ;;  %v70_v11 = vld [vmem:[%s520_s1 + $0x20] sm:$0xff] }
   0x5   :  { %83 = vmatpush.msra.mxu0 %v80_v1  ;;  %289 = vmatpush.msra.mxu1 %v80_v1  ;;  %v69_v12 = vld [vmem:[%s520_s1 + $0x18] sm:$0xff]  ;;  %v68_v13 = vld [vmem:[%s520_s1 + $0x10] sm:$0xff]  ;;  %v67_v14 = vld [vmem:[%s520_s1 + $0x8] sm:$0xff] }
   0x6   :  { %293 = vmatpush.msra.mxu2 %v79_v2  ;;  %294 = vmatpush.msra.mxu3 %v79_v2  ;;  %v66_v15 = vld [vmem:[%s520_s1] sm:$0xff]  ;;  %v43_v20 = vld [vmem:[%s522_s0 + $0x48] sm:$0xff]  ;;  %v44_v24 = vld [vmem:[%s522_s0 + $0x50] sm:$0xff] }
   0x7   :  { %84 = vmatpush.msra.mxu0 %v79_v2  ;;  %292 = vmatpush.msra.mxu1 %v79_v2  ;;  %v42_v16 = vld [vmem:[%s522_s0 + $0x40] sm:$0xff]  ;;  %v47_v21 = vld [vmem:[%s522_s0 + $0x68] sm:$0xff]  ;;  %v48_v25 = vld [vmem:[%s522_s0 + $0x70] sm:$0xff] }
   0x8   :  { %296 = vmatpush.msra.mxu2 %v78_v3  ;;  %297 = vmatpush.msra.mxu3 %v78_v3  ;;  %v46_v17 = vld [vmem:[%s522_s0 + $0x60] sm:$0xff]  ;;  %v35_v22 = vld [vmem:[%s522_s0 + $0x8] sm:$0xff]  ;;  %v36_v26 = vld [vmem:[%s522_s0 + $0x10] sm:$0xff] }
   0x9   :  { %85 = vmatpush.msra.mxu0 %v78_v3  ;;  %295 = vmatpush.msra.mxu1 %v78_v3  ;;  %v34_v18 = vld [vmem:[%s522_s0] sm:$0xff]  ;;  %v39_v23 = vld [vmem:[%s522_s0 + $0x28] sm:$0xff]  ;;  %v40_v27 = vld [vmem:[%s522_s0 + $0x30] sm:$0xff] }
   0xa   :  { %299 = vmatpush.msra.mxu2 %v77_v4  ;;  %300 = vmatpush.msra.mxu3 %v77_v4  ;;  %v38_v19 = vld [vmem:[%s522_s0 + $0x20] sm:$0xff]  ;;  %v45_v28 = vld [vmem:[%s522_s0 + $0x58] sm:$0xff] }
   0xb   :  { %86 = vmatpush.msra.mxu0 %v77_v4  ;;  %298 = vmatpush.msra.mxu1 %v77_v4  ;;  %v49_v29 = vld [vmem:[%s522_s0 + $0x78] sm:$0xff]  ;;  %v454_v32 = vld [vmem:[%s521_s2] ss:$0 sm:$0xff] }
   0xc   :  { %302 = vmatpush.msra.mxu2 %v76_v5  ;;  %303 = vmatpush.msra.mxu3 %v76_v5  ;;  %v37_v30 = vld [vmem:[%s522_s0 + $0x18] sm:$0xff] }
   0xd   :  { %87 = vmatpush.msra.mxu0 %v76_v5  ;;  %301 = vmatpush.msra.mxu1 %v76_v5  ;;  %v41_v31 = vld [vmem:[%s522_s0 + $0x38] sm:$0xff] }
   0xe   :  { %305 = vmatpush.msra.mxu2 %v75_v6  ;;  %306 = vmatpush.msra.mxu3 %v75_v6 }
   0xf   :  { %88 = vmatpush.msra.mxu0 %v75_v6  ;;  %304 = vmatpush.msra.mxu1 %v75_v6 }
  0x10   :  { %308 = vmatpush.msra.mxu2 %v74_v7  ;;  %309 = vmatpush.msra.mxu3 %v74_v7 }
  0x11   :  { %89 = vmatpush.msra.mxu0 %v74_v7  ;;  %307 = vmatpush.msra.mxu1 %v74_v7 }
  0x12   :  { %311 = vmatpush.msra.mxu2 %v73_v8  ;;  %312 = vmatpush.msra.mxu3 %v73_v8 }
  0x13   :  { %90 = vmatpush.msra.mxu0 %v73_v8  ;;  %310 = vmatpush.msra.mxu1 %v73_v8 }
  0x14   :  { %314 = vmatpush.msra.mxu2 %v72_v9  ;;  %315 = vmatpush.msra.mxu3 %v72_v9 }
  0x15   :  { %91 = vmatpush.msra.mxu0 %v72_v9  ;;  %313 = vmatpush.msra.mxu1 %v72_v9 }
  0x16   :  { %317 = vmatpush.msra.mxu2 %v71_v10  ;;  %318 = vmatpush.msra.mxu3 %v71_v10 }
  0x17   :  { %92 = vmatpush.msra.mxu0 %v71_v10  ;;  %316 = vmatpush.msra.mxu1 %v71_v10 }
  0x18   :  { %320 = vmatpush.msra.mxu2 %v70_v11  ;;  %321 = vmatpush.msra.mxu3 %v70_v11 }
  0x19   :  { %93 = vmatpush.msra.mxu0 %v70_v11  ;;  %319 = vmatpush.msra.mxu1 %v70_v11 }
  0x1a   :  { %323 = vmatpush.msra.mxu2 %v69_v12  ;;  %324 = vmatpush.msra.mxu3 %v69_v12 }
  0x1b   :  { %94 = vmatpush.msra.mxu0 %v69_v12  ;;  %322 = vmatpush.msra.mxu1 %v69_v12 }
  0x1c   :  { %326 = vmatpush.msra.mxu2 %v68_v13  ;;  %327 = vmatpush.msra.mxu3 %v68_v13 }
  0x1d   :  { %95 = vmatpush.msra.mxu0 %v68_v13  ;;  %325 = vmatpush.msra.mxu1 %v68_v13 }
  0x1e   :  { %329 = vmatpush.msra.mxu2 %v67_v14  ;;  %330 = vmatpush.msra.mxu3 %v67_v14 }
  0x1f   :  { %96 = vmatpush.msra.mxu0 %v67_v14  ;;  %328 = vmatpush.msra.mxu1 %v67_v14 }
  0x20   :  { %332 = vmatpush.msra.mxu2 %v66_v15  ;;  %333 = vmatpush.msra.mxu3 %v66_v15 }
  0x21   :  { %122 = vmatmul.f32.vlgmr.msra.gmra.mxu2 %v42_v16  ;;  %134 = vmatmul.f32.vlgmr.msra.gmra.mxu3 %v46_v17 }
  0x22   :  { %97 = vmatpush.msra.mxu0 %v66_v15  ;;  %331 = vmatpush.msra.mxu1 %v66_v15 }
  0x23   :  { %98 = vmatmul.f32.vlgmr.msra.gmra.mxu0 %v34_v18  ;;  %110 = vmatmul.f32.vlgmr.msra.gmra.mxu1 %v38_v19 }
  0x29   :  { %125 = vmatmul.f32.gmra.mxu2 %v43_v20  ;;  %137 = vmatmul.f32.gmra.mxu3 %v47_v21 }
  0x2b   :  { %101 = vmatmul.f32.gmra.mxu0 %v35_v22  ;;  %113 = vmatmul.f32.gmra.mxu1 %v39_v23 }
  0x31   :  { %128 = vmatmul.f32.gmra.mxu2 %v44_v24  ;;  %140 = vmatmul.f32.gmra.mxu3 %v48_v25 }
  0x33   :  { %104 = vmatmul.f32.gmra.mxu0 %v36_v26  ;;  %116 = vmatmul.f32.gmra.mxu1 %v40_v27 }
  0x39   :  { %131 = vmatmul.f32.gmra.mxu2 %v45_v28  ;;  %143 = vmatmul.f32.gmra.mxu3 %v49_v29 }
  0x3b   :  { %107 = vmatmul.f32.gmra.mxu0 %v37_v30  ;;  %119 = vmatmul.f32.gmra.mxu1 %v41_v31 }
  0xa0   :  { %v99_v33 = vpop.f32.mrf.mxu0  ;;  %v111_v34 = vpop.f32.mrf.mxu1 }
  0xa1   :  { %v202_v35 = vadd.f32 %v454_v32, %v99_v33  ;;  %v206_v36 = vadd.f32 %v454_v32, %v111_v34 }
  0xa3   :  { %vm218_vm0 = vcmp.ge.f32.partialorder %v202_v35, 0.0  ;;  %v234_v37 = vmul.f32 0.2, %v202_v35  ;;  %vm222_vm1 = vcmp.ge.f32.partialorder %v206_v36, 0.0  ;;  %v238_v38 = vmul.f32 0.2, %v206_v36 }
  0xa4   :  { %v123_v39 = vpop.f32.mrf.mxu2  ;;  %v135_v40 = vpop.f32.mrf.mxu3 }
  0xa5   :  { %v250_v41 = vsel %vm218_vm0, %v202_v35, %v234_v37  ;;  %v254_v42 = vsel %vm222_vm1, %v206_v36, %v238_v38  ;;  %v210_v43 = vadd.f32 %v454_v32, %v123_v39  ;;  %v214_v44 = vadd.f32 %v454_v32, %v135_v40 }
  0xa6   :  { %266 = vst [vmem:[%s523_s3] sm:$0xff] %v250_v41 }
  0xa7   :  { %270 = vst [vmem:[%s523_s3 + $0x20] sm:$0xff] %v254_v42  ;;  %vm226_vm2 = vcmp.ge.f32.partialorder %v210_v43, 0.0  ;;  %v242_v45 = vmul.f32 0.2, %v210_v43  ;;  %vm230_vm3 = vcmp.ge.f32.partialorder %v214_v44, 0.0 }
  0xa8   :  { %v246_v46 = vmul.f32 0.2, %v214_v44  ;;  %v102_v47 = vpop.f32.mrf.mxu0  ;;  %v114_v48 = vpop.f32.mrf.mxu1 }
  0xa9   :  { %v258_v49 = vsel %vm226_vm2, %v210_v43, %v242_v45  ;;  %v203_v50 = vadd.f32 %v454_v32, %v102_v47  ;;  %v207_v51 = vadd.f32 %v454_v32, %v114_v48 }
  0xaa   :  { %274 = vst [vmem:[%s523_s3 + $0x40] sm:$0xff] %v258_v49  ;;  %v262_v52 = vsel %vm230_vm3, %v214_v44, %v246_v46 }
  0xab   :  { %278 = vst [vmem:[%s523_s3 + $0x60] sm:$0xff] %v262_v52  ;;  %vm219_vm4 = vcmp.ge.f32.partialorder %v203_v50, 0.0  ;;  %v235_v53 = vmul.f32 0.2, %v203_v50  ;;  %vm223_vm5 = vcmp.ge.f32.partialorder %v207_v51, 0.0 }
  0xac   :  { %v239_v54 = vmul.f32 0.2, %v207_v51  ;;  %v126_v55 = vpop.f32.mrf.mxu2  ;;  %v138_v56 = vpop.f32.mrf.mxu3 }
  0xad   :  { %v251_v57 = vsel %vm219_vm4, %v203_v50, %v235_v53  ;;  %v211_v58 = vadd.f32 %v454_v32, %v126_v55  ;;  %v215_v59 = vadd.f32 %v454_v32, %v138_v56 }
  0xae   :  { %267 = vst [vmem:[%s523_s3 + $0x8] sm:$0xff] %v251_v57  ;;  %v255_v60 = vsel %vm223_vm5, %v207_v51, %v239_v54 }
  0xaf   :  { %271 = vst [vmem:[%s523_s3 + $0x28] sm:$0xff] %v255_v60  ;;  %vm227_vm6 = vcmp.ge.f32.partialorder %v211_v58, 0.0  ;;  %v243_v61 = vmul.f32 0.2, %v211_v58  ;;  %vm231_vm7 = vcmp.ge.f32.partialorder %v215_v59, 0.0 }
  0xb0   :  { %v247_v62 = vmul.f32 0.2, %v215_v59  ;;  %v105_v63 = vpop.f32.mrf.mxu0  ;;  %v117_v0 = vpop.f32.mrf.mxu1 }
  0xb1   :  { %v259_v1 = vsel %vm227_vm6, %v211_v58, %v243_v61  ;;  %v204_v2 = vadd.f32 %v454_v32, %v105_v63  ;;  %v208_v3 = vadd.f32 %v454_v32, %v117_v0 }
  0xb2   :  { %275 = vst [vmem:[%s523_s3 + $0x48] sm:$0xff] %v259_v1  ;;  %v263_v4 = vsel %vm231_vm7, %v215_v59, %v247_v62 }
  0xb3   :  { %279 = vst [vmem:[%s523_s3 + $0x68] sm:$0xff] %v263_v4  ;;  %vm220_vm8 = vcmp.ge.f32.partialorder %v204_v2, 0.0  ;;  %v236_v5 = vmul.f32 0.2, %v204_v2  ;;  %vm224_vm9 = vcmp.ge.f32.partialorder %v208_v3, 0.0 }
  0xb4   :  { %v240_v6 = vmul.f32 0.2, %v208_v3  ;;  %v129_v7 = vpop.f32.mrf.mxu2  ;;  %v141_v8 = vpop.f32.mrf.mxu3 }
  0xb5   :  { %v252_v9 = vsel %vm220_vm8, %v204_v2, %v236_v5  ;;  %v212_v10 = vadd.f32 %v454_v32, %v129_v7  ;;  %v216_v11 = vadd.f32 %v454_v32, %v141_v8 }
  0xb6   :  { %268 = vst [vmem:[%s523_s3 + $0x10] sm:$0xff] %v252_v9  ;;  %v256_v12 = vsel %vm224_vm9, %v208_v3, %v240_v6 }
  0xb7   :  { %272 = vst [vmem:[%s523_s3 + $0x30] sm:$0xff] %v256_v12  ;;  %vm228_vm10 = vcmp.ge.f32.partialorder %v212_v10, 0.0  ;;  %v244_v13 = vmul.f32 0.2, %v212_v10  ;;  %vm232_vm11 = vcmp.ge.f32.partialorder %v216_v11, 0.0 }
  0xb8   :  { %v248_v14 = vmul.f32 0.2, %v216_v11  ;;  %v108_v15 = vpop.f32.mrf.mxu0  ;;  %v120_v16 = vpop.f32.mrf.mxu1 }
  0xb9   :  { %v260_v17 = vsel %vm228_vm10, %v212_v10, %v244_v13  ;;  %v205_v18 = vadd.f32 %v454_v32, %v108_v15  ;;  %v209_v19 = vadd.f32 %v454_v32, %v120_v16 }
  0xba   :  { %276 = vst [vmem:[%s523_s3 + $0x50] sm:$0xff] %v260_v17  ;;  %v264_v20 = vsel %vm232_vm11, %v216_v11, %v248_v14 }
  0xbb   :  { %280 = vst [vmem:[%s523_s3 + $0x70] sm:$0xff] %v264_v20  ;;  %vm221_vm12 = vcmp.ge.f32.partialorder %v205_v18, 0.0  ;;  %v237_v21 = vmul.f32 0.2, %v205_v18  ;;  %vm225_vm13 = vcmp.ge.f32.partialorder %v209_v19, 0.0 }
  0xbc   :  { %v241_v22 = vmul.f32 0.2, %v209_v19  ;;  %v132_v23 = vpop.f32.mrf.mxu2  ;;  %v144_v24 = vpop.f32.mrf.mxu3 }
  0xbd   :  { %v253_v25 = vsel %vm221_vm12, %v205_v18, %v237_v21  ;;  %v213_v26 = vadd.f32 %v454_v32, %v132_v23  ;;  %v217_v27 = vadd.f32 %v454_v32, %v144_v24 }
  0xbe   :  { %269 = vst [vmem:[%s523_s3 + $0x18] sm:$0xff] %v253_v25  ;;  %v257_v28 = vsel %vm225_vm13, %v209_v19, %v241_v22 }
  0xbf   :  { %273 = vst [vmem:[%s523_s3 + $0x38] sm:$0xff] %v257_v28  ;;  %vm229_vm14 = vcmp.ge.f32.partialorder %v213_v26, 0.0  ;;  %v245_v29 = vmul.f32 0.2, %v213_v26  ;;  %vm233_vm15 = vcmp.ge.f32.partialorder %v217_v27, 0.0 }
  0xc0   :  { %v249_v30 = vmul.f32 0.2, %v217_v27 }
  0xc1   :  { %v261_v31 = vsel %vm229_vm14, %v213_v26, %v245_v29 }
  0xc2   :  { %277 = vst [vmem:[%s523_s3 + $0x58] sm:$0xff] %v261_v31  ;;  %v265_v33 = vsel %vm233_vm15, %v217_v27, %v249_v30 }
  0xc3   :  { %281 = vst [vmem:[%s523_s3 + $0x78] sm:$0xff] %v265_v33 }

// kernel: _lambda_.17
= control target key start
LH: loop header
LB: loop body
LE: loop exit
PB: predicated region body
PF: predicated region fallthrough
CT: control target
= control target key end

     0   :  { %s355_s1 = inlined_call_operand.vmem [shape: f32[256,128], index: 1, kind: input, shape index: {}]   ;;  %s356_s0 = inlined_call_operand.vmem [shape: f32[32,256], index: 0, kind: input, shape index: {}]   ;;  %s357_s2 = inlined_call_operand.vmem [shape: f32[1,128], index: 2, kind: input, shape index: {}]   ;;  %s358_s3 = inlined_call_operand.vmem [shape: f32[32,128], index: 3, kind: output, shape index: {}]  }
   0x1   :  { %v49_v0 = vld [vmem:[%s355_s1 + $0x78] sm:$0xff]  ;;  %v48_v2 = vld [vmem:[%s355_s1 + $0x70] sm:$0xff]  ;;  %v47_v4 = vld [vmem:[%s355_s1 + $0x68] sm:$0xff] }
   0x2   :  { %v65_v1 = vld [vmem:[%s355_s1 + $0xf8] sm:$0xff]  ;;  %167 = vmatpush.msra.mxu2 %v49_v0  ;;  %v64_v3 = vld [vmem:[%s355_s1 + $0xf0] sm:$0xff]  ;;  %66 = vmatpush.msra.mxu0 %v49_v0  ;;  %v63_v5 = vld [vmem:[%s355_s1 + $0xe8] sm:$0xff] }
   0x3   :  { %183 = vmatpush.msra.mxu3 %v65_v1  ;;  %95 = vmatpush.msra.mxu1 %v65_v1  ;;  %v46_v6 = vld [vmem:[%s355_s1 + $0x60] sm:$0xff]  ;;  %v45_v8 = vld [vmem:[%s355_s1 + $0x58] sm:$0xff]  ;;  %v44_v10 = vld [vmem:[%s355_s1 + $0x50] sm:$0xff] }
   0x4   :  { %168 = vmatpush.msra.mxu2 %v48_v2  ;;  %67 = vmatpush.msra.mxu0 %v48_v2  ;;  %v62_v7 = vld [vmem:[%s355_s1 + $0xe0] sm:$0xff]  ;;  %v61_v9 = vld [vmem:[%s355_s1 + $0xd8] sm:$0xff]  ;;  %v60_v11 = vld [vmem:[%s355_s1 + $0xd0] sm:$0xff] }
   0x5   :  { %184 = vmatpush.msra.mxu3 %v64_v3  ;;  %96 = vmatpush.msra.mxu1 %v64_v3  ;;  %v43_v12 = vld [vmem:[%s355_s1 + $0x48] sm:$0xff]  ;;  %v42_v14 = vld [vmem:[%s355_s1 + $0x40] sm:$0xff]  ;;  %v41_v16 = vld [vmem:[%s355_s1 + $0x38] sm:$0xff] }
   0x6   :  { %169 = vmatpush.msra.mxu2 %v47_v4  ;;  %68 = vmatpush.msra.mxu0 %v47_v4  ;;  %v59_v13 = vld [vmem:[%s355_s1 + $0xc8] sm:$0xff]  ;;  %v58_v15 = vld [vmem:[%s355_s1 + $0xc0] sm:$0xff]  ;;  %v57_v17 = vld [vmem:[%s355_s1 + $0xb8] sm:$0xff] }
   0x7   :  { %185 = vmatpush.msra.mxu3 %v63_v5  ;;  %97 = vmatpush.msra.mxu1 %v63_v5  ;;  %v40_v18 = vld [vmem:[%s355_s1 + $0x30] sm:$0xff]  ;;  %v39_v20 = vld [vmem:[%s355_s1 + $0x28] sm:$0xff]  ;;  %v38_v22 = vld [vmem:[%s355_s1 + $0x20] sm:$0xff] }
   0x8   :  { %170 = vmatpush.msra.mxu2 %v46_v6  ;;  %69 = vmatpush.msra.mxu0 %v46_v6  ;;  %v56_v19 = vld [vmem:[%s355_s1 + $0xb0] sm:$0xff]  ;;  %v55_v21 = vld [vmem:[%s355_s1 + $0xa8] sm:$0xff]  ;;  %v54_v23 = vld [vmem:[%s355_s1 + $0xa0] sm:$0xff] }
   0x9   :  { %186 = vmatpush.msra.mxu3 %v62_v7  ;;  %98 = vmatpush.msra.mxu1 %v62_v7  ;;  %v37_v24 = vld [vmem:[%s355_s1 + $0x18] sm:$0xff]  ;;  %v36_v26 = vld [vmem:[%s355_s1 + $0x10] sm:$0xff]  ;;  %v35_v28 = vld [vmem:[%s355_s1 + $0x8] sm:$0xff] }
   0xa   :  { %171 = vmatpush.msra.mxu2 %v45_v8  ;;  %70 = vmatpush.msra.mxu0 %v45_v8  ;;  %v53_v25 = vld [vmem:[%s355_s1 + $0x98] sm:$0xff]  ;;  %v52_v27 = vld [vmem:[%s355_s1 + $0x90] sm:$0xff]  ;;  %v51_v29 = vld [vmem:[%s355_s1 + $0x88] sm:$0xff] }
   0xb   :  { %187 = vmatpush.msra.mxu3 %v61_v9  ;;  %99 = vmatpush.msra.mxu1 %v61_v9  ;;  %v34_v30 = vld [vmem:[%s355_s1] sm:$0xff]  ;;  %v27_v33 = vld [vmem:[%s356_s0 + $0x28] sm:$0xff]  ;;  %v28_v36 = vld [vmem:[%s356_s0 + $0x30] sm:$0xff] }
   0xc   :  { %172 = vmatpush.msra.mxu2 %v44_v10  ;;  %71 = vmatpush.msra.mxu0 %v44_v10  ;;  %v50_v31 = vld [vmem:[%s355_s1 + $0x80] sm:$0xff]  ;;  %v23_v35 = vld [vmem:[%s356_s0 + $0x8] sm:$0xff]  ;;  %v29_v37 = vld [vmem:[%s356_s0 + $0x38] sm:$0xff] }
   0xd   :  { %188 = vmatpush.msra.mxu3 %v60_v11  ;;  %100 = vmatpush.msra.mxu1 %v60_v11  ;;  %v26_v32 = vld [vmem:[%s356_s0 + $0x20] sm:$0xff]  ;;  %v24_v38 = vld [vmem:[%s356_s0 + $0x10] sm:$0xff]  ;;  %v25_v39 = vld [vmem:[%s356_s0 + $0x18] sm:$0xff] }
   0xe   :  { %173 = vmatpush.msra.mxu2 %v43_v12  ;;  %72 = vmatpush.msra.mxu0 %v43_v12  ;;  %v22_v34 = vld [vmem:[%s356_s0] sm:$0xff] }
   0xf   :  { %189 = vmatpush.msra.mxu3 %v59_v13  ;;  %101 = vmatpush.msra.mxu1 %v59_v13  ;;  %v199_v40 = vld [vmem:[%s357_s2] ss:$0 sm:$0xff] }
  0x10   :  { %174 = vmatpush.msra.mxu2 %v42_v14  ;;  %73 = vmatpush.msra.mxu0 %v42_v14 }
  0x11   :  { %190 = vmatpush.msra.mxu3 %v58_v15  ;;  %102 = vmatpush.msra.mxu1 %v58_v15 }
  0x12   :  { %175 = vmatpush.msra.mxu2 %v41_v16  ;;  %74 = vmatpush.msra.mxu0 %v41_v16 }
  0x13   :  { %191 = vmatpush.msra.mxu3 %v57_v17  ;;  %103 = vmatpush.msra.mxu1 %v57_v17 }
  0x14   :  { %176 = vmatpush.msra.mxu2 %v40_v18  ;;  %75 = vmatpush.msra.mxu0 %v40_v18 }
  0x15   :  { %192 = vmatpush.msra.mxu3 %v56_v19  ;;  %104 = vmatpush.msra.mxu1 %v56_v19 }
  0x16   :  { %177 = vmatpush.msra.mxu2 %v39_v20  ;;  %76 = vmatpush.msra.mxu0 %v39_v20 }
  0x17   :  { %193 = vmatpush.msra.mxu3 %v55_v21  ;;  %105 = vmatpush.msra.mxu1 %v55_v21 }
  0x18   :  { %178 = vmatpush.msra.mxu2 %v38_v22  ;;  %77 = vmatpush.msra.mxu0 %v38_v22 }
  0x19   :  { %194 = vmatpush.msra.mxu3 %v54_v23  ;;  %106 = vmatpush.msra.mxu1 %v54_v23 }
  0x1a   :  { %179 = vmatpush.msra.mxu2 %v37_v24  ;;  %78 = vmatpush.msra.mxu0 %v37_v24 }
  0x1b   :  { %195 = vmatpush.msra.mxu3 %v53_v25  ;;  %107 = vmatpush.msra.mxu1 %v53_v25 }
  0x1c   :  { %180 = vmatpush.msra.mxu2 %v36_v26  ;;  %79 = vmatpush.msra.mxu0 %v36_v26 }
  0x1d   :  { %196 = vmatpush.msra.mxu3 %v52_v27  ;;  %108 = vmatpush.msra.mxu1 %v52_v27 }
  0x1e   :  { %181 = vmatpush.msra.mxu2 %v35_v28  ;;  %80 = vmatpush.msra.mxu0 %v35_v28 }
  0x1f   :  { %197 = vmatpush.msra.mxu3 %v51_v29  ;;  %109 = vmatpush.msra.mxu1 %v51_v29 }
  0x20   :  { %182 = vmatpush.msra.mxu2 %v34_v30  ;;  %81 = vmatpush.msra.mxu0 %v34_v30 }
  0x21   :  { %198 = vmatpush.msra.mxu3 %v50_v31  ;;  %88 = vmatmul.f32.vlgmr.msra.gmra.mxu2 %v26_v32 }
  0x22   :  { %117 = vmatmul.f32.vlgmr.msra.gmra.mxu3 %v27_v33  ;;  %110 = vmatpush.msra.mxu1 %v50_v31 }
  0x23   :  { %82 = vmatmul.f32.vlgmr.msra.gmra.mxu0 %v22_v34  ;;  %111 = vmatmul.f32.vlgmr.msra.gmra.mxu1 %v23_v35 }
  0x29   :  { %91 = vmatmul.f32.gmra.mxu2 %v28_v36 }
  0x2a   :  { %120 = vmatmul.f32.gmra.mxu3 %v29_v37 }
  0x2b   :  { %85 = vmatmul.f32.gmra.mxu0 %v24_v38  ;;  %114 = vmatmul.f32.gmra.mxu1 %v25_v39 }
  0xa0   :  { %v83_v41 = vpop.f32.mrf.mxu0  ;;  %v112_v42 = vpop.f32.mrf.mxu1 }
  0xa1   :  { %v113_v43 = vadd.f32 %v112_v42, %v83_v41 }
  0xa3   :  { %v143_v44 = vadd.f32 %v199_v40, %v113_v43 }
  0xa4   :  { %v89_v45 = vpop.f32.mrf.mxu2 }
  0xa5   :  { %v118_v46 = vpop.f32.mrf.mxu3  ;;  %vm147_vm0 = vcmp.ge.f32.partialorder %v143_v44, 0.0  ;;  %v151_v47 = vmul.f32 0.2, %v143_v44 }
  0xa6   :  { %v119_v48 = vadd.f32 %v118_v46, %v89_v45 }
  0xa7   :  { %v155_v49 = vsel %vm147_vm0, %v143_v44, %v151_v47 }
  0xa8   :  { %v145_v50 = vadd.f32 %v199_v40, %v119_v48  ;;  %159 = vst [vmem:[%s358_s3] sm:$0xff] %v155_v49  ;;  %v86_v51 = vpop.f32.mrf.mxu0  ;;  %v115_v52 = vpop.f32.mrf.mxu1 }
  0xa9   :  { %v116_v54 = vadd.f32 %v115_v52, %v86_v51 }
  0xaa   :  { %vm149_vm1 = vcmp.ge.f32.partialorder %v145_v50, 0.0  ;;  %v153_v53 = vmul.f32 0.2, %v145_v50 }
  0xab   :  { %v144_v56 = vadd.f32 %v199_v40, %v116_v54 }
  0xac   :  { %v157_v55 = vsel %vm149_vm1, %v145_v50, %v153_v53  ;;  %v92_v57 = vpop.f32.mrf.mxu2 }
  0xad   :  { %161 = vst [vmem:[%s358_s3 + $0x10] sm:$0xff] %v157_v55  ;;  %v121_v58 = vpop.f32.mrf.mxu3  ;;  %vm148_vm2 = vcmp.ge.f32.partialorder %v144_v56, 0.0  ;;  %v152_v59 = vmul.f32 0.2, %v144_v56 }
  0xae   :  { %v122_v60 = vadd.f32 %v121_v58, %v92_v57 }
  0xaf   :  { %v156_v61 = vsel %vm148_vm2, %v144_v56, %v152_v59 }
  0xb0   :  { %v146_v62 = vadd.f32 %v199_v40, %v122_v60  ;;  %160 = vst [vmem:[%s358_s3 + $0x8] sm:$0xff] %v156_v61 }
  0xb2   :  { %vm150_vm3 = vcmp.ge.f32.partialorder %v146_v62, 0.0  ;;  %v154_v63 = vmul.f32 0.2, %v146_v62 }
  0xb4   :  { %v158_v0 = vsel %vm150_vm3, %v146_v62, %v154_v63 }
  0xb5   :  { %162 = vst [vmem:[%s358_s3 + $0x18] sm:$0xff] %v158_v0 }

// kernel: _lambda_.18
= control target key start
LH: loop header
LB: loop body
LE: loop exit
PB: predicated region body
PF: predicated region fallthrough
CT: control target
= control target key end

     0   :  { %s545_s12 = smov 0   ;;  %s547_s13 = smov 0   ;;  %s628_s0 = inlined_call_operand.vmem [shape: f32[8,512], index: 0, kind: input, shape index: {}]   ;;  %s629_s1 = inlined_call_operand.vmem [shape: f32[512,128], index: 1, kind: input, shape index: {}]   ;;  %s630_s2 = inlined_call_operand.vmem [shape: f32[1,128], index: 2, kind: input, shape index: {}]   ;;  %s631_s3 = inlined_call_operand.vmem [shape: f32[8,128], index: 3, kind: output, shape index: {}]  }
   0x1   :  { %s549_s14 = smov 0  }
   0x2 LB: > { %s25_s15 = sadd.s32 1, %s518_s13  ;;  %p464_p0 = scmp.ge.s32.totalorder %s522_s14, 1  ;;  %s522_s14 = sphi %s549_s14, %s13_s14   ;;  %s518_s13 = sphi %s547_s13, %s633_s13   ;;  %s514_s12 = sphi %s545_s12, %s632_s12  }
   0x3   : > { %p26_p1 = scmp.ge.s32.totalorder %s25_s15, 2  ;;  %p189_p2 = scmp.lt.s32.totalorder %s522_s14, 3 }
   0x5   : > { %s635_s15 = smov (%p26_p1, %s25_s15), 0  ;;  %p190_p3 = pnand %p464_p0, %p189_p2 }
   0x6   : > { %s465_s16 = sshll.u32 (!%p190_p3), %s514_s12, 1  ;;  %s467_s17 = sshll.u32 (!%p190_p3), %s514_s12, 5 }
   0x7   : > { %193 = sbr.rel (%p190_p3) target bundleno = 199 (0xc7), region = 32  ;;  %p233_p4 = scmp.lt.s32.totalorder (!%p190_p3), %s465_s16, 3 }
   0x8   : > { %p241_p5 = scmp.lt.s32.totalorder (!%p190_p3), %s467_s17, 63  ;;  %p469_p6 = scmp.ne.s32.totalorder (!%p190_p3), %s514_s12, 0 }
   0xc   : > { %s637_s16 = smov (!%p233_p4, %s465_s16), 3  ;;  %s639_s17 = smov (!%p241_p5, %s467_s17), 63 }
   0xd   : > { %s466_s18 = sshll.u32 %s637_s16, 3  ;;  %s468_s22 = sshll.u32 %s639_s17, 3 }
   0xe   : > { %s570_s21 = scalar_lea.vmem %s628_s0, %s466_s18  ;;  %s575_s25 = scalar_lea.vmem %s629_s1, %s468_s22 }
   0xf   : > { %262 = sbr.rel (%p469_p6) target bundleno = 22 (0x16), region = 36 }
  0x14   : > { %v524_v0 = vmov 0.0  }
  0x15   : > { %263 = vst [vmem:[#allocation2] sm:$0xff] %v524_v0 }
  0x16 PF: > { %v282_v1 = vld [vmem:[%s575_s25 + $0x78] sm:$0xff]  ;;  %v281_v3 = vld [vmem:[%s575_s25 + $0x70] sm:$0xff]  ;;  %v280_v5 = vld [vmem:[%s575_s25 + $0x68] sm:$0xff]  ;;  %p470_p7 = scmp.ne.s32.totalorder %s514_s12, 1 }
  0x17   : > { %v298_v2 = vld [vmem:[%s575_s25 + $0xf8] sm:$0xff]  ;;  %299 = vmatpush.msra.mxu0 %v282_v1  ;;  %v297_v4 = vld [vmem:[%s575_s25 + $0xf0] sm:$0xff]  ;;  %v296_v6 = vld [vmem:[%s575_s25 + $0xe8] sm:$0xff] }
  0x18   : > { %319 = vmatpush.msra.mxu1 %v298_v2  ;;  %v279_v7 = vld [vmem:[%s575_s25 + $0x60] sm:$0xff]  ;;  %v278_v9 = vld [vmem:[%s575_s25 + $0x58] sm:$0xff]  ;;  %v277_v11 = vld [vmem:[%s575_s25 + $0x50] sm:$0xff] }
  0x19   : > { %300 = vmatpush.msra.mxu0 %v281_v3  ;;  %v295_v8 = vld [vmem:[%s575_s25 + $0xe0] sm:$0xff]  ;;  %v294_v10 = vld [vmem:[%s575_s25 + $0xd8] sm:$0xff]  ;;  %v293_v12 = vld [vmem:[%s575_s25 + $0xd0] sm:$0xff] }
  0x1a   : > { %320 = vmatpush.msra.mxu1 %v297_v4  ;;  %v276_v13 = vld [vmem:[%s575_s25 + $0x48] sm:$0xff]  ;;  %v275_v15 = vld [vmem:[%s575_s25 + $0x40] sm:$0xff]  ;;  %v274_v17 = vld [vmem:[%s575_s25 + $0x38] sm:$0xff] }
  0x1b   : > { %301 = vmatpush.msra.mxu0 %v280_v5  ;;  %v292_v14 = vld [vmem:[%s575_s25 + $0xc8] sm:$0xff]  ;;  %v291_v16 = vld [vmem:[%s575_s25 + $0xc0] sm:$0xff]  ;;  %v290_v18 = vld [vmem:[%s575_s25 + $0xb8] sm:$0xff] }
  0x1c   : > { %321 = vmatpush.msra.mxu1 %v296_v6  ;;  %v273_v19 = vld [vmem:[%s575_s25 + $0x30] sm:$0xff]  ;;  %v272_v21 = vld [vmem:[%s575_s25 + $0x28] sm:$0xff]  ;;  %v271_v23 = vld [vmem:[%s575_s25 + $0x20] sm:$0xff] }
  0x1d   : > { %302 = vmatpush.msra.mxu0 %v279_v7  ;;  %v289_v20 = vld [vmem:[%s575_s25 + $0xb0] sm:$0xff]  ;;  %v288_v22 = vld [vmem:[%s575_s25 + $0xa8] sm:$0xff]  ;;  %v287_v24 = vld [vmem:[%s575_s25 + $0xa0] sm:$0xff] }
  0x1e   : > { %322 = vmatpush.msra.mxu1 %v295_v8  ;;  %v270_v25 = vld [vmem:[%s575_s25 + $0x18] sm:$0xff]  ;;  %v269_v27 = vld [vmem:[%s575_s25 + $0x10] sm:$0xff]  ;;  %v268_v29 = vld [vmem:[%s575_s25 + $0x8] sm:$0xff] }
  0x1f   : > { %303 = vmatpush.msra.mxu0 %v278_v9  ;;  %v286_v26 = vld [vmem:[%s575_s25 + $0x98] sm:$0xff]  ;;  %v285_v28 = vld [vmem:[%s575_s25 + $0x90] sm:$0xff]  ;;  %v284_v30 = vld [vmem:[%s575_s25 + $0x88] sm:$0xff] }
  0x20   : > { %323 = vmatpush.msra.mxu1 %v294_v10  ;;  %v267_v31 = vld [vmem:[%s575_s25] sm:$0xff]  ;;  %v265_v34 = vld [vmem:[%s570_s21 + $0x8] sm:$0xff] }
  0x21   : > { %304 = vmatpush.msra.mxu0 %v277_v11  ;;  %v283_v32 = vld [vmem:[%s575_s25 + $0x80] sm:$0xff] }
  0x22   : > { %324 = vmatpush.msra.mxu1 %v293_v12  ;;  %v264_v33 = vld [vmem:[%s570_s21] sm:$0xff] }
  0x23   : > { %305 = vmatpush.msra.mxu0 %v276_v13  ;;  %v266_v36 = vld [vmem:[#allocation2] sm:$0xff] }
  0x24   : > { %325 = vmatpush.msra.mxu1 %v292_v14 }
  0x25   : > { %306 = vmatpush.msra.mxu0 %v275_v15 }
  0x26   : > { %326 = vmatpush.msra.mxu1 %v291_v16 }
  0x27   : > { %307 = vmatpush.msra.mxu0 %v274_v17 }
  0x28   : > { %327 = vmatpush.msra.mxu1 %v290_v18 }
  0x29   : > { %308 = vmatpush.msra.mxu0 %v273_v19 }
  0x2a   : > { %328 = vmatpush.msra.mxu1 %v289_v20 }
  0x2b   : > { %309 = vmatpush.msra.mxu0 %v272_v21 }
  0x2c   : > { %329 = vmatpush.msra.mxu1 %v288_v22 }
  0x2d   : > { %310 = vmatpush.msra.mxu0 %v271_v23 }
  0x2e   : > { %330 = vmatpush.msra.mxu1 %v287_v24 }
  0x2f   : > { %311 = vmatpush.msra.mxu0 %v270_v25 }
  0x30   : > { %331 = vmatpush.msra.mxu1 %v286_v26 }
  0x31   : > { %312 = vmatpush.msra.mxu0 %v269_v27 }
  0x32   : > { %332 = vmatpush.msra.mxu1 %v285_v28 }
  0x33   : > { %313 = vmatpush.msra.mxu0 %v268_v29 }
  0x34   : > { %333 = vmatpush.msra.mxu1 %v284_v30 }
  0x35   : > { %314 = vmatpush.msra.mxu0 %v267_v31 }
  0x36   : > { %334 = vmatpush.msra.mxu1 %v283_v32  ;;  %315 = vmatmul.f32.vlgmr.msra.gmra.mxu0 %v264_v33 }
  0x37   : > { %335 = vmatmul.f32.vlgmr.msra.gmra.mxu1 %v265_v34 }
  0xb3   : > { %v316_v35 = vpop.f32.mrf.mxu0 }
  0xb4   : > { %v336_v37 = vpop.f32.mrf.mxu1 }
  0xb5   : > { %v337_v38 = vadd.f32 %v336_v37, %v316_v35  ;;  %344 = sbr.rel (%p470_p7) target bundleno = 199 (0xc7), region = 40 }
  0xb7   : > { %v339_v39 = vadd.f32 %v337_v38, %v266_v36 }
  0xb9   : > { %340 = vst [vmem:[#allocation2] sm:$0xff] %v339_v39 }
  0xba   : > { %v499_v41 = vld [vmem:[%s630_s2] ss:$0 sm:$0xff] }
  0xc0   : > { %v345_v40 = vld [vmem:[#allocation2] sm:$0xff] }
  0xc1   : > { %v350_v42 = vadd.f32 %v499_v41, %v345_v40 }
  0xc3   : > { %vm351_vm0 = vcmp.ge.f32.partialorder %v350_v42, 0.0  ;;  %v352_v43 = vmul.f32 0.2, %v350_v42 }
  0xc5   : > { %v353_v44 = vsel %vm351_vm0, %v350_v42, %v352_v43 }
  0xc6   : > { %354 = vst [vmem:[%s631_s3] sm:$0xff] %v353_v44 }
  0xc7 PF: > { %s13_s14 = sadd.s32 1, %s522_s14   ;;  %s632_s12 = smov %s518_s13 }
  0xc8   : > { %p10_p8 = scmp.ge.s32.totalorder %s13_s14, 4   ;;  %s633_s13 = smov %s635_s15 }
  0xca   :  { %12 = sbr.rel (!%p10_p8) target bundleno = 2 (0x2), region = 76 }

// kernel: _lambda_.19
= control target key start
LH: loop header
LB: loop body
LE: loop exit
PB: predicated region body
PF: predicated region fallthrough
CT: control target
= control target key end

     0   :  { %s542_s12 = smov 0   ;;  %s544_s13 = smov 0   ;;  %s625_s0 = inlined_call_operand.vmem [shape: f32[8,1024], index: 0, kind: input, shape index: {}]   ;;  %s626_s1 = inlined_call_operand.vmem [shape: f32[1024,128], index: 1, kind: input, shape index: {}]   ;;  %s627_s2 = inlined_call_operand.vmem [shape: f32[1,128], index: 2, kind: input, shape index: {}]   ;;  %s628_s3 = inlined_call_operand.vmem [shape: f32[8,128], index: 3, kind: output, shape index: {}]  }
   0x1   :  { %s546_s14 = smov 0  }
   0x2 LB: > { %s25_s15 = sadd.s32 1, %s515_s13  ;;  %p461_p0 = scmp.ge.s32.totalorder %s519_s14, 1  ;;  %s519_s14 = sphi %s546_s14, %s13_s14   ;;  %s515_s13 = sphi %s544_s13, %s630_s13   ;;  %s511_s12 = sphi %s542_s12, %s629_s12  }
   0x3   : > { %p26_p1 = scmp.ge.s32.totalorder %s25_s15, 4  ;;  %p189_p2 = scmp.lt.s32.totalorder %s519_s14, 5 }
   0x5   : > { %s632_s15 = smov (%p26_p1, %s25_s15), 0  ;;  %p190_p3 = pnand %p461_p0, %p189_p2 }
   0x6   : > { %s462_s16 = sshll.u32 (!%p190_p3), %s511_s12, 1  ;;  %s464_s17 = sshll.u32 (!%p190_p3), %s511_s12, 5 }
   0x7   : > { %193 = sbr.rel (%p190_p3) target bundleno = 196 (0xc4), region = 32  ;;  %p233_p4 = scmp.lt.s32.totalorder (!%p190_p3), %s462_s16, 7 }
   0x8   : > { %p241_p5 = scmp.lt.s32.totalorder (!%p190_p3), %s464_s17, 127  ;;  %p466_p6 = scmp.ne.s32.totalorder (!%p190_p3), %s511_s12, 0 }
   0xc   : > { %s634_s16 = smov (!%p233_p4, %s462_s16), 7  ;;  %s636_s17 = smov (!%p241_p5, %s464_s17), 127 }
   0xd   : > { %s463_s18 = sshll.u32 %s634_s16, 3  ;;  %s465_s22 = sshll.u32 %s636_s17, 3 }
   0xe   : > { %s567_s21 = scalar_lea.vmem %s625_s0, %s463_s18  ;;  %s572_s25 = scalar_lea.vmem %s626_s1, %s465_s22 }
   0xf   : > { %262 = sbr.rel (%p466_p6) target bundleno = 22 (0x16), region = 36 }
  0x14   : > { %v521_v0 = vmov 0.0  }
  0x15   : > { %263 = vst [vmem:[#allocation2] sm:$0xff] %v521_v0 }
  0x16 PF: > { %v282_v1 = vld [vmem:[%s572_s25 + $0x78] sm:$0xff]  ;;  %v281_v3 = vld [vmem:[%s572_s25 + $0x70] sm:$0xff]  ;;  %v280_v5 = vld [vmem:[%s572_s25 + $0x68] sm:$0xff]  ;;  %p467_p7 = scmp.ne.s32.totalorder %s511_s12, 3 }
  0x17   : > { %v298_v2 = vld [vmem:[%s572_s25 + $0xf8] sm:$0xff]  ;;  %299 = vmatpush.msra.mxu0 %v282_v1  ;;  %v297_v4 = vld [vmem:[%s572_s25 + $0xf0] sm:$0xff]  ;;  %v296_v6 = vld [vmem:[%s572_s25 + $0xe8] sm:$0xff] }
  0x18   : > { %319 = vmatpush.msra.mxu1 %v298_v2  ;;  %v279_v7 = vld [vmem:[%s572_s25 + $0x60] sm:$0xff]  ;;  %v278_v9 = vld [vmem:[%s572_s25 + $0x58] sm:$0xff]  ;;  %v277_v11 = vld [vmem:[%s572_s25 + $0x50] sm:$0xff] }
  0x19   : > { %300 = vmatpush.msra.mxu0 %v281_v3  ;;  %v295_v8 = vld [vmem:[%s572_s25 + $0xe0] sm:$0xff]  ;;  %v294_v10 = vld [vmem:[%s572_s25 + $0xd8] sm:$0xff]  ;;  %v293_v12 = vld [vmem:[%s572_s25 + $0xd0] sm:$0xff] }
  0x1a   : > { %320 = vmatpush.msra.mxu1 %v297_v4  ;;  %v276_v13 = vld [vmem:[%s572_s25 + $0x48] sm:$0xff]  ;;  %v275_v15 = vld [vmem:[%s572_s25 + $0x40] sm:$0xff]  ;;  %v274_v17 = vld [vmem:[%s572_s25 + $0x38] sm:$0xff] }
  0x1b   : > { %301 = vmatpush.msra.mxu0 %v280_v5  ;;  %v292_v14 = vld [vmem:[%s572_s25 + $0xc8] sm:$0xff]  ;;  %v291_v16 = vld [vmem:[%s572_s25 + $0xc0] sm:$0xff]  ;;  %v290_v18 = vld [vmem:[%s572_s25 + $0xb8] sm:$0xff] }
  0x1c   : > { %321 = vmatpush.msra.mxu1 %v296_v6  ;;  %v273_v19 = vld [vmem:[%s572_s25 + $0x30] sm:$0xff]  ;;  %v272_v21 = vld [vmem:[%s572_s25 + $0x28] sm:$0xff]  ;;  %v271_v23 = vld [vmem:[%s572_s25 + $0x20] sm:$0xff] }
  0x1d   : > { %302 = vmatpush.msra.mxu0 %v279_v7  ;;  %v289_v20 = vld [vmem:[%s572_s25 + $0xb0] sm:$0xff]  ;;  %v288_v22 = vld [vmem:[%s572_s25 + $0xa8] sm:$0xff]  ;;  %v287_v24 = vld [vmem:[%s572_s25 + $0xa0] sm:$0xff] }
  0x1e   : > { %322 = vmatpush.msra.mxu1 %v295_v8  ;;  %v270_v25 = vld [vmem:[%s572_s25 + $0x18] sm:$0xff]  ;;  %v269_v27 = vld [vmem:[%s572_s25 + $0x10] sm:$0xff]  ;;  %v268_v29 = vld [vmem:[%s572_s25 + $0x8] sm:$0xff] }
  0x1f   : > { %303 = vmatpush.msra.mxu0 %v278_v9  ;;  %v286_v26 = vld [vmem:[%s572_s25 + $0x98] sm:$0xff]  ;;  %v285_v28 = vld [vmem:[%s572_s25 + $0x90] sm:$0xff]  ;;  %v284_v30 = vld [vmem:[%s572_s25 + $0x88] sm:$0xff] }
  0x20   : > { %323 = vmatpush.msra.mxu1 %v294_v10  ;;  %v267_v31 = vld [vmem:[%s572_s25] sm:$0xff]  ;;  %v265_v34 = vld [vmem:[%s567_s21 + $0x8] sm:$0xff] }
  0x21   : > { %304 = vmatpush.msra.mxu0 %v277_v11  ;;  %v283_v32 = vld [vmem:[%s572_s25 + $0x80] sm:$0xff] }
  0x22   : > { %324 = vmatpush.msra.mxu1 %v293_v12  ;;  %v264_v33 = vld [vmem:[%s567_s21] sm:$0xff] }
  0x23   : > { %305 = vmatpush.msra.mxu0 %v276_v13  ;;  %v266_v36 = vld [vmem:[#allocation2] sm:$0xff] }
  0x24   : > { %325 = vmatpush.msra.mxu1 %v292_v14 }
  0x25   : > { %306 = vmatpush.msra.mxu0 %v275_v15 }
  0x26   : > { %326 = vmatpush.msra.mxu1 %v291_v16 }
  0x27   : > { %307 = vmatpush.msra.mxu0 %v274_v17 }
  0x28   : > { %327 = vmatpush.msra.mxu1 %v290_v18 }
  0x29   : > { %308 = vmatpush.msra.mxu0 %v273_v19 }
  0x2a   : > { %328 = vmatpush.msra.mxu1 %v289_v20 }
  0x2b   : > { %309 = vmatpush.msra.mxu0 %v272_v21 }
  0x2c   : > { %329 = vmatpush.msra.mxu1 %v288_v22 }
  0x2d   : > { %310 = vmatpush.msra.mxu0 %v271_v23 }
  0x2e   : > { %330 = vmatpush.msra.mxu1 %v287_v24 }
  0x2f   : > { %311 = vmatpush.msra.mxu0 %v270_v25 }
  0x30   : > { %331 = vmatpush.msra.mxu1 %v286_v26 }
  0x31   : > { %312 = vmatpush.msra.mxu0 %v269_v27 }
  0x32   : > { %332 = vmatpush.msra.mxu1 %v285_v28 }
  0x33   : > { %313 = vmatpush.msra.mxu0 %v268_v29 }
  0x34   : > { %333 = vmatpush.msra.mxu1 %v284_v30 }
  0x35   : > { %314 = vmatpush.msra.mxu0 %v267_v31 }
  0x36   : > { %334 = vmatpush.msra.mxu1 %v283_v32  ;;  %315 = vmatmul.f32.vlgmr.msra.gmra.mxu0 %v264_v33 }
  0x37   : > { %335 = vmatmul.f32.vlgmr.msra.gmra.mxu1 %v265_v34 }
  0xb3   : > { %v316_v35 = vpop.f32.mrf.mxu0 }
  0xb4   : > { %v336_v37 = vpop.f32.mrf.mxu1 }
  0xb5   : > { %v337_v38 = vadd.f32 %v336_v37, %v316_v35  ;;  %344 = sbr.rel (%p467_p7) target bundleno = 196 (0xc4), region = 40 }
  0xb7   : > { %v339_v39 = vadd.f32 %v337_v38, %v266_v36 }
  0xb9   : > { %340 = vst [vmem:[#allocation2] sm:$0xff] %v339_v39 }
  0xba   : > { %v496_v41 = vld [vmem:[%s627_s2] ss:$0 sm:$0xff] }
  0xc0   : > { %v345_v40 = vld [vmem:[#allocation2] sm:$0xff] }
  0xc1   : > { %v350_v42 = vadd.f32 %v496_v41, %v345_v40 }
  0xc3   : > { %351 = vst [vmem:[%s628_s3] sm:$0xff] %v350_v42 }
  0xc4 PF: > { %s13_s14 = sadd.s32 1, %s519_s14   ;;  %s629_s12 = smov %s515_s13 }
  0xc5   : > { %p10_p8 = scmp.ge.s32.totalorder %s13_s14, 6   ;;  %s630_s13 = smov %s632_s15 }
  0xc7   :  { %12 = sbr.rel (!%p10_p8) target bundleno = 2 (0x2), region = 76 }

// kernel: _lambda_.20
= control target key start
LH: loop header
LB: loop body
LE: loop exit
PB: predicated region body
PF: predicated region fallthrough
CT: control target
= control target key end

     0   :  { %s254_s1 = inlined_call_operand.vmem [shape: f32[128,128], index: 1, kind: input, shape index: {}]   ;;  %s255_s2 = inlined_call_operand.vmem [shape: f32[1,128], index: 2, kind: input, shape index: {}]   ;;  %s256_s0 = inlined_call_operand.vmem [shape: f32[32,128], index: 0, kind: input, shape index: {}]   ;;  %s257_s3 = inlined_call_operand.vmem [shape: f32[32,128], index: 3, kind: output, shape index: {}]  }
   0x1   :  { %v49_v0 = vld [vmem:[%s254_s1 + $0x78] sm:$0xff]  ;;  %v48_v1 = vld [vmem:[%s254_s1 + $0x70] sm:$0xff]  ;;  %v47_v2 = vld [vmem:[%s254_s1 + $0x68] sm:$0xff] }
   0x2   :  { %111 = vmatpush.msra.mxu2 %v49_v0  ;;  %112 = vmatpush.msra.mxu3 %v49_v0  ;;  %v46_v3 = vld [vmem:[%s254_s1 + $0x60] sm:$0xff]  ;;  %v45_v4 = vld [vmem:[%s254_s1 + $0x58] sm:$0xff]  ;;  %v44_v5 = vld [vmem:[%s254_s1 + $0x50] sm:$0xff] }
   0x3   :  { %50 = vmatpush.msra.mxu0 %v49_v0  ;;  %110 = vmatpush.msra.mxu1 %v49_v0  ;;  %v43_v6 = vld [vmem:[%s254_s1 + $0x48] sm:$0xff]  ;;  %v42_v7 = vld [vmem:[%s254_s1 + $0x40] sm:$0xff]  ;;  %v41_v8 = vld [vmem:[%s254_s1 + $0x38] sm:$0xff] }
   0x4   :  { %114 = vmatpush.msra.mxu2 %v48_v1  ;;  %115 = vmatpush.msra.mxu3 %v48_v1  ;;  %v40_v9 = vld [vmem:[%s254_s1 + $0x30] sm:$0xff]  ;;  %v39_v10 = vld [vmem:[%s254_s1 + $0x28] sm:$0xff]  ;;  %v38_v11 = vld [vmem:[%s254_s1 + $0x20] sm:$0xff] }
   0x5   :  { %51 = vmatpush.msra.mxu0 %v48_v1  ;;  %113 = vmatpush.msra.mxu1 %v48_v1  ;;  %v37_v12 = vld [vmem:[%s254_s1 + $0x18] sm:$0xff]  ;;  %v36_v13 = vld [vmem:[%s254_s1 + $0x10] sm:$0xff]  ;;  %v35_v16 = vld [vmem:[%s254_s1 + $0x8] sm:$0xff] }
   0x6   :  { %117 = vmatpush.msra.mxu2 %v47_v2  ;;  %118 = vmatpush.msra.mxu3 %v47_v2  ;;  %v24_v14 = vld [vmem:[%s256_s0 + $0x10] sm:$0xff]  ;;  %v25_v15 = vld [vmem:[%s256_s0 + $0x18] sm:$0xff]  ;;  %v22_v17 = vld [vmem:[%s256_s0] sm:$0xff] }
   0x7   :  { %52 = vmatpush.msra.mxu0 %v47_v2  ;;  %116 = vmatpush.msra.mxu1 %v47_v2  ;;  %v23_v18 = vld [vmem:[%s256_s0 + $0x8] sm:$0xff]  ;;  %v34_v19 = vld [vmem:[%s254_s1] sm:$0xff]  ;;  %v28_v20 = vmax.f32 %v24_v14, 0.0  ;;  %v29_v21 = vmax.f32 %v25_v15, 0.0  ;;  %v26_v22 = vmax.f32 %v22_v17, 0.0 }
   0x8   :  { %120 = vmatpush.msra.mxu2 %v46_v3  ;;  %121 = vmatpush.msra.mxu3 %v46_v3  ;;  %v27_v23 = vmax.f32 %v23_v18, 0.0  ;;  %v158_v24 = vld [vmem:[%s255_s2] ss:$0 sm:$0xff] }
   0x9   :  { %53 = vmatpush.msra.mxu0 %v46_v3  ;;  %119 = vmatpush.msra.mxu1 %v46_v3 }
   0xa   :  { %123 = vmatpush.msra.mxu2 %v45_v4  ;;  %124 = vmatpush.msra.mxu3 %v45_v4 }
   0xb   :  { %54 = vmatpush.msra.mxu0 %v45_v4  ;;  %122 = vmatpush.msra.mxu1 %v45_v4 }
   0xc   :  { %126 = vmatpush.msra.mxu2 %v44_v5  ;;  %127 = vmatpush.msra.mxu3 %v44_v5 }
   0xd   :  { %55 = vmatpush.msra.mxu0 %v44_v5  ;;  %125 = vmatpush.msra.mxu1 %v44_v5 }
   0xe   :  { %129 = vmatpush.msra.mxu2 %v43_v6  ;;  %130 = vmatpush.msra.mxu3 %v43_v6 }
   0xf   :  { %56 = vmatpush.msra.mxu0 %v43_v6  ;;  %128 = vmatpush.msra.mxu1 %v43_v6 }
  0x10   :  { %132 = vmatpush.msra.mxu2 %v42_v7  ;;  %133 = vmatpush.msra.mxu3 %v42_v7 }
  0x11   :  { %57 = vmatpush.msra.mxu0 %v42_v7  ;;  %131 = vmatpush.msra.mxu1 %v42_v7 }
  0x12   :  { %135 = vmatpush.msra.mxu2 %v41_v8  ;;  %136 = vmatpush.msra.mxu3 %v41_v8 }
  0x13   :  { %58 = vmatpush.msra.mxu0 %v41_v8  ;;  %134 = vmatpush.msra.mxu1 %v41_v8 }
  0x14   :  { %138 = vmatpush.msra.mxu2 %v40_v9  ;;  %139 = vmatpush.msra.mxu3 %v40_v9 }
  0x15   :  { %59 = vmatpush.msra.mxu0 %v40_v9  ;;  %137 = vmatpush.msra.mxu1 %v40_v9 }
  0x16   :  { %141 = vmatpush.msra.mxu2 %v39_v10  ;;  %142 = vmatpush.msra.mxu3 %v39_v10 }
  0x17   :  { %60 = vmatpush.msra.mxu0 %v39_v10  ;;  %140 = vmatpush.msra.mxu1 %v39_v10 }
  0x18   :  { %144 = vmatpush.msra.mxu2 %v38_v11  ;;  %145 = vmatpush.msra.mxu3 %v38_v11 }
  0x19   :  { %61 = vmatpush.msra.mxu0 %v38_v11  ;;  %143 = vmatpush.msra.mxu1 %v38_v11 }
  0x1a   :  { %147 = vmatpush.msra.mxu2 %v37_v12  ;;  %148 = vmatpush.msra.mxu3 %v37_v12 }
  0x1b   :  { %62 = vmatpush.msra.mxu0 %v37_v12  ;;  %146 = vmatpush.msra.mxu1 %v37_v12 }
  0x1c   :  { %150 = vmatpush.msra.mxu2 %v36_v13  ;;  %151 = vmatpush.msra.mxu3 %v36_v13 }
  0x1d   :  { %63 = vmatpush.msra.mxu0 %v36_v13  ;;  %149 = vmatpush.msra.mxu1 %v36_v13 }
  0x1e   :  { %153 = vmatpush.msra.mxu2 %v35_v16  ;;  %154 = vmatpush.msra.mxu3 %v35_v16 }
  0x1f   :  { %64 = vmatpush.msra.mxu0 %v35_v16  ;;  %152 = vmatpush.msra.mxu1 %v35_v16 }
  0x20   :  { %156 = vmatpush.msra.mxu2 %v34_v19  ;;  %157 = vmatpush.msra.mxu3 %v34_v19 }
  0x21   :  { %72 = vmatmul.f32.vlgmr.msra.gmra.mxu2 %v28_v20  ;;  %75 = vmatmul.f32.vlgmr.msra.gmra.mxu3 %v29_v21 }
  0x22   :  { %65 = vmatpush.msra.mxu0 %v34_v19  ;;  %155 = vmatpush.msra.mxu1 %v34_v19 }
  0x23   :  { %66 = vmatmul.f32.vlgmr.msra.gmra.mxu0 %v26_v22  ;;  %69 = vmatmul.f32.vlgmr.msra.gmra.mxu1 %v27_v23 }
  0xa0   :  { %v67_v25 = vpop.f32.mrf.mxu0  ;;  %v70_v26 = vpop.f32.mrf.mxu1 }
  0xa1   :  { %v98_v27 = vadd.f32 %v158_v24, %v67_v25  ;;  %v99_v28 = vadd.f32 %v158_v24, %v70_v26 }
  0xa3   :  { %102 = vst [vmem:[%s257_s3] sm:$0xff] %v98_v27 }
  0xa4   :  { %103 = vst [vmem:[%s257_s3 + $0x8] sm:$0xff] %v99_v28  ;;  %v73_v29 = vpop.f32.mrf.mxu2  ;;  %v76_v30 = vpop.f32.mrf.mxu3 }
  0xa5   :  { %v100_v31 = vadd.f32 %v158_v24, %v73_v29  ;;  %v101_v32 = vadd.f32 %v158_v24, %v76_v30 }
  0xa7   :  { %104 = vst [vmem:[%s257_s3 + $0x10] sm:$0xff] %v100_v31 }
  0xa8   :  { %105 = vst [vmem:[%s257_s3 + $0x18] sm:$0xff] %v101_v32 }

// kernel: _lambda_.21
= control target key start
LH: loop header
LB: loop body
LE: loop exit
PB: predicated region body
PF: predicated region fallthrough
CT: control target
= control target key end

     0   :  { %s240_s1 = inlined_call_operand.vmem [shape: f32[256,128], index: 1, kind: input, shape index: {}]   ;;  %s241_s0 = inlined_call_operand.vmem [shape: f32[8,256], index: 0, kind: input, shape index: {}]   ;;  %s242_s2 = inlined_call_operand.vmem [shape: f32[1,128], index: 2, kind: input, shape index: {}]   ;;  %s243_s3 = inlined_call_operand.vmem [shape: f32[8,128], index: 3, kind: output, shape index: {}]  }
   0x1   :  { %v37_v0 = vld [vmem:[%s240_s1 + $0x78] sm:$0xff]  ;;  %v36_v2 = vld [vmem:[%s240_s1 + $0x70] sm:$0xff]  ;;  %v35_v4 = vld [vmem:[%s240_s1 + $0x68] sm:$0xff] }
   0x2   :  { %v53_v1 = vld [vmem:[%s240_s1 + $0xf8] sm:$0xff]  ;;  %54 = vmatpush.msra.mxu0 %v37_v0  ;;  %v52_v3 = vld [vmem:[%s240_s1 + $0xf0] sm:$0xff]  ;;  %v51_v5 = vld [vmem:[%s240_s1 + $0xe8] sm:$0xff] }
   0x3   :  { %74 = vmatpush.msra.mxu1 %v53_v1  ;;  %v34_v6 = vld [vmem:[%s240_s1 + $0x60] sm:$0xff]  ;;  %v33_v8 = vld [vmem:[%s240_s1 + $0x58] sm:$0xff]  ;;  %v32_v10 = vld [vmem:[%s240_s1 + $0x50] sm:$0xff] }
   0x4   :  { %55 = vmatpush.msra.mxu0 %v36_v2  ;;  %v50_v7 = vld [vmem:[%s240_s1 + $0xe0] sm:$0xff]  ;;  %v49_v9 = vld [vmem:[%s240_s1 + $0xd8] sm:$0xff]  ;;  %v48_v11 = vld [vmem:[%s240_s1 + $0xd0] sm:$0xff] }
   0x5   :  { %75 = vmatpush.msra.mxu1 %v52_v3  ;;  %v31_v12 = vld [vmem:[%s240_s1 + $0x48] sm:$0xff]  ;;  %v30_v14 = vld [vmem:[%s240_s1 + $0x40] sm:$0xff]  ;;  %v29_v16 = vld [vmem:[%s240_s1 + $0x38] sm:$0xff] }
   0x6   :  { %56 = vmatpush.msra.mxu0 %v35_v4  ;;  %v47_v13 = vld [vmem:[%s240_s1 + $0xc8] sm:$0xff]  ;;  %v46_v15 = vld [vmem:[%s240_s1 + $0xc0] sm:$0xff]  ;;  %v45_v17 = vld [vmem:[%s240_s1 + $0xb8] sm:$0xff] }
   0x7   :  { %76 = vmatpush.msra.mxu1 %v51_v5  ;;  %v28_v18 = vld [vmem:[%s240_s1 + $0x30] sm:$0xff]  ;;  %v27_v20 = vld [vmem:[%s240_s1 + $0x28] sm:$0xff]  ;;  %v26_v22 = vld [vmem:[%s240_s1 + $0x20] sm:$0xff] }
   0x8   :  { %57 = vmatpush.msra.mxu0 %v34_v6  ;;  %v44_v19 = vld [vmem:[%s240_s1 + $0xb0] sm:$0xff]  ;;  %v43_v21 = vld [vmem:[%s240_s1 + $0xa8] sm:$0xff]  ;;  %v42_v23 = vld [vmem:[%s240_s1 + $0xa0] sm:$0xff] }
   0x9   :  { %77 = vmatpush.msra.mxu1 %v50_v7  ;;  %v25_v24 = vld [vmem:[%s240_s1 + $0x18] sm:$0xff]  ;;  %v24_v26 = vld [vmem:[%s240_s1 + $0x10] sm:$0xff]  ;;  %v23_v28 = vld [vmem:[%s240_s1 + $0x8] sm:$0xff] }
   0xa   :  { %58 = vmatpush.msra.mxu0 %v33_v8  ;;  %v41_v25 = vld [vmem:[%s240_s1 + $0x98] sm:$0xff]  ;;  %v40_v27 = vld [vmem:[%s240_s1 + $0x90] sm:$0xff]  ;;  %v39_v29 = vld [vmem:[%s240_s1 + $0x88] sm:$0xff] }
   0xb   :  { %78 = vmatpush.msra.mxu1 %v49_v9  ;;  %v22_v30 = vld [vmem:[%s240_s1] sm:$0xff]  ;;  %v20_v33 = vld [vmem:[%s241_s0 + $0x8] sm:$0xff] }
   0xc   :  { %59 = vmatpush.msra.mxu0 %v32_v10  ;;  %v38_v31 = vld [vmem:[%s240_s1 + $0x80] sm:$0xff] }
   0xd   :  { %79 = vmatpush.msra.mxu1 %v48_v11  ;;  %v19_v32 = vld [vmem:[%s241_s0] sm:$0xff] }
   0xe   :  { %60 = vmatpush.msra.mxu0 %v31_v12  ;;  %v111_v34 = vld [vmem:[%s242_s2] ss:$0 sm:$0xff] }
   0xf   :  { %80 = vmatpush.msra.mxu1 %v47_v13 }
  0x10   :  { %61 = vmatpush.msra.mxu0 %v30_v14 }
  0x11   :  { %81 = vmatpush.msra.mxu1 %v46_v15 }
  0x12   :  { %62 = vmatpush.msra.mxu0 %v29_v16 }
  0x13   :  { %82 = vmatpush.msra.mxu1 %v45_v17 }
  0x14   :  { %63 = vmatpush.msra.mxu0 %v28_v18 }
  0x15   :  { %83 = vmatpush.msra.mxu1 %v44_v19 }
  0x16   :  { %64 = vmatpush.msra.mxu0 %v27_v20 }
  0x17   :  { %84 = vmatpush.msra.mxu1 %v43_v21 }
  0x18   :  { %65 = vmatpush.msra.mxu0 %v26_v22 }
  0x19   :  { %85 = vmatpush.msra.mxu1 %v42_v23 }
  0x1a   :  { %66 = vmatpush.msra.mxu0 %v25_v24 }
  0x1b   :  { %86 = vmatpush.msra.mxu1 %v41_v25 }
  0x1c   :  { %67 = vmatpush.msra.mxu0 %v24_v26 }
  0x1d   :  { %87 = vmatpush.msra.mxu1 %v40_v27 }
  0x1e   :  { %68 = vmatpush.msra.mxu0 %v23_v28 }
  0x1f   :  { %88 = vmatpush.msra.mxu1 %v39_v29 }
  0x20   :  { %69 = vmatpush.msra.mxu0 %v22_v30 }
  0x21   :  { %89 = vmatpush.msra.mxu1 %v38_v31  ;;  %70 = vmatmul.f32.vlgmr.msra.gmra.mxu0 %v19_v32 }
  0x22   :  { %90 = vmatmul.f32.vlgmr.msra.gmra.mxu1 %v20_v33 }
  0x9e   :  { %v71_v35 = vpop.f32.mrf.mxu0 }
  0x9f   :  { %v91_v36 = vpop.f32.mrf.mxu1 }
  0xa0   :  { %v92_v37 = vadd.f32 %v91_v36, %v71_v35 }
  0xa2   :  { %v104_v38 = vadd.f32 %v111_v34, %v92_v37 }
  0xa4   :  { %v105_v39 = vmax.f32 %v104_v38, 0.0 }
  0xa6   :  { %106 = vst [vmem:[%s243_s3] sm:$0xff] %v105_v39 }

// kernel: _lambda_.22
= control target key start
LH: loop header
LB: loop body
LE: loop exit
PB: predicated region body
PF: predicated region fallthrough
CT: control target
= control target key end

     0   :  { %s454_s1 = inlined_call_operand.vmem [shape: f32[128,128], index: 1, kind: input, shape index: {}]   ;;  %s455_s2 = inlined_call_operand.vmem [shape: f32[1,128], index: 2, kind: input, shape index: {}]   ;;  %s456_s0 = inlined_call_operand.vmem [shape: f32[128,128], index: 0, kind: input, shape index: {}]   ;;  %s457_s3 = inlined_call_operand.vmem [shape: f32[128,128], index: 3, kind: output, shape index: {}]  }
   0x1   :  { %v81_v0 = vld [vmem:[%s454_s1 + $0x78] sm:$0xff]  ;;  %v80_v1 = vld [vmem:[%s454_s1 + $0x70] sm:$0xff]  ;;  %v79_v2 = vld [vmem:[%s454_s1 + $0x68] sm:$0xff] }
   0x2   :  { %239 = vmatpush.msra.mxu2 %v81_v0  ;;  %240 = vmatpush.msra.mxu3 %v81_v0  ;;  %v78_v3 = vld [vmem:[%s454_s1 + $0x60] sm:$0xff]  ;;  %v77_v4 = vld [vmem:[%s454_s1 + $0x58] sm:$0xff]  ;;  %v76_v5 = vld [vmem:[%s454_s1 + $0x50] sm:$0xff] }
   0x3   :  { %82 = vmatpush.msra.mxu0 %v81_v0  ;;  %238 = vmatpush.msra.mxu1 %v81_v0  ;;  %v75_v6 = vld [vmem:[%s454_s1 + $0x48] sm:$0xff]  ;;  %v74_v7 = vld [vmem:[%s454_s1 + $0x40] sm:$0xff]  ;;  %v73_v8 = vld [vmem:[%s454_s1 + $0x38] sm:$0xff] }
   0x4   :  { %242 = vmatpush.msra.mxu2 %v80_v1  ;;  %243 = vmatpush.msra.mxu3 %v80_v1  ;;  %v72_v9 = vld [vmem:[%s454_s1 + $0x30] sm:$0xff]  ;;  %v71_v10 = vld [vmem:[%s454_s1 + $0x28] sm:$0xff]  ;;  %v70_v11 = vld [vmem:[%s454_s1 + $0x20] sm:$0xff] }
   0x5   :  { %83 = vmatpush.msra.mxu0 %v80_v1  ;;  %241 = vmatpush.msra.mxu1 %v80_v1  ;;  %v69_v12 = vld [vmem:[%s454_s1 + $0x18] sm:$0xff]  ;;  %v68_v13 = vld [vmem:[%s454_s1 + $0x10] sm:$0xff]  ;;  %v67_v14 = vld [vmem:[%s454_s1 + $0x8] sm:$0xff] }
   0x6   :  { %245 = vmatpush.msra.mxu2 %v79_v2  ;;  %246 = vmatpush.msra.mxu3 %v79_v2  ;;  %v66_v15 = vld [vmem:[%s454_s1] sm:$0xff]  ;;  %v43_v20 = vld [vmem:[%s456_s0 + $0x48] sm:$0xff]  ;;  %v44_v24 = vld [vmem:[%s456_s0 + $0x50] sm:$0xff] }
   0x7   :  { %84 = vmatpush.msra.mxu0 %v79_v2  ;;  %244 = vmatpush.msra.mxu1 %v79_v2  ;;  %v42_v16 = vld [vmem:[%s456_s0 + $0x40] sm:$0xff]  ;;  %v47_v21 = vld [vmem:[%s456_s0 + $0x68] sm:$0xff]  ;;  %v48_v25 = vld [vmem:[%s456_s0 + $0x70] sm:$0xff] }
   0x8   :  { %248 = vmatpush.msra.mxu2 %v78_v3  ;;  %249 = vmatpush.msra.mxu3 %v78_v3  ;;  %v46_v17 = vld [vmem:[%s456_s0 + $0x60] sm:$0xff]  ;;  %v35_v22 = vld [vmem:[%s456_s0 + $0x8] sm:$0xff]  ;;  %v36_v26 = vld [vmem:[%s456_s0 + $0x10] sm:$0xff] }
   0x9   :  { %85 = vmatpush.msra.mxu0 %v78_v3  ;;  %247 = vmatpush.msra.mxu1 %v78_v3  ;;  %v34_v18 = vld [vmem:[%s456_s0] sm:$0xff]  ;;  %v39_v23 = vld [vmem:[%s456_s0 + $0x28] sm:$0xff]  ;;  %v40_v27 = vld [vmem:[%s456_s0 + $0x30] sm:$0xff] }
   0xa   :  { %251 = vmatpush.msra.mxu2 %v77_v4  ;;  %252 = vmatpush.msra.mxu3 %v77_v4  ;;  %v38_v19 = vld [vmem:[%s456_s0 + $0x20] sm:$0xff]  ;;  %v45_v28 = vld [vmem:[%s456_s0 + $0x58] sm:$0xff] }
   0xb   :  { %86 = vmatpush.msra.mxu0 %v77_v4  ;;  %250 = vmatpush.msra.mxu1 %v77_v4  ;;  %v49_v29 = vld [vmem:[%s456_s0 + $0x78] sm:$0xff]  ;;  %v286_v32 = vld [vmem:[%s455_s2] ss:$0 sm:$0xff] }
   0xc   :  { %254 = vmatpush.msra.mxu2 %v76_v5  ;;  %255 = vmatpush.msra.mxu3 %v76_v5  ;;  %v37_v30 = vld [vmem:[%s456_s0 + $0x18] sm:$0xff] }
   0xd   :  { %87 = vmatpush.msra.mxu0 %v76_v5  ;;  %253 = vmatpush.msra.mxu1 %v76_v5  ;;  %v41_v31 = vld [vmem:[%s456_s0 + $0x38] sm:$0xff] }
   0xe   :  { %257 = vmatpush.msra.mxu2 %v75_v6  ;;  %258 = vmatpush.msra.mxu3 %v75_v6 }
   0xf   :  { %88 = vmatpush.msra.mxu0 %v75_v6  ;;  %256 = vmatpush.msra.mxu1 %v75_v6 }
  0x10   :  { %260 = vmatpush.msra.mxu2 %v74_v7  ;;  %261 = vmatpush.msra.mxu3 %v74_v7 }
  0x11   :  { %89 = vmatpush.msra.mxu0 %v74_v7  ;;  %259 = vmatpush.msra.mxu1 %v74_v7 }
  0x12   :  { %263 = vmatpush.msra.mxu2 %v73_v8  ;;  %264 = vmatpush.msra.mxu3 %v73_v8 }
  0x13   :  { %90 = vmatpush.msra.mxu0 %v73_v8  ;;  %262 = vmatpush.msra.mxu1 %v73_v8 }
  0x14   :  { %266 = vmatpush.msra.mxu2 %v72_v9  ;;  %267 = vmatpush.msra.mxu3 %v72_v9 }
  0x15   :  { %91 = vmatpush.msra.mxu0 %v72_v9  ;;  %265 = vmatpush.msra.mxu1 %v72_v9 }
  0x16   :  { %269 = vmatpush.msra.mxu2 %v71_v10  ;;  %270 = vmatpush.msra.mxu3 %v71_v10 }
  0x17   :  { %92 = vmatpush.msra.mxu0 %v71_v10  ;;  %268 = vmatpush.msra.mxu1 %v71_v10 }
  0x18   :  { %272 = vmatpush.msra.mxu2 %v70_v11  ;;  %273 = vmatpush.msra.mxu3 %v70_v11 }
  0x19   :  { %93 = vmatpush.msra.mxu0 %v70_v11  ;;  %271 = vmatpush.msra.mxu1 %v70_v11 }
  0x1a   :  { %275 = vmatpush.msra.mxu2 %v69_v12  ;;  %276 = vmatpush.msra.mxu3 %v69_v12 }
  0x1b   :  { %94 = vmatpush.msra.mxu0 %v69_v12  ;;  %274 = vmatpush.msra.mxu1 %v69_v12 }
  0x1c   :  { %278 = vmatpush.msra.mxu2 %v68_v13  ;;  %279 = vmatpush.msra.mxu3 %v68_v13 }
  0x1d   :  { %95 = vmatpush.msra.mxu0 %v68_v13  ;;  %277 = vmatpush.msra.mxu1 %v68_v13 }
  0x1e   :  { %281 = vmatpush.msra.mxu2 %v67_v14  ;;  %282 = vmatpush.msra.mxu3 %v67_v14 }
  0x1f   :  { %96 = vmatpush.msra.mxu0 %v67_v14  ;;  %280 = vmatpush.msra.mxu1 %v67_v14 }
  0x20   :  { %284 = vmatpush.msra.mxu2 %v66_v15  ;;  %285 = vmatpush.msra.mxu3 %v66_v15 }
  0x21   :  { %122 = vmatmul.f32.vlgmr.msra.gmra.mxu2 %v42_v16  ;;  %134 = vmatmul.f32.vlgmr.msra.gmra.mxu3 %v46_v17 }
  0x22   :  { %97 = vmatpush.msra.mxu0 %v66_v15  ;;  %283 = vmatpush.msra.mxu1 %v66_v15 }
  0x23   :  { %98 = vmatmul.f32.vlgmr.msra.gmra.mxu0 %v34_v18  ;;  %110 = vmatmul.f32.vlgmr.msra.gmra.mxu1 %v38_v19 }
  0x29   :  { %125 = vmatmul.f32.gmra.mxu2 %v43_v20  ;;  %137 = vmatmul.f32.gmra.mxu3 %v47_v21 }
  0x2b   :  { %101 = vmatmul.f32.gmra.mxu0 %v35_v22  ;;  %113 = vmatmul.f32.gmra.mxu1 %v39_v23 }
  0x31   :  { %128 = vmatmul.f32.gmra.mxu2 %v44_v24  ;;  %140 = vmatmul.f32.gmra.mxu3 %v48_v25 }
  0x33   :  { %104 = vmatmul.f32.gmra.mxu0 %v36_v26  ;;  %116 = vmatmul.f32.gmra.mxu1 %v40_v27 }
  0x39   :  { %131 = vmatmul.f32.gmra.mxu2 %v45_v28  ;;  %143 = vmatmul.f32.gmra.mxu3 %v49_v29 }
  0x3b   :  { %107 = vmatmul.f32.gmra.mxu0 %v37_v30  ;;  %119 = vmatmul.f32.gmra.mxu1 %v41_v31 }
  0xa0   :  { %v99_v33 = vpop.f32.mrf.mxu0  ;;  %v111_v34 = vpop.f32.mrf.mxu1 }
  0xa1   :  { %v202_v35 = vadd.f32 %v286_v32, %v99_v33  ;;  %v206_v36 = vadd.f32 %v286_v32, %v111_v34 }
  0xa3   :  { %218 = vst [vmem:[%s457_s3] sm:$0xff] %v202_v35 }
  0xa4   :  { %222 = vst [vmem:[%s457_s3 + $0x20] sm:$0xff] %v206_v36  ;;  %v123_v37 = vpop.f32.mrf.mxu2  ;;  %v135_v38 = vpop.f32.mrf.mxu3 }
  0xa5   :  { %v210_v39 = vadd.f32 %v286_v32, %v123_v37  ;;  %v214_v40 = vadd.f32 %v286_v32, %v135_v38 }
  0xa7   :  { %226 = vst [vmem:[%s457_s3 + $0x40] sm:$0xff] %v210_v39 }
  0xa8   :  { %230 = vst [vmem:[%s457_s3 + $0x60] sm:$0xff] %v214_v40  ;;  %v102_v41 = vpop.f32.mrf.mxu0  ;;  %v114_v42 = vpop.f32.mrf.mxu1 }
  0xa9   :  { %v203_v43 = vadd.f32 %v286_v32, %v102_v41  ;;  %v207_v44 = vadd.f32 %v286_v32, %v114_v42 }
  0xab   :  { %219 = vst [vmem:[%s457_s3 + $0x8] sm:$0xff] %v203_v43 }
  0xac   :  { %223 = vst [vmem:[%s457_s3 + $0x28] sm:$0xff] %v207_v44  ;;  %v126_v45 = vpop.f32.mrf.mxu2  ;;  %v138_v46 = vpop.f32.mrf.mxu3 }
  0xad   :  { %v211_v47 = vadd.f32 %v286_v32, %v126_v45  ;;  %v215_v48 = vadd.f32 %v286_v32, %v138_v46 }
  0xaf   :  { %227 = vst [vmem:[%s457_s3 + $0x48] sm:$0xff] %v211_v47 }
  0xb0   :  { %231 = vst [vmem:[%s457_s3 + $0x68] sm:$0xff] %v215_v48  ;;  %v105_v49 = vpop.f32.mrf.mxu0  ;;  %v117_v50 = vpop.f32.mrf.mxu1 }
  0xb1   :  { %v204_v51 = vadd.f32 %v286_v32, %v105_v49  ;;  %v208_v52 = vadd.f32 %v286_v32, %v117_v50 }
  0xb3   :  { %220 = vst [vmem:[%s457_s3 + $0x10] sm:$0xff] %v204_v51 }
  0xb4   :  { %224 = vst [vmem:[%s457_s3 + $0x30] sm:$0xff] %v208_v52  ;;  %v129_v53 = vpop.f32.mrf.mxu2  ;;  %v141_v54 = vpop.f32.mrf.mxu3 }
  0xb5   :  { %v212_v55 = vadd.f32 %v286_v32, %v129_v53  ;;  %v216_v56 = vadd.f32 %v286_v32, %v141_v54 }
  0xb7   :  { %228 = vst [vmem:[%s457_s3 + $0x50] sm:$0xff] %v212_v55 }
  0xb8   :  { %232 = vst [vmem:[%s457_s3 + $0x70] sm:$0xff] %v216_v56  ;;  %v108_v57 = vpop.f32.mrf.mxu0  ;;  %v120_v58 = vpop.f32.mrf.mxu1 }
  0xb9   :  { %v205_v59 = vadd.f32 %v286_v32, %v108_v57  ;;  %v209_v60 = vadd.f32 %v286_v32, %v120_v58 }
  0xbb   :  { %221 = vst [vmem:[%s457_s3 + $0x18] sm:$0xff] %v205_v59 }
  0xbc   :  { %225 = vst [vmem:[%s457_s3 + $0x38] sm:$0xff] %v209_v60  ;;  %v132_v61 = vpop.f32.mrf.mxu2  ;;  %v144_v62 = vpop.f32.mrf.mxu3 }
  0xbd   :  { %v213_v63 = vadd.f32 %v286_v32, %v132_v61  ;;  %v217_v0 = vadd.f32 %v286_v32, %v144_v62 }
  0xbf   :  { %229 = vst [vmem:[%s457_s3 + $0x58] sm:$0xff] %v213_v63 }
  0xc0   :  { %233 = vst [vmem:[%s457_s3 + $0x78] sm:$0xff] %v217_v0 }

// kernel: _lambda_.23
= control target key start
LH: loop header
LB: loop body
LE: loop exit
PB: predicated region body
PF: predicated region fallthrough
CT: control target
= control target key end

     0   :  { %s693_s12 = smov 0   ;;  %s695_s13 = smov 0   ;;  %s819_s0 = inlined_call_operand.vmem [shape: f32[32,768], index: 0, kind: input, shape index: {}]   ;;  %s820_s1 = inlined_call_operand.vmem [shape: f32[768,128], index: 1, kind: input, shape index: {}]   ;;  %s821_s2 = inlined_call_operand.vmem [shape: f32[1,128], index: 2, kind: input, shape index: {}]   ;;  %s822_s3 = inlined_call_operand.vmem [shape: f32[32,128], index: 3, kind: output, shape index: {}]  }
   0x1   :  { %s697_s14 = smov 0   ;;  %s699_s15 = smov 0  }
   0x2   :  { %s701_s16 = smov 0  }
   0x3 LB: > { %s25_s17 = sadd.s32 1, %s666_s15  ;;  %p48_p1 = scmp.ne.s32.totalorder %s658_s13, %s654_s12  ;;  %s670_s16 = sphi %s701_s16, %s13_s16   ;;  %s666_s15 = sphi %s699_s15, %s826_s15   ;;  %s662_s14 = sphi %s697_s14, %s825_s14   ;;  %s658_s13 = sphi %s695_s13, %s824_s13   ;;  %s654_s12 = sphi %s693_s12, %s823_s12  }
   0x4   : > { %p26_p0 = scmp.ge.s32.totalorder %s25_s17, 3  ;;  %p49_p2 = scmp.eq.s32.totalorder %s670_s16, 0 }
   0x5   : > { %s41_s19 = sadd.s32 1, %s658_s13  ;;  %p543_p5 = scmp.ge.s32.totalorder %s670_s16, 3 }
   0x6   : > { %s828_s17 = smov (%p26_p0, %s25_s17), 0  ;;  %p50_p3 = por %p49_p2, %p48_p1 }
   0x7   : > { %s37_s18 = ssub.s32 %s666_s15, %s828_s17  ;;  %162 = sbr.rel (%p543_p5) target bundleno = 24 (0x18), region = 20 }
   0x8   : > { %p39_p4 = scmp.eq.s32.totalorder %s37_s18, 0 }
   0xa   : > { %s728_s20 = scalar_select %p39_p4, %s658_s13, %s41_s19  }
   0xc   : > { %165 = sbr.rel (!%p50_p3) target bundleno = 24 (0x18), region = 24  ;;  %s167_s21 = sand.u32 (%p50_p3), 1, %s658_s13  }
   0xd   : > { %s557_s22 = sshll.u32 (%p50_p3), %s666_s15, 4  ;;  %s544_s23 = sshll.u32 (%p50_p3), %s167_s21, 6 }
   0xe   : > { %s175_s26 = scalar_lea.vmem (%p50_p3), %s819_s0, %s557_s22  ;;  %s169_s27 = scalar_lea.vmem (%p50_p3), [#allocation3], %s544_s23 }
   0xf   : > { %v188_v0 = vld [vmem:[%s175_s26] sm:$0xff] (%p50_p3)  ;;  %v190_v1 = vld [vmem:[%s175_s26 + $0x8] sm:$0xff] (%p50_p3)  ;;  %v192_v2 = vld [vmem:[%s175_s26 + $0x30] sm:$0xff] (%p50_p3) }
  0x10   : > { %189 = vst [vmem:[%s169_s27] sm:$0xff] (%p50_p3), %v188_v0  ;;  %v194_v3 = vld [vmem:[%s175_s26 + $0x38] sm:$0xff] (%p50_p3)  ;;  %v196_v4 = vld [vmem:[%s175_s26 + $0x60] sm:$0xff] (%p50_p3)  ;;  %v198_v5 = vld [vmem:[%s175_s26 + $0x68] sm:$0xff] (%p50_p3) }
  0x11   : > { %191 = vst [vmem:[%s169_s27 + $0x8] sm:$0xff] %v190_v1  ;;  %v200_v6 = vld [vmem:[%s175_s26 + $0x90] sm:$0xff]  ;;  %v202_v7 = vld [vmem:[%s175_s26 + $0x98] sm:$0xff] }
  0x12   : > { %193 = vst [vmem:[%s169_s27 + $0x10] sm:$0xff] %v192_v2 }
  0x13   : > { %195 = vst [vmem:[%s169_s27 + $0x18] sm:$0xff] %v194_v3 }
  0x14   : > { %197 = vst [vmem:[%s169_s27 + $0x20] sm:$0xff] %v196_v4 }
  0x15   : > { %199 = vst [vmem:[%s169_s27 + $0x28] sm:$0xff] %v198_v5 }
  0x16   : > { %201 = vst [vmem:[%s169_s27 + $0x30] sm:$0xff] %v200_v6 }
  0x17   : > { %203 = vst [vmem:[%s169_s27 + $0x38] sm:$0xff] %v202_v7 }
  0x18 PF: > { %p547_p6 = scmp.ge.s32.totalorder %s670_s16, 1  ;;  %p220_p7 = scmp.lt.s32.totalorder %s670_s16, 4 }
  0x1a   : > { %p221_p8 = pnand %p547_p6, %p220_p7 }
  0x1b   : > { %s227_s28 = sand.u32 (!%p221_p8), 1, %s654_s12   ;;  %s549_s29 = sshll.u32 (!%p221_p8), %s662_s14, 5 }
  0x1c   : > { %224 = sbr.rel (%p221_p8) target bundleno = 233 (0xe9), region = 51  ;;  %s548_s30 = sshll.u32 (!%p221_p8), %s227_s28, 6 }
  0x1d   : > { %p267_p9 = scmp.lt.s32.totalorder (!%p221_p8), %s549_s29, 95  ;;  %s745_s8 = scalar_lea.vmem (!%p221_p8), [#allocation3], %s548_s30 }
  0x1e   : > { %p551_p10 = scmp.ne.s32.totalorder (!%p221_p8), %s662_s14, 0 }
  0x21   : > { %s830_s29 = smov (!%p267_p9, %s549_s29), 95  ;;  %290 = sbr.rel (%p551_p10) target bundleno = 43 (0x2b), region = 59 }
  0x22   : > { %s550_s4 = sshll.u32 %s830_s29, 3 }
  0x23   : > { %s743_s7 = scalar_lea.vmem %s820_s1, %s550_s4 }
  0x26   : > { %v672_v8 = vmov 0.0  }
  0x27   : > { %291 = vst [vmem:[#allocation2 + $0x10] sm:$0xff] %v672_v8 }
  0x28   : > { %292 = vst [vmem:[#allocation2] sm:$0xff] %v672_v8 }
  0x29   : > { %293 = vst [vmem:[#allocation2 + $0x18] sm:$0xff] %v672_v8 }
  0x2a   : > { %294 = vst [vmem:[#allocation2 + $0x8] sm:$0xff] %v672_v8 }
  0x2b PF: > { %v322_v9 = vld [vmem:[%s743_s7 + $0x78] sm:$0xff]  ;;  %v321_v11 = vld [vmem:[%s743_s7 + $0x70] sm:$0xff]  ;;  %v320_v13 = vld [vmem:[%s743_s7 + $0x68] sm:$0xff]  ;;  %p552_p11 = scmp.ne.s32.totalorder %s662_s14, 2 }
  0x2c   : > { %v338_v10 = vld [vmem:[%s743_s7 + $0xf8] sm:$0xff]  ;;  %558 = vmatpush.msra.mxu2 %v322_v9  ;;  %v337_v12 = vld [vmem:[%s743_s7 + $0xf0] sm:$0xff]  ;;  %v336_v14 = vld [vmem:[%s743_s7 + $0xe8] sm:$0xff]  ;;  %339 = vmatpush.msra.mxu0 %v322_v9 }
  0x2d   : > { %574 = vmatpush.msra.mxu3 %v338_v10  ;;  %368 = vmatpush.msra.mxu1 %v338_v10  ;;  %v319_v15 = vld [vmem:[%s743_s7 + $0x60] sm:$0xff]  ;;  %v318_v17 = vld [vmem:[%s743_s7 + $0x58] sm:$0xff]  ;;  %v317_v19 = vld [vmem:[%s743_s7 + $0x50] sm:$0xff] }
  0x2e   : > { %559 = vmatpush.msra.mxu2 %v321_v11  ;;  %v335_v16 = vld [vmem:[%s743_s7 + $0xe0] sm:$0xff]  ;;  %340 = vmatpush.msra.mxu0 %v321_v11  ;;  %v334_v18 = vld [vmem:[%s743_s7 + $0xd8] sm:$0xff]  ;;  %v333_v20 = vld [vmem:[%s743_s7 + $0xd0] sm:$0xff] }
  0x2f   : > { %575 = vmatpush.msra.mxu3 %v337_v12  ;;  %369 = vmatpush.msra.mxu1 %v337_v12  ;;  %v316_v21 = vld [vmem:[%s743_s7 + $0x48] sm:$0xff]  ;;  %v315_v23 = vld [vmem:[%s743_s7 + $0x40] sm:$0xff]  ;;  %v314_v25 = vld [vmem:[%s743_s7 + $0x38] sm:$0xff] }
  0x30   : > { %560 = vmatpush.msra.mxu2 %v320_v13  ;;  %341 = vmatpush.msra.mxu0 %v320_v13  ;;  %v332_v22 = vld [vmem:[%s743_s7 + $0xc8] sm:$0xff]  ;;  %v331_v24 = vld [vmem:[%s743_s7 + $0xc0] sm:$0xff]  ;;  %v330_v26 = vld [vmem:[%s743_s7 + $0xb8] sm:$0xff] }
  0x31   : > { %576 = vmatpush.msra.mxu3 %v336_v14  ;;  %370 = vmatpush.msra.mxu1 %v336_v14  ;;  %v313_v27 = vld [vmem:[%s743_s7 + $0x30] sm:$0xff]  ;;  %v312_v29 = vld [vmem:[%s743_s7 + $0x28] sm:$0xff]  ;;  %v311_v31 = vld [vmem:[%s743_s7 + $0x20] sm:$0xff] }
  0x32   : > { %561 = vmatpush.msra.mxu2 %v319_v15  ;;  %342 = vmatpush.msra.mxu0 %v319_v15  ;;  %v329_v28 = vld [vmem:[%s743_s7 + $0xb0] sm:$0xff]  ;;  %v328_v30 = vld [vmem:[%s743_s7 + $0xa8] sm:$0xff]  ;;  %v327_v32 = vld [vmem:[%s743_s7 + $0xa0] sm:$0xff] }
  0x33   : > { %577 = vmatpush.msra.mxu3 %v335_v16  ;;  %371 = vmatpush.msra.mxu1 %v335_v16  ;;  %v310_v33 = vld [vmem:[%s743_s7 + $0x18] sm:$0xff]  ;;  %v309_v35 = vld [vmem:[%s743_s7 + $0x10] sm:$0xff]  ;;  %v308_v37 = vld [vmem:[%s743_s7 + $0x8] sm:$0xff] }
  0x34   : > { %562 = vmatpush.msra.mxu2 %v318_v17  ;;  %343 = vmatpush.msra.mxu0 %v318_v17  ;;  %v326_v34 = vld [vmem:[%s743_s7 + $0x98] sm:$0xff]  ;;  %v325_v36 = vld [vmem:[%s743_s7 + $0x90] sm:$0xff]  ;;  %v324_v38 = vld [vmem:[%s743_s7 + $0x88] sm:$0xff] }
  0x35   : > { %578 = vmatpush.msra.mxu3 %v334_v18  ;;  %372 = vmatpush.msra.mxu1 %v334_v18  ;;  %v307_v39 = vld [vmem:[%s743_s7] sm:$0xff]  ;;  %v300_v42 = vld [vmem:[%s745_s8 + $0x28] sm:$0xff]  ;;  %v301_v45 = vld [vmem:[%s745_s8 + $0x30] sm:$0xff] }
  0x36   : > { %563 = vmatpush.msra.mxu2 %v317_v19  ;;  %344 = vmatpush.msra.mxu0 %v317_v19  ;;  %v323_v40 = vld [vmem:[%s743_s7 + $0x80] sm:$0xff]  ;;  %v296_v44 = vld [vmem:[%s745_s8 + $0x8] sm:$0xff]  ;;  %v302_v46 = vld [vmem:[%s745_s8 + $0x38] sm:$0xff] }
  0x37   : > { %579 = vmatpush.msra.mxu3 %v333_v20  ;;  %373 = vmatpush.msra.mxu1 %v333_v20  ;;  %v299_v41 = vld [vmem:[%s745_s8 + $0x20] sm:$0xff]  ;;  %v297_v47 = vld [vmem:[%s745_s8 + $0x10] sm:$0xff]  ;;  %v298_v48 = vld [vmem:[%s745_s8 + $0x18] sm:$0xff] }
  0x38   : > { %564 = vmatpush.msra.mxu2 %v316_v21  ;;  %345 = vmatpush.msra.mxu0 %v316_v21  ;;  %v295_v43 = vld [vmem:[%s745_s8] sm:$0xff]  ;;  %v303_v50 = vld [vmem:[#allocation2 + $0x10] sm:$0xff]  ;;  %v305_v55 = vld [vmem:[#allocation2 + $0x18] sm:$0xff] }
  0x39   : > { %580 = vmatpush.msra.mxu3 %v332_v22  ;;  %374 = vmatpush.msra.mxu1 %v332_v22  ;;  %v304_v60 = vld [vmem:[#allocation2] sm:$0xff]  ;;  %v306_v1 = vld [vmem:[#allocation2 + $0x8] sm:$0xff] }
  0x3a   : > { %565 = vmatpush.msra.mxu2 %v315_v23  ;;  %346 = vmatpush.msra.mxu0 %v315_v23 }
  0x3b   : > { %581 = vmatpush.msra.mxu3 %v331_v24  ;;  %375 = vmatpush.msra.mxu1 %v331_v24 }
  0x3c   : > { %566 = vmatpush.msra.mxu2 %v314_v25  ;;  %347 = vmatpush.msra.mxu0 %v314_v25 }
  0x3d   : > { %582 = vmatpush.msra.mxu3 %v330_v26  ;;  %376 = vmatpush.msra.mxu1 %v330_v26 }
  0x3e   : > { %567 = vmatpush.msra.mxu2 %v313_v27  ;;  %348 = vmatpush.msra.mxu0 %v313_v27 }
  0x3f   : > { %583 = vmatpush.msra.mxu3 %v329_v28  ;;  %377 = vmatpush.msra.mxu1 %v329_v28 }
  0x40   : > { %568 = vmatpush.msra.mxu2 %v312_v29  ;;  %349 = vmatpush.msra.mxu0 %v312_v29 }
  0x41   : > { %584 = vmatpush.msra.mxu3 %v328_v30  ;;  %378 = vmatpush.msra.mxu1 %v328_v30 }
  0x42   : > { %569 = vmatpush.msra.mxu2 %v311_v31  ;;  %350 = vmatpush.msra.mxu0 %v311_v31 }
  0x43   : > { %585 = vmatpush.msra.mxu3 %v327_v32  ;;  %379 = vmatpush.msra.mxu1 %v327_v32 }
  0x44   : > { %570 = vmatpush.msra.mxu2 %v310_v33  ;;  %351 = vmatpush.msra.mxu0 %v310_v33 }
  0x45   : > { %586 = vmatpush.msra.mxu3 %v326_v34  ;;  %380 = vmatpush.msra.mxu1 %v326_v34 }
  0x46   : > { %571 = vmatpush.msra.mxu2 %v309_v35  ;;  %352 = vmatpush.msra.mxu0 %v309_v35 }
  0x47   : > { %587 = vmatpush.msra.mxu3 %v325_v36  ;;  %381 = vmatpush.msra.mxu1 %v325_v36 }
  0x48   : > { %572 = vmatpush.msra.mxu2 %v308_v37  ;;  %353 = vmatpush.msra.mxu0 %v308_v37 }
  0x49   : > { %588 = vmatpush.msra.mxu3 %v324_v38  ;;  %382 = vmatpush.msra.mxu1 %v324_v38 }
  0x4a   : > { %573 = vmatpush.msra.mxu2 %v307_v39  ;;  %354 = vmatpush.msra.mxu0 %v307_v39 }
  0x4b   : > { %589 = vmatpush.msra.mxu3 %v323_v40  ;;  %361 = vmatmul.f32.vlgmr.msra.gmra.mxu2 %v299_v41 }
  0x4c   : > { %390 = vmatmul.f32.vlgmr.msra.gmra.mxu3 %v300_v42  ;;  %383 = vmatpush.msra.mxu1 %v323_v40 }
  0x4d   : > { %355 = vmatmul.f32.vlgmr.msra.gmra.mxu0 %v295_v43  ;;  %384 = vmatmul.f32.vlgmr.msra.gmra.mxu1 %v296_v44 }
  0x53   : > { %364 = vmatmul.f32.gmra.mxu2 %v301_v45 }
  0x54   : > { %393 = vmatmul.f32.gmra.mxu3 %v302_v46 }
  0x55   : > { %358 = vmatmul.f32.gmra.mxu0 %v297_v47  ;;  %387 = vmatmul.f32.gmra.mxu1 %v298_v48 }
  0xca   : > { %v356_v49 = vpop.f32.mrf.mxu0  ;;  %v385_v51 = vpop.f32.mrf.mxu1 }
  0xcb   : > { %v386_v52 = vadd.f32 %v385_v51, %v356_v49 }
  0xcd   : > { %v397_v53 = vadd.f32 %v386_v52, %v303_v50 }
  0xce   : > { %v362_v54 = vpop.f32.mrf.mxu2 }
  0xcf   : > { %v391_v56 = vpop.f32.mrf.mxu3  ;;  %401 = vst [vmem:[#allocation2 + $0x10] sm:$0xff] %v397_v53 }
  0xd0   : > { %v392_v57 = vadd.f32 %v391_v56, %v362_v54 }
  0xd2   : > { %v399_v58 = vadd.f32 %v392_v57, %v305_v55  ;;  %v359_v59 = vpop.f32.mrf.mxu0  ;;  %v388_v61 = vpop.f32.mrf.mxu1 }
  0xd3   : > { %v389_v62 = vadd.f32 %v388_v61, %v359_v59 }
  0xd4   : > { %403 = vst [vmem:[#allocation2 + $0x18] sm:$0xff] %v399_v58 }
  0xd5   : > { %v398_v63 = vadd.f32 %v389_v62, %v304_v60 }
  0xd6   : > { %v365_v0 = vpop.f32.mrf.mxu2 }
  0xd7   : > { %v394_v2 = vpop.f32.mrf.mxu3  ;;  %402 = vst [vmem:[#allocation2] sm:$0xff] %v398_v63 }
  0xd8   : > { %v395_v3 = vadd.f32 %v394_v2, %v365_v0  ;;  %408 = sbr.rel (%p552_p11) target bundleno = 233 (0xe9), region = 63 }
  0xda   : > { %v400_v4 = vadd.f32 %v395_v3, %v306_v1 }
  0xdc   : > { %404 = vst [vmem:[#allocation2 + $0x8] sm:$0xff] %v400_v4 }
  0xdd   : > { %v409_v5 = vld [vmem:[#allocation2 + $0x10] sm:$0xff]  ;;  %v631_v6 = vld [vmem:[%s821_s2] ss:$0 sm:$0xff]  ;;  %v411_v8 = vld [vmem:[#allocation2 + $0x18] sm:$0xff] }
  0xde   : > { %v410_v7 = vld [vmem:[#allocation2] sm:$0xff]  ;;  %v417_v10 = vadd.f32 %v631_v6, %v409_v5  ;;  %v419_v12 = vadd.f32 %v631_v6, %v411_v8 }
  0xdf   : > { %v418_v11 = vadd.f32 %v631_v6, %v410_v7 }
  0xe0   : > { %v421_v14 = vmax.f32 %v417_v10, 0.0  ;;  %v423_v16 = vmax.f32 %v419_v12, 0.0 }
  0xe1   : > { %v422_v15 = vmax.f32 %v418_v11, 0.0 }
  0xe2   : > { %425 = vst [vmem:[%s822_s3] sm:$0xff] %v421_v14 }
  0xe3   : > { %v412_v9 = vld [vmem:[#allocation2 + $0x8] sm:$0xff]  ;;  %426 = vst [vmem:[%s822_s3 + $0x8] sm:$0xff] %v422_v15 }
  0xe4   : > { %v420_v13 = vadd.f32 %v631_v6, %v412_v9  ;;  %427 = vst [vmem:[%s822_s3 + $0x10] sm:$0xff] %v423_v16 }
  0xe6   : > { %v424_v17 = vmax.f32 %v420_v13, 0.0 }
  0xe8   : > { %428 = vst [vmem:[%s822_s3 + $0x18] sm:$0xff] %v424_v17 }
  0xe9 PF: > { %s13_s16 = sadd.s32 1, %s670_s16   ;;  %s823_s12 = smov %s658_s13 }
  0xea   : > { %p10_p12 = scmp.ge.s32.totalorder %s13_s16, 5   ;;  %s824_s13 = smov %s728_s20 }
  0xeb   : > { %s825_s14 = smov %s666_s15  ;;  %s826_s15 = smov %s828_s17 }
  0xec   :  { %12 = sbr.rel (!%p10_p12) target bundleno = 3 (0x3), region = 104 }

// kernel: _lambda_.24
= control target key start
LH: loop header
LB: loop body
LE: loop exit
PB: predicated region body
PF: predicated region fallthrough
CT: control target
= control target key end

     0   :  { %s318_s1 = inlined_call_operand.vmem [shape: f32[128,128], index: 1, kind: input, shape index: {}]   ;;  %s319_s2 = inlined_call_operand.vmem [shape: f32[1,128], index: 2, kind: input, shape index: {}]   ;;  %s320_s0 = inlined_call_operand.vmem [shape: f32[64,128], index: 0, kind: input, shape index: {}]   ;;  %s321_s3 = inlined_call_operand.vmem [shape: f32[64,128], index: 3, kind: output, shape index: {}]  }
   0x1   :  { %v57_v0 = vld [vmem:[%s318_s1 + $0x78] sm:$0xff]  ;;  %v56_v1 = vld [vmem:[%s318_s1 + $0x70] sm:$0xff]  ;;  %v55_v2 = vld [vmem:[%s318_s1 + $0x68] sm:$0xff] }
   0x2   :  { %151 = vmatpush.msra.mxu2 %v57_v0  ;;  %152 = vmatpush.msra.mxu3 %v57_v0  ;;  %v54_v3 = vld [vmem:[%s318_s1 + $0x60] sm:$0xff]  ;;  %v53_v4 = vld [vmem:[%s318_s1 + $0x58] sm:$0xff]  ;;  %v52_v5 = vld [vmem:[%s318_s1 + $0x50] sm:$0xff] }
   0x3   :  { %58 = vmatpush.msra.mxu0 %v57_v0  ;;  %150 = vmatpush.msra.mxu1 %v57_v0  ;;  %v51_v6 = vld [vmem:[%s318_s1 + $0x48] sm:$0xff]  ;;  %v50_v7 = vld [vmem:[%s318_s1 + $0x40] sm:$0xff]  ;;  %v49_v8 = vld [vmem:[%s318_s1 + $0x38] sm:$0xff] }
   0x4   :  { %154 = vmatpush.msra.mxu2 %v56_v1  ;;  %155 = vmatpush.msra.mxu3 %v56_v1  ;;  %v48_v9 = vld [vmem:[%s318_s1 + $0x30] sm:$0xff]  ;;  %v47_v10 = vld [vmem:[%s318_s1 + $0x28] sm:$0xff]  ;;  %v46_v11 = vld [vmem:[%s318_s1 + $0x20] sm:$0xff] }
   0x5   :  { %59 = vmatpush.msra.mxu0 %v56_v1  ;;  %153 = vmatpush.msra.mxu1 %v56_v1  ;;  %v45_v12 = vld [vmem:[%s318_s1 + $0x18] sm:$0xff]  ;;  %v44_v13 = vld [vmem:[%s318_s1 + $0x10] sm:$0xff]  ;;  %v43_v14 = vld [vmem:[%s318_s1 + $0x8] sm:$0xff] }
   0x6   :  { %157 = vmatpush.msra.mxu2 %v55_v2  ;;  %158 = vmatpush.msra.mxu3 %v55_v2  ;;  %v42_v15 = vld [vmem:[%s318_s1] sm:$0xff]  ;;  %v32_v17 = vld [vmem:[%s320_s0 + $0x30] sm:$0xff]  ;;  %v31_v20 = vld [vmem:[%s320_s0 + $0x28] sm:$0xff] }
   0x7   :  { %60 = vmatpush.msra.mxu0 %v55_v2  ;;  %156 = vmatpush.msra.mxu1 %v55_v2  ;;  %v30_v16 = vld [vmem:[%s320_s0 + $0x20] sm:$0xff]  ;;  %v28_v19 = vld [vmem:[%s320_s0 + $0x10] sm:$0xff]  ;;  %v33_v21 = vld [vmem:[%s320_s0 + $0x38] sm:$0xff] }
   0x8   :  { %160 = vmatpush.msra.mxu2 %v54_v3  ;;  %161 = vmatpush.msra.mxu3 %v54_v3  ;;  %v26_v18 = vld [vmem:[%s320_s0] sm:$0xff]  ;;  %v27_v22 = vld [vmem:[%s320_s0 + $0x8] sm:$0xff]  ;;  %v29_v23 = vld [vmem:[%s320_s0 + $0x18] sm:$0xff] }
   0x9   :  { %61 = vmatpush.msra.mxu0 %v54_v3  ;;  %159 = vmatpush.msra.mxu1 %v54_v3  ;;  %v198_v24 = vld [vmem:[%s319_s2] ss:$0 sm:$0xff] }
   0xa   :  { %163 = vmatpush.msra.mxu2 %v53_v4  ;;  %164 = vmatpush.msra.mxu3 %v53_v4 }
   0xb   :  { %62 = vmatpush.msra.mxu0 %v53_v4  ;;  %162 = vmatpush.msra.mxu1 %v53_v4 }
   0xc   :  { %166 = vmatpush.msra.mxu2 %v52_v5  ;;  %167 = vmatpush.msra.mxu3 %v52_v5 }
   0xd   :  { %63 = vmatpush.msra.mxu0 %v52_v5  ;;  %165 = vmatpush.msra.mxu1 %v52_v5 }
   0xe   :  { %169 = vmatpush.msra.mxu2 %v51_v6  ;;  %170 = vmatpush.msra.mxu3 %v51_v6 }
   0xf   :  { %64 = vmatpush.msra.mxu0 %v51_v6  ;;  %168 = vmatpush.msra.mxu1 %v51_v6 }
  0x10   :  { %172 = vmatpush.msra.mxu2 %v50_v7  ;;  %173 = vmatpush.msra.mxu3 %v50_v7 }
  0x11   :  { %65 = vmatpush.msra.mxu0 %v50_v7  ;;  %171 = vmatpush.msra.mxu1 %v50_v7 }
  0x12   :  { %175 = vmatpush.msra.mxu2 %v49_v8  ;;  %176 = vmatpush.msra.mxu3 %v49_v8 }
  0x13   :  { %66 = vmatpush.msra.mxu0 %v49_v8  ;;  %174 = vmatpush.msra.mxu1 %v49_v8 }
  0x14   :  { %178 = vmatpush.msra.mxu2 %v48_v9  ;;  %179 = vmatpush.msra.mxu3 %v48_v9 }
  0x15   :  { %67 = vmatpush.msra.mxu0 %v48_v9  ;;  %177 = vmatpush.msra.mxu1 %v48_v9 }
  0x16   :  { %181 = vmatpush.msra.mxu2 %v47_v10  ;;  %182 = vmatpush.msra.mxu3 %v47_v10 }
  0x17   :  { %68 = vmatpush.msra.mxu0 %v47_v10  ;;  %180 = vmatpush.msra.mxu1 %v47_v10 }
  0x18   :  { %184 = vmatpush.msra.mxu2 %v46_v11  ;;  %185 = vmatpush.msra.mxu3 %v46_v11 }
  0x19   :  { %69 = vmatpush.msra.mxu0 %v46_v11  ;;  %183 = vmatpush.msra.mxu1 %v46_v11 }
  0x1a   :  { %187 = vmatpush.msra.mxu2 %v45_v12  ;;  %188 = vmatpush.msra.mxu3 %v45_v12 }
  0x1b   :  { %70 = vmatpush.msra.mxu0 %v45_v12  ;;  %186 = vmatpush.msra.mxu1 %v45_v12 }
  0x1c   :  { %190 = vmatpush.msra.mxu2 %v44_v13  ;;  %191 = vmatpush.msra.mxu3 %v44_v13 }
  0x1d   :  { %71 = vmatpush.msra.mxu0 %v44_v13  ;;  %189 = vmatpush.msra.mxu1 %v44_v13 }
  0x1e   :  { %193 = vmatpush.msra.mxu2 %v43_v14  ;;  %194 = vmatpush.msra.mxu3 %v43_v14 }
  0x1f   :  { %72 = vmatpush.msra.mxu0 %v43_v14  ;;  %192 = vmatpush.msra.mxu1 %v43_v14 }
  0x20   :  { %196 = vmatpush.msra.mxu2 %v42_v15  ;;  %197 = vmatpush.msra.mxu3 %v42_v15 }
  0x21   :  { %86 = vmatmul.f32.vlgmr.msra.gmra.mxu2 %v30_v16  ;;  %92 = vmatmul.f32.vlgmr.msra.gmra.mxu3 %v32_v17 }
  0x22   :  { %73 = vmatpush.msra.mxu0 %v42_v15  ;;  %195 = vmatpush.msra.mxu1 %v42_v15 }
  0x23   :  { %74 = vmatmul.f32.vlgmr.msra.gmra.mxu0 %v26_v18  ;;  %80 = vmatmul.f32.vlgmr.msra.gmra.mxu1 %v28_v19 }
  0x29   :  { %89 = vmatmul.f32.gmra.mxu2 %v31_v20  ;;  %95 = vmatmul.f32.gmra.mxu3 %v33_v21 }
  0x2b   :  { %77 = vmatmul.f32.gmra.mxu0 %v27_v22  ;;  %83 = vmatmul.f32.gmra.mxu1 %v29_v23 }
  0xa0   :  { %v75_v25 = vpop.f32.mrf.mxu0  ;;  %v81_v26 = vpop.f32.mrf.mxu1 }
  0xa1   :  { %v130_v27 = vadd.f32 %v198_v24, %v75_v25  ;;  %v132_v28 = vadd.f32 %v198_v24, %v81_v26 }
  0xa3   :  { %138 = vst [vmem:[%s321_s3] sm:$0xff] %v130_v27 }
  0xa4   :  { %140 = vst [vmem:[%s321_s3 + $0x10] sm:$0xff] %v132_v28  ;;  %v87_v29 = vpop.f32.mrf.mxu2  ;;  %v93_v30 = vpop.f32.mrf.mxu3 }
  0xa5   :  { %v134_v31 = vadd.f32 %v198_v24, %v87_v29  ;;  %v136_v32 = vadd.f32 %v198_v24, %v93_v30 }
  0xa7   :  { %142 = vst [vmem:[%s321_s3 + $0x20] sm:$0xff] %v134_v31 }
  0xa8   :  { %144 = vst [vmem:[%s321_s3 + $0x30] sm:$0xff] %v136_v32  ;;  %v78_v33 = vpop.f32.mrf.mxu0  ;;  %v84_v34 = vpop.f32.mrf.mxu1 }
  0xa9   :  { %v131_v35 = vadd.f32 %v198_v24, %v78_v33  ;;  %v133_v36 = vadd.f32 %v198_v24, %v84_v34 }
  0xab   :  { %139 = vst [vmem:[%s321_s3 + $0x8] sm:$0xff] %v131_v35 }
  0xac   :  { %141 = vst [vmem:[%s321_s3 + $0x18] sm:$0xff] %v133_v36  ;;  %v90_v37 = vpop.f32.mrf.mxu2  ;;  %v96_v38 = vpop.f32.mrf.mxu3 }
  0xad   :  { %v135_v39 = vadd.f32 %v198_v24, %v90_v37  ;;  %v137_v40 = vadd.f32 %v198_v24, %v96_v38 }
  0xaf   :  { %143 = vst [vmem:[%s321_s3 + $0x28] sm:$0xff] %v135_v39 }
  0xb0   :  { %145 = vst [vmem:[%s321_s3 + $0x38] sm:$0xff] %v137_v40 }

// kernel: _lambda_.25
= control target key start
LH: loop header
LB: loop body
LE: loop exit
PB: predicated region body
PF: predicated region fallthrough
CT: control target
= control target key end

     0   :  { %s933_s12 = smov 0   ;;  %s935_s13 = smov 0   ;;  %s1187_s0 = inlined_call_operand.vmem [shape: f32[128,512], index: 0, kind: input, shape index: {}]   ;;  %s1188_s1 = inlined_call_operand.vmem [shape: f32[512,128], index: 1, kind: input, shape index: {}]   ;;  %s1189_s2 = inlined_call_operand.vmem [shape: f32[1,128], index: 2, kind: input, shape index: {}]   ;;  %s1190_s3 = inlined_call_operand.vmem [shape: f32[128,128], index: 3, kind: output, shape index: {}]  }
   0x1   :  { %s937_s14 = smov 0   ;;  %s939_s15 = smov 0  }
   0x2   :  { %s941_s16 = smov 0  }
   0x3 LB: > { %s25_s17 = sadd.s32 1, %s906_s15  ;;  %p48_p1 = scmp.ne.s32.totalorder %s898_s13, %s894_s12  ;;  %s910_s16 = sphi %s941_s16, %s13_s16   ;;  %s906_s15 = sphi %s939_s15, %s1194_s15   ;;  %s902_s14 = sphi %s937_s14, %s1193_s14   ;;  %s898_s13 = sphi %s935_s13, %s1192_s13   ;;  %s894_s12 = sphi %s933_s12, %s1191_s12  }
   0x4   : > { %p26_p0 = scmp.ge.s32.totalorder %s25_s17, 2  ;;  %p49_p2 = scmp.eq.s32.totalorder %s910_s16, 0 }
   0x5   : > { %s41_s19 = sadd.s32 1, %s898_s13  ;;  %p783_p5 = scmp.ge.s32.totalorder %s910_s16, 2 }
   0x6   : > { %s1196_s17 = smov (%p26_p0, %s25_s17), 0  ;;  %p50_p3 = por %p49_p2, %p48_p1 }
   0x7   : > { %s37_s18 = ssub.s32 %s906_s15, %s1196_s17  ;;  %162 = sbr.rel (%p783_p5) target bundleno = 48 (0x30), region = 20 }
   0x8   : > { %p39_p4 = scmp.eq.s32.totalorder %s37_s18, 0 }
   0xa   : > { %s968_s20 = scalar_select %p39_p4, %s898_s13, %s41_s19  }
   0xc   : > { %165 = sbr.rel (!%p50_p3) target bundleno = 48 (0x30), region = 24  ;;  %s167_s21 = sand.u32 (%p50_p3), 1, %s898_s13  }
   0xd   : > { %s797_s22 = sshll.u32 (%p50_p3), %s906_s15, 4  ;;  %s784_s23 = sshll.u32 (%p50_p3), %s167_s21, 8 }
   0xe   : > { %s976_s26 = scalar_lea.vmem (%p50_p3), %s1187_s0, %s797_s22  ;;  %s981_s27 = scalar_lea.vmem (%p50_p3), [#allocation3], %s784_s23 }
   0xf   : > { %v188_v0 = vld [vmem:[%s976_s26] sm:$0xff] (%p50_p3)  ;;  %v190_v1 = vld [vmem:[%s976_s26 + $0x8] sm:$0xff] (%p50_p3) }
  0x10   : > { %v192_v2 = vld [vmem:[%s976_s26 + $0x20] sm:$0xff] (%p50_p3)  ;;  %189 = vst [vmem:[%s981_s27] sm:$0xff] (%p50_p3), %v188_v0  ;;  %v194_v3 = vld [vmem:[%s976_s26 + $0x28] sm:$0xff] (%p50_p3) }
  0x11   : > { %191 = vst [vmem:[%s981_s27 + $0x8] sm:$0xff] %v190_v1  ;;  %v196_v4 = vld [vmem:[%s976_s26 + $0x40] sm:$0xff]  ;;  %v198_v5 = vld [vmem:[%s976_s26 + $0x48] sm:$0xff] }
  0x12   : > { %193 = vst [vmem:[%s981_s27 + $0x10] sm:$0xff] %v192_v2  ;;  %v200_v6 = vld [vmem:[%s976_s26 + $0x60] sm:$0xff]  ;;  %v202_v7 = vld [vmem:[%s976_s26 + $0x68] sm:$0xff] }
  0x13   : > { %195 = vst [vmem:[%s981_s27 + $0x18] sm:$0xff] %v194_v3  ;;  %v204_v8 = vld [vmem:[%s976_s26 + $0x80] sm:$0xff]  ;;  %v206_v9 = vld [vmem:[%s976_s26 + $0x88] sm:$0xff] }
  0x14   : > { %197 = vst [vmem:[%s981_s27 + $0x20] sm:$0xff] %v196_v4  ;;  %v208_v10 = vld [vmem:[%s976_s26 + $0xa0] sm:$0xff]  ;;  %v210_v11 = vld [vmem:[%s976_s26 + $0xa8] sm:$0xff] }
  0x15   : > { %199 = vst [vmem:[%s981_s27 + $0x28] sm:$0xff] %v198_v5  ;;  %v212_v12 = vld [vmem:[%s976_s26 + $0xc0] sm:$0xff]  ;;  %v214_v13 = vld [vmem:[%s976_s26 + $0xc8] sm:$0xff] }
  0x16   : > { %201 = vst [vmem:[%s981_s27 + $0x30] sm:$0xff] %v200_v6  ;;  %v216_v14 = vld [vmem:[%s976_s26 + $0xe0] sm:$0xff]  ;;  %v218_v15 = vld [vmem:[%s976_s26 + $0xe8] sm:$0xff] }
  0x17   : > { %203 = vst [vmem:[%s981_s27 + $0x38] sm:$0xff] %v202_v7  ;;  %v220_v16 = vld [vmem:[%s976_s26 + $0x100] sm:$0xff]  ;;  %v222_v17 = vld [vmem:[%s976_s26 + $0x108] sm:$0xff] }
  0x18   : > { %205 = vst [vmem:[%s981_s27 + $0x40] sm:$0xff] %v204_v8  ;;  %v224_v18 = vld [vmem:[%s976_s26 + $0x120] sm:$0xff]  ;;  %v226_v19 = vld [vmem:[%s976_s26 + $0x128] sm:$0xff] }
  0x19   : > { %207 = vst [vmem:[%s981_s27 + $0x48] sm:$0xff] %v206_v9  ;;  %v228_v20 = vld [vmem:[%s976_s26 + $0x140] sm:$0xff]  ;;  %v230_v21 = vld [vmem:[%s976_s26 + $0x148] sm:$0xff] }
  0x1a   : > { %209 = vst [vmem:[%s981_s27 + $0x50] sm:$0xff] %v208_v10  ;;  %v232_v22 = vld [vmem:[%s976_s26 + $0x160] sm:$0xff]  ;;  %v234_v23 = vld [vmem:[%s976_s26 + $0x168] sm:$0xff] }
  0x1b   : > { %211 = vst [vmem:[%s981_s27 + $0x58] sm:$0xff] %v210_v11  ;;  %v236_v24 = vld [vmem:[%s976_s26 + $0x180] sm:$0xff]  ;;  %v238_v25 = vld [vmem:[%s976_s26 + $0x188] sm:$0xff] }
  0x1c   : > { %213 = vst [vmem:[%s981_s27 + $0x60] sm:$0xff] %v212_v12  ;;  %v240_v26 = vld [vmem:[%s976_s26 + $0x1a0] sm:$0xff]  ;;  %v242_v27 = vld [vmem:[%s976_s26 + $0x1a8] sm:$0xff] }
  0x1d   : > { %215 = vst [vmem:[%s981_s27 + $0x68] sm:$0xff] %v214_v13  ;;  %v244_v28 = vld [vmem:[%s976_s26 + $0x1c0] sm:$0xff]  ;;  %v246_v29 = vld [vmem:[%s976_s26 + $0x1c8] sm:$0xff] }
  0x1e   : > { %217 = vst [vmem:[%s981_s27 + $0x70] sm:$0xff] %v216_v14  ;;  %v248_v30 = vld [vmem:[%s976_s26 + $0x1e0] sm:$0xff]  ;;  %v250_v31 = vld [vmem:[%s976_s26 + $0x1e8] sm:$0xff] }
  0x1f   : > { %219 = vst [vmem:[%s981_s27 + $0x78] sm:$0xff] %v218_v15 }
  0x20   : > { %221 = vst [vmem:[%s981_s27 + $0x80] sm:$0xff] %v220_v16 }
  0x21   : > { %223 = vst [vmem:[%s981_s27 + $0x88] sm:$0xff] %v222_v17 }
  0x22   : > { %225 = vst [vmem:[%s981_s27 + $0x90] sm:$0xff] %v224_v18 }
  0x23   : > { %227 = vst [vmem:[%s981_s27 + $0x98] sm:$0xff] %v226_v19 }
  0x24   : > { %229 = vst [vmem:[%s981_s27 + $0xa0] sm:$0xff] %v228_v20 }
  0x25   : > { %231 = vst [vmem:[%s981_s27 + $0xa8] sm:$0xff] %v230_v21 }
  0x26   : > { %233 = vst [vmem:[%s981_s27 + $0xb0] sm:$0xff] %v232_v22 }
  0x27   : > { %235 = vst [vmem:[%s981_s27 + $0xb8] sm:$0xff] %v234_v23 }
  0x28   : > { %237 = vst [vmem:[%s981_s27 + $0xc0] sm:$0xff] %v236_v24 }
  0x29   : > { %239 = vst [vmem:[%s981_s27 + $0xc8] sm:$0xff] %v238_v25 }
  0x2a   : > { %241 = vst [vmem:[%s981_s27 + $0xd0] sm:$0xff] %v240_v26 }
  0x2b   : > { %243 = vst [vmem:[%s981_s27 + $0xd8] sm:$0xff] %v242_v27 }
  0x2c   : > { %245 = vst [vmem:[%s981_s27 + $0xe0] sm:$0xff] %v244_v28 }
  0x2d   : > { %247 = vst [vmem:[%s981_s27 + $0xe8] sm:$0xff] %v246_v29 }
  0x2e   : > { %249 = vst [vmem:[%s981_s27 + $0xf0] sm:$0xff] %v248_v30 }
  0x2f   : > { %251 = vst [vmem:[%s981_s27 + $0xf8] sm:$0xff] %v250_v31 }
  0x30 PF: > { %p787_p6 = scmp.ge.s32.totalorder %s910_s16, 1  ;;  %p268_p7 = scmp.lt.s32.totalorder %s910_s16, 3 }
  0x32   : > { %p269_p8 = pnand %p787_p6, %p268_p7 }
  0x33   : > { %s275_s28 = sand.u32 (!%p269_p8), 1, %s894_s12   ;;  %s789_s29 = sshll.u32 (!%p269_p8), %s902_s14, 5 }
  0x34   : > { %272 = sbr.rel (%p269_p8) target bundleno = 326 (0x146), region = 51  ;;  %s788_s30 = sshll.u32 (!%p269_p8), %s275_s28, 8 }
  0x35   : > { %p315_p9 = scmp.lt.s32.totalorder (!%p269_p8), %s789_s29, 63  ;;  %s1053_s8 = scalar_lea.vmem (!%p269_p8), [#allocation3], %s788_s30 }
  0x36   : > { %p791_p10 = scmp.ne.s32.totalorder (!%p269_p8), %s902_s14, 0 }
  0x39   : > { %s1198_s29 = smov (!%p315_p9, %s789_s29), 63  ;;  %338 = sbr.rel (%p791_p10) target bundleno = 79 (0x4f), region = 59 }
  0x3a   : > { %s790_s4 = sshll.u32 %s1198_s29, 3 }
  0x3b   : > { %s1051_s7 = scalar_lea.vmem %s1188_s1, %s790_s4 }
  0x3e   : > { %v912_v32 = vmov 0.0  }
  0x3f   : > { %339 = vst [vmem:[#allocation2 + $0x30] sm:$0xff] %v912_v32 }
  0x40   : > { %340 = vst [vmem:[#allocation2] sm:$0xff] %v912_v32 }
  0x41   : > { %341 = vst [vmem:[#allocation2 + $0x58] sm:$0xff] %v912_v32 }
  0x42   : > { %342 = vst [vmem:[#allocation2 + $0x18] sm:$0xff] %v912_v32 }
  0x43   : > { %343 = vst [vmem:[#allocation2 + $0x50] sm:$0xff] %v912_v32 }
  0x44   : > { %344 = vst [vmem:[#allocation2 + $0x68] sm:$0xff] %v912_v32 }
  0x45   : > { %345 = vst [vmem:[#allocation2 + $0x8] sm:$0xff] %v912_v32 }
  0x46   : > { %346 = vst [vmem:[#allocation2 + $0x48] sm:$0xff] %v912_v32 }
  0x47   : > { %347 = vst [vmem:[#allocation2 + $0x40] sm:$0xff] %v912_v32 }
  0x48   : > { %348 = vst [vmem:[#allocation2 + $0x20] sm:$0xff] %v912_v32 }
  0x49   : > { %349 = vst [vmem:[#allocation2 + $0x10] sm:$0xff] %v912_v32 }
  0x4a   : > { %350 = vst [vmem:[#allocation2 + $0x38] sm:$0xff] %v912_v32 }
  0x4b   : > { %351 = vst [vmem:[#allocation2 + $0x60] sm:$0xff] %v912_v32 }
  0x4c   : > { %352 = vst [vmem:[#allocation2 + $0x70] sm:$0xff] %v912_v32 }
  0x4d   : > { %353 = vst [vmem:[#allocation2 + $0x78] sm:$0xff] %v912_v32 }
  0x4e   : > { %354 = vst [vmem:[#allocation2 + $0x28] sm:$0xff] %v912_v32 }
  0x4f PF: > { %v418_v33 = vld [vmem:[%s1051_s7 + $0x78] sm:$0xff]  ;;  %v417_v35 = vld [vmem:[%s1051_s7 + $0x70] sm:$0xff]  ;;  %v416_v37 = vld [vmem:[%s1051_s7 + $0x68] sm:$0xff]  ;;  %p792_p11 = scmp.ne.s32.totalorder %s902_s14, 1 }
  0x50   : > { %v434_v34 = vld [vmem:[%s1051_s7 + $0xf8] sm:$0xff]  ;;  %798 = vmatpush.msra.mxu2 %v418_v33  ;;  %v433_v36 = vld [vmem:[%s1051_s7 + $0xf0] sm:$0xff]  ;;  %v432_v38 = vld [vmem:[%s1051_s7 + $0xe8] sm:$0xff]  ;;  %435 = vmatpush.msra.mxu0 %v418_v33 }
  0x51   : > { %814 = vmatpush.msra.mxu3 %v434_v34  ;;  %500 = vmatpush.msra.mxu1 %v434_v34  ;;  %v415_v39 = vld [vmem:[%s1051_s7 + $0x60] sm:$0xff]  ;;  %v414_v41 = vld [vmem:[%s1051_s7 + $0x58] sm:$0xff]  ;;  %v413_v43 = vld [vmem:[%s1051_s7 + $0x50] sm:$0xff] }
  0x52   : > { %799 = vmatpush.msra.mxu2 %v417_v35  ;;  %v431_v40 = vld [vmem:[%s1051_s7 + $0xe0] sm:$0xff]  ;;  %436 = vmatpush.msra.mxu0 %v417_v35  ;;  %v430_v42 = vld [vmem:[%s1051_s7 + $0xd8] sm:$0xff]  ;;  %v429_v44 = vld [vmem:[%s1051_s7 + $0xd0] sm:$0xff] }
  0x53   : > { %815 = vmatpush.msra.mxu3 %v433_v36  ;;  %501 = vmatpush.msra.mxu1 %v433_v36  ;;  %v412_v45 = vld [vmem:[%s1051_s7 + $0x48] sm:$0xff]  ;;  %v411_v47 = vld [vmem:[%s1051_s7 + $0x40] sm:$0xff]  ;;  %v410_v49 = vld [vmem:[%s1051_s7 + $0x38] sm:$0xff] }
  0x54   : > { %800 = vmatpush.msra.mxu2 %v416_v37  ;;  %437 = vmatpush.msra.mxu0 %v416_v37  ;;  %v428_v46 = vld [vmem:[%s1051_s7 + $0xc8] sm:$0xff]  ;;  %v427_v48 = vld [vmem:[%s1051_s7 + $0xc0] sm:$0xff]  ;;  %v426_v50 = vld [vmem:[%s1051_s7 + $0xb8] sm:$0xff] }
  0x55   : > { %816 = vmatpush.msra.mxu3 %v432_v38  ;;  %502 = vmatpush.msra.mxu1 %v432_v38  ;;  %v409_v51 = vld [vmem:[%s1051_s7 + $0x30] sm:$0xff]  ;;  %v408_v53 = vld [vmem:[%s1051_s7 + $0x28] sm:$0xff]  ;;  %v407_v55 = vld [vmem:[%s1051_s7 + $0x20] sm:$0xff] }
  0x56   : > { %801 = vmatpush.msra.mxu2 %v415_v39  ;;  %438 = vmatpush.msra.mxu0 %v415_v39  ;;  %v425_v52 = vld [vmem:[%s1051_s7 + $0xb0] sm:$0xff]  ;;  %v424_v54 = vld [vmem:[%s1051_s7 + $0xa8] sm:$0xff]  ;;  %v423_v56 = vld [vmem:[%s1051_s7 + $0xa0] sm:$0xff] }
  0x57   : > { %817 = vmatpush.msra.mxu3 %v431_v40  ;;  %503 = vmatpush.msra.mxu1 %v431_v40  ;;  %v406_v57 = vld [vmem:[%s1051_s7 + $0x18] sm:$0xff]  ;;  %v405_v59 = vld [vmem:[%s1051_s7 + $0x10] sm:$0xff]  ;;  %v404_v61 = vld [vmem:[%s1051_s7 + $0x8] sm:$0xff] }
  0x58   : > { %802 = vmatpush.msra.mxu2 %v414_v41  ;;  %439 = vmatpush.msra.mxu0 %v414_v41  ;;  %v422_v58 = vld [vmem:[%s1051_s7 + $0x98] sm:$0xff]  ;;  %v421_v60 = vld [vmem:[%s1051_s7 + $0x90] sm:$0xff]  ;;  %v420_v62 = vld [vmem:[%s1051_s7 + $0x88] sm:$0xff] }
  0x59   : > { %818 = vmatpush.msra.mxu3 %v430_v42  ;;  %504 = vmatpush.msra.mxu1 %v430_v42  ;;  %v403_v63 = vld [vmem:[%s1051_s7] sm:$0xff]  ;;  %v372_v2 = vld [vmem:[%s1053_s8 + $0x88] sm:$0xff]  ;;  %v373_v5 = vld [vmem:[%s1053_s8 + $0x90] sm:$0xff] }
  0x5a   : > { %803 = vmatpush.msra.mxu2 %v413_v43  ;;  %440 = vmatpush.msra.mxu0 %v413_v43  ;;  %v419_v0 = vld [vmem:[%s1051_s7 + $0x80] sm:$0xff]  ;;  %v356_v4 = vld [vmem:[%s1053_s8 + $0x8] sm:$0xff]  ;;  %v374_v6 = vld [vmem:[%s1053_s8 + $0x98] sm:$0xff] }
  0x5b   : > { %819 = vmatpush.msra.mxu3 %v429_v44  ;;  %505 = vmatpush.msra.mxu1 %v429_v44  ;;  %v371_v1 = vld [vmem:[%s1053_s8 + $0x80] sm:$0xff]  ;;  %v357_v7 = vld [vmem:[%s1053_s8 + $0x10] sm:$0xff]  ;;  %v358_v8 = vld [vmem:[%s1053_s8 + $0x18] sm:$0xff] }
  0x5c   : > { %804 = vmatpush.msra.mxu2 %v412_v45  ;;  %441 = vmatpush.msra.mxu0 %v412_v45  ;;  %v355_v3 = vld [vmem:[%s1053_s8] sm:$0xff]  ;;  %v376_v10 = vld [vmem:[%s1053_s8 + $0xa8] sm:$0xff]  ;;  %v377_v13 = vld [vmem:[%s1053_s8 + $0xb0] sm:$0xff] }
  0x5d   : > { %820 = vmatpush.msra.mxu3 %v428_v46  ;;  %506 = vmatpush.msra.mxu1 %v428_v46  ;;  %v375_v9 = vld [vmem:[%s1053_s8 + $0xa0] sm:$0xff]  ;;  %v360_v12 = vld [vmem:[%s1053_s8 + $0x28] sm:$0xff]  ;;  %v378_v14 = vld [vmem:[%s1053_s8 + $0xb8] sm:$0xff] }
  0x5e   : > { %805 = vmatpush.msra.mxu2 %v411_v47  ;;  %442 = vmatpush.msra.mxu0 %v411_v47  ;;  %v359_v11 = vld [vmem:[%s1053_s8 + $0x20] sm:$0xff]  ;;  %v361_v15 = vld [vmem:[%s1053_s8 + $0x30] sm:$0xff]  ;;  %v362_v16 = vld [vmem:[%s1053_s8 + $0x38] sm:$0xff] }
  0x5f   : > { %821 = vmatpush.msra.mxu3 %v427_v48  ;;  %507 = vmatpush.msra.mxu1 %v427_v48  ;;  %v379_v17 = vld [vmem:[%s1053_s8 + $0xc0] sm:$0xff]  ;;  %v380_v18 = vld [vmem:[%s1053_s8 + $0xc8] sm:$0xff]  ;;  %v381_v21 = vld [vmem:[%s1053_s8 + $0xd0] sm:$0xff] }
  0x60   : > { %806 = vmatpush.msra.mxu2 %v410_v49  ;;  %443 = vmatpush.msra.mxu0 %v410_v49  ;;  %v363_v19 = vld [vmem:[%s1053_s8 + $0x40] sm:$0xff]  ;;  %v364_v20 = vld [vmem:[%s1053_s8 + $0x48] sm:$0xff]  ;;  %v382_v22 = vld [vmem:[%s1053_s8 + $0xd8] sm:$0xff] }
  0x61   : > { %822 = vmatpush.msra.mxu3 %v426_v50  ;;  %508 = vmatpush.msra.mxu1 %v426_v50  ;;  %v365_v23 = vld [vmem:[%s1053_s8 + $0x50] sm:$0xff]  ;;  %v366_v24 = vld [vmem:[%s1053_s8 + $0x58] sm:$0xff]  ;;  %v383_v25 = vld [vmem:[%s1053_s8 + $0xe0] sm:$0xff] }
  0x62   : > { %807 = vmatpush.msra.mxu2 %v409_v51  ;;  %444 = vmatpush.msra.mxu0 %v409_v51  ;;  %v384_v26 = vld [vmem:[%s1053_s8 + $0xe8] sm:$0xff]  ;;  %v367_v27 = vld [vmem:[%s1053_s8 + $0x60] sm:$0xff]  ;;  %v385_v29 = vld [vmem:[%s1053_s8 + $0xf0] sm:$0xff] }
  0x63   : > { %823 = vmatpush.msra.mxu3 %v425_v52  ;;  %509 = vmatpush.msra.mxu1 %v425_v52  ;;  %v368_v28 = vld [vmem:[%s1053_s8 + $0x68] sm:$0xff]  ;;  %v386_v30 = vld [vmem:[%s1053_s8 + $0xf8] sm:$0xff]  ;;  %v369_v31 = vld [vmem:[%s1053_s8 + $0x70] sm:$0xff] }
  0x64   : > { %808 = vmatpush.msra.mxu2 %v408_v53  ;;  %445 = vmatpush.msra.mxu0 %v408_v53  ;;  %v370_v32 = vld [vmem:[%s1053_s8 + $0x78] sm:$0xff]  ;;  %v387_v34 = vld [vmem:[#allocation2 + $0x30] sm:$0xff]  ;;  %v395_v39 = vld [vmem:[#allocation2 + $0x40] sm:$0xff] }
  0x65   : > { %824 = vmatpush.msra.mxu3 %v424_v54  ;;  %510 = vmatpush.msra.mxu1 %v424_v54  ;;  %v388_v44 = vld [vmem:[#allocation2] sm:$0xff]  ;;  %v389_v54 = vld [vmem:[#allocation2 + $0x58] sm:$0xff] }
  0x66   : > { %809 = vmatpush.msra.mxu2 %v407_v55  ;;  %446 = vmatpush.msra.mxu0 %v407_v55  ;;  %v396_v49 = vld [vmem:[#allocation2 + $0x20] sm:$0xff] }
  0x67   : > { %825 = vmatpush.msra.mxu3 %v423_v56  ;;  %511 = vmatpush.msra.mxu1 %v423_v56 }
  0x68   : > { %810 = vmatpush.msra.mxu2 %v406_v57  ;;  %447 = vmatpush.msra.mxu0 %v406_v57 }
  0x69   : > { %826 = vmatpush.msra.mxu3 %v422_v58  ;;  %512 = vmatpush.msra.mxu1 %v422_v58 }
  0x6a   : > { %811 = vmatpush.msra.mxu2 %v405_v59  ;;  %448 = vmatpush.msra.mxu0 %v405_v59  ;;  %v397_v59 = vld [vmem:[#allocation2 + $0x10] sm:$0xff] }
  0x6b   : > { %827 = vmatpush.msra.mxu3 %v421_v60  ;;  %513 = vmatpush.msra.mxu1 %v421_v60 }
  0x6c   : > { %812 = vmatpush.msra.mxu2 %v404_v61  ;;  %449 = vmatpush.msra.mxu0 %v404_v61 }
  0x6d   : > { %828 = vmatpush.msra.mxu3 %v420_v62  ;;  %514 = vmatpush.msra.mxu1 %v420_v62 }
  0x6e   : > { %813 = vmatpush.msra.mxu2 %v403_v63  ;;  %450 = vmatpush.msra.mxu0 %v403_v63 }
  0x6f   : > { %829 = vmatpush.msra.mxu3 %v419_v0  ;;  %475 = vmatmul.f32.vlgmr.msra.gmra.mxu2 %v371_v1 }
  0x70   : > { %540 = vmatmul.f32.vlgmr.msra.gmra.mxu3 %v372_v2  ;;  %515 = vmatpush.msra.mxu1 %v419_v0  ;;  %v390_v0 = vld [vmem:[#allocation2 + $0x18] sm:$0xff] }
  0x71   : > { %451 = vmatmul.f32.vlgmr.msra.gmra.mxu0 %v355_v3  ;;  %516 = vmatmul.f32.vlgmr.msra.gmra.mxu1 %v356_v4 }
  0x77   : > { %478 = vmatmul.f32.gmra.mxu2 %v373_v5  ;;  %v398_v5 = vld [vmem:[#allocation2 + $0x38] sm:$0xff] }
  0x78   : > { %543 = vmatmul.f32.gmra.mxu3 %v374_v6 }
  0x79   : > { %454 = vmatmul.f32.gmra.mxu0 %v357_v7  ;;  %519 = vmatmul.f32.gmra.mxu1 %v358_v8 }
  0x7f   : > { %481 = vmatmul.f32.gmra.mxu2 %v375_v9 }
  0x80   : > { %546 = vmatmul.f32.gmra.mxu3 %v376_v10  ;;  %v391_v10 = vld [vmem:[#allocation2 + $0x50] sm:$0xff] }
  0x81   : > { %457 = vmatmul.f32.gmra.mxu0 %v359_v11  ;;  %522 = vmatmul.f32.gmra.mxu1 %v360_v12 }
  0x87   : > { %484 = vmatmul.f32.gmra.mxu2 %v377_v13 }
  0x88   : > { %549 = vmatmul.f32.gmra.mxu3 %v378_v14 }
  0x89   : > { %460 = vmatmul.f32.gmra.mxu0 %v361_v15  ;;  %525 = vmatmul.f32.gmra.mxu1 %v362_v16  ;;  %v399_v15 = vld [vmem:[#allocation2 + $0x60] sm:$0xff] }
  0x8f   : > { %487 = vmatmul.f32.gmra.mxu2 %v379_v17 }
  0x90   : > { %552 = vmatmul.f32.gmra.mxu3 %v380_v18 }
  0x91   : > { %463 = vmatmul.f32.gmra.mxu0 %v363_v19  ;;  %528 = vmatmul.f32.gmra.mxu1 %v364_v20  ;;  %v392_v20 = vld [vmem:[#allocation2 + $0x68] sm:$0xff] }
  0x97   : > { %490 = vmatmul.f32.gmra.mxu2 %v381_v21 }
  0x98   : > { %555 = vmatmul.f32.gmra.mxu3 %v382_v22 }
  0x99   : > { %466 = vmatmul.f32.gmra.mxu0 %v365_v23  ;;  %531 = vmatmul.f32.gmra.mxu1 %v366_v24 }
  0x9f   : > { %493 = vmatmul.f32.gmra.mxu2 %v383_v25  ;;  %v400_v25 = vld [vmem:[#allocation2 + $0x70] sm:$0xff] }
  0xa0   : > { %558 = vmatmul.f32.gmra.mxu3 %v384_v26 }
  0xa1   : > { %469 = vmatmul.f32.gmra.mxu0 %v367_v27  ;;  %534 = vmatmul.f32.gmra.mxu1 %v368_v28 }
  0xa7   : > { %496 = vmatmul.f32.gmra.mxu2 %v385_v29 }
  0xa8   : > { %561 = vmatmul.f32.gmra.mxu3 %v386_v30  ;;  %v393_v30 = vld [vmem:[#allocation2 + $0x8] sm:$0xff] }
  0xa9   : > { %472 = vmatmul.f32.gmra.mxu0 %v369_v31  ;;  %537 = vmatmul.f32.gmra.mxu1 %v370_v32 }
  0xee   : > { %v452_v33 = vpop.f32.mrf.mxu0  ;;  %v517_v35 = vpop.f32.mrf.mxu1 }
  0xef   : > { %v518_v36 = vadd.f32 %v517_v35, %v452_v33  ;;  %v401_v35 = vld [vmem:[#allocation2 + $0x78] sm:$0xff] }
  0xf1   : > { %v565_v37 = vadd.f32 %v518_v36, %v387_v34 }
  0xf2   : > { %v476_v38 = vpop.f32.mrf.mxu2 }
  0xf3   : > { %v541_v40 = vpop.f32.mrf.mxu3  ;;  %581 = vst [vmem:[#allocation2 + $0x30] sm:$0xff] %v565_v37 }
  0xf4   : > { %v542_v41 = vadd.f32 %v541_v40, %v476_v38  ;;  %v394_v40 = vld [vmem:[#allocation2 + $0x48] sm:$0xff] }
  0xf6   : > { %v573_v42 = vadd.f32 %v542_v41, %v395_v39  ;;  %v455_v43 = vpop.f32.mrf.mxu0  ;;  %v520_v45 = vpop.f32.mrf.mxu1 }
  0xf7   : > { %v521_v46 = vadd.f32 %v520_v45, %v455_v43  ;;  %v402_v45 = vld [vmem:[#allocation2 + $0x28] sm:$0xff] }
  0xf8   : > { %589 = vst [vmem:[#allocation2 + $0x40] sm:$0xff] %v573_v42 }
  0xf9   : > { %v566_v47 = vadd.f32 %v521_v46, %v388_v44 }
  0xfa   : > { %v479_v48 = vpop.f32.mrf.mxu2 }
  0xfb   : > { %v544_v50 = vpop.f32.mrf.mxu3  ;;  %582 = vst [vmem:[#allocation2] sm:$0xff] %v566_v47 }
  0xfc   : > { %v545_v51 = vadd.f32 %v544_v50, %v479_v48 }
  0xfe   : > { %v574_v52 = vadd.f32 %v545_v51, %v396_v49  ;;  %v458_v53 = vpop.f32.mrf.mxu0  ;;  %v523_v55 = vpop.f32.mrf.mxu1 }
  0xff   : > { %v524_v56 = vadd.f32 %v523_v55, %v458_v53 }
 0x100   : > { %590 = vst [vmem:[#allocation2 + $0x20] sm:$0xff] %v574_v52 }
 0x101   : > { %v567_v57 = vadd.f32 %v524_v56, %v389_v54 }
 0x102   : > { %v482_v58 = vpop.f32.mrf.mxu2 }
 0x103   : > { %v547_v60 = vpop.f32.mrf.mxu3  ;;  %583 = vst [vmem:[#allocation2 + $0x58] sm:$0xff] %v567_v57 }
 0x104   : > { %v548_v61 = vadd.f32 %v547_v60, %v482_v58 }
 0x106   : > { %v575_v62 = vadd.f32 %v548_v61, %v397_v59  ;;  %v461_v63 = vpop.f32.mrf.mxu0  ;;  %v526_v1 = vpop.f32.mrf.mxu1 }
 0x107   : > { %v527_v2 = vadd.f32 %v526_v1, %v461_v63 }
 0x108   : > { %591 = vst [vmem:[#allocation2 + $0x10] sm:$0xff] %v575_v62 }
 0x109   : > { %v568_v3 = vadd.f32 %v527_v2, %v390_v0 }
 0x10a   : > { %v485_v4 = vpop.f32.mrf.mxu2 }
 0x10b   : > { %v550_v6 = vpop.f32.mrf.mxu3  ;;  %584 = vst [vmem:[#allocation2 + $0x18] sm:$0xff] %v568_v3 }
 0x10c   : > { %v551_v7 = vadd.f32 %v550_v6, %v485_v4 }
 0x10e   : > { %v576_v8 = vadd.f32 %v551_v7, %v398_v5  ;;  %v464_v9 = vpop.f32.mrf.mxu0  ;;  %v529_v11 = vpop.f32.mrf.mxu1 }
 0x10f   : > { %v530_v12 = vadd.f32 %v529_v11, %v464_v9 }
 0x110   : > { %592 = vst [vmem:[#allocation2 + $0x38] sm:$0xff] %v576_v8 }
 0x111   : > { %v569_v13 = vadd.f32 %v530_v12, %v391_v10 }
 0x112   : > { %v488_v14 = vpop.f32.mrf.mxu2 }
 0x113   : > { %v553_v16 = vpop.f32.mrf.mxu3  ;;  %585 = vst [vmem:[#allocation2 + $0x50] sm:$0xff] %v569_v13 }
 0x114   : > { %v554_v17 = vadd.f32 %v553_v16, %v488_v14 }
 0x116   : > { %v577_v18 = vadd.f32 %v554_v17, %v399_v15  ;;  %v467_v19 = vpop.f32.mrf.mxu0  ;;  %v532_v21 = vpop.f32.mrf.mxu1 }
 0x117   : > { %v533_v22 = vadd.f32 %v532_v21, %v467_v19 }
 0x118   : > { %593 = vst [vmem:[#allocation2 + $0x60] sm:$0xff] %v577_v18 }
 0x119   : > { %v570_v23 = vadd.f32 %v533_v22, %v392_v20 }
 0x11a   : > { %v491_v24 = vpop.f32.mrf.mxu2 }
 0x11b   : > { %v556_v26 = vpop.f32.mrf.mxu3  ;;  %586 = vst [vmem:[#allocation2 + $0x68] sm:$0xff] %v570_v23 }
 0x11c   : > { %v557_v27 = vadd.f32 %v556_v26, %v491_v24 }
 0x11e   : > { %v578_v28 = vadd.f32 %v557_v27, %v400_v25  ;;  %v470_v29 = vpop.f32.mrf.mxu0  ;;  %v535_v31 = vpop.f32.mrf.mxu1 }
 0x11f   : > { %v536_v32 = vadd.f32 %v535_v31, %v470_v29 }
 0x120   : > { %594 = vst [vmem:[#allocation2 + $0x70] sm:$0xff] %v578_v28 }
 0x121   : > { %v571_v33 = vadd.f32 %v536_v32, %v393_v30 }
 0x122   : > { %v494_v34 = vpop.f32.mrf.mxu2 }
 0x123   : > { %v559_v36 = vpop.f32.mrf.mxu3  ;;  %587 = vst [vmem:[#allocation2 + $0x8] sm:$0xff] %v571_v33 }
 0x124   : > { %v560_v37 = vadd.f32 %v559_v36, %v494_v34 }
 0x126   : > { %v579_v38 = vadd.f32 %v560_v37, %v401_v35  ;;  %v473_v39 = vpop.f32.mrf.mxu0  ;;  %v538_v41 = vpop.f32.mrf.mxu1 }
 0x127   : > { %v539_v42 = vadd.f32 %v538_v41, %v473_v39 }
 0x128   : > { %595 = vst [vmem:[#allocation2 + $0x78] sm:$0xff] %v579_v38 }
 0x129   : > { %v572_v43 = vadd.f32 %v539_v42, %v394_v40 }
 0x12a   : > { %v497_v44 = vpop.f32.mrf.mxu2 }
 0x12b   : > { %v562_v46 = vpop.f32.mrf.mxu3  ;;  %588 = vst [vmem:[#allocation2 + $0x48] sm:$0xff] %v572_v43 }
 0x12c   : > { %v563_v47 = vadd.f32 %v562_v46, %v497_v44  ;;  %600 = sbr.rel (%p792_p11) target bundleno = 326 (0x146), region = 63 }
 0x12e   : > { %v580_v48 = vadd.f32 %v563_v47, %v402_v45 }
 0x130   : > { %596 = vst [vmem:[#allocation2 + $0x28] sm:$0xff] %v580_v48 }
 0x131   : > { %v601_v49 = vld [vmem:[#allocation2 + $0x30] sm:$0xff]  ;;  %v871_v50 = vld [vmem:[%s1189_s2] ss:$0 sm:$0xff]  ;;  %v603_v52 = vld [vmem:[#allocation2 + $0x58] sm:$0xff] }
 0x132   : > { %v602_v51 = vld [vmem:[#allocation2] sm:$0xff]  ;;  %v604_v53 = vld [vmem:[#allocation2 + $0x18] sm:$0xff]  ;;  %v621_v54 = vadd.f32 %v871_v50, %v601_v49  ;;  %v623_v56 = vadd.f32 %v871_v50, %v603_v52  ;;  %v605_v58 = vld [vmem:[#allocation2 + $0x50] sm:$0xff] }
 0x133   : > { %v622_v55 = vadd.f32 %v871_v50, %v602_v51  ;;  %v624_v57 = vadd.f32 %v871_v50, %v604_v53  ;;  %v606_v59 = vld [vmem:[#allocation2 + $0x68] sm:$0xff]  ;;  %v625_v61 = vadd.f32 %v871_v50, %v605_v58  ;;  %v609_v0 = vld [vmem:[#allocation2 + $0x40] sm:$0xff]  ;;  %v611_v8 = vld [vmem:[#allocation2 + $0x10] sm:$0xff] }
 0x134   : > { %v607_v60 = vld [vmem:[#allocation2 + $0x8] sm:$0xff]  ;;  %v626_v62 = vadd.f32 %v871_v50, %v606_v59  ;;  %v637_v1 = vmax.f32 %v621_v54, 0.0  ;;  %v639_v3 = vmax.f32 %v623_v56, 0.0  ;;  %v610_v5 = vld [vmem:[#allocation2 + $0x20] sm:$0xff]  ;;  %v629_v10 = vadd.f32 %v871_v50, %v609_v0  ;;  %v612_v11 = vld [vmem:[#allocation2 + $0x38] sm:$0xff] }
 0x135   : > { %v608_v63 = vld [vmem:[#allocation2 + $0x48] sm:$0xff]  ;;  %v638_v2 = vmax.f32 %v622_v55, 0.0  ;;  %v627_v4 = vadd.f32 %v871_v50, %v607_v60  ;;  %v640_v6 = vmax.f32 %v624_v57, 0.0  ;;  %v641_v9 = vmax.f32 %v625_v61, 0.0  ;;  %v613_v14 = vld [vmem:[#allocation2 + $0x60] sm:$0xff]  ;;  %v614_v17 = vld [vmem:[#allocation2 + $0x70] sm:$0xff] }
 0x136   : > { %v628_v7 = vadd.f32 %v871_v50, %v608_v63  ;;  %653 = vst [vmem:[%s1190_s3] sm:$0xff] %v637_v1  ;;  %v642_v12 = vmax.f32 %v626_v62, 0.0  ;;  %v630_v13 = vadd.f32 %v871_v50, %v610_v5  ;;  %v631_v16 = vadd.f32 %v871_v50, %v611_v8  ;;  %v615_v20 = vld [vmem:[#allocation2 + $0x78] sm:$0xff] }
 0x137   : > { %654 = vst [vmem:[%s1190_s3 + $0x8] sm:$0xff] %v638_v2  ;;  %v643_v15 = vmax.f32 %v627_v4, 0.0  ;;  %v632_v19 = vadd.f32 %v871_v50, %v612_v11  ;;  %v645_v21 = vmax.f32 %v629_v10, 0.0  ;;  %v633_v22 = vadd.f32 %v871_v50, %v613_v14  ;;  %v616_v23 = vld [vmem:[#allocation2 + $0x28] sm:$0xff] }
 0x138   : > { %655 = vst [vmem:[%s1190_s3 + $0x10] sm:$0xff] %v639_v3  ;;  %v644_v18 = vmax.f32 %v628_v7, 0.0  ;;  %v646_v24 = vmax.f32 %v630_v13, 0.0  ;;  %v634_v25 = vadd.f32 %v871_v50, %v614_v17  ;;  %v647_v26 = vmax.f32 %v631_v16, 0.0 }
 0x139   : > { %656 = vst [vmem:[%s1190_s3 + $0x18] sm:$0xff] %v640_v6  ;;  %v635_v27 = vadd.f32 %v871_v50, %v615_v20  ;;  %v648_v28 = vmax.f32 %v632_v19, 0.0  ;;  %v636_v29 = vadd.f32 %v871_v50, %v616_v23  ;;  %v649_v30 = vmax.f32 %v633_v22, 0.0 }
 0x13a   : > { %657 = vst [vmem:[%s1190_s3 + $0x20] sm:$0xff] %v641_v9  ;;  %v650_v31 = vmax.f32 %v634_v25, 0.0 }
 0x13b   : > { %658 = vst [vmem:[%s1190_s3 + $0x28] sm:$0xff] %v642_v12  ;;  %v651_v32 = vmax.f32 %v635_v27, 0.0  ;;  %v652_v33 = vmax.f32 %v636_v29, 0.0 }
 0x13c   : > { %659 = vst [vmem:[%s1190_s3 + $0x30] sm:$0xff] %v643_v15 }
 0x13d   : > { %660 = vst [vmem:[%s1190_s3 + $0x38] sm:$0xff] %v644_v18 }
 0x13e   : > { %661 = vst [vmem:[%s1190_s3 + $0x40] sm:$0xff] %v645_v21 }
 0x13f   : > { %662 = vst [vmem:[%s1190_s3 + $0x48] sm:$0xff] %v646_v24 }
 0x140   : > { %663 = vst [vmem:[%s1190_s3 + $0x50] sm:$0xff] %v647_v26 }
 0x141   : > { %664 = vst [vmem:[%s1190_s3 + $0x58] sm:$0xff] %v648_v28 }
 0x142   : > { %665 = vst [vmem:[%s1190_s3 + $0x60] sm:$0xff] %v649_v30 }
 0x143   : > { %666 = vst [vmem:[%s1190_s3 + $0x68] sm:$0xff] %v650_v31 }
 0x144   : > { %667 = vst [vmem:[%s1190_s3 + $0x70] sm:$0xff] %v651_v32 }
 0x145   : > { %668 = vst [vmem:[%s1190_s3 + $0x78] sm:$0xff] %v652_v33 }
 0x146 PF: > { %s13_s16 = sadd.s32 1, %s910_s16   ;;  %s1191_s12 = smov %s898_s13 }
 0x147   : > { %p10_p12 = scmp.ge.s32.totalorder %s13_s16, 4   ;;  %s1192_s13 = smov %s968_s20 }
 0x148   : > { %s1193_s14 = smov %s906_s15  ;;  %s1194_s15 = smov %s1196_s17 }
 0x149   :  { %12 = sbr.rel (!%p10_p12) target bundleno = 3 (0x3), region = 104 }

// kernel: _lambda_.26
= control target key start
LH: loop header
LB: loop body
LE: loop exit
PB: predicated region body
PF: predicated region fallthrough
CT: control target
= control target key end

     0   :  { %s368_s1 = inlined_call_operand.vmem [shape: f32[128,256], index: 1, kind: input, shape index: {}]   ;;  %s369_s0 = inlined_call_operand.vmem [shape: f32[32,128], index: 0, kind: input, shape index: {}]   ;;  %s370_s2 = inlined_call_operand.vmem [shape: f32[1,256], index: 2, kind: input, shape index: {}]   ;;  %s371_s3 = inlined_call_operand.vmem [shape: f32[32,256], index: 3, kind: output, shape index: {}]  }
   0x1   :  { %v68_v0 = vld [vmem:[%s368_s1 + $0xf0] sm:$0xff]  ;;  %v69_v1 = vld [vmem:[%s368_s1 + $0xf8] sm:$0xff]  ;;  %v66_v2 = vld [vmem:[%s368_s1 + $0xe0] sm:$0xff] }
   0x2   :  { %181 = vmatpush.msra.mxu2 %v68_v0  ;;  %197 = vmatpush.msra.mxu3 %v69_v1  ;;  %v67_v3 = vld [vmem:[%s368_s1 + $0xe8] sm:$0xff]  ;;  %v64_v4 = vld [vmem:[%s368_s1 + $0xd0] sm:$0xff]  ;;  %v65_v5 = vld [vmem:[%s368_s1 + $0xd8] sm:$0xff] }
   0x3   :  { %70 = vmatpush.msra.mxu0 %v68_v0  ;;  %99 = vmatpush.msra.mxu1 %v69_v1  ;;  %v62_v6 = vld [vmem:[%s368_s1 + $0xc0] sm:$0xff]  ;;  %v63_v7 = vld [vmem:[%s368_s1 + $0xc8] sm:$0xff]  ;;  %v60_v8 = vld [vmem:[%s368_s1 + $0xb0] sm:$0xff] }
   0x4   :  { %182 = vmatpush.msra.mxu2 %v66_v2  ;;  %198 = vmatpush.msra.mxu3 %v67_v3  ;;  %v61_v9 = vld [vmem:[%s368_s1 + $0xb8] sm:$0xff]  ;;  %v58_v10 = vld [vmem:[%s368_s1 + $0xa0] sm:$0xff]  ;;  %v59_v11 = vld [vmem:[%s368_s1 + $0xa8] sm:$0xff] }
   0x5   :  { %71 = vmatpush.msra.mxu0 %v66_v2  ;;  %100 = vmatpush.msra.mxu1 %v67_v3  ;;  %v56_v12 = vld [vmem:[%s368_s1 + $0x90] sm:$0xff]  ;;  %v57_v13 = vld [vmem:[%s368_s1 + $0x98] sm:$0xff]  ;;  %v54_v14 = vld [vmem:[%s368_s1 + $0x80] sm:$0xff] }
   0x6   :  { %183 = vmatpush.msra.mxu2 %v64_v4  ;;  %199 = vmatpush.msra.mxu3 %v65_v5  ;;  %v55_v15 = vld [vmem:[%s368_s1 + $0x88] sm:$0xff]  ;;  %v52_v16 = vld [vmem:[%s368_s1 + $0x70] sm:$0xff]  ;;  %v53_v17 = vld [vmem:[%s368_s1 + $0x78] sm:$0xff] }
   0x7   :  { %72 = vmatpush.msra.mxu0 %v64_v4  ;;  %101 = vmatpush.msra.mxu1 %v65_v5  ;;  %v50_v18 = vld [vmem:[%s368_s1 + $0x60] sm:$0xff]  ;;  %v51_v19 = vld [vmem:[%s368_s1 + $0x68] sm:$0xff]  ;;  %v48_v20 = vld [vmem:[%s368_s1 + $0x50] sm:$0xff] }
   0x8   :  { %184 = vmatpush.msra.mxu2 %v62_v6  ;;  %200 = vmatpush.msra.mxu3 %v63_v7  ;;  %v49_v21 = vld [vmem:[%s368_s1 + $0x58] sm:$0xff]  ;;  %v46_v22 = vld [vmem:[%s368_s1 + $0x40] sm:$0xff]  ;;  %v47_v23 = vld [vmem:[%s368_s1 + $0x48] sm:$0xff] }
   0x9   :  { %73 = vmatpush.msra.mxu0 %v62_v6  ;;  %102 = vmatpush.msra.mxu1 %v63_v7  ;;  %v44_v24 = vld [vmem:[%s368_s1 + $0x30] sm:$0xff]  ;;  %v45_v25 = vld [vmem:[%s368_s1 + $0x38] sm:$0xff]  ;;  %v42_v26 = vld [vmem:[%s368_s1 + $0x20] sm:$0xff] }
   0xa   :  { %185 = vmatpush.msra.mxu2 %v60_v8  ;;  %201 = vmatpush.msra.mxu3 %v61_v9  ;;  %v43_v27 = vld [vmem:[%s368_s1 + $0x28] sm:$0xff]  ;;  %v40_v28 = vld [vmem:[%s368_s1 + $0x10] sm:$0xff]  ;;  %v41_v29 = vld [vmem:[%s368_s1 + $0x18] sm:$0xff] }
   0xb   :  { %74 = vmatpush.msra.mxu0 %v60_v8  ;;  %103 = vmatpush.msra.mxu1 %v61_v9  ;;  %v38_v30 = vld [vmem:[%s368_s1] sm:$0xff]  ;;  %v39_v31 = vld [vmem:[%s368_s1 + $0x8] sm:$0xff]  ;;  %v28_v32 = vld [vmem:[%s369_s0 + $0x10] sm:$0xff] }
   0xc   :  { %186 = vmatpush.msra.mxu2 %v58_v10  ;;  %202 = vmatpush.msra.mxu3 %v59_v11  ;;  %v26_v33 = vld [vmem:[%s369_s0] sm:$0xff]  ;;  %v29_v34 = vld [vmem:[%s369_s0 + $0x18] sm:$0xff]  ;;  %v27_v35 = vld [vmem:[%s369_s0 + $0x8] sm:$0xff] }
   0xd   :  { %75 = vmatpush.msra.mxu0 %v58_v10  ;;  %104 = vmatpush.msra.mxu1 %v59_v11  ;;  %v155_v36 = vld [vmem:[%s370_s2] sm:$0x3] }
   0xe   :  { %187 = vmatpush.msra.mxu2 %v56_v12  ;;  %203 = vmatpush.msra.mxu3 %v57_v13  ;;  %v157_v37 = vperm.slane %v155_v36, 0  ;;  %v158_v38 = vperm.slane %v155_v36, 1 }
   0xf   :  { %76 = vmatpush.msra.mxu0 %v56_v12  ;;  %105 = vmatpush.msra.mxu1 %v57_v13 }
  0x10   :  { %188 = vmatpush.msra.mxu2 %v54_v14  ;;  %204 = vmatpush.msra.mxu3 %v55_v15 }
  0x11   :  { %77 = vmatpush.msra.mxu0 %v54_v14  ;;  %106 = vmatpush.msra.mxu1 %v55_v15 }
  0x12   :  { %189 = vmatpush.msra.mxu2 %v52_v16  ;;  %205 = vmatpush.msra.mxu3 %v53_v17 }
  0x13   :  { %78 = vmatpush.msra.mxu0 %v52_v16  ;;  %107 = vmatpush.msra.mxu1 %v53_v17 }
  0x14   :  { %190 = vmatpush.msra.mxu2 %v50_v18  ;;  %206 = vmatpush.msra.mxu3 %v51_v19 }
  0x15   :  { %79 = vmatpush.msra.mxu0 %v50_v18  ;;  %108 = vmatpush.msra.mxu1 %v51_v19 }
  0x16   :  { %191 = vmatpush.msra.mxu2 %v48_v20  ;;  %207 = vmatpush.msra.mxu3 %v49_v21 }
  0x17   :  { %80 = vmatpush.msra.mxu0 %v48_v20  ;;  %109 = vmatpush.msra.mxu1 %v49_v21 }
  0x18   :  { %192 = vmatpush.msra.mxu2 %v46_v22  ;;  %208 = vmatpush.msra.mxu3 %v47_v23 }
  0x19   :  { %81 = vmatpush.msra.mxu0 %v46_v22  ;;  %110 = vmatpush.msra.mxu1 %v47_v23 }
  0x1a   :  { %193 = vmatpush.msra.mxu2 %v44_v24  ;;  %209 = vmatpush.msra.mxu3 %v45_v25 }
  0x1b   :  { %82 = vmatpush.msra.mxu0 %v44_v24  ;;  %111 = vmatpush.msra.mxu1 %v45_v25 }
  0x1c   :  { %194 = vmatpush.msra.mxu2 %v42_v26  ;;  %210 = vmatpush.msra.mxu3 %v43_v27 }
  0x1d   :  { %83 = vmatpush.msra.mxu0 %v42_v26  ;;  %112 = vmatpush.msra.mxu1 %v43_v27 }
  0x1e   :  { %195 = vmatpush.msra.mxu2 %v40_v28  ;;  %211 = vmatpush.msra.mxu3 %v41_v29 }
  0x1f   :  { %84 = vmatpush.msra.mxu0 %v40_v28  ;;  %113 = vmatpush.msra.mxu1 %v41_v29 }
  0x20   :  { %196 = vmatpush.msra.mxu2 %v38_v30  ;;  %212 = vmatpush.msra.mxu3 %v39_v31 }
  0x21   :  { %92 = vmatmul.f32.vlgmr.msra.gmra.mxu2 %v28_v32  ;;  %121 = vmatmul.f32.vlgmr.msra.gmra.mxu3 %v28_v32 }
  0x22   :  { %85 = vmatpush.msra.mxu0 %v38_v30  ;;  %114 = vmatpush.msra.mxu1 %v39_v31 }
  0x23   :  { %86 = vmatmul.f32.vlgmr.msra.gmra.mxu0 %v26_v33  ;;  %115 = vmatmul.f32.vlgmr.msra.gmra.mxu1 %v26_v33 }
  0x29   :  { %95 = vmatmul.f32.gmra.mxu2 %v29_v34  ;;  %124 = vmatmul.f32.gmra.mxu3 %v29_v34 }
  0x2b   :  { %89 = vmatmul.f32.gmra.mxu0 %v27_v35  ;;  %118 = vmatmul.f32.gmra.mxu1 %v27_v35 }
  0xa0   :  { %v87_v39 = vpop.f32.mrf.mxu0  ;;  %v116_v40 = vpop.f32.mrf.mxu1 }
  0xa1   :  { %v161_v41 = vadd.f32 %v157_v37, %v87_v39  ;;  %v162_v42 = vadd.f32 %v158_v38, %v116_v40 }
  0xa3   :  { %169 = vst [vmem:[%s371_s3] sm:$0xff] %v161_v41 }
  0xa4   :  { %v93_v43 = vpop.f32.mrf.mxu2  ;;  %170 = vst [vmem:[%s371_s3 + $0x8] sm:$0xff] %v162_v42  ;;  %v122_v44 = vpop.f32.mrf.mxu3 }
  0xa5   :  { %v165_v45 = vadd.f32 %v157_v37, %v93_v43  ;;  %v166_v46 = vadd.f32 %v158_v38, %v122_v44 }
  0xa7   :  { %173 = vst [vmem:[%s371_s3 + $0x20] sm:$0xff] %v165_v45 }
  0xa8   :  { %174 = vst [vmem:[%s371_s3 + $0x28] sm:$0xff] %v166_v46  ;;  %v90_v47 = vpop.f32.mrf.mxu0  ;;  %v119_v48 = vpop.f32.mrf.mxu1 }
  0xa9   :  { %v163_v49 = vadd.f32 %v157_v37, %v90_v47  ;;  %v164_v50 = vadd.f32 %v158_v38, %v119_v48 }
  0xab   :  { %171 = vst [vmem:[%s371_s3 + $0x10] sm:$0xff] %v163_v49 }
  0xac   :  { %v96_v51 = vpop.f32.mrf.mxu2  ;;  %172 = vst [vmem:[%s371_s3 + $0x18] sm:$0xff] %v164_v50  ;;  %v125_v52 = vpop.f32.mrf.mxu3 }
  0xad   :  { %v167_v53 = vadd.f32 %v157_v37, %v96_v51  ;;  %v168_v54 = vadd.f32 %v158_v38, %v125_v52 }
  0xaf   :  { %175 = vst [vmem:[%s371_s3 + $0x30] sm:$0xff] %v167_v53 }
  0xb0   :  { %176 = vst [vmem:[%s371_s3 + $0x38] sm:$0xff] %v168_v54 }

// kernel: _lambda_.27
= control target key start
LH: loop header
LB: loop body
LE: loop exit
PB: predicated region body
PF: predicated region fallthrough
CT: control target
= control target key end

     0   :  { %s1086_s12 = smov 0   ;;  %s1088_s13 = smov 0   ;;  %s1359_s0 = inlined_call_operand.vmem [shape: f32[512,256], index: 0, kind: input, shape index: {}]   ;;  %s1360_s1 = inlined_call_operand.vmem [shape: f32[256,128], index: 1, kind: input, shape index: {}]   ;;  %s1361_s2 = inlined_call_operand.vmem [shape: f32[1,128], index: 2, kind: input, shape index: {}]   ;;  %s1362_s3 = inlined_call_operand.vmem [shape: f32[512,128], index: 3, kind: output, shape index: {}]  }
   0x1   :  { %s1090_s14 = smov 0  }
   0x2 LB: > { %s32_s15 = sadd.s32 1, %s1060_s13  ;;  %p976_p0 = scmp.ge.s32.totalorder %s1064_s14, 1  ;;  %s1064_s14 = sphi %s1090_s14, %s13_s14   ;;  %s1060_s13 = sphi %s1088_s13, %s1364_s13   ;;  %s1056_s12 = sphi %s1086_s12, %s1363_s12  }
   0x3   : > { %p34_p1 = scmp.ge.s32.totalorder %s32_s15, 2  ;;  %p191_p2 = scmp.lt.s32.totalorder %s1064_s14, 3 }
   0x5   : > { %s1366_s15 = smov (%p34_p1, %s32_s15), 0  ;;  %p192_p3 = pnand %p976_p0, %p191_p2 }
   0x6   : > { %s977_s25 = sshll.u32 (!%p192_p3), %s1056_s12, 5 }
   0x7   : > { %195 = sbr.rel (%p192_p3) target bundleno = 304 (0x130), region = 32  ;;  %p236_p4 = scmp.lt.s32.totalorder (!%p192_p3), %s977_s25, 63 }
   0xc   : > { %v414_v0 = vld [vmem:[%s1360_s1 + $0x78] sm:$0xff]  ;;  %v413_v2 = vld [vmem:[%s1360_s1 + $0x70] sm:$0xff]  ;;  %v412_v4 = vld [vmem:[%s1360_s1 + $0x68] sm:$0xff]  ;;  %s1368_s25 = smov (!%p236_p4, %s977_s25), 63 }
   0xd   : > { %v430_v1 = vld [vmem:[%s1360_s1 + $0xf8] sm:$0xff]  ;;  %985 = vmatpush.msra.mxu2 %v414_v0  ;;  %v429_v3 = vld [vmem:[%s1360_s1 + $0xf0] sm:$0xff]  ;;  %v428_v5 = vld [vmem:[%s1360_s1 + $0xe8] sm:$0xff]  ;;  %431 = vmatpush.msra.mxu0 %v414_v0  ;;  %s984_s22 = sshll.u32 %s1368_s25, 4  ;;  %s981_s17 = sshll.u32 %s1368_s25, 3 }
   0xe   : > { %1001 = vmatpush.msra.mxu3 %v430_v1  ;;  %544 = vmatpush.msra.mxu1 %v430_v1  ;;  %v411_v6 = vld [vmem:[%s1360_s1 + $0x60] sm:$0xff]  ;;  %v410_v8 = vld [vmem:[%s1360_s1 + $0x58] sm:$0xff]  ;;  %v409_v10 = vld [vmem:[%s1360_s1 + $0x50] sm:$0xff]  ;;  %s1203_s6 = scalar_lea.vmem %s1359_s0, %s984_s22  ;;  %s1285_s20 = scalar_lea.vmem %s1362_s3, %s981_s17 }
   0xf   : > { %986 = vmatpush.msra.mxu2 %v413_v2  ;;  %v427_v7 = vld [vmem:[%s1360_s1 + $0xe0] sm:$0xff]  ;;  %432 = vmatpush.msra.mxu0 %v413_v2  ;;  %v426_v9 = vld [vmem:[%s1360_s1 + $0xd8] sm:$0xff]  ;;  %v425_v11 = vld [vmem:[%s1360_s1 + $0xd0] sm:$0xff] }
  0x10   : > { %1002 = vmatpush.msra.mxu3 %v429_v3  ;;  %545 = vmatpush.msra.mxu1 %v429_v3  ;;  %v408_v12 = vld [vmem:[%s1360_s1 + $0x48] sm:$0xff]  ;;  %v407_v14 = vld [vmem:[%s1360_s1 + $0x40] sm:$0xff]  ;;  %v406_v16 = vld [vmem:[%s1360_s1 + $0x38] sm:$0xff] }
  0x11   : > { %987 = vmatpush.msra.mxu2 %v412_v4  ;;  %433 = vmatpush.msra.mxu0 %v412_v4  ;;  %v424_v13 = vld [vmem:[%s1360_s1 + $0xc8] sm:$0xff]  ;;  %v423_v15 = vld [vmem:[%s1360_s1 + $0xc0] sm:$0xff]  ;;  %v422_v17 = vld [vmem:[%s1360_s1 + $0xb8] sm:$0xff] }
  0x12   : > { %1003 = vmatpush.msra.mxu3 %v428_v5  ;;  %546 = vmatpush.msra.mxu1 %v428_v5  ;;  %v405_v18 = vld [vmem:[%s1360_s1 + $0x30] sm:$0xff]  ;;  %v404_v20 = vld [vmem:[%s1360_s1 + $0x28] sm:$0xff]  ;;  %v403_v22 = vld [vmem:[%s1360_s1 + $0x20] sm:$0xff] }
  0x13   : > { %988 = vmatpush.msra.mxu2 %v411_v6  ;;  %434 = vmatpush.msra.mxu0 %v411_v6  ;;  %v421_v19 = vld [vmem:[%s1360_s1 + $0xb0] sm:$0xff]  ;;  %v420_v21 = vld [vmem:[%s1360_s1 + $0xa8] sm:$0xff]  ;;  %v419_v23 = vld [vmem:[%s1360_s1 + $0xa0] sm:$0xff] }
  0x14   : > { %1004 = vmatpush.msra.mxu3 %v427_v7  ;;  %547 = vmatpush.msra.mxu1 %v427_v7  ;;  %v402_v24 = vld [vmem:[%s1360_s1 + $0x18] sm:$0xff]  ;;  %v401_v26 = vld [vmem:[%s1360_s1 + $0x10] sm:$0xff]  ;;  %v400_v28 = vld [vmem:[%s1360_s1 + $0x8] sm:$0xff] }
  0x15   : > { %989 = vmatpush.msra.mxu2 %v410_v8  ;;  %435 = vmatpush.msra.mxu0 %v410_v8  ;;  %v418_v25 = vld [vmem:[%s1360_s1 + $0x98] sm:$0xff]  ;;  %v417_v27 = vld [vmem:[%s1360_s1 + $0x90] sm:$0xff]  ;;  %v416_v29 = vld [vmem:[%s1360_s1 + $0x88] sm:$0xff] }
  0x16   : > { %1005 = vmatpush.msra.mxu3 %v426_v9  ;;  %548 = vmatpush.msra.mxu1 %v426_v9  ;;  %v399_v30 = vld [vmem:[%s1360_s1] sm:$0xff]  ;;  %v336_v33 = vld [vmem:[%s1203_s6 + $0x108] sm:$0xff]  ;;  %v337_v36 = vld [vmem:[%s1203_s6 + $0x110] sm:$0xff] }
  0x17   : > { %990 = vmatpush.msra.mxu2 %v409_v10  ;;  %436 = vmatpush.msra.mxu0 %v409_v10  ;;  %v415_v31 = vld [vmem:[%s1360_s1 + $0x80] sm:$0xff]  ;;  %v304_v35 = vld [vmem:[%s1203_s6 + $0x8] sm:$0xff]  ;;  %v338_v37 = vld [vmem:[%s1203_s6 + $0x118] sm:$0xff] }
  0x18   : > { %1006 = vmatpush.msra.mxu3 %v425_v11  ;;  %549 = vmatpush.msra.mxu1 %v425_v11  ;;  %v335_v32 = vld [vmem:[%s1203_s6 + $0x100] sm:$0xff]  ;;  %v305_v38 = vld [vmem:[%s1203_s6 + $0x10] sm:$0xff]  ;;  %v306_v39 = vld [vmem:[%s1203_s6 + $0x18] sm:$0xff] }
  0x19   : > { %991 = vmatpush.msra.mxu2 %v408_v12  ;;  %437 = vmatpush.msra.mxu0 %v408_v12  ;;  %v303_v34 = vld [vmem:[%s1203_s6] sm:$0xff]  ;;  %v340_v41 = vld [vmem:[%s1203_s6 + $0x128] sm:$0xff]  ;;  %v341_v44 = vld [vmem:[%s1203_s6 + $0x130] sm:$0xff] }
  0x1a   : > { %1007 = vmatpush.msra.mxu3 %v424_v13  ;;  %550 = vmatpush.msra.mxu1 %v424_v13  ;;  %v339_v40 = vld [vmem:[%s1203_s6 + $0x120] sm:$0xff]  ;;  %v308_v43 = vld [vmem:[%s1203_s6 + $0x28] sm:$0xff]  ;;  %v342_v45 = vld [vmem:[%s1203_s6 + $0x138] sm:$0xff] }
  0x1b   : > { %992 = vmatpush.msra.mxu2 %v407_v14  ;;  %438 = vmatpush.msra.mxu0 %v407_v14  ;;  %v307_v42 = vld [vmem:[%s1203_s6 + $0x20] sm:$0xff]  ;;  %v309_v46 = vld [vmem:[%s1203_s6 + $0x30] sm:$0xff]  ;;  %v310_v47 = vld [vmem:[%s1203_s6 + $0x38] sm:$0xff] }
  0x1c   : > { %1008 = vmatpush.msra.mxu3 %v423_v15  ;;  %551 = vmatpush.msra.mxu1 %v423_v15  ;;  %v343_v48 = vld [vmem:[%s1203_s6 + $0x140] sm:$0xff]  ;;  %v344_v49 = vld [vmem:[%s1203_s6 + $0x148] sm:$0xff]  ;;  %v345_v52 = vld [vmem:[%s1203_s6 + $0x150] sm:$0xff] }
  0x1d   : > { %993 = vmatpush.msra.mxu2 %v406_v16  ;;  %439 = vmatpush.msra.mxu0 %v406_v16  ;;  %v311_v50 = vld [vmem:[%s1203_s6 + $0x40] sm:$0xff]  ;;  %v312_v51 = vld [vmem:[%s1203_s6 + $0x48] sm:$0xff]  ;;  %v346_v53 = vld [vmem:[%s1203_s6 + $0x158] sm:$0xff] }
  0x1e   : > { %1009 = vmatpush.msra.mxu3 %v422_v17  ;;  %552 = vmatpush.msra.mxu1 %v422_v17  ;;  %v313_v54 = vld [vmem:[%s1203_s6 + $0x50] sm:$0xff]  ;;  %v314_v55 = vld [vmem:[%s1203_s6 + $0x58] sm:$0xff]  ;;  %v347_v56 = vld [vmem:[%s1203_s6 + $0x160] sm:$0xff] }
  0x1f   : > { %994 = vmatpush.msra.mxu2 %v405_v18  ;;  %440 = vmatpush.msra.mxu0 %v405_v18  ;;  %v348_v57 = vld [vmem:[%s1203_s6 + $0x168] sm:$0xff]  ;;  %v315_v58 = vld [vmem:[%s1203_s6 + $0x60] sm:$0xff]  ;;  %v349_v60 = vld [vmem:[%s1203_s6 + $0x170] sm:$0xff] }
  0x20   : > { %1010 = vmatpush.msra.mxu3 %v421_v19  ;;  %553 = vmatpush.msra.mxu1 %v421_v19  ;;  %v316_v59 = vld [vmem:[%s1203_s6 + $0x68] sm:$0xff]  ;;  %v350_v61 = vld [vmem:[%s1203_s6 + $0x178] sm:$0xff]  ;;  %v317_v62 = vld [vmem:[%s1203_s6 + $0x70] sm:$0xff] }
  0x21   : > { %995 = vmatpush.msra.mxu2 %v404_v20  ;;  %441 = vmatpush.msra.mxu0 %v404_v20  ;;  %v318_v63 = vld [vmem:[%s1203_s6 + $0x78] sm:$0xff]  ;;  %v351_v0 = vld [vmem:[%s1203_s6 + $0x180] sm:$0xff]  ;;  %v352_v1 = vld [vmem:[%s1203_s6 + $0x188] sm:$0xff] }
  0x22   : > { %1011 = vmatpush.msra.mxu3 %v420_v21  ;;  %554 = vmatpush.msra.mxu1 %v420_v21  ;;  %v319_v2 = vld [vmem:[%s1203_s6 + $0x80] sm:$0xff]  ;;  %v320_v3 = vld [vmem:[%s1203_s6 + $0x88] sm:$0xff]  ;;  %v353_v4 = vld [vmem:[%s1203_s6 + $0x190] sm:$0xff] }
  0x23   : > { %996 = vmatpush.msra.mxu2 %v403_v22  ;;  %442 = vmatpush.msra.mxu0 %v403_v22  ;;  %v354_v5 = vld [vmem:[%s1203_s6 + $0x198] sm:$0xff]  ;;  %v321_v6 = vld [vmem:[%s1203_s6 + $0x90] sm:$0xff]  ;;  %v355_v8 = vld [vmem:[%s1203_s6 + $0x1a0] sm:$0xff] }
  0x24   : > { %1012 = vmatpush.msra.mxu3 %v419_v23  ;;  %555 = vmatpush.msra.mxu1 %v419_v23  ;;  %v322_v7 = vld [vmem:[%s1203_s6 + $0x98] sm:$0xff]  ;;  %v356_v9 = vld [vmem:[%s1203_s6 + $0x1a8] sm:$0xff]  ;;  %v323_v10 = vld [vmem:[%s1203_s6 + $0xa0] sm:$0xff] }
  0x25   : > { %997 = vmatpush.msra.mxu2 %v402_v24  ;;  %443 = vmatpush.msra.mxu0 %v402_v24  ;;  %v324_v11 = vld [vmem:[%s1203_s6 + $0xa8] sm:$0xff]  ;;  %v357_v12 = vld [vmem:[%s1203_s6 + $0x1b0] sm:$0xff]  ;;  %v358_v13 = vld [vmem:[%s1203_s6 + $0x1b8] sm:$0xff] }
  0x26   : > { %1013 = vmatpush.msra.mxu3 %v418_v25  ;;  %556 = vmatpush.msra.mxu1 %v418_v25  ;;  %v325_v14 = vld [vmem:[%s1203_s6 + $0xb0] sm:$0xff]  ;;  %v326_v15 = vld [vmem:[%s1203_s6 + $0xb8] sm:$0xff]  ;;  %v359_v16 = vld [vmem:[%s1203_s6 + $0x1c0] sm:$0xff] }
  0x27   : > { %998 = vmatpush.msra.mxu2 %v401_v26  ;;  %444 = vmatpush.msra.mxu0 %v401_v26  ;;  %v360_v17 = vld [vmem:[%s1203_s6 + $0x1c8] sm:$0xff]  ;;  %v327_v18 = vld [vmem:[%s1203_s6 + $0xc0] sm:$0xff]  ;;  %v361_v20 = vld [vmem:[%s1203_s6 + $0x1d0] sm:$0xff] }
  0x28   : > { %1014 = vmatpush.msra.mxu3 %v417_v27  ;;  %557 = vmatpush.msra.mxu1 %v417_v27  ;;  %v328_v19 = vld [vmem:[%s1203_s6 + $0xc8] sm:$0xff]  ;;  %v362_v21 = vld [vmem:[%s1203_s6 + $0x1d8] sm:$0xff]  ;;  %v329_v22 = vld [vmem:[%s1203_s6 + $0xd0] sm:$0xff] }
  0x29   : > { %999 = vmatpush.msra.mxu2 %v400_v28  ;;  %445 = vmatpush.msra.mxu0 %v400_v28  ;;  %v330_v23 = vld [vmem:[%s1203_s6 + $0xd8] sm:$0xff]  ;;  %v363_v24 = vld [vmem:[%s1203_s6 + $0x1e0] sm:$0xff]  ;;  %v364_v25 = vld [vmem:[%s1203_s6 + $0x1e8] sm:$0xff] }
  0x2a   : > { %1015 = vmatpush.msra.mxu3 %v416_v29  ;;  %558 = vmatpush.msra.mxu1 %v416_v29  ;;  %v331_v26 = vld [vmem:[%s1203_s6 + $0xe0] sm:$0xff]  ;;  %v332_v27 = vld [vmem:[%s1203_s6 + $0xe8] sm:$0xff]  ;;  %v365_v28 = vld [vmem:[%s1203_s6 + $0x1f0] sm:$0xff] }
  0x2b   : > { %1000 = vmatpush.msra.mxu2 %v399_v30  ;;  %446 = vmatpush.msra.mxu0 %v399_v30  ;;  %v366_v29 = vld [vmem:[%s1203_s6 + $0x1f8] sm:$0xff]  ;;  %v333_v30 = vld [vmem:[%s1203_s6 + $0xf0] sm:$0xff] }
  0x2c   : > { %1016 = vmatpush.msra.mxu3 %v415_v31  ;;  %495 = vmatmul.f32.vlgmr.msra.gmra.mxu2 %v335_v32  ;;  %v1278_v32 = vld [vmem:[%s1361_s2] ss:$0 sm:$0xff] }
  0x2d   : > { %608 = vmatmul.f32.vlgmr.msra.gmra.mxu3 %v336_v33  ;;  %559 = vmatpush.msra.mxu1 %v415_v31  ;;  %v334_v31 = vld [vmem:[%s1203_s6 + $0xf8] sm:$0xff] }
  0x2e   : > { %447 = vmatmul.f32.vlgmr.msra.gmra.mxu0 %v303_v34  ;;  %560 = vmatmul.f32.vlgmr.msra.gmra.mxu1 %v304_v35 }
  0x34   : > { %498 = vmatmul.f32.gmra.mxu2 %v337_v36 }
  0x35   : > { %611 = vmatmul.f32.gmra.mxu3 %v338_v37 }
  0x36   : > { %450 = vmatmul.f32.gmra.mxu0 %v305_v38  ;;  %563 = vmatmul.f32.gmra.mxu1 %v306_v39 }
  0x3c   : > { %501 = vmatmul.f32.gmra.mxu2 %v339_v40 }
  0x3d   : > { %614 = vmatmul.f32.gmra.mxu3 %v340_v41 }
  0x3e   : > { %453 = vmatmul.f32.gmra.mxu0 %v307_v42  ;;  %566 = vmatmul.f32.gmra.mxu1 %v308_v43 }
  0x44   : > { %504 = vmatmul.f32.gmra.mxu2 %v341_v44 }
  0x45   : > { %617 = vmatmul.f32.gmra.mxu3 %v342_v45 }
  0x46   : > { %456 = vmatmul.f32.gmra.mxu0 %v309_v46  ;;  %569 = vmatmul.f32.gmra.mxu1 %v310_v47 }
  0x4c   : > { %507 = vmatmul.f32.gmra.mxu2 %v343_v48 }
  0x4d   : > { %620 = vmatmul.f32.gmra.mxu3 %v344_v49 }
  0x4e   : > { %459 = vmatmul.f32.gmra.mxu0 %v311_v50  ;;  %572 = vmatmul.f32.gmra.mxu1 %v312_v51 }
  0x54   : > { %510 = vmatmul.f32.gmra.mxu2 %v345_v52 }
  0x55   : > { %623 = vmatmul.f32.gmra.mxu3 %v346_v53 }
  0x56   : > { %462 = vmatmul.f32.gmra.mxu0 %v313_v54  ;;  %575 = vmatmul.f32.gmra.mxu1 %v314_v55 }
  0x5c   : > { %513 = vmatmul.f32.gmra.mxu2 %v347_v56 }
  0x5d   : > { %626 = vmatmul.f32.gmra.mxu3 %v348_v57 }
  0x5e   : > { %465 = vmatmul.f32.gmra.mxu0 %v315_v58  ;;  %578 = vmatmul.f32.gmra.mxu1 %v316_v59 }
  0x64   : > { %516 = vmatmul.f32.gmra.mxu2 %v349_v60 }
  0x65   : > { %629 = vmatmul.f32.gmra.mxu3 %v350_v61 }
  0x66   : > { %468 = vmatmul.f32.gmra.mxu0 %v317_v62  ;;  %581 = vmatmul.f32.gmra.mxu1 %v318_v63 }
  0x6c   : > { %519 = vmatmul.f32.gmra.mxu2 %v351_v0 }
  0x6d   : > { %632 = vmatmul.f32.gmra.mxu3 %v352_v1 }
  0x6e   : > { %471 = vmatmul.f32.gmra.mxu0 %v319_v2  ;;  %584 = vmatmul.f32.gmra.mxu1 %v320_v3 }
  0x74   : > { %522 = vmatmul.f32.gmra.mxu2 %v353_v4 }
  0x75   : > { %635 = vmatmul.f32.gmra.mxu3 %v354_v5 }
  0x76   : > { %474 = vmatmul.f32.gmra.mxu0 %v321_v6  ;;  %587 = vmatmul.f32.gmra.mxu1 %v322_v7 }
  0x7c   : > { %525 = vmatmul.f32.gmra.mxu2 %v355_v8 }
  0x7d   : > { %638 = vmatmul.f32.gmra.mxu3 %v356_v9 }
  0x7e   : > { %477 = vmatmul.f32.gmra.mxu0 %v323_v10  ;;  %590 = vmatmul.f32.gmra.mxu1 %v324_v11 }
  0x84   : > { %528 = vmatmul.f32.gmra.mxu2 %v357_v12 }
  0x85   : > { %641 = vmatmul.f32.gmra.mxu3 %v358_v13 }
  0x86   : > { %480 = vmatmul.f32.gmra.mxu0 %v325_v14  ;;  %593 = vmatmul.f32.gmra.mxu1 %v326_v15 }
  0x8c   : > { %531 = vmatmul.f32.gmra.mxu2 %v359_v16 }
  0x8d   : > { %644 = vmatmul.f32.gmra.mxu3 %v360_v17 }
  0x8e   : > { %483 = vmatmul.f32.gmra.mxu0 %v327_v18  ;;  %596 = vmatmul.f32.gmra.mxu1 %v328_v19 }
  0x94   : > { %534 = vmatmul.f32.gmra.mxu2 %v361_v20 }
  0x95   : > { %647 = vmatmul.f32.gmra.mxu3 %v362_v21 }
  0x96   : > { %486 = vmatmul.f32.gmra.mxu0 %v329_v22  ;;  %599 = vmatmul.f32.gmra.mxu1 %v330_v23 }
  0x9c   : > { %537 = vmatmul.f32.gmra.mxu2 %v363_v24 }
  0x9d   : > { %650 = vmatmul.f32.gmra.mxu3 %v364_v25 }
  0x9e   : > { %489 = vmatmul.f32.gmra.mxu0 %v331_v26  ;;  %602 = vmatmul.f32.gmra.mxu1 %v332_v27 }
  0xa4   : > { %540 = vmatmul.f32.gmra.mxu2 %v365_v28 }
  0xa5   : > { %653 = vmatmul.f32.gmra.mxu3 %v366_v29 }
  0xa6   : > { %492 = vmatmul.f32.gmra.mxu0 %v333_v30  ;;  %605 = vmatmul.f32.gmra.mxu1 %v334_v31 }
  0xab   : > { %v448_v33 = vpop.f32.mrf.mxu0  ;;  %v561_v34 = vpop.f32.mrf.mxu1 }
  0xac   : > { %v562_v35 = vadd.f32 %v561_v34, %v448_v33 }
  0xae   : > { %v760_v36 = vadd.f32 %v1278_v32, %v562_v35 }
  0xaf   : > { %v496_v37 = vpop.f32.mrf.mxu2 }
  0xb0   : > { %v609_v38 = vpop.f32.mrf.mxu3  ;;  %v792_v39 = vmax.f32 %v760_v36, 0.0 }
  0xb1   : > { %v610_v40 = vadd.f32 %v609_v38, %v496_v37 }
  0xb2   : > { %824 = vst [vmem:[%s1285_s20] sm:$0xff] %v792_v39 }
  0xb3   : > { %v776_v41 = vadd.f32 %v1278_v32, %v610_v40  ;;  %v451_v42 = vpop.f32.mrf.mxu0  ;;  %v564_v43 = vpop.f32.mrf.mxu1 }
  0xb4   : > { %v565_v45 = vadd.f32 %v564_v43, %v451_v42 }
  0xb5   : > { %v808_v44 = vmax.f32 %v776_v41, 0.0 }
  0xb6   : > { %v761_v46 = vadd.f32 %v1278_v32, %v565_v45 }
  0xb7   : > { %840 = vst [vmem:[%s1285_s20 + $0x80] sm:$0xff] %v808_v44  ;;  %v499_v47 = vpop.f32.mrf.mxu2 }
  0xb8   : > { %v612_v48 = vpop.f32.mrf.mxu3  ;;  %v793_v49 = vmax.f32 %v761_v46, 0.0 }
  0xb9   : > { %v613_v50 = vadd.f32 %v612_v48, %v499_v47 }
  0xba   : > { %825 = vst [vmem:[%s1285_s20 + $0x8] sm:$0xff] %v793_v49 }
  0xbb   : > { %v777_v51 = vadd.f32 %v1278_v32, %v613_v50  ;;  %v454_v52 = vpop.f32.mrf.mxu0  ;;  %v567_v53 = vpop.f32.mrf.mxu1 }
  0xbc   : > { %v568_v55 = vadd.f32 %v567_v53, %v454_v52 }
  0xbd   : > { %v809_v54 = vmax.f32 %v777_v51, 0.0 }
  0xbe   : > { %v762_v56 = vadd.f32 %v1278_v32, %v568_v55 }
  0xbf   : > { %841 = vst [vmem:[%s1285_s20 + $0x88] sm:$0xff] %v809_v54  ;;  %v502_v57 = vpop.f32.mrf.mxu2 }
  0xc0   : > { %v615_v58 = vpop.f32.mrf.mxu3  ;;  %v794_v59 = vmax.f32 %v762_v56, 0.0 }
  0xc1   : > { %v616_v60 = vadd.f32 %v615_v58, %v502_v57 }
  0xc2   : > { %826 = vst [vmem:[%s1285_s20 + $0x10] sm:$0xff] %v794_v59 }
  0xc3   : > { %v778_v61 = vadd.f32 %v1278_v32, %v616_v60  ;;  %v457_v62 = vpop.f32.mrf.mxu0  ;;  %v570_v63 = vpop.f32.mrf.mxu1 }
  0xc4   : > { %v571_v1 = vadd.f32 %v570_v63, %v457_v62 }
  0xc5   : > { %v810_v0 = vmax.f32 %v778_v61, 0.0 }
  0xc6   : > { %v763_v2 = vadd.f32 %v1278_v32, %v571_v1 }
  0xc7   : > { %842 = vst [vmem:[%s1285_s20 + $0x90] sm:$0xff] %v810_v0  ;;  %v505_v3 = vpop.f32.mrf.mxu2 }
  0xc8   : > { %v618_v4 = vpop.f32.mrf.mxu3  ;;  %v795_v5 = vmax.f32 %v763_v2, 0.0 }
  0xc9   : > { %v619_v6 = vadd.f32 %v618_v4, %v505_v3 }
  0xca   : > { %827 = vst [vmem:[%s1285_s20 + $0x18] sm:$0xff] %v795_v5 }
  0xcb   : > { %v779_v7 = vadd.f32 %v1278_v32, %v619_v6  ;;  %v460_v8 = vpop.f32.mrf.mxu0  ;;  %v573_v9 = vpop.f32.mrf.mxu1 }
  0xcc   : > { %v574_v11 = vadd.f32 %v573_v9, %v460_v8 }
  0xcd   : > { %v811_v10 = vmax.f32 %v779_v7, 0.0 }
  0xce   : > { %v764_v12 = vadd.f32 %v1278_v32, %v574_v11 }
  0xcf   : > { %843 = vst [vmem:[%s1285_s20 + $0x98] sm:$0xff] %v811_v10  ;;  %v508_v13 = vpop.f32.mrf.mxu2 }
  0xd0   : > { %v621_v14 = vpop.f32.mrf.mxu3  ;;  %v796_v15 = vmax.f32 %v764_v12, 0.0 }
  0xd1   : > { %v622_v16 = vadd.f32 %v621_v14, %v508_v13 }
  0xd2   : > { %828 = vst [vmem:[%s1285_s20 + $0x20] sm:$0xff] %v796_v15 }
  0xd3   : > { %v780_v17 = vadd.f32 %v1278_v32, %v622_v16  ;;  %v463_v18 = vpop.f32.mrf.mxu0  ;;  %v576_v19 = vpop.f32.mrf.mxu1 }
  0xd4   : > { %v577_v21 = vadd.f32 %v576_v19, %v463_v18 }
  0xd5   : > { %v812_v20 = vmax.f32 %v780_v17, 0.0 }
  0xd6   : > { %v765_v22 = vadd.f32 %v1278_v32, %v577_v21 }
  0xd7   : > { %844 = vst [vmem:[%s1285_s20 + $0xa0] sm:$0xff] %v812_v20  ;;  %v511_v23 = vpop.f32.mrf.mxu2 }
  0xd8   : > { %v624_v24 = vpop.f32.mrf.mxu3  ;;  %v797_v25 = vmax.f32 %v765_v22, 0.0 }
  0xd9   : > { %v625_v26 = vadd.f32 %v624_v24, %v511_v23 }
  0xda   : > { %829 = vst [vmem:[%s1285_s20 + $0x28] sm:$0xff] %v797_v25 }
  0xdb   : > { %v781_v27 = vadd.f32 %v1278_v32, %v625_v26  ;;  %v466_v28 = vpop.f32.mrf.mxu0  ;;  %v579_v29 = vpop.f32.mrf.mxu1 }
  0xdc   : > { %v580_v31 = vadd.f32 %v579_v29, %v466_v28 }
  0xdd   : > { %v813_v30 = vmax.f32 %v781_v27, 0.0 }
  0xde   : > { %v766_v33 = vadd.f32 %v1278_v32, %v580_v31 }
  0xdf   : > { %845 = vst [vmem:[%s1285_s20 + $0xa8] sm:$0xff] %v813_v30  ;;  %v514_v34 = vpop.f32.mrf.mxu2 }
  0xe0   : > { %v627_v35 = vpop.f32.mrf.mxu3  ;;  %v798_v36 = vmax.f32 %v766_v33, 0.0 }
  0xe1   : > { %v628_v37 = vadd.f32 %v627_v35, %v514_v34 }
  0xe2   : > { %830 = vst [vmem:[%s1285_s20 + $0x30] sm:$0xff] %v798_v36 }
  0xe3   : > { %v782_v38 = vadd.f32 %v1278_v32, %v628_v37  ;;  %v469_v39 = vpop.f32.mrf.mxu0  ;;  %v582_v40 = vpop.f32.mrf.mxu1 }
  0xe4   : > { %v583_v42 = vadd.f32 %v582_v40, %v469_v39 }
  0xe5   : > { %v814_v41 = vmax.f32 %v782_v38, 0.0 }
  0xe6   : > { %v767_v43 = vadd.f32 %v1278_v32, %v583_v42 }
  0xe7   : > { %846 = vst [vmem:[%s1285_s20 + $0xb0] sm:$0xff] %v814_v41  ;;  %v517_v44 = vpop.f32.mrf.mxu2 }
  0xe8   : > { %v630_v45 = vpop.f32.mrf.mxu3  ;;  %v799_v46 = vmax.f32 %v767_v43, 0.0 }
  0xe9   : > { %v631_v47 = vadd.f32 %v630_v45, %v517_v44 }
  0xea   : > { %831 = vst [vmem:[%s1285_s20 + $0x38] sm:$0xff] %v799_v46 }
  0xeb   : > { %v783_v48 = vadd.f32 %v1278_v32, %v631_v47  ;;  %v472_v49 = vpop.f32.mrf.mxu0  ;;  %v585_v50 = vpop.f32.mrf.mxu1 }
  0xec   : > { %v586_v52 = vadd.f32 %v585_v50, %v472_v49 }
  0xed   : > { %v815_v51 = vmax.f32 %v783_v48, 0.0 }
  0xee   : > { %v768_v53 = vadd.f32 %v1278_v32, %v586_v52 }
  0xef   : > { %847 = vst [vmem:[%s1285_s20 + $0xb8] sm:$0xff] %v815_v51  ;;  %v520_v54 = vpop.f32.mrf.mxu2 }
  0xf0   : > { %v633_v55 = vpop.f32.mrf.mxu3  ;;  %v800_v56 = vmax.f32 %v768_v53, 0.0 }
  0xf1   : > { %v634_v57 = vadd.f32 %v633_v55, %v520_v54 }
  0xf2   : > { %832 = vst [vmem:[%s1285_s20 + $0x40] sm:$0xff] %v800_v56 }
  0xf3   : > { %v784_v58 = vadd.f32 %v1278_v32, %v634_v57  ;;  %v475_v59 = vpop.f32.mrf.mxu0  ;;  %v588_v60 = vpop.f32.mrf.mxu1 }
  0xf4   : > { %v589_v62 = vadd.f32 %v588_v60, %v475_v59 }
  0xf5   : > { %v816_v61 = vmax.f32 %v784_v58, 0.0 }
  0xf6   : > { %v769_v63 = vadd.f32 %v1278_v32, %v589_v62 }
  0xf7   : > { %848 = vst [vmem:[%s1285_s20 + $0xc0] sm:$0xff] %v816_v61  ;;  %v523_v0 = vpop.f32.mrf.mxu2 }
  0xf8   : > { %v636_v1 = vpop.f32.mrf.mxu3  ;;  %v801_v2 = vmax.f32 %v769_v63, 0.0 }
  0xf9   : > { %v637_v3 = vadd.f32 %v636_v1, %v523_v0 }
  0xfa   : > { %833 = vst [vmem:[%s1285_s20 + $0x48] sm:$0xff] %v801_v2 }
  0xfb   : > { %v785_v4 = vadd.f32 %v1278_v32, %v637_v3  ;;  %v478_v5 = vpop.f32.mrf.mxu0  ;;  %v591_v6 = vpop.f32.mrf.mxu1 }
  0xfc   : > { %v592_v8 = vadd.f32 %v591_v6, %v478_v5 }
  0xfd   : > { %v817_v7 = vmax.f32 %v785_v4, 0.0 }
  0xfe   : > { %v770_v9 = vadd.f32 %v1278_v32, %v592_v8 }
  0xff   : > { %849 = vst [vmem:[%s1285_s20 + $0xc8] sm:$0xff] %v817_v7  ;;  %v526_v10 = vpop.f32.mrf.mxu2 }
 0x100   : > { %v639_v11 = vpop.f32.mrf.mxu3  ;;  %v802_v12 = vmax.f32 %v770_v9, 0.0 }
 0x101   : > { %v640_v13 = vadd.f32 %v639_v11, %v526_v10 }
 0x102   : > { %834 = vst [vmem:[%s1285_s20 + $0x50] sm:$0xff] %v802_v12 }
 0x103   : > { %v786_v14 = vadd.f32 %v1278_v32, %v640_v13  ;;  %v481_v15 = vpop.f32.mrf.mxu0  ;;  %v594_v16 = vpop.f32.mrf.mxu1 }
 0x104   : > { %v595_v18 = vadd.f32 %v594_v16, %v481_v15 }
 0x105   : > { %v818_v17 = vmax.f32 %v786_v14, 0.0 }
 0x106   : > { %v771_v19 = vadd.f32 %v1278_v32, %v595_v18 }
 0x107   : > { %850 = vst [vmem:[%s1285_s20 + $0xd0] sm:$0xff] %v818_v17  ;;  %v529_v20 = vpop.f32.mrf.mxu2 }
 0x108   : > { %v642_v21 = vpop.f32.mrf.mxu3  ;;  %v803_v22 = vmax.f32 %v771_v19, 0.0 }
 0x109   : > { %v643_v23 = vadd.f32 %v642_v21, %v529_v20 }
 0x10a   : > { %835 = vst [vmem:[%s1285_s20 + $0x58] sm:$0xff] %v803_v22 }
 0x10b   : > { %v787_v24 = vadd.f32 %v1278_v32, %v643_v23  ;;  %v484_v25 = vpop.f32.mrf.mxu0  ;;  %v597_v26 = vpop.f32.mrf.mxu1 }
 0x10c   : > { %v598_v28 = vadd.f32 %v597_v26, %v484_v25 }
 0x10d   : > { %v819_v27 = vmax.f32 %v787_v24, 0.0 }
 0x10e   : > { %v772_v29 = vadd.f32 %v1278_v32, %v598_v28 }
 0x10f   : > { %851 = vst [vmem:[%s1285_s20 + $0xd8] sm:$0xff] %v819_v27  ;;  %v532_v30 = vpop.f32.mrf.mxu2 }
 0x110   : > { %v645_v31 = vpop.f32.mrf.mxu3  ;;  %v804_v33 = vmax.f32 %v772_v29, 0.0 }
 0x111   : > { %v646_v34 = vadd.f32 %v645_v31, %v532_v30 }
 0x112   : > { %836 = vst [vmem:[%s1285_s20 + $0x60] sm:$0xff] %v804_v33 }
 0x113   : > { %v788_v35 = vadd.f32 %v1278_v32, %v646_v34  ;;  %v487_v36 = vpop.f32.mrf.mxu0  ;;  %v600_v37 = vpop.f32.mrf.mxu1 }
 0x114   : > { %v601_v39 = vadd.f32 %v600_v37, %v487_v36 }
 0x115   : > { %v820_v38 = vmax.f32 %v788_v35, 0.0 }
 0x116   : > { %v773_v40 = vadd.f32 %v1278_v32, %v601_v39 }
 0x117   : > { %852 = vst [vmem:[%s1285_s20 + $0xe0] sm:$0xff] %v820_v38  ;;  %v535_v41 = vpop.f32.mrf.mxu2 }
 0x118   : > { %v648_v42 = vpop.f32.mrf.mxu3  ;;  %v805_v43 = vmax.f32 %v773_v40, 0.0 }
 0x119   : > { %v649_v44 = vadd.f32 %v648_v42, %v535_v41 }
 0x11a   : > { %837 = vst [vmem:[%s1285_s20 + $0x68] sm:$0xff] %v805_v43 }
 0x11b   : > { %v789_v45 = vadd.f32 %v1278_v32, %v649_v44  ;;  %v490_v46 = vpop.f32.mrf.mxu0  ;;  %v603_v47 = vpop.f32.mrf.mxu1 }
 0x11c   : > { %v604_v49 = vadd.f32 %v603_v47, %v490_v46 }
 0x11d   : > { %v821_v48 = vmax.f32 %v789_v45, 0.0 }
 0x11e   : > { %v774_v50 = vadd.f32 %v1278_v32, %v604_v49 }
 0x11f   : > { %853 = vst [vmem:[%s1285_s20 + $0xe8] sm:$0xff] %v821_v48  ;;  %v538_v51 = vpop.f32.mrf.mxu2 }
 0x120   : > { %v651_v52 = vpop.f32.mrf.mxu3  ;;  %v806_v53 = vmax.f32 %v774_v50, 0.0 }
 0x121   : > { %v652_v54 = vadd.f32 %v651_v52, %v538_v51 }
 0x122   : > { %838 = vst [vmem:[%s1285_s20 + $0x70] sm:$0xff] %v806_v53 }
 0x123   : > { %v790_v55 = vadd.f32 %v1278_v32, %v652_v54  ;;  %v493_v56 = vpop.f32.mrf.mxu0  ;;  %v606_v57 = vpop.f32.mrf.mxu1 }
 0x124   : > { %v607_v59 = vadd.f32 %v606_v57, %v493_v56 }
 0x125   : > { %v822_v58 = vmax.f32 %v790_v55, 0.0 }
 0x126   : > { %v775_v60 = vadd.f32 %v1278_v32, %v607_v59 }
 0x127   : > { %854 = vst [vmem:[%s1285_s20 + $0xf0] sm:$0xff] %v822_v58  ;;  %v541_v61 = vpop.f32.mrf.mxu2 }
 0x128   : > { %v654_v62 = vpop.f32.mrf.mxu3  ;;  %v807_v63 = vmax.f32 %v775_v60, 0.0 }
 0x129   : > { %v655_v0 = vadd.f32 %v654_v62, %v541_v61 }
 0x12a   : > { %839 = vst [vmem:[%s1285_s20 + $0x78] sm:$0xff] %v807_v63 }
 0x12b   : > { %v791_v1 = vadd.f32 %v1278_v32, %v655_v0 }
 0x12d   : > { %v823_v2 = vmax.f32 %v791_v1, 0.0 }
 0x12f   : > { %855 = vst [vmem:[%s1285_s20 + $0xf8] sm:$0xff] %v823_v2 }
 0x130 PF: > { %s13_s14 = sadd.s32 1, %s1064_s14   ;;  %s1363_s12 = smov %s1060_s13 }
 0x131   : > { %p10_p5 = scmp.ge.s32.totalorder %s13_s14, 4   ;;  %s1364_s13 = smov %s1366_s15 }
 0x133   :  { %12 = sbr.rel (!%p10_p5) target bundleno = 2 (0x2), region = 76 }

// kernel: _lambda_.28
= control target key start
LH: loop header
LB: loop body
LE: loop exit
PB: predicated region body
PF: predicated region fallthrough
CT: control target
= control target key end

     0   :  { %s861_s12 = smov 0   ;;  %s863_s13 = smov 0   ;;  %s1151_s0 = inlined_call_operand.vmem [shape: f32[16,256], index: 0, kind: input, shape index: {}]   ;;  %s1152_s1 = inlined_call_operand.vmem [shape: f32[256,1024], index: 1, kind: input, shape index: {}]   ;;  %s1153_s2 = inlined_call_operand.vmem [shape: f32[1,1024], index: 2, kind: input, shape index: {}]   ;;  %s1154_s3 = inlined_call_operand.vmem [shape: f32[16,1024], index: 3, kind: output, shape index: {}]  }
   0x1   :  { %s865_s14 = smov 0   ;;  %s867_s15 = smov 0  }
   0x2   :  { %s869_s16 = smov 0  }
   0x3 LB: > { %s28_s17 = sadd.s32 1, %s835_s15  ;;  %s742_s18 = sadd.s32 4294967295, %s839_s16   ;;  %s839_s16 = sphi %s869_s16, %s13_s16   ;;  %s835_s15 = sphi %s867_s15, %s1159_s15   ;;  %s831_s14 = sphi %s865_s14, %s1158_s14   ;;  %s827_s13 = sphi %s863_s13, %s1157_s13   ;;  %s823_s12 = sphi %s861_s12, %s1156_s12  }
   0x4   : > { %p30_p0 = scmp.ge.s32.totalorder %s28_s17, 4  ;;  %p76_p1 = scmp.ne.s32.totalorder %s827_s13, %s823_s12 }
   0x5   : > { %p77_p2 = scmp.eq.s32.totalorder %s839_s16, 0  ;;  %p134_p4 = scmp.eq.s32.totalorder %s742_s18, 3 }
   0x6   : > { %s1161_s17 = smov (%p30_p0, %s28_s17), 0  ;;  %s69_s20 = sadd.s32 1, %s827_s13 }
   0x7   : > { %p78_p3 = por %p77_p2, %p76_p1  ;;  %s65_s19 = ssub.s32 %s835_s15, %s1161_s17 }
   0x8   : > { %p67_p5 = scmp.eq.s32.totalorder %s65_s19, 0  ;;  %p896_p6 = por %p134_p4, %p76_p1 }
   0x9   : > { %p746_p7 = scmp.ge.s32.totalorder %s839_s16, 4 }
   0xa   : > { %s901_s22 = scalar_select %p67_p5, %s827_s13, %s69_s20  }
   0xb   : > { %171 = sbr.rel (%p746_p7) target bundleno = 84 (0x54), region = 20 }
  0x10   : > { %174 = sbr.rel (!%p78_p3) target bundleno = 84 (0x54), region = 24  ;;  %s176_s23 = sand.u32 (%p78_p3), 1, %s827_s13  }
  0x11   : > { %s759_s24 = sshll.u32 (%p78_p3), %s835_s15, 4  ;;  %s747_s25 = sshll.u32 (%p78_p3), %s176_s23, 9 }
  0x12   : > { %s909_s28 = scalar_lea.vmem (%p78_p3), %s1152_s1, %s759_s24  ;;  %s914_s29 = scalar_lea.vmem (%p78_p3), [#allocation3], %s747_s25 }
  0x13   : > { %v197_v0 = vld [vmem:[%s909_s28] sm:$0xff] (%p78_p3)  ;;  %v199_v1 = vld [vmem:[%s909_s28 + $0x8] sm:$0xff] (%p78_p3) }
  0x14   : > { %v201_v2 = vld [vmem:[%s909_s28 + $0x40] sm:$0xff] (%p78_p3)  ;;  %198 = vst [vmem:[%s914_s29] sm:$0xff] (%p78_p3), %v197_v0  ;;  %v203_v3 = vld [vmem:[%s909_s28 + $0x48] sm:$0xff] (%p78_p3) }
  0x15   : > { %200 = vst [vmem:[%s914_s29 + $0x8] sm:$0xff] %v199_v1  ;;  %v205_v4 = vld [vmem:[%s909_s28 + $0x80] sm:$0xff]  ;;  %v207_v5 = vld [vmem:[%s909_s28 + $0x88] sm:$0xff] }
  0x16   : > { %202 = vst [vmem:[%s914_s29 + $0x10] sm:$0xff] %v201_v2  ;;  %v209_v6 = vld [vmem:[%s909_s28 + $0xc0] sm:$0xff]  ;;  %v211_v7 = vld [vmem:[%s909_s28 + $0xc8] sm:$0xff] }
  0x17   : > { %204 = vst [vmem:[%s914_s29 + $0x18] sm:$0xff] %v203_v3  ;;  %v213_v8 = vld [vmem:[%s909_s28 + $0x100] sm:$0xff]  ;;  %v215_v9 = vld [vmem:[%s909_s28 + $0x108] sm:$0xff] }
  0x18   : > { %206 = vst [vmem:[%s914_s29 + $0x20] sm:$0xff] %v205_v4  ;;  %v217_v10 = vld [vmem:[%s909_s28 + $0x140] sm:$0xff]  ;;  %v219_v11 = vld [vmem:[%s909_s28 + $0x148] sm:$0xff] }
  0x19   : > { %208 = vst [vmem:[%s914_s29 + $0x28] sm:$0xff] %v207_v5  ;;  %v221_v12 = vld [vmem:[%s909_s28 + $0x180] sm:$0xff]  ;;  %v223_v13 = vld [vmem:[%s909_s28 + $0x188] sm:$0xff] }
  0x1a   : > { %210 = vst [vmem:[%s914_s29 + $0x30] sm:$0xff] %v209_v6  ;;  %v225_v14 = vld [vmem:[%s909_s28 + $0x1c0] sm:$0xff]  ;;  %v227_v15 = vld [vmem:[%s909_s28 + $0x1c8] sm:$0xff] }
  0x1b   : > { %212 = vst [vmem:[%s914_s29 + $0x38] sm:$0xff] %v211_v7  ;;  %v229_v16 = vld [vmem:[%s909_s28 + $0x200] sm:$0xff]  ;;  %v231_v17 = vld [vmem:[%s909_s28 + $0x208] sm:$0xff] }
  0x1c   : > { %214 = vst [vmem:[%s914_s29 + $0x40] sm:$0xff] %v213_v8  ;;  %v233_v18 = vld [vmem:[%s909_s28 + $0x240] sm:$0xff]  ;;  %v235_v19 = vld [vmem:[%s909_s28 + $0x248] sm:$0xff] }
  0x1d   : > { %216 = vst [vmem:[%s914_s29 + $0x48] sm:$0xff] %v215_v9  ;;  %v237_v20 = vld [vmem:[%s909_s28 + $0x280] sm:$0xff]  ;;  %v239_v21 = vld [vmem:[%s909_s28 + $0x288] sm:$0xff] }
  0x1e   : > { %218 = vst [vmem:[%s914_s29 + $0x50] sm:$0xff] %v217_v10  ;;  %v241_v22 = vld [vmem:[%s909_s28 + $0x2c0] sm:$0xff]  ;;  %v243_v23 = vld [vmem:[%s909_s28 + $0x2c8] sm:$0xff] }
  0x1f   : > { %220 = vst [vmem:[%s914_s29 + $0x58] sm:$0xff] %v219_v11  ;;  %v245_v24 = vld [vmem:[%s909_s28 + $0x300] sm:$0xff]  ;;  %v247_v25 = vld [vmem:[%s909_s28 + $0x308] sm:$0xff] }
  0x20   : > { %222 = vst [vmem:[%s914_s29 + $0x60] sm:$0xff] %v221_v12  ;;  %v249_v26 = vld [vmem:[%s909_s28 + $0x340] sm:$0xff]  ;;  %v251_v27 = vld [vmem:[%s909_s28 + $0x348] sm:$0xff] }
  0x21   : > { %224 = vst [vmem:[%s914_s29 + $0x68] sm:$0xff] %v223_v13  ;;  %v253_v28 = vld [vmem:[%s909_s28 + $0x380] sm:$0xff]  ;;  %v255_v29 = vld [vmem:[%s909_s28 + $0x388] sm:$0xff] }
  0x22   : > { %226 = vst [vmem:[%s914_s29 + $0x70] sm:$0xff] %v225_v14  ;;  %v257_v30 = vld [vmem:[%s909_s28 + $0x3c0] sm:$0xff]  ;;  %v259_v31 = vld [vmem:[%s909_s28 + $0x3c8] sm:$0xff] }
  0x23   : > { %228 = vst [vmem:[%s914_s29 + $0x78] sm:$0xff] %v227_v15  ;;  %v261_v32 = vld [vmem:[%s909_s28 + $0x400] sm:$0xff]  ;;  %v263_v33 = vld [vmem:[%s909_s28 + $0x408] sm:$0xff] }
  0x24   : > { %230 = vst [vmem:[%s914_s29 + $0x80] sm:$0xff] %v229_v16  ;;  %v265_v34 = vld [vmem:[%s909_s28 + $0x440] sm:$0xff]  ;;  %v267_v35 = vld [vmem:[%s909_s28 + $0x448] sm:$0xff] }
  0x25   : > { %232 = vst [vmem:[%s914_s29 + $0x88] sm:$0xff] %v231_v17  ;;  %v269_v36 = vld [vmem:[%s909_s28 + $0x480] sm:$0xff]  ;;  %v271_v37 = vld [vmem:[%s909_s28 + $0x488] sm:$0xff] }
  0x26   : > { %234 = vst [vmem:[%s914_s29 + $0x90] sm:$0xff] %v233_v18  ;;  %v273_v38 = vld [vmem:[%s909_s28 + $0x4c0] sm:$0xff]  ;;  %v275_v39 = vld [vmem:[%s909_s28 + $0x4c8] sm:$0xff] }
  0x27   : > { %236 = vst [vmem:[%s914_s29 + $0x98] sm:$0xff] %v235_v19  ;;  %v277_v40 = vld [vmem:[%s909_s28 + $0x500] sm:$0xff]  ;;  %v279_v41 = vld [vmem:[%s909_s28 + $0x508] sm:$0xff] }
  0x28   : > { %238 = vst [vmem:[%s914_s29 + $0xa0] sm:$0xff] %v237_v20  ;;  %v281_v42 = vld [vmem:[%s909_s28 + $0x540] sm:$0xff]  ;;  %v283_v43 = vld [vmem:[%s909_s28 + $0x548] sm:$0xff] }
  0x29   : > { %240 = vst [vmem:[%s914_s29 + $0xa8] sm:$0xff] %v239_v21  ;;  %v285_v44 = vld [vmem:[%s909_s28 + $0x580] sm:$0xff]  ;;  %v287_v45 = vld [vmem:[%s909_s28 + $0x588] sm:$0xff] }
  0x2a   : > { %242 = vst [vmem:[%s914_s29 + $0xb0] sm:$0xff] %v241_v22  ;;  %v289_v46 = vld [vmem:[%s909_s28 + $0x5c0] sm:$0xff]  ;;  %v291_v47 = vld [vmem:[%s909_s28 + $0x5c8] sm:$0xff] }
  0x2b   : > { %244 = vst [vmem:[%s914_s29 + $0xb8] sm:$0xff] %v243_v23  ;;  %v293_v48 = vld [vmem:[%s909_s28 + $0x600] sm:$0xff]  ;;  %v295_v49 = vld [vmem:[%s909_s28 + $0x608] sm:$0xff] }
  0x2c   : > { %246 = vst [vmem:[%s914_s29 + $0xc0] sm:$0xff] %v245_v24  ;;  %v297_v50 = vld [vmem:[%s909_s28 + $0x640] sm:$0xff]  ;;  %v299_v51 = vld [vmem:[%s909_s28 + $0x648] sm:$0xff] }
  0x2d   : > { %248 = vst [vmem:[%s914_s29 + $0xc8] sm:$0xff] %v247_v25  ;;  %v301_v52 = vld [vmem:[%s909_s28 + $0x680] sm:$0xff]  ;;  %v303_v53 = vld [vmem:[%s909_s28 + $0x688] sm:$0xff] }
  0x2e   : > { %250 = vst [vmem:[%s914_s29 + $0xd0] sm:$0xff] %v249_v26  ;;  %v305_v54 = vld [vmem:[%s909_s28 + $0x6c0] sm:$0xff]  ;;  %v307_v55 = vld [vmem:[%s909_s28 + $0x6c8] sm:$0xff] }
  0x2f   : > { %252 = vst [vmem:[%s914_s29 + $0xd8] sm:$0xff] %v251_v27  ;;  %v309_v56 = vld [vmem:[%s909_s28 + $0x700] sm:$0xff]  ;;  %v311_v57 = vld [vmem:[%s909_s28 + $0x708] sm:$0xff] }
  0x30   : > { %254 = vst [vmem:[%s914_s29 + $0xe0] sm:$0xff] %v253_v28  ;;  %v313_v58 = vld [vmem:[%s909_s28 + $0x740] sm:$0xff]  ;;  %v315_v59 = vld [vmem:[%s909_s28 + $0x748] sm:$0xff] }
  0x31   : > { %256 = vst [vmem:[%s914_s29 + $0xe8] sm:$0xff] %v255_v29  ;;  %v317_v60 = vld [vmem:[%s909_s28 + $0x780] sm:$0xff]  ;;  %v319_v61 = vld [vmem:[%s909_s28 + $0x788] sm:$0xff] }
  0x32   : > { %258 = vst [vmem:[%s914_s29 + $0xf0] sm:$0xff] %v257_v30  ;;  %v321_v62 = vld [vmem:[%s909_s28 + $0x7c0] sm:$0xff]  ;;  %v323_v63 = vld [vmem:[%s909_s28 + $0x7c8] sm:$0xff] }
  0x33   : > { %260 = vst [vmem:[%s914_s29 + $0xf8] sm:$0xff] %v259_v31 }
  0x34   : > { %262 = vst [vmem:[%s914_s29 + $0x100] sm:$0xff] %v261_v32 }
  0x35   : > { %264 = vst [vmem:[%s914_s29 + $0x108] sm:$0xff] %v263_v33 }
  0x36   : > { %266 = vst [vmem:[%s914_s29 + $0x110] sm:$0xff] %v265_v34 }
  0x37   : > { %268 = vst [vmem:[%s914_s29 + $0x118] sm:$0xff] %v267_v35 }
  0x38   : > { %270 = vst [vmem:[%s914_s29 + $0x120] sm:$0xff] %v269_v36 }
  0x39   : > { %272 = vst [vmem:[%s914_s29 + $0x128] sm:$0xff] %v271_v37 }
  0x3a   : > { %274 = vst [vmem:[%s914_s29 + $0x130] sm:$0xff] %v273_v38 }
  0x3b   : > { %276 = vst [vmem:[%s914_s29 + $0x138] sm:$0xff] %v275_v39 }
  0x3c   : > { %278 = vst [vmem:[%s914_s29 + $0x140] sm:$0xff] %v277_v40 }
  0x3d   : > { %280 = vst [vmem:[%s914_s29 + $0x148] sm:$0xff] %v279_v41 }
  0x3e   : > { %282 = vst [vmem:[%s914_s29 + $0x150] sm:$0xff] %v281_v42 }
  0x3f   : > { %284 = vst [vmem:[%s914_s29 + $0x158] sm:$0xff] %v283_v43 }
  0x40   : > { %286 = vst [vmem:[%s914_s29 + $0x160] sm:$0xff] %v285_v44 }
  0x41   : > { %288 = vst [vmem:[%s914_s29 + $0x168] sm:$0xff] %v287_v45 }
  0x42   : > { %290 = vst [vmem:[%s914_s29 + $0x170] sm:$0xff] %v289_v46 }
  0x43   : > { %292 = vst [vmem:[%s914_s29 + $0x178] sm:$0xff] %v291_v47 }
  0x44   : > { %294 = vst [vmem:[%s914_s29 + $0x180] sm:$0xff] %v293_v48 }
  0x45   : > { %296 = vst [vmem:[%s914_s29 + $0x188] sm:$0xff] %v295_v49 }
  0x46   : > { %298 = vst [vmem:[%s914_s29 + $0x190] sm:$0xff] %v297_v50 }
  0x47   : > { %300 = vst [vmem:[%s914_s29 + $0x198] sm:$0xff] %v299_v51 }
  0x48   : > { %302 = vst [vmem:[%s914_s29 + $0x1a0] sm:$0xff] %v301_v52 }
  0x49   : > { %304 = vst [vmem:[%s914_s29 + $0x1a8] sm:$0xff] %v303_v53 }
  0x4a   : > { %306 = vst [vmem:[%s914_s29 + $0x1b0] sm:$0xff] %v305_v54 }
  0x4b   : > { %308 = vst [vmem:[%s914_s29 + $0x1b8] sm:$0xff] %v307_v55 }
  0x4c   : > { %310 = vst [vmem:[%s914_s29 + $0x1c0] sm:$0xff] %v309_v56 }
  0x4d   : > { %312 = vst [vmem:[%s914_s29 + $0x1c8] sm:$0xff] %v311_v57 }
  0x4e   : > { %314 = vst [vmem:[%s914_s29 + $0x1d0] sm:$0xff] %v313_v58 }
  0x4f   : > { %316 = vst [vmem:[%s914_s29 + $0x1d8] sm:$0xff] %v315_v59 }
  0x50   : > { %318 = vst [vmem:[%s914_s29 + $0x1e0] sm:$0xff] %v317_v60 }
  0x51   : > { %320 = vst [vmem:[%s914_s29 + $0x1e8] sm:$0xff] %v319_v61 }
  0x52   : > { %322 = vst [vmem:[%s914_s29 + $0x1f0] sm:$0xff] %v321_v62 }
  0x53   : > { %324 = vst [vmem:[%s914_s29 + $0x1f8] sm:$0xff] %v323_v63 }
  0x54 PF: > { %p750_p8 = scmp.ge.s32.totalorder %s839_s16, 1  ;;  %p337_p9 = scmp.lt.s32.totalorder %s839_s16, 5 }
  0x56   : > { %p338_p10 = pnand %p750_p8, %p337_p9 }
  0x57   : > { %s344_s30 = sand.u32 (!%p338_p10), 1, %s823_s12   ;;  %s753_s20 = sshll.u32 (!%p338_p10), %s831_s14, 1 }
  0x58   : > { %341 = sbr.rel (%p338_p10) target bundleno = 279 (0x117), region = 51  ;;  %s751_s4 = sshll.u32 (!%p338_p10), %s344_s30, 9 }
  0x59   : > { %s1046_s5 = scalar_lea.vmem (!%p338_p10), [#allocation3], %s751_s4  ;;  %p395_p11 = scmp.lt.s32.totalorder (!%p338_p10), %s753_s20, 7 }
  0x5a   : > { %s752_s26 = sshll.u32 (!%p338_p10), %s344_s30, 5 }
  0x5b   : > { %s379_s27 = scalar_lea.vmem (!%p338_p10), [#allocation4], %s752_s26 }
  0x5d   : > { %v448_v0 = vld [vmem:[%s1046_s5 + $0xf8] sm:$0xff]  ;;  %v446_v2 = vld [vmem:[%s1046_s5 + $0xe8] sm:$0xff]  ;;  %v447_v6 = vld [vmem:[%s1046_s5 + $0xf0] sm:$0xff]  ;;  %s1163_s20 = smov (!%p395_p11, %s753_s20), 7  ;;  %s760_s12 = sshll.u32 (%p896_p6), %s831_s14, 4 }
  0x5e   : > { %v480_v1 = vld [vmem:[%s1046_s5 + $0x1f8] sm:$0xff]  ;;  %527 = vmatpush.msra.mxu2 %v448_v0  ;;  %v478_v3 = vld [vmem:[%s1046_s5 + $0x1e8] sm:$0xff]  ;;  %v479_v7 = vld [vmem:[%s1046_s5 + $0x1f0] sm:$0xff]  ;;  %481 = vmatpush.msra.mxu0 %v447_v6  ;;  %s397_s25 = scalar_lea.vmem %s1153_s2, %s1163_s20  ;;  %s614_s30 = scalar_lea.vmem (%p896_p6), %s1154_s3, %s760_s12 }
  0x5f   : > { %550 = vmatpush.msra.mxu3 %v480_v1  ;;  %v444_v4 = vld [vmem:[%s1046_s5 + $0xd8] sm:$0xff]  ;;  %v445_v8 = vld [vmem:[%s1046_s5 + $0xe0] sm:$0xff]  ;;  %504 = vmatpush.msra.mxu1 %v479_v7  ;;  %v442_v10 = vld [vmem:[%s1046_s5 + $0xc8] sm:$0xff] }
  0x60   : > { %v476_v5 = vld [vmem:[%s1046_s5 + $0x1d8] sm:$0xff]  ;;  %528 = vmatpush.msra.mxu2 %v446_v2  ;;  %v477_v9 = vld [vmem:[%s1046_s5 + $0x1e0] sm:$0xff]  ;;  %v474_v11 = vld [vmem:[%s1046_s5 + $0x1c8] sm:$0xff]  ;;  %482 = vmatpush.msra.mxu0 %v445_v8 }
  0x61   : > { %551 = vmatpush.msra.mxu3 %v478_v3  ;;  %v443_v12 = vld [vmem:[%s1046_s5 + $0xd0] sm:$0xff]  ;;  %505 = vmatpush.msra.mxu1 %v477_v9  ;;  %v440_v14 = vld [vmem:[%s1046_s5 + $0xb8] sm:$0xff]  ;;  %v441_v16 = vld [vmem:[%s1046_s5 + $0xc0] sm:$0xff] }
  0x62   : > { %529 = vmatpush.msra.mxu2 %v444_v4  ;;  %v475_v13 = vld [vmem:[%s1046_s5 + $0x1d0] sm:$0xff]  ;;  %v472_v15 = vld [vmem:[%s1046_s5 + $0x1b8] sm:$0xff]  ;;  %v473_v17 = vld [vmem:[%s1046_s5 + $0x1c0] sm:$0xff]  ;;  %483 = vmatpush.msra.mxu0 %v443_v12 }
  0x63   : > { %552 = vmatpush.msra.mxu3 %v476_v5  ;;  %506 = vmatpush.msra.mxu1 %v475_v13  ;;  %v438_v18 = vld [vmem:[%s1046_s5 + $0xa8] sm:$0xff]  ;;  %v439_v20 = vld [vmem:[%s1046_s5 + $0xb0] sm:$0xff]  ;;  %v436_v22 = vld [vmem:[%s1046_s5 + $0x98] sm:$0xff] }
  0x64   : > { %530 = vmatpush.msra.mxu2 %v442_v10  ;;  %v470_v19 = vld [vmem:[%s1046_s5 + $0x1a8] sm:$0xff]  ;;  %v471_v21 = vld [vmem:[%s1046_s5 + $0x1b0] sm:$0xff]  ;;  %484 = vmatpush.msra.mxu0 %v441_v16  ;;  %v468_v23 = vld [vmem:[%s1046_s5 + $0x198] sm:$0xff] }
  0x65   : > { %553 = vmatpush.msra.mxu3 %v474_v11  ;;  %507 = vmatpush.msra.mxu1 %v473_v17  ;;  %v437_v24 = vld [vmem:[%s1046_s5 + $0xa0] sm:$0xff]  ;;  %v434_v26 = vld [vmem:[%s1046_s5 + $0x88] sm:$0xff]  ;;  %v435_v28 = vld [vmem:[%s1046_s5 + $0x90] sm:$0xff] }
  0x66   : > { %531 = vmatpush.msra.mxu2 %v440_v14  ;;  %v469_v25 = vld [vmem:[%s1046_s5 + $0x1a0] sm:$0xff]  ;;  %485 = vmatpush.msra.mxu0 %v439_v20  ;;  %v466_v27 = vld [vmem:[%s1046_s5 + $0x188] sm:$0xff]  ;;  %v467_v29 = vld [vmem:[%s1046_s5 + $0x190] sm:$0xff] }
  0x67   : > { %554 = vmatpush.msra.mxu3 %v472_v15  ;;  %508 = vmatpush.msra.mxu1 %v471_v21  ;;  %v432_v30 = vld [vmem:[%s1046_s5 + $0x78] sm:$0xff]  ;;  %v433_v32 = vld [vmem:[%s1046_s5 + $0x80] sm:$0xff]  ;;  %v430_v34 = vld [vmem:[%s1046_s5 + $0x68] sm:$0xff] }
  0x68   : > { %532 = vmatpush.msra.mxu2 %v438_v18  ;;  %486 = vmatpush.msra.mxu0 %v437_v24  ;;  %v464_v31 = vld [vmem:[%s1046_s5 + $0x178] sm:$0xff]  ;;  %v465_v33 = vld [vmem:[%s1046_s5 + $0x180] sm:$0xff]  ;;  %v462_v35 = vld [vmem:[%s1046_s5 + $0x168] sm:$0xff] }
  0x69   : > { %555 = vmatpush.msra.mxu3 %v470_v19  ;;  %509 = vmatpush.msra.mxu1 %v469_v25  ;;  %v431_v36 = vld [vmem:[%s1046_s5 + $0x70] sm:$0xff]  ;;  %v428_v38 = vld [vmem:[%s1046_s5 + $0x58] sm:$0xff]  ;;  %v429_v40 = vld [vmem:[%s1046_s5 + $0x60] sm:$0xff] }
  0x6a   : > { %533 = vmatpush.msra.mxu2 %v436_v22  ;;  %487 = vmatpush.msra.mxu0 %v435_v28  ;;  %v463_v37 = vld [vmem:[%s1046_s5 + $0x170] sm:$0xff]  ;;  %v460_v39 = vld [vmem:[%s1046_s5 + $0x158] sm:$0xff]  ;;  %v461_v41 = vld [vmem:[%s1046_s5 + $0x160] sm:$0xff] }
  0x6b   : > { %556 = vmatpush.msra.mxu3 %v468_v23  ;;  %510 = vmatpush.msra.mxu1 %v467_v29  ;;  %v426_v42 = vld [vmem:[%s1046_s5 + $0x48] sm:$0xff]  ;;  %v427_v44 = vld [vmem:[%s1046_s5 + $0x50] sm:$0xff]  ;;  %v424_v46 = vld [vmem:[%s1046_s5 + $0x38] sm:$0xff] }
  0x6c   : > { %534 = vmatpush.msra.mxu2 %v434_v26  ;;  %488 = vmatpush.msra.mxu0 %v433_v32  ;;  %v458_v43 = vld [vmem:[%s1046_s5 + $0x148] sm:$0xff]  ;;  %v459_v45 = vld [vmem:[%s1046_s5 + $0x150] sm:$0xff]  ;;  %v456_v47 = vld [vmem:[%s1046_s5 + $0x138] sm:$0xff] }
  0x6d   : > { %557 = vmatpush.msra.mxu3 %v466_v27  ;;  %511 = vmatpush.msra.mxu1 %v465_v33  ;;  %v425_v48 = vld [vmem:[%s1046_s5 + $0x40] sm:$0xff]  ;;  %v422_v50 = vld [vmem:[%s1046_s5 + $0x28] sm:$0xff]  ;;  %v423_v52 = vld [vmem:[%s1046_s5 + $0x30] sm:$0xff] }
  0x6e   : > { %535 = vmatpush.msra.mxu2 %v432_v30  ;;  %489 = vmatpush.msra.mxu0 %v431_v36  ;;  %v457_v49 = vld [vmem:[%s1046_s5 + $0x140] sm:$0xff]  ;;  %v454_v51 = vld [vmem:[%s1046_s5 + $0x128] sm:$0xff]  ;;  %v455_v53 = vld [vmem:[%s1046_s5 + $0x130] sm:$0xff] }
  0x6f   : > { %558 = vmatpush.msra.mxu3 %v464_v31  ;;  %512 = vmatpush.msra.mxu1 %v463_v37  ;;  %v420_v54 = vld [vmem:[%s1046_s5 + $0x18] sm:$0xff]  ;;  %v421_v56 = vld [vmem:[%s1046_s5 + $0x20] sm:$0xff]  ;;  %v418_v58 = vld [vmem:[%s1046_s5 + $0x8] sm:$0xff] }
  0x70   : > { %536 = vmatpush.msra.mxu2 %v430_v34  ;;  %490 = vmatpush.msra.mxu0 %v429_v40  ;;  %v452_v55 = vld [vmem:[%s1046_s5 + $0x118] sm:$0xff]  ;;  %v453_v57 = vld [vmem:[%s1046_s5 + $0x120] sm:$0xff]  ;;  %v450_v59 = vld [vmem:[%s1046_s5 + $0x108] sm:$0xff] }
  0x71   : > { %559 = vmatpush.msra.mxu3 %v462_v35  ;;  %513 = vmatpush.msra.mxu1 %v461_v41  ;;  %v409_v60 = vld [vmem:[%s1151_s0] sm:$0xff]  ;;  %v410_v61 = vld [vmem:[%s1151_s0 + $0x8] sm:$0xff]  ;;  %v419_v62 = vld [vmem:[%s1046_s5 + $0x10] sm:$0xff] }
  0x72   : > { %537 = vmatpush.msra.mxu2 %v428_v38  ;;  %491 = vmatpush.msra.mxu0 %v427_v44  ;;  %v451_v63 = vld [vmem:[%s1046_s5 + $0x110] sm:$0xff]  ;;  %v417_v0 = vld [vmem:[%s1046_s5] sm:$0xff]  ;;  %v412_v3 = vld [vmem:[%s1151_s0 + $0x18] sm:$0xff] }
  0x73   : > { %560 = vmatpush.msra.mxu3 %v460_v39  ;;  %514 = vmatpush.msra.mxu1 %v459_v45  ;;  %v449_v1 = vld [vmem:[%s1046_s5 + $0x100] sm:$0xff]  ;;  %v411_v2 = vld [vmem:[%s1151_s0 + $0x10] sm:$0xff] }
  0x74   : > { %538 = vmatpush.msra.mxu2 %v426_v42  ;;  %492 = vmatpush.msra.mxu0 %v425_v48  ;;  %v588_v4 = vld [vmem:[%s397_s25] sm:$0x3] }
  0x75   : > { %561 = vmatpush.msra.mxu3 %v458_v43  ;;  %515 = vmatpush.msra.mxu1 %v457_v49  ;;  %v590_v5 = vperm.slane %v588_v4, 0  ;;  %v591_v9 = vperm.slane %v588_v4, 1 }
  0x76   : > { %539 = vmatpush.msra.mxu2 %v424_v46  ;;  %493 = vmatpush.msra.mxu0 %v423_v52 }
  0x77   : > { %562 = vmatpush.msra.mxu3 %v456_v47  ;;  %516 = vmatpush.msra.mxu1 %v455_v53 }
  0x78   : > { %540 = vmatpush.msra.mxu2 %v422_v50  ;;  %494 = vmatpush.msra.mxu0 %v421_v56 }
  0x79   : > { %563 = vmatpush.msra.mxu3 %v454_v51  ;;  %517 = vmatpush.msra.mxu1 %v453_v57 }
  0x7a   : > { %541 = vmatpush.msra.mxu2 %v420_v54  ;;  %495 = vmatpush.msra.mxu0 %v419_v62 }
  0x7b   : > { %564 = vmatpush.msra.mxu3 %v452_v55  ;;  %518 = vmatpush.msra.mxu1 %v451_v63 }
  0x7c   : > { %542 = vmatpush.msra.mxu2 %v418_v58  ;;  %496 = vmatpush.msra.mxu0 %v417_v0 }
  0x7d   : > { %565 = vmatpush.msra.mxu3 %v450_v59  ;;  %543 = vmatmul.f32.vlgmr.msra.gmra.mxu2 %v409_v60 }
  0x7e   : > { %566 = vmatmul.f32.vlgmr.msra.gmra.mxu3 %v410_v61  ;;  %519 = vmatpush.msra.mxu1 %v449_v1 }
  0x7f   : > { %497 = vmatmul.f32.vlgmr.msra.gmra.mxu0 %v409_v60  ;;  %520 = vmatmul.f32.vlgmr.msra.gmra.mxu1 %v410_v61 }
  0x85   : > { %546 = vmatmul.f32.gmra.mxu2 %v411_v2 }
  0x86   : > { %569 = vmatmul.f32.gmra.mxu3 %v412_v3 }
  0x87   : > { %500 = vmatmul.f32.gmra.mxu0 %v411_v2  ;;  %523 = vmatmul.f32.gmra.mxu1 %v412_v3 }
  0xfc   : > { %v498_v6 = vpop.f32.mrf.mxu0  ;;  %v521_v7 = vpop.f32.mrf.mxu1 }
  0xfd   : > { %v522_v8 = vadd.f32 %v521_v7, %v498_v6 }
  0xff   : > { %v594_v12 = vadd.f32 %v590_v5, %v522_v8 }
 0x100   : > { %v544_v10 = vpop.f32.mrf.mxu2 }
 0x101   : > { %v567_v11 = vpop.f32.mrf.mxu3  ;;  %598 = vst [vmem:[%s379_s27] sm:$0xff] %v594_v12 }
 0x102   : > { %v568_v13 = vadd.f32 %v567_v11, %v544_v10 }
 0x104   : > { %v595_v14 = vadd.f32 %v591_v9, %v568_v13  ;;  %v501_v15 = vpop.f32.mrf.mxu0  ;;  %v524_v16 = vpop.f32.mrf.mxu1 }
 0x105   : > { %v525_v17 = vadd.f32 %v524_v16, %v501_v15 }
 0x106   : > { %599 = vst [vmem:[%s379_s27 + $0x8] sm:$0xff] %v595_v14 }
 0x107   : > { %v596_v20 = vadd.f32 %v590_v5, %v525_v17 }
 0x108   : > { %v547_v18 = vpop.f32.mrf.mxu2  ;;  %v627_v23 = vld [vmem:[%s379_s27] sm:$0xff] (%p896_p6) }
 0x109   : > { %v570_v19 = vpop.f32.mrf.mxu3  ;;  %600 = vst [vmem:[%s379_s27 + $0x10] sm:$0xff] %v596_v20 }
 0x10a   : > { %v571_v21 = vadd.f32 %v570_v19, %v547_v18  ;;  %608 = sbr.rel (!%p896_p6) target bundleno = 279 (0x117), region = 67  ;;  %628 = vst [vmem:[%s614_s30] sm:$0xff] (%p896_p6), %v627_v23 }
 0x10c   : > { %v597_v22 = vadd.f32 %v591_v9, %v571_v21 }
 0x10d   : > { %v629_v24 = vld [vmem:[%s379_s27 + $0x8] sm:$0xff] (%p896_p6) }
 0x10e   : > { %601 = vst [vmem:[%s379_s27 + $0x18] sm:$0xff] %v597_v22 }
 0x10f   : > { %630 = vst [vmem:[%s614_s30 + $0x8] sm:$0xff] %v629_v24 }
 0x110   : > { %v631_v25 = vld [vmem:[%s379_s27 + $0x10] sm:$0xff] }
 0x111   : > { %632 = vst [vmem:[%s614_s30 + $0x40] sm:$0xff] %v631_v25 }
 0x115   : > { %v633_v26 = vld [vmem:[%s379_s27 + $0x18] sm:$0xff] }
 0x116   : > { %634 = vst [vmem:[%s614_s30 + $0x48] sm:$0xff] %v633_v26 }
 0x117 PF: > { %s13_s16 = sadd.s32 1, %s839_s16   ;;  %s1156_s12 = smov %s827_s13 }
 0x118   : > { %p10_p12 = scmp.ge.s32.totalorder %s13_s16, 6   ;;  %s1157_s13 = smov %s901_s22 }
 0x119   : > { %s1158_s14 = smov %s835_s15  ;;  %s1159_s15 = smov %s1161_s17 }
 0x11a   :  { %12 = sbr.rel (!%p10_p12) target bundleno = 3 (0x3), region = 127 }

// kernel: _lambda_.29
= control target key start
LH: loop header
LB: loop body
LE: loop exit
PB: predicated region body
PF: predicated region fallthrough
CT: control target
= control target key end

     0   :  { %s992_s12 = smov 0   ;;  %s994_s13 = smov 0   ;;  %s1188_s0 = inlined_call_operand.vmem [shape: f32[2048,128], index: 0, kind: input, shape index: {}]   ;;  %s1189_s1 = inlined_call_operand.vmem [shape: f32[128,128], index: 1, kind: input, shape index: {}]   ;;  %s1190_s2 = inlined_call_operand.vmem [shape: f32[1,128], index: 2, kind: input, shape index: {}]   ;;  %s1191_s3 = inlined_call_operand.vmem [shape: f32[2048,128], index: 3, kind: output, shape index: {}]  }
   0x1   :  { %s996_s14 = smov 0  }
   0x2 LB: > { %s32_s15 = sadd.s32 1, %s966_s13  ;;  %p804_p0 = scmp.ge.s32.totalorder %s970_s14, 1  ;;  %s970_s14 = sphi %s996_s14, %s13_s14   ;;  %s966_s13 = sphi %s994_s13, %s1193_s13   ;;  %s962_s12 = sphi %s992_s12, %s1192_s12  }
   0x3   : > { %p34_p1 = scmp.ge.s32.totalorder %s32_s15, 8  ;;  %p188_p2 = scmp.lt.s32.totalorder %s970_s14, 9 }
   0x5   : > { %s1195_s15 = smov (%p34_p1, %s32_s15), 0  ;;  %p189_p3 = pnand %p804_p0, %p188_p2 }
   0x6   : > { %s805_s5 = sshll.u32 (!%p189_p3), %s962_s12, 5 }
   0x7   : > { %192 = sbr.rel (%p189_p3) target bundleno = 243 (0xf3), region = 32  ;;  %p230_p4 = scmp.lt.s32.totalorder (!%p189_p3), %s805_s5, 255 }
   0xc   : > { %v374_v0 = vld [vmem:[%s1189_s1 + $0x78] sm:$0xff]  ;;  %v373_v1 = vld [vmem:[%s1189_s1 + $0x70] sm:$0xff]  ;;  %v372_v2 = vld [vmem:[%s1189_s1 + $0x68] sm:$0xff]  ;;  %s1197_s5 = smov (!%p230_p4, %s805_s5), 255 }
   0xd   : > { %812 = vmatpush.msra.mxu2 %v374_v0  ;;  %813 = vmatpush.msra.mxu3 %v374_v0  ;;  %v371_v3 = vld [vmem:[%s1189_s1 + $0x60] sm:$0xff]  ;;  %v370_v4 = vld [vmem:[%s1189_s1 + $0x58] sm:$0xff]  ;;  %v369_v5 = vld [vmem:[%s1189_s1 + $0x50] sm:$0xff]  ;;  %s806_s19 = sshll.u32 %s1197_s5, 3 }
   0xe   : > { %375 = vmatpush.msra.mxu0 %v374_v0  ;;  %811 = vmatpush.msra.mxu1 %v374_v0  ;;  %v368_v6 = vld [vmem:[%s1189_s1 + $0x48] sm:$0xff]  ;;  %v367_v7 = vld [vmem:[%s1189_s1 + $0x40] sm:$0xff]  ;;  %v366_v8 = vld [vmem:[%s1189_s1 + $0x38] sm:$0xff]  ;;  %s1066_s26 = scalar_lea.vmem %s1188_s0, %s806_s19  ;;  %s1117_s7 = scalar_lea.vmem %s1191_s3, %s806_s19 }
   0xf   : > { %815 = vmatpush.msra.mxu2 %v373_v1  ;;  %816 = vmatpush.msra.mxu3 %v373_v1  ;;  %v365_v9 = vld [vmem:[%s1189_s1 + $0x30] sm:$0xff]  ;;  %v364_v10 = vld [vmem:[%s1189_s1 + $0x28] sm:$0xff]  ;;  %v363_v11 = vld [vmem:[%s1189_s1 + $0x20] sm:$0xff] }
  0x10   : > { %376 = vmatpush.msra.mxu0 %v373_v1  ;;  %814 = vmatpush.msra.mxu1 %v373_v1  ;;  %v362_v12 = vld [vmem:[%s1189_s1 + $0x18] sm:$0xff]  ;;  %v361_v13 = vld [vmem:[%s1189_s1 + $0x10] sm:$0xff]  ;;  %v360_v14 = vld [vmem:[%s1189_s1 + $0x8] sm:$0xff] }
  0x11   : > { %818 = vmatpush.msra.mxu2 %v372_v2  ;;  %819 = vmatpush.msra.mxu3 %v372_v2  ;;  %v359_v15 = vld [vmem:[%s1189_s1] sm:$0xff]  ;;  %v312_v20 = vld [vmem:[%s1066_s26 + $0x88] sm:$0xff]  ;;  %v313_v24 = vld [vmem:[%s1066_s26 + $0x90] sm:$0xff] }
  0x12   : > { %377 = vmatpush.msra.mxu0 %v372_v2  ;;  %817 = vmatpush.msra.mxu1 %v372_v2  ;;  %v311_v16 = vld [vmem:[%s1066_s26 + $0x80] sm:$0xff]  ;;  %v320_v21 = vld [vmem:[%s1066_s26 + $0xc8] sm:$0xff]  ;;  %v321_v25 = vld [vmem:[%s1066_s26 + $0xd0] sm:$0xff] }
  0x13   : > { %821 = vmatpush.msra.mxu2 %v371_v3  ;;  %822 = vmatpush.msra.mxu3 %v371_v3  ;;  %v319_v17 = vld [vmem:[%s1066_s26 + $0xc0] sm:$0xff]  ;;  %v296_v22 = vld [vmem:[%s1066_s26 + $0x8] sm:$0xff]  ;;  %v297_v26 = vld [vmem:[%s1066_s26 + $0x10] sm:$0xff] }
  0x14   : > { %378 = vmatpush.msra.mxu0 %v371_v3  ;;  %820 = vmatpush.msra.mxu1 %v371_v3  ;;  %v295_v18 = vld [vmem:[%s1066_s26] sm:$0xff]  ;;  %v304_v23 = vld [vmem:[%s1066_s26 + $0x48] sm:$0xff]  ;;  %v305_v27 = vld [vmem:[%s1066_s26 + $0x50] sm:$0xff] }
  0x15   : > { %824 = vmatpush.msra.mxu2 %v370_v4  ;;  %825 = vmatpush.msra.mxu3 %v370_v4  ;;  %v303_v19 = vld [vmem:[%s1066_s26 + $0x40] sm:$0xff]  ;;  %v314_v28 = vld [vmem:[%s1066_s26 + $0x98] sm:$0xff]  ;;  %v316_v36 = vld [vmem:[%s1066_s26 + $0xa8] sm:$0xff] }
  0x16   : > { %379 = vmatpush.msra.mxu0 %v370_v4  ;;  %823 = vmatpush.msra.mxu1 %v370_v4  ;;  %v322_v29 = vld [vmem:[%s1066_s26 + $0xd8] sm:$0xff]  ;;  %v315_v32 = vld [vmem:[%s1066_s26 + $0xa0] sm:$0xff]  ;;  %v324_v37 = vld [vmem:[%s1066_s26 + $0xe8] sm:$0xff] }
  0x17   : > { %827 = vmatpush.msra.mxu2 %v369_v5  ;;  %828 = vmatpush.msra.mxu3 %v369_v5  ;;  %v298_v30 = vld [vmem:[%s1066_s26 + $0x18] sm:$0xff]  ;;  %v323_v33 = vld [vmem:[%s1066_s26 + $0xe0] sm:$0xff]  ;;  %v300_v38 = vld [vmem:[%s1066_s26 + $0x28] sm:$0xff] }
  0x18   : > { %380 = vmatpush.msra.mxu0 %v369_v5  ;;  %826 = vmatpush.msra.mxu1 %v369_v5  ;;  %v306_v31 = vld [vmem:[%s1066_s26 + $0x58] sm:$0xff]  ;;  %v299_v34 = vld [vmem:[%s1066_s26 + $0x20] sm:$0xff]  ;;  %v308_v39 = vld [vmem:[%s1066_s26 + $0x68] sm:$0xff] }
  0x19   : > { %830 = vmatpush.msra.mxu2 %v368_v6  ;;  %831 = vmatpush.msra.mxu3 %v368_v6  ;;  %v307_v35 = vld [vmem:[%s1066_s26 + $0x60] sm:$0xff]  ;;  %v317_v40 = vld [vmem:[%s1066_s26 + $0xb0] sm:$0xff]  ;;  %v318_v44 = vld [vmem:[%s1066_s26 + $0xb8] sm:$0xff] }
  0x1a   : > { %381 = vmatpush.msra.mxu0 %v368_v6  ;;  %829 = vmatpush.msra.mxu1 %v368_v6  ;;  %v325_v41 = vld [vmem:[%s1066_s26 + $0xf0] sm:$0xff]  ;;  %v326_v45 = vld [vmem:[%s1066_s26 + $0xf8] sm:$0xff]  ;;  %v1106_v48 = vld [vmem:[%s1190_s2] ss:$0 sm:$0xff] }
  0x1b   : > { %833 = vmatpush.msra.mxu2 %v367_v7  ;;  %834 = vmatpush.msra.mxu3 %v367_v7  ;;  %v301_v42 = vld [vmem:[%s1066_s26 + $0x30] sm:$0xff]  ;;  %v302_v46 = vld [vmem:[%s1066_s26 + $0x38] sm:$0xff] }
  0x1c   : > { %382 = vmatpush.msra.mxu0 %v367_v7  ;;  %832 = vmatpush.msra.mxu1 %v367_v7  ;;  %v309_v43 = vld [vmem:[%s1066_s26 + $0x70] sm:$0xff]  ;;  %v310_v47 = vld [vmem:[%s1066_s26 + $0x78] sm:$0xff] }
  0x1d   : > { %836 = vmatpush.msra.mxu2 %v366_v8  ;;  %837 = vmatpush.msra.mxu3 %v366_v8 }
  0x1e   : > { %383 = vmatpush.msra.mxu0 %v366_v8  ;;  %835 = vmatpush.msra.mxu1 %v366_v8 }
  0x1f   : > { %839 = vmatpush.msra.mxu2 %v365_v9  ;;  %840 = vmatpush.msra.mxu3 %v365_v9 }
  0x20   : > { %384 = vmatpush.msra.mxu0 %v365_v9  ;;  %838 = vmatpush.msra.mxu1 %v365_v9 }
  0x21   : > { %842 = vmatpush.msra.mxu2 %v364_v10  ;;  %843 = vmatpush.msra.mxu3 %v364_v10 }
  0x22   : > { %385 = vmatpush.msra.mxu0 %v364_v10  ;;  %841 = vmatpush.msra.mxu1 %v364_v10 }
  0x23   : > { %845 = vmatpush.msra.mxu2 %v363_v11  ;;  %846 = vmatpush.msra.mxu3 %v363_v11 }
  0x24   : > { %386 = vmatpush.msra.mxu0 %v363_v11  ;;  %844 = vmatpush.msra.mxu1 %v363_v11 }
  0x25   : > { %848 = vmatpush.msra.mxu2 %v362_v12  ;;  %849 = vmatpush.msra.mxu3 %v362_v12 }
  0x26   : > { %387 = vmatpush.msra.mxu0 %v362_v12  ;;  %847 = vmatpush.msra.mxu1 %v362_v12 }
  0x27   : > { %851 = vmatpush.msra.mxu2 %v361_v13  ;;  %852 = vmatpush.msra.mxu3 %v361_v13 }
  0x28   : > { %388 = vmatpush.msra.mxu0 %v361_v13  ;;  %850 = vmatpush.msra.mxu1 %v361_v13 }
  0x29   : > { %854 = vmatpush.msra.mxu2 %v360_v14  ;;  %855 = vmatpush.msra.mxu3 %v360_v14 }
  0x2a   : > { %389 = vmatpush.msra.mxu0 %v360_v14  ;;  %853 = vmatpush.msra.mxu1 %v360_v14 }
  0x2b   : > { %857 = vmatpush.msra.mxu2 %v359_v15  ;;  %858 = vmatpush.msra.mxu3 %v359_v15 }
  0x2c   : > { %439 = vmatmul.f32.vlgmr.msra.gmra.mxu2 %v311_v16  ;;  %463 = vmatmul.f32.vlgmr.msra.gmra.mxu3 %v319_v17 }
  0x2d   : > { %390 = vmatpush.msra.mxu0 %v359_v15  ;;  %856 = vmatpush.msra.mxu1 %v359_v15 }
  0x2e   : > { %391 = vmatmul.f32.vlgmr.msra.gmra.mxu0 %v295_v18  ;;  %415 = vmatmul.f32.vlgmr.msra.gmra.mxu1 %v303_v19 }
  0x34   : > { %442 = vmatmul.f32.gmra.mxu2 %v312_v20  ;;  %466 = vmatmul.f32.gmra.mxu3 %v320_v21 }
  0x36   : > { %394 = vmatmul.f32.gmra.mxu0 %v296_v22  ;;  %418 = vmatmul.f32.gmra.mxu1 %v304_v23 }
  0x3c   : > { %445 = vmatmul.f32.gmra.mxu2 %v313_v24  ;;  %469 = vmatmul.f32.gmra.mxu3 %v321_v25 }
  0x3e   : > { %397 = vmatmul.f32.gmra.mxu0 %v297_v26  ;;  %421 = vmatmul.f32.gmra.mxu1 %v305_v27 }
  0x44   : > { %448 = vmatmul.f32.gmra.mxu2 %v314_v28  ;;  %472 = vmatmul.f32.gmra.mxu3 %v322_v29 }
  0x46   : > { %400 = vmatmul.f32.gmra.mxu0 %v298_v30  ;;  %424 = vmatmul.f32.gmra.mxu1 %v306_v31 }
  0x4c   : > { %451 = vmatmul.f32.gmra.mxu2 %v315_v32  ;;  %475 = vmatmul.f32.gmra.mxu3 %v323_v33 }
  0x4e   : > { %403 = vmatmul.f32.gmra.mxu0 %v299_v34  ;;  %427 = vmatmul.f32.gmra.mxu1 %v307_v35 }
  0x54   : > { %454 = vmatmul.f32.gmra.mxu2 %v316_v36  ;;  %478 = vmatmul.f32.gmra.mxu3 %v324_v37 }
  0x56   : > { %406 = vmatmul.f32.gmra.mxu0 %v300_v38  ;;  %430 = vmatmul.f32.gmra.mxu1 %v308_v39 }
  0x5c   : > { %457 = vmatmul.f32.gmra.mxu2 %v317_v40  ;;  %481 = vmatmul.f32.gmra.mxu3 %v325_v41 }
  0x5e   : > { %409 = vmatmul.f32.gmra.mxu0 %v301_v42  ;;  %433 = vmatmul.f32.gmra.mxu1 %v309_v43 }
  0x64   : > { %460 = vmatmul.f32.gmra.mxu2 %v318_v44  ;;  %484 = vmatmul.f32.gmra.mxu3 %v326_v45 }
  0x66   : > { %412 = vmatmul.f32.gmra.mxu0 %v302_v46  ;;  %436 = vmatmul.f32.gmra.mxu1 %v310_v47 }
  0xab   : > { %v392_v49 = vpop.f32.mrf.mxu0  ;;  %v416_v50 = vpop.f32.mrf.mxu1 }
  0xac   : > { %v591_v51 = vadd.f32 %v1106_v48, %v392_v49  ;;  %v599_v52 = vadd.f32 %v1106_v48, %v416_v50 }
  0xae   : > { %884 = vtanh.f32 %v591_v51 }
  0xaf   : > { %886 = vtanh.f32 %v599_v52  ;;  %v440_v53 = vpop.f32.mrf.mxu2  ;;  %v464_v54 = vpop.f32.mrf.mxu3 }
  0xb0   : > { %v607_v55 = vadd.f32 %v1106_v48, %v440_v53  ;;  %v615_v56 = vadd.f32 %v1106_v48, %v464_v54 }
  0xb2   : > { %888 = vtanh.f32 %v607_v55 }
  0xb3   : > { %890 = vtanh.f32 %v615_v56  ;;  %v395_v57 = vpop.f32.mrf.mxu0  ;;  %v419_v58 = vpop.f32.mrf.mxu1 }
  0xb4   : > { %v885_v59 = vpop.eup %884  ;;  %v592_v60 = vadd.f32 %v1106_v48, %v395_v57  ;;  %v600_v61 = vadd.f32 %v1106_v48, %v419_v58 }
  0xb5   : > { %v887_v62 = vpop.eup %886  ;;  %655 = vst [vmem:[%s1117_s7] sm:$0xff] %v885_v59 }
  0xb6   : > { %663 = vst [vmem:[%s1117_s7 + $0x40] sm:$0xff] %v887_v62  ;;  %892 = vtanh.f32 %v592_v60 }
  0xb7   : > { %894 = vtanh.f32 %v600_v61  ;;  %v443_v63 = vpop.f32.mrf.mxu2  ;;  %v467_v0 = vpop.f32.mrf.mxu3 }
  0xb8   : > { %v889_v1 = vpop.eup %888  ;;  %v608_v2 = vadd.f32 %v1106_v48, %v443_v63  ;;  %v616_v3 = vadd.f32 %v1106_v48, %v467_v0 }
  0xb9   : > { %v891_v4 = vpop.eup %890  ;;  %671 = vst [vmem:[%s1117_s7 + $0x80] sm:$0xff] %v889_v1 }
  0xba   : > { %679 = vst [vmem:[%s1117_s7 + $0xc0] sm:$0xff] %v891_v4  ;;  %896 = vtanh.f32 %v608_v2 }
  0xbb   : > { %898 = vtanh.f32 %v616_v3  ;;  %v398_v5 = vpop.f32.mrf.mxu0  ;;  %v422_v6 = vpop.f32.mrf.mxu1 }
  0xbc   : > { %v893_v7 = vpop.eup %892  ;;  %v593_v8 = vadd.f32 %v1106_v48, %v398_v5  ;;  %v601_v9 = vadd.f32 %v1106_v48, %v422_v6 }
  0xbd   : > { %v895_v10 = vpop.eup %894  ;;  %656 = vst [vmem:[%s1117_s7 + $0x8] sm:$0xff] %v893_v7 }
  0xbe   : > { %664 = vst [vmem:[%s1117_s7 + $0x48] sm:$0xff] %v895_v10  ;;  %900 = vtanh.f32 %v593_v8 }
  0xbf   : > { %902 = vtanh.f32 %v601_v9  ;;  %v446_v11 = vpop.f32.mrf.mxu2  ;;  %v470_v12 = vpop.f32.mrf.mxu3 }
  0xc0   : > { %v897_v13 = vpop.eup %896  ;;  %v609_v14 = vadd.f32 %v1106_v48, %v446_v11  ;;  %v617_v15 = vadd.f32 %v1106_v48, %v470_v12 }
  0xc1   : > { %v899_v16 = vpop.eup %898  ;;  %672 = vst [vmem:[%s1117_s7 + $0x88] sm:$0xff] %v897_v13 }
  0xc2   : > { %680 = vst [vmem:[%s1117_s7 + $0xc8] sm:$0xff] %v899_v16  ;;  %904 = vtanh.f32 %v609_v14 }
  0xc3   : > { %906 = vtanh.f32 %v617_v15  ;;  %v401_v17 = vpop.f32.mrf.mxu0  ;;  %v425_v18 = vpop.f32.mrf.mxu1 }
  0xc4   : > { %v901_v19 = vpop.eup %900  ;;  %v594_v20 = vadd.f32 %v1106_v48, %v401_v17  ;;  %v602_v21 = vadd.f32 %v1106_v48, %v425_v18 }
  0xc5   : > { %v903_v22 = vpop.eup %902  ;;  %657 = vst [vmem:[%s1117_s7 + $0x10] sm:$0xff] %v901_v19 }
  0xc6   : > { %665 = vst [vmem:[%s1117_s7 + $0x50] sm:$0xff] %v903_v22  ;;  %908 = vtanh.f32 %v594_v20 }
  0xc7   : > { %910 = vtanh.f32 %v602_v21  ;;  %v449_v23 = vpop.f32.mrf.mxu2  ;;  %v473_v24 = vpop.f32.mrf.mxu3 }
  0xc8   : > { %v905_v25 = vpop.eup %904  ;;  %v610_v26 = vadd.f32 %v1106_v48, %v449_v23  ;;  %v618_v27 = vadd.f32 %v1106_v48, %v473_v24 }
  0xc9   : > { %v907_v28 = vpop.eup %906  ;;  %673 = vst [vmem:[%s1117_s7 + $0x90] sm:$0xff] %v905_v25 }
  0xca   : > { %681 = vst [vmem:[%s1117_s7 + $0xd0] sm:$0xff] %v907_v28  ;;  %912 = vtanh.f32 %v610_v26 }
  0xcb   : > { %914 = vtanh.f32 %v618_v27  ;;  %v404_v29 = vpop.f32.mrf.mxu0  ;;  %v428_v30 = vpop.f32.mrf.mxu1 }
  0xcc   : > { %v909_v31 = vpop.eup %908  ;;  %v595_v32 = vadd.f32 %v1106_v48, %v404_v29  ;;  %v603_v33 = vadd.f32 %v1106_v48, %v428_v30 }
  0xcd   : > { %v911_v34 = vpop.eup %910  ;;  %658 = vst [vmem:[%s1117_s7 + $0x18] sm:$0xff] %v909_v31 }
  0xce   : > { %666 = vst [vmem:[%s1117_s7 + $0x58] sm:$0xff] %v911_v34  ;;  %916 = vtanh.f32 %v595_v32 }
  0xcf   : > { %918 = vtanh.f32 %v603_v33  ;;  %v452_v35 = vpop.f32.mrf.mxu2  ;;  %v476_v36 = vpop.f32.mrf.mxu3 }
  0xd0   : > { %v913_v37 = vpop.eup %912  ;;  %v611_v38 = vadd.f32 %v1106_v48, %v452_v35  ;;  %v619_v39 = vadd.f32 %v1106_v48, %v476_v36 }
  0xd1   : > { %v915_v40 = vpop.eup %914  ;;  %674 = vst [vmem:[%s1117_s7 + $0x98] sm:$0xff] %v913_v37 }
  0xd2   : > { %682 = vst [vmem:[%s1117_s7 + $0xd8] sm:$0xff] %v915_v40  ;;  %920 = vtanh.f32 %v611_v38 }
  0xd3   : > { %922 = vtanh.f32 %v619_v39  ;;  %v407_v41 = vpop.f32.mrf.mxu0  ;;  %v431_v42 = vpop.f32.mrf.mxu1 }
  0xd4   : > { %v917_v43 = vpop.eup %916  ;;  %v596_v44 = vadd.f32 %v1106_v48, %v407_v41  ;;  %v604_v45 = vadd.f32 %v1106_v48, %v431_v42 }
  0xd5   : > { %v919_v46 = vpop.eup %918  ;;  %659 = vst [vmem:[%s1117_s7 + $0x20] sm:$0xff] %v917_v43 }
  0xd6   : > { %667 = vst [vmem:[%s1117_s7 + $0x60] sm:$0xff] %v919_v46  ;;  %924 = vtanh.f32 %v596_v44 }
  0xd7   : > { %926 = vtanh.f32 %v604_v45  ;;  %v455_v47 = vpop.f32.mrf.mxu2  ;;  %v479_v49 = vpop.f32.mrf.mxu3 }
  0xd8   : > { %v921_v50 = vpop.eup %920  ;;  %v612_v51 = vadd.f32 %v1106_v48, %v455_v47  ;;  %v620_v52 = vadd.f32 %v1106_v48, %v479_v49 }
  0xd9   : > { %v923_v53 = vpop.eup %922  ;;  %675 = vst [vmem:[%s1117_s7 + $0xa0] sm:$0xff] %v921_v50 }
  0xda   : > { %683 = vst [vmem:[%s1117_s7 + $0xe0] sm:$0xff] %v923_v53  ;;  %928 = vtanh.f32 %v612_v51 }
  0xdb   : > { %930 = vtanh.f32 %v620_v52  ;;  %v410_v54 = vpop.f32.mrf.mxu0  ;;  %v434_v55 = vpop.f32.mrf.mxu1 }
  0xdc   : > { %v925_v56 = vpop.eup %924  ;;  %v597_v57 = vadd.f32 %v1106_v48, %v410_v54  ;;  %v605_v58 = vadd.f32 %v1106_v48, %v434_v55 }
  0xdd   : > { %v927_v59 = vpop.eup %926  ;;  %660 = vst [vmem:[%s1117_s7 + $0x28] sm:$0xff] %v925_v56 }
  0xde   : > { %668 = vst [vmem:[%s1117_s7 + $0x68] sm:$0xff] %v927_v59  ;;  %932 = vtanh.f32 %v597_v57 }
  0xdf   : > { %934 = vtanh.f32 %v605_v58  ;;  %v458_v60 = vpop.f32.mrf.mxu2  ;;  %v482_v61 = vpop.f32.mrf.mxu3 }
  0xe0   : > { %v929_v62 = vpop.eup %928  ;;  %v613_v63 = vadd.f32 %v1106_v48, %v458_v60  ;;  %v621_v0 = vadd.f32 %v1106_v48, %v482_v61 }
  0xe1   : > { %v931_v1 = vpop.eup %930  ;;  %676 = vst [vmem:[%s1117_s7 + $0xa8] sm:$0xff] %v929_v62 }
  0xe2   : > { %684 = vst [vmem:[%s1117_s7 + $0xe8] sm:$0xff] %v931_v1  ;;  %936 = vtanh.f32 %v613_v63 }
  0xe3   : > { %938 = vtanh.f32 %v621_v0  ;;  %v413_v2 = vpop.f32.mrf.mxu0  ;;  %v437_v3 = vpop.f32.mrf.mxu1 }
  0xe4   : > { %v933_v4 = vpop.eup %932  ;;  %v598_v5 = vadd.f32 %v1106_v48, %v413_v2  ;;  %v606_v6 = vadd.f32 %v1106_v48, %v437_v3 }
  0xe5   : > { %v935_v7 = vpop.eup %934  ;;  %661 = vst [vmem:[%s1117_s7 + $0x30] sm:$0xff] %v933_v4 }
  0xe6   : > { %669 = vst [vmem:[%s1117_s7 + $0x70] sm:$0xff] %v935_v7  ;;  %940 = vtanh.f32 %v598_v5 }
  0xe7   : > { %942 = vtanh.f32 %v606_v6  ;;  %v461_v8 = vpop.f32.mrf.mxu2  ;;  %v485_v9 = vpop.f32.mrf.mxu3 }
  0xe8   : > { %v937_v10 = vpop.eup %936  ;;  %v614_v11 = vadd.f32 %v1106_v48, %v461_v8  ;;  %v622_v12 = vadd.f32 %v1106_v48, %v485_v9 }
  0xe9   : > { %v939_v13 = vpop.eup %938  ;;  %677 = vst [vmem:[%s1117_s7 + $0xb0] sm:$0xff] %v937_v10 }
  0xea   : > { %685 = vst [vmem:[%s1117_s7 + $0xf0] sm:$0xff] %v939_v13  ;;  %944 = vtanh.f32 %v614_v11 }
  0xeb   : > { %946 = vtanh.f32 %v622_v12 }
  0xec   : > { %v941_v14 = vpop.eup %940 }
  0xed   : > { %v943_v15 = vpop.eup %942  ;;  %662 = vst [vmem:[%s1117_s7 + $0x38] sm:$0xff] %v941_v14 }
  0xee   : > { %670 = vst [vmem:[%s1117_s7 + $0x78] sm:$0xff] %v943_v15 }
  0xf0   : > { %v945_v16 = vpop.eup %944 }
  0xf1   : > { %v947_v17 = vpop.eup %946  ;;  %678 = vst [vmem:[%s1117_s7 + $0xb8] sm:$0xff] %v945_v16 }
  0xf2   : > { %686 = vst [vmem:[%s1117_s7 + $0xf8] sm:$0xff] %v947_v17 }
  0xf3 PF: > { %s13_s14 = sadd.s32 1, %s970_s14   ;;  %s1192_s12 = smov %s966_s13 }
  0xf4   : > { %p10_p5 = scmp.ge.s32.totalorder %s13_s14, 10   ;;  %s1193_s13 = smov %s1195_s15 }
  0xf6   :  { %12 = sbr.rel (!%p10_p5) target bundleno = 2 (0x2), region = 76 }

</bundles_post_ra>
